<compile_context>
chip_gen: v5e
topology: v5e:2x2
jax: 0.10.0
libtpu: 0.0.40
codegen_flags: <defaults>
</compile_context>

<pallas_src>
import functools

import jax
import jax.numpy as jnp
from jax.experimental import pallas as pl
from jax.experimental.pallas import tpu as pltpu


# -----------------------------------------------------------------------------
# Fused Pallas kernel: full SEGNN forward (embedding -> N layers -> heads -> pool)
# -----------------------------------------------------------------------------
def _segnn_fused_kernel(
    # graph data
    x1h_ref,    # (n, C)  one-hot node features, f32
    dist_ref,   # (n, n)  squared pairwise distances, f32 (reference uses rel_pos^2.sum)
    valid_ref,  # (n, n)  edge mask (no self-edge, same graph, dist < cutoff), f32
    pool_ref,   # (G, n)  row-normalised mean-pool matrix, f32
    # embedding weights
    we1_ref, be1_ref, we2_ref, be2_ref,
    # per-layer stacked weights (leading dim = layer index)
    wm1i_ref,   # (L, H, H) message MLP-1, x_i (target) block, bf16
    wm1j_ref,   # (L, H, H) message MLP-1, x_j (source) block, bf16
    wm1d_ref,   # (L, 1, H) message MLP-1, squared-distance row, f32 (used elementwise)
    bm1_ref,    # (L, 1, H) f32
    wm2_ref, bm2_ref,              # (L, H, H) bf16 / (L, 1, H) f32
    wu1x_ref, wu1a_ref, bu1_ref,   # update MLP-1 split: x block, agg block, bias
    wu2_ref, bu2_ref,
    # head weights
    wp1_ref, bp1_ref, wp2_ref, bp2_ref,   # pre-pool head
    wq1_ref, bq1_ref, wq2_ref, bq2_ref,   # post-pool head
    # output
    o_ref,      # (G, out_features) f32
    *, n_layers):
    f32, bf16 = jnp.float32, jnp.bfloat16

    def silu(v):                              # gate math kept in f32 (v5e has no bf16 VPU/EUP)
        return v * jax.nn.sigmoid(v)

    def lin(a, w, b=None, act=False):
        # bf16 MXU inputs, f32 accumulation.
        out = jnp.dot(a.astype(bf16), w, preferred_element_type=f32)
        if b is not None:
            out = out + b
        return silu(out) if act else out

    n = dist_ref.shape[0]
    h = we1_ref.shape[1]

    dist = dist_ref[...]
    valid = valid_ref[...]

    # ---- embedding: SwishGate linear, then plain linear ----
    x = lin(x1h_ref[...], we1_ref[...], be1_ref[...], act=True)
    x = lin(x, we2_ref[...], be2_ref[...])

    # ---- SEGNN message-passing layers (unrolled; everything stays in VMEM/vregs) ----
    for l in range(n_layers):
        # message MLP-1 without materialising cat(x_i, x_j, d):
        #   m1[i, j, :] = silu(x_i @ W_i + x_j @ W_j + d_ij * w_d + b)   (i = target, j = source)
        p_i = lin(x, wm1i_ref[l])                              # (n, H)
        p_j = lin(x, wm1j_ref[l])                              # (n, H)
        w_d = wm1d_ref[l]                                      # (1, H)
        m1 = silu(p_i[:, None, :] + p_j[None, :, :]
                  + dist[:, :, None] * w_d[None, :, :]
                  + bm1_ref[l][None, :, :])                    # (n, n, H)
        # message MLP-2 (SwishGate) as one (n^2, H) x (H, H) MXU matmul
        m2 = lin(m1.reshape(n * n, h), wm2_ref[l], bm2_ref[l], act=True)
        # mask invalid/self/cross-graph edges (exact zeros), scatter-add over sources
        m2 = m2.reshape(n, n, h) * valid[:, :, None]
        agg = jnp.sum(m2, axis=1)                              # (n, H)
        # update MLP without materialising cat(x, agg)
        u = silu(lin(x, wu1x_ref[l]) + lin(agg, wu1a_ref[l]) + bu1_ref[l])
        u = lin(u, wu2_ref[l], bu2_ref[l])
        x = x + u                                              # residual, as in reference

    # ---- head: pre-pool ----
    x = lin(x, wp1_ref[...], bp1_ref[...], act=True)
    x = lin(x, wp2_ref[...], bp2_ref[...])

    # ---- global mean pool (rows of pool matrix pre-normalised; f32 to keep means exact) ----
    pooled = jnp.dot(pool_ref[...], x, preferred_element_type=f32)    # (G, H)

    # ---- head: post-pool ----
    o = lin(pooled, wq1_ref[...], bq1_ref[...], act=True)
    o = lin(o, wq2_ref[...], bq2_ref[...])
    o_ref[...] = o.astype(o_ref.dtype)


# -----------------------------------------------------------------------------
# Parameters (shapes follow SEGNNModel.__init__ at lmax=0)
# -----------------------------------------------------------------------------
def _dense_params(key, fan_in, fan_out):
    kw, kb = jax.random.split(key)
    w = jax.random.normal(kw, (fan_in, fan_out), jnp.float32) / jnp.sqrt(float(fan_in))
    b = 0.01 * jax.random.normal(kb, (fan_out,), jnp.float32)
    return {"w": w, "b": b}


def init_segnn_params(key, input_features, output_features, hidden_features, n_layers):
    keys = jax.random.split(key, 8 + 4 * n_layers)
    H = hidden_features
    params = {
        "emb1": _dense_params(keys[0], input_features, H),   # embedding_layer_1 (SwishGate)
        "emb2": _dense_params(keys[1], H, H),                 # embedding_layer_2
        "layers": [],
        "pre1": _dense_params(keys[2], H, H),                 # head_pre_pool_layer_1 (SwishGate)
        "pre2": _dense_params(keys[3], H, H),                 # head_pre_pool_layer_2
        "post1": _dense_params(keys[4], H, H),                # head_post_pool_layer_1 (SwishGate)
        "post2": _dense_params(keys[5], H, output_features),  # head_post_pool_layer_2
    }
    for i in range(n_layers):
        k = keys[8 + 4 * i: 8 + 4 * (i + 1)]
        params["layers"].append({
            "msg1": _dense_params(k[0], 2 * H + 1, H),  # message_layer_1: cat(x_i, x_j, d)
            "msg2": _dense_params(k[1], H, H),          # message_layer_2
            "upd1": _dense_params(k[2], 2 * H, H),      # update_layer_1: cat(x, agg)
            "upd2": _dense_params(k[3], H, H),          # update_layer_2
        })
    return params


def prepare_segnn_params(params):
    """One-time (NOT per-forward) split / stack / cast of weights into kernel layout."""
    H = params["emb1"]["w"].shape[1]
    bf16, f32 = jnp.bfloat16, jnp.float32

    def w(p):
        return p["w"].astype(bf16)

    def b(p):
        return p["b"].reshape(1, -1).astype(f32)

    L = params["layers"]
    stack = lambda xs: jnp.stack(xs, axis=0)
    return {
        "we1": w(params["emb1"]), "be1": b(params["emb1"]),
        "we2": w(params["emb2"]), "be2": b(params["emb2"]),
        # message MLP-1 split: rows [0:H] -> x_i (target), [H:2H] -> x_j (source), [2H] -> d^2
        "wm1i": stack([lp["msg1"]["w"][:H].astype(bf16) for lp in L]),
        "wm1j": stack([lp["msg1"]["w"][H:2 * H].astype(bf16) for lp in L]),
        "wm1d": stack([lp["msg1"]["w"][2 * H:2 * H + 1].astype(f32) for lp in L]),
        "bm1": stack([lp["msg1"]["b"].reshape(1, -1).astype(f32) for lp in L]),
        "wm2": stack([lp["msg2"]["w"].astype(bf16) for lp in L]),
        "bm2": stack([lp["msg2"]["b"].reshape(1, -1).astype(f32) for lp in L]),
        # update MLP-1 split: rows [0:H] -> x, [H:2H] -> aggregated message
        "wu1x": stack([lp["upd1"]["w"][:H].astype(bf16) for lp in L]),
        "wu1a": stack([lp["upd1"]["w"][H:].astype(bf16) for lp in L]),
        "bu1": stack([lp["upd1"]["b"].reshape(1, -1).astype(f32) for lp in L]),
        "wu2": stack([lp["upd2"]["w"].astype(bf16) for lp in L]),
        "bu2": stack([lp["upd2"]["b"].reshape(1, -1).astype(f32) for lp in L]),
        "wp1": w(params["pre1"]), "bp1": b(params["pre1"]),
        "wp2": w(params["pre2"]), "bp2": b(params["pre2"]),
        "wq1": w(params["post1"]), "bq1": b(params["post1"]),
        "wq2": w(params["post2"]), "bq2": b(params["post2"]),
    }


_WEIGHT_ORDER = (
    "we1", "be1", "we2", "be2",
    "wm1i", "wm1j", "wm1d", "bm1", "wm2", "bm2",
    "wu1x", "wu1a", "bu1", "wu2", "bu2",
    "wp1", "bp1", "wp2", "bp2", "wq1", "bq1", "wq2", "bq2",
)


# -----------------------------------------------------------------------------
# Forward pass
# -----------------------------------------------------------------------------
def segnn_forward(prepped, z, pos, batch, *, num_graphs, cutoff, pool="avg"):
    n = z.shape[0]
    num_classes = prepped["we1"].shape[0]
    n_layers = prepped["wm2"].shape[0]
    out_features = prepped["wq2"].shape[1]

    # --- tiny O(n^2) graph preprocessing in plain XLA (no Pallas launches, no hot loop) ---
    x1h = jax.nn.one_hot(z, num_classes, dtype=jnp.float32)            # (n, C)
    rel = pos[:, None, :] - pos[None, :, :]
    dist2 = jnp.sum(rel * rel, axis=-1)                                # squared distance (as in reference)
    same_graph = batch[:, None] == batch[None, :]
    not_self = jnp.logical_not(jnp.eye(n, dtype=bool))
    valid = (same_graph & not_self & (dist2 < cutoff * cutoff)).astype(jnp.float32)
    # TODO(synk): PyG radius_graph's max_num_neighbors=32 truncation is not replicated.
    # TODO(synk): lmax>0 spherical harmonics / Clebsch-Gordan tensor products.

    pool_mat = (batch[None, :] == jnp.arange(num_graphs)[:, None]).astype(jnp.float32)
    if pool == "avg":
        pool_mat = pool_mat / jnp.maximum(pool_mat.sum(-1, keepdims=True), 1.0)

    # Pad node count to the f32 sublane multiple (8) so in-kernel (n,n,H)<->(n^2,H)
    # reshapes are layout-preserving; padded nodes are masked out of aggregation & pooling.
    n_pad = -(-n // 8) * 8
    if n_pad != n:
        p = n_pad - n
        x1h = jnp.pad(x1h, ((0, p), (0, 0)))
        dist2 = jnp.pad(dist2, ((0, p), (0, p)))
        valid = jnp.pad(valid, ((0, p), (0, p)))
        pool_mat = jnp.pad(pool_mat, ((0, 0), (0, p)))

    args = [x1h, dist2, valid, pool_mat] + [prepped[k] for k in _WEIGHT_ORDER]
    vmem_spec = lambda: pl.BlockSpec(memory_space=pltpu.MemorySpace.VMEM)

    # Whole forward in ONE pallas_call; all tensors fit VMEM at these sizes.
    # TODO(synk): for large n, tile the (n^2, H) message work over a grid of target-node
    # blocks ('arbitrary' reduction axis + VMEM accumulator) instead of single-shot VMEM.
    out = pl.pallas_call(
        functools.partial(_segnn_fused_kernel, n_layers=n_layers),
        out_shape=jax.ShapeDtypeStruct((num_graphs, out_features), jnp.float32),
        in_specs=[vmem_spec() for _ in args],
        out_specs=vmem_spec(),
    )(*args)
    return out


# -----------------------------------------------------------------------------
if __name__ == "__main__":
    input_features = 4
    output_features = 3
    hidden_features = 32
    n_layers = 2          # N
    cutoff = 5.0
    n_nodes = 16
    num_graphs = 2

    key = jax.random.PRNGKey(0)
    kz, kp, kw = jax.random.split(key, 3)
    z = jax.random.randint(kz, (n_nodes,), 0, input_features, dtype=jnp.int32)
    pos = 2.0 * jax.random.normal(kp, (n_nodes, 3), dtype=jnp.float32)
    batch = jnp.repeat(jnp.arange(num_graphs, dtype=jnp.int32),
                       n_nodes // num_graphs)

    params = init_segnn_params(kw, input_features, output_features,
                               hidden_features, n_layers)
    prepped = prepare_segnn_params(params)   # split / stack / bf16-cast once, not per forward

    fwd = jax.jit(functools.partial(segnn_forward, num_graphs=num_graphs,
                                    cutoff=cutoff, pool="avg"))
    out = fwd(prepped, z, pos, batch)
    jax.block_until_ready(out)
    assert out.shape == (num_graphs, output_features), out.shape
    print("KERNEL_OK")
</pallas_src>

<mosaic_0001>
module attributes {stable_mosaic.version = 11 : i64} {
  func.func @_segnn_fused_kernel(%arg0: memref<16x4xf32, #tpu.memory_space<vmem>>, %arg1: memref<16x16xf32, #tpu.memory_space<vmem>>, %arg2: memref<16x16xf32, #tpu.memory_space<vmem>>, %arg3: memref<2x16xf32, #tpu.memory_space<vmem>>, %arg4: memref<4x32xbf16, #tpu.memory_space<vmem>>, %arg5: memref<1x32xf32, #tpu.memory_space<vmem>>, %arg6: memref<32x32xbf16, #tpu.memory_space<vmem>>, %arg7: memref<1x32xf32, #tpu.memory_space<vmem>>, %arg8: memref<2x32x32xbf16, #tpu.memory_space<vmem>>, %arg9: memref<2x32x32xbf16, #tpu.memory_space<vmem>>, %arg10: memref<2x1x32xf32, #tpu.memory_space<vmem>>, %arg11: memref<2x1x32xf32, #tpu.memory_space<vmem>>, %arg12: memref<2x32x32xbf16, #tpu.memory_space<vmem>>, %arg13: memref<2x1x32xf32, #tpu.memory_space<vmem>>, %arg14: memref<2x32x32xbf16, #tpu.memory_space<vmem>>, %arg15: memref<2x32x32xbf16, #tpu.memory_space<vmem>>, %arg16: memref<2x1x32xf32, #tpu.memory_space<vmem>>, %arg17: memref<2x32x32xbf16, #tpu.memory_space<vmem>>, %arg18: memref<2x1x32xf32, #tpu.memory_space<vmem>>, %arg19: memref<32x32xbf16, #tpu.memory_space<vmem>>, %arg20: memref<1x32xf32, #tpu.memory_space<vmem>>, %arg21: memref<32x32xbf16, #tpu.memory_space<vmem>>, %arg22: memref<1x32xf32, #tpu.memory_space<vmem>>, %arg23: memref<32x32xbf16, #tpu.memory_space<vmem>>, %arg24: memref<1x32xf32, #tpu.memory_space<vmem>>, %arg25: memref<32x3xbf16, #tpu.memory_space<vmem>>, %arg26: memref<1x3xf32, #tpu.memory_space<vmem>>, %arg27: memref<2x3xf32, #tpu.memory_space<vmem>>) attributes {dimension_semantics = [], scalar_prefetch = 0 : i64, scratch_operands = 0 : i64, tpu.core_type = #tpu.core_type<tc>} {
    %c0 = arith.constant 0 : index
    %c0_0 = arith.constant 0 : index
    %0 = vector.load %arg1[%c0, %c0_0] : memref<16x16xf32, #tpu.memory_space<vmem>>, vector<16x16xf32>
    %c0_1 = arith.constant 0 : index
    %c0_2 = arith.constant 0 : index
    %1 = vector.load %arg2[%c0_1, %c0_2] : memref<16x16xf32, #tpu.memory_space<vmem>>, vector<16x16xf32>
    %c0_3 = arith.constant 0 : index
    %c0_4 = arith.constant 0 : index
    %2 = vector.load %arg0[%c0_3, %c0_4] : memref<16x4xf32, #tpu.memory_space<vmem>>, vector<16x4xf32>
    %c0_5 = arith.constant 0 : index
    %c0_6 = arith.constant 0 : index
    %3 = vector.load %arg4[%c0_5, %c0_6] : memref<4x32xbf16, #tpu.memory_space<vmem>>, vector<4x32xbf16>
    %c0_7 = arith.constant 0 : index
    %c0_8 = arith.constant 0 : index
    %4 = vector.load %arg5[%c0_7, %c0_8] : memref<1x32xf32, #tpu.memory_space<vmem>>, vector<1x32xf32>
    %5 = arith.truncf %2 : vector<16x4xf32> to vector<16x4xbf16>
    %cst = arith.constant dense<0.000000e+00> : vector<16x32xf32>
    %6 = tpu.matmul %5, %3, %cst {dimension_numbers = #tpu.dot_dimension_numbers<[1], [0], [0], [1], [0, 0, 1, 1], [], []>} : vector<16x4xbf16>, vector<4x32xbf16>, vector<16x32xf32> -> vector<16x32xf32>
    %7 = vector.broadcast %4 : vector<1x32xf32> to vector<16x32xf32>
    %8 = arith.addf %6, %7 : vector<16x32xf32>
    %9 = arith.negf %8 : vector<16x32xf32>
    %10 = math.exp %9 : vector<16x32xf32>
    %cst_9 = arith.constant 1.000000e+00 : f32
    %11 = vector.broadcast %cst_9 : f32 to vector<16x32xf32>
    %12 = arith.addf %11, %10 : vector<16x32xf32>
    %13 = arith.divf %11, %12 : vector<16x32xf32>
    %14 = arith.mulf %8, %13 : vector<16x32xf32>
    %c0_10 = arith.constant 0 : index
    %c0_11 = arith.constant 0 : index
    %15 = vector.load %arg6[%c0_10, %c0_11] : memref<32x32xbf16, #tpu.memory_space<vmem>>, vector<32x32xbf16>
    %c0_12 = arith.constant 0 : index
    %c0_13 = arith.constant 0 : index
    %16 = vector.load %arg7[%c0_12, %c0_13] : memref<1x32xf32, #tpu.memory_space<vmem>>, vector<1x32xf32>
    %17 = arith.truncf %14 : vector<16x32xf32> to vector<16x32xbf16>
    %cst_14 = arith.constant dense<0.000000e+00> : vector<16x32xf32>
    %18 = tpu.matmul %17, %15, %cst_14 {dimension_numbers = #tpu.dot_dimension_numbers<[1], [0], [0], [1], [0, 0, 1, 1], [], []>} : vector<16x32xbf16>, vector<32x32xbf16>, vector<16x32xf32> -> vector<16x32xf32>
    %19 = vector.broadcast %16 : vector<1x32xf32> to vector<16x32xf32>
    %20 = arith.addf %18, %19 : vector<16x32xf32>
    %c0_15 = arith.constant 0 : index
    %c0_16 = arith.constant 0 : index
    %c0_17 = arith.constant 0 : index
    %21 = vector.load %arg8[%c0_15, %c0_16, %c0_17] : memref<2x32x32xbf16, #tpu.memory_space<vmem>>, vector<1x32x32xbf16>
    %22 = vector.shape_cast %21 : vector<1x32x32xbf16> to vector<32x32xbf16>
    %23 = arith.truncf %20 : vector<16x32xf32> to vector<16x32xbf16>
    %cst_18 = arith.constant dense<0.000000e+00> : vector<16x32xf32>
    %24 = tpu.matmul %23, %22, %cst_18 {dimension_numbers = #tpu.dot_dimension_numbers<[1], [0], [0], [1], [0, 0, 1, 1], [], []>} : vector<16x32xbf16>, vector<32x32xbf16>, vector<16x32xf32> -> vector<16x32xf32>
    %c0_19 = arith.constant 0 : index
    %c0_20 = arith.constant 0 : index
    %c0_21 = arith.constant 0 : index
    %25 = vector.load %arg9[%c0_19, %c0_20, %c0_21] : memref<2x32x32xbf16, #tpu.memory_space<vmem>>, vector<1x32x32xbf16>
    %26 = vector.shape_cast %25 : vector<1x32x32xbf16> to vector<32x32xbf16>
    %27 = arith.truncf %20 : vector<16x32xf32> to vector<16x32xbf16>
    %cst_22 = arith.constant dense<0.000000e+00> : vector<16x32xf32>
    %28 = tpu.matmul %27, %26, %cst_22 {dimension_numbers = #tpu.dot_dimension_numbers<[1], [0], [0], [1], [0, 0, 1, 1], [], []>} : vector<16x32xbf16>, vector<32x32xbf16>, vector<16x32xf32> -> vector<16x32xf32>
    %c0_23 = arith.constant 0 : index
    %c0_24 = arith.constant 0 : index
    %c0_25 = arith.constant 0 : index
    %29 = vector.load %arg10[%c0_23, %c0_24, %c0_25] : memref<2x1x32xf32, #tpu.memory_space<vmem>>, vector<1x1x32xf32>
    %30 = vector.shape_cast %29 : vector<1x1x32xf32> to vector<1x32xf32>
    %31 = vector.shape_cast %24 : vector<16x32xf32> to vector<16x1x32xf32>
    %32 = vector.shape_cast %28 : vector<16x32xf32> to vector<1x16x32xf32>
    %33 = vector.broadcast %31 : vector<16x1x32xf32> to vector<16x16x32xf32>
    %34 = vector.broadcast %32 : vector<1x16x32xf32> to vector<16x16x32xf32>
    %35 = arith.addf %33, %34 : vector<16x16x32xf32>
    %36 = vector.shape_cast %0 : vector<16x16xf32> to vector<16x16x1xf32>
    %37 = vector.shape_cast %30 : vector<1x32xf32> to vector<1x1x32xf32>
    %38 = vector.broadcast %36 : vector<16x16x1xf32> to vector<16x16x32xf32>
    %39 = vector.broadcast %37 : vector<1x1x32xf32> to vector<16x16x32xf32>
    %40 = arith.mulf %38, %39 : vector<16x16x32xf32>
    %41 = arith.addf %35, %40 : vector<16x16x32xf32>
    %c0_26 = arith.constant 0 : index
    %c0_27 = arith.constant 0 : index
    %c0_28 = arith.constant 0 : index
    %42 = vector.load %arg11[%c0_26, %c0_27, %c0_28] : memref<2x1x32xf32, #tpu.memory_space<vmem>>, vector<1x1x32xf32>
    %43 = vector.shape_cast %42 : vector<1x1x32xf32> to vector<1x32xf32>
    %44 = vector.shape_cast %43 : vector<1x32xf32> to vector<1x1x32xf32>
    %45 = vector.broadcast %44 : vector<1x1x32xf32> to vector<16x16x32xf32>
    %46 = arith.addf %41, %45 : vector<16x16x32xf32>
    %47 = arith.negf %46 : vector<16x16x32xf32>
    %48 = math.exp %47 : vector<16x16x32xf32>
    %cst_29 = arith.constant 1.000000e+00 : f32
    %49 = vector.broadcast %cst_29 : f32 to vector<16x16x32xf32>
    %50 = arith.addf %49, %48 : vector<16x16x32xf32>
    %51 = arith.divf %49, %50 : vector<16x16x32xf32>
    %52 = arith.mulf %46, %51 : vector<16x16x32xf32>
    %53 = vector.shape_cast %52 : vector<16x16x32xf32> to vector<256x32xf32>
    %c0_30 = arith.constant 0 : index
    %c0_31 = arith.constant 0 : index
    %c0_32 = arith.constant 0 : index
    %54 = vector.load %arg12[%c0_30, %c0_31, %c0_32] : memref<2x32x32xbf16, #tpu.memory_space<vmem>>, vector<1x32x32xbf16>
    %55 = vector.shape_cast %54 : vector<1x32x32xbf16> to vector<32x32xbf16>
    %c0_33 = arith.constant 0 : index
    %c0_34 = arith.constant 0 : index
    %c0_35 = arith.constant 0 : index
    %56 = vector.load %arg13[%c0_33, %c0_34, %c0_35] : memref<2x1x32xf32, #tpu.memory_space<vmem>>, vector<1x1x32xf32>
    %57 = vector.shape_cast %56 : vector<1x1x32xf32> to vector<1x32xf32>
    %58 = arith.truncf %53 : vector<256x32xf32> to vector<256x32xbf16>
    %cst_36 = arith.constant dense<0.000000e+00> : vector<256x32xf32>
    %59 = tpu.matmul %58, %55, %cst_36 {dimension_numbers = #tpu.dot_dimension_numbers<[1], [0], [0], [1], [0, 0, 1, 1], [], []>} : vector<256x32xbf16>, vector<32x32xbf16>, vector<256x32xf32> -> vector<256x32xf32>
    %60 = vector.broadcast %57 : vector<1x32xf32> to vector<256x32xf32>
    %61 = arith.addf %59, %60 : vector<256x32xf32>
    %62 = arith.negf %61 : vector<256x32xf32>
    %63 = math.exp %62 : vector<256x32xf32>
    %cst_37 = arith.constant 1.000000e+00 : f32
    %64 = vector.broadcast %cst_37 : f32 to vector<256x32xf32>
    %65 = arith.addf %64, %63 : vector<256x32xf32>
    %66 = arith.divf %64, %65 : vector<256x32xf32>
    %67 = arith.mulf %61, %66 : vector<256x32xf32>
    %68 = vector.shape_cast %67 : vector<256x32xf32> to vector<16x16x32xf32>
    %69 = vector.shape_cast %1 : vector<16x16xf32> to vector<16x16x1xf32>
    %70 = vector.broadcast %69 : vector<16x16x1xf32> to vector<16x16x32xf32>
    %71 = arith.mulf %68, %70 : vector<16x16x32xf32>
    %cst_38 = arith.constant dense<0.000000e+00> : vector<16x32xf32>
    %72 = vector.multi_reduction <add>, %71, %cst_38 [1] : vector<16x16x32xf32> to vector<16x32xf32>
    %c0_39 = arith.constant 0 : index
    %c0_40 = arith.constant 0 : index
    %c0_41 = arith.constant 0 : index
    %73 = vector.load %arg14[%c0_39, %c0_40, %c0_41] : memref<2x32x32xbf16, #tpu.memory_space<vmem>>, vector<1x32x32xbf16>
    %74 = vector.shape_cast %73 : vector<1x32x32xbf16> to vector<32x32xbf16>
    %75 = arith.truncf %20 : vector<16x32xf32> to vector<16x32xbf16>
    %cst_42 = arith.constant dense<0.000000e+00> : vector<16x32xf32>
    %76 = tpu.matmul %75, %74, %cst_42 {dimension_numbers = #tpu.dot_dimension_numbers<[1], [0], [0], [1], [0, 0, 1, 1], [], []>} : vector<16x32xbf16>, vector<32x32xbf16>, vector<16x32xf32> -> vector<16x32xf32>
    %c0_43 = arith.constant 0 : index
    %c0_44 = arith.constant 0 : index
    %c0_45 = arith.constant 0 : index
    %77 = vector.load %arg15[%c0_43, %c0_44, %c0_45] : memref<2x32x32xbf16, #tpu.memory_space<vmem>>, vector<1x32x32xbf16>
    %78 = vector.shape_cast %77 : vector<1x32x32xbf16> to vector<32x32xbf16>
    %79 = arith.truncf %72 : vector<16x32xf32> to vector<16x32xbf16>
    %cst_46 = arith.constant dense<0.000000e+00> : vector<16x32xf32>
    %80 = tpu.matmul %79, %78, %cst_46 {dimension_numbers = #tpu.dot_dimension_numbers<[1], [0], [0], [1], [0, 0, 1, 1], [], []>} : vector<16x32xbf16>, vector<32x32xbf16>, vector<16x32xf32> -> vector<16x32xf32>
    %81 = arith.addf %76, %80 : vector<16x32xf32>
    %c0_47 = arith.constant 0 : index
    %c0_48 = arith.constant 0 : index
    %c0_49 = arith.constant 0 : index
    %82 = vector.load %arg16[%c0_47, %c0_48, %c0_49] : memref<2x1x32xf32, #tpu.memory_space<vmem>>, vector<1x1x32xf32>
    %83 = vector.shape_cast %82 : vector<1x1x32xf32> to vector<1x32xf32>
    %84 = vector.broadcast %83 : vector<1x32xf32> to vector<16x32xf32>
    %85 = arith.addf %81, %84 : vector<16x32xf32>
    %86 = arith.negf %85 : vector<16x32xf32>
    %87 = math.exp %86 : vector<16x32xf32>
    %cst_50 = arith.constant 1.000000e+00 : f32
    %88 = vector.broadcast %cst_50 : f32 to vector<16x32xf32>
    %89 = arith.addf %88, %87 : vector<16x32xf32>
    %90 = arith.divf %88, %89 : vector<16x32xf32>
    %91 = arith.mulf %85, %90 : vector<16x32xf32>
    %c0_51 = arith.constant 0 : index
    %c0_52 = arith.constant 0 : index
    %c0_53 = arith.constant 0 : index
    %92 = vector.load %arg17[%c0_51, %c0_52, %c0_53] : memref<2x32x32xbf16, #tpu.memory_space<vmem>>, vector<1x32x32xbf16>
    %93 = vector.shape_cast %92 : vector<1x32x32xbf16> to vector<32x32xbf16>
    %c0_54 = arith.constant 0 : index
    %c0_55 = arith.constant 0 : index
    %c0_56 = arith.constant 0 : index
    %94 = vector.load %arg18[%c0_54, %c0_55, %c0_56] : memref<2x1x32xf32, #tpu.memory_space<vmem>>, vector<1x1x32xf32>
    %95 = vector.shape_cast %94 : vector<1x1x32xf32> to vector<1x32xf32>
    %96 = arith.truncf %91 : vector<16x32xf32> to vector<16x32xbf16>
    %cst_57 = arith.constant dense<0.000000e+00> : vector<16x32xf32>
    %97 = tpu.matmul %96, %93, %cst_57 {dimension_numbers = #tpu.dot_dimension_numbers<[1], [0], [0], [1], [0, 0, 1, 1], [], []>} : vector<16x32xbf16>, vector<32x32xbf16>, vector<16x32xf32> -> vector<16x32xf32>
    %98 = vector.broadcast %95 : vector<1x32xf32> to vector<16x32xf32>
    %99 = arith.addf %97, %98 : vector<16x32xf32>
    %100 = arith.addf %20, %99 : vector<16x32xf32>
    %c1 = arith.constant 1 : index
    %c0_58 = arith.constant 0 : index
    %c0_59 = arith.constant 0 : index
    %101 = vector.load %arg8[%c1, %c0_58, %c0_59] : memref<2x32x32xbf16, #tpu.memory_space<vmem>>, vector<1x32x32xbf16>
    %102 = vector.shape_cast %101 : vector<1x32x32xbf16> to vector<32x32xbf16>
    %103 = arith.truncf %100 : vector<16x32xf32> to vector<16x32xbf16>
    %cst_60 = arith.constant dense<0.000000e+00> : vector<16x32xf32>
    %104 = tpu.matmul %103, %102, %cst_60 {dimension_numbers = #tpu.dot_dimension_numbers<[1], [0], [0], [1], [0, 0, 1, 1], [], []>} : vector<16x32xbf16>, vector<32x32xbf16>, vector<16x32xf32> -> vector<16x32xf32>
    %c1_61 = arith.constant 1 : index
    %c0_62 = arith.constant 0 : index
    %c0_63 = arith.constant 0 : index
    %105 = vector.load %arg9[%c1_61, %c0_62, %c0_63] : memref<2x32x32xbf16, #tpu.memory_space<vmem>>, vector<1x32x32xbf16>
    %106 = vector.shape_cast %105 : vector<1x32x32xbf16> to vector<32x32xbf16>
    %107 = arith.truncf %100 : vector<16x32xf32> to vector<16x32xbf16>
    %cst_64 = arith.constant dense<0.000000e+00> : vector<16x32xf32>
    %108 = tpu.matmul %107, %106, %cst_64 {dimension_numbers = #tpu.dot_dimension_numbers<[1], [0], [0], [1], [0, 0, 1, 1], [], []>} : vector<16x32xbf16>, vector<32x32xbf16>, vector<16x32xf32> -> vector<16x32xf32>
    %c1_65 = arith.constant 1 : index
    %c0_66 = arith.constant 0 : index
    %c0_67 = arith.constant 0 : index
    %109 = vector.load %arg10[%c1_65, %c0_66, %c0_67] : memref<2x1x32xf32, #tpu.memory_space<vmem>>, vector<1x1x32xf32>
    %110 = vector.shape_cast %109 : vector<1x1x32xf32> to vector<1x32xf32>
    %111 = vector.shape_cast %104 : vector<16x32xf32> to vector<16x1x32xf32>
    %112 = vector.shape_cast %108 : vector<16x32xf32> to vector<1x16x32xf32>
    %113 = vector.broadcast %111 : vector<16x1x32xf32> to vector<16x16x32xf32>
    %114 = vector.broadcast %112 : vector<1x16x32xf32> to vector<16x16x32xf32>
    %115 = arith.addf %113, %114 : vector<16x16x32xf32>
    %116 = vector.shape_cast %0 : vector<16x16xf32> to vector<16x16x1xf32>
    %117 = vector.shape_cast %110 : vector<1x32xf32> to vector<1x1x32xf32>
    %118 = vector.broadcast %116 : vector<16x16x1xf32> to vector<16x16x32xf32>
    %119 = vector.broadcast %117 : vector<1x1x32xf32> to vector<16x16x32xf32>
    %120 = arith.mulf %118, %119 : vector<16x16x32xf32>
    %121 = arith.addf %115, %120 : vector<16x16x32xf32>
    %c1_68 = arith.constant 1 : index
    %c0_69 = arith.constant 0 : index
    %c0_70 = arith.constant 0 : index
    %122 = vector.load %arg11[%c1_68, %c0_69, %c0_70] : memref<2x1x32xf32, #tpu.memory_space<vmem>>, vector<1x1x32xf32>
    %123 = vector.shape_cast %122 : vector<1x1x32xf32> to vector<1x32xf32>
    %124 = vector.shape_cast %123 : vector<1x32xf32> to vector<1x1x32xf32>
    %125 = vector.broadcast %124 : vector<1x1x32xf32> to vector<16x16x32xf32>
    %126 = arith.addf %121, %125 : vector<16x16x32xf32>
    %127 = arith.negf %126 : vector<16x16x32xf32>
    %128 = math.exp %127 : vector<16x16x32xf32>
    %cst_71 = arith.constant 1.000000e+00 : f32
    %129 = vector.broadcast %cst_71 : f32 to vector<16x16x32xf32>
    %130 = arith.addf %129, %128 : vector<16x16x32xf32>
    %131 = arith.divf %129, %130 : vector<16x16x32xf32>
    %132 = arith.mulf %126, %131 : vector<16x16x32xf32>
    %133 = vector.shape_cast %132 : vector<16x16x32xf32> to vector<256x32xf32>
    %c1_72 = arith.constant 1 : index
    %c0_73 = arith.constant 0 : index
    %c0_74 = arith.constant 0 : index
    %134 = vector.load %arg12[%c1_72, %c0_73, %c0_74] : memref<2x32x32xbf16, #tpu.memory_space<vmem>>, vector<1x32x32xbf16>
    %135 = vector.shape_cast %134 : vector<1x32x32xbf16> to vector<32x32xbf16>
    %c1_75 = arith.constant 1 : index
    %c0_76 = arith.constant 0 : index
    %c0_77 = arith.constant 0 : index
    %136 = vector.load %arg13[%c1_75, %c0_76, %c0_77] : memref<2x1x32xf32, #tpu.memory_space<vmem>>, vector<1x1x32xf32>
    %137 = vector.shape_cast %136 : vector<1x1x32xf32> to vector<1x32xf32>
    %138 = arith.truncf %133 : vector<256x32xf32> to vector<256x32xbf16>
    %cst_78 = arith.constant dense<0.000000e+00> : vector<256x32xf32>
    %139 = tpu.matmul %138, %135, %cst_78 {dimension_numbers = #tpu.dot_dimension_numbers<[1], [0], [0], [1], [0, 0, 1, 1], [], []>} : vector<256x32xbf16>, vector<32x32xbf16>, vector<256x32xf32> -> vector<256x32xf32>
    %140 = vector.broadcast %137 : vector<1x32xf32> to vector<256x32xf32>
    %141 = arith.addf %139, %140 : vector<256x32xf32>
    %142 = arith.negf %141 : vector<256x32xf32>
    %143 = math.exp %142 : vector<256x32xf32>
    %cst_79 = arith.constant 1.000000e+00 : f32
    %144 = vector.broadcast %cst_79 : f32 to vector<256x32xf32>
    %145 = arith.addf %144, %143 : vector<256x32xf32>
    %146 = arith.divf %144, %145 : vector<256x32xf32>
    %147 = arith.mulf %141, %146 : vector<256x32xf32>
    %148 = vector.shape_cast %147 : vector<256x32xf32> to vector<16x16x32xf32>
    %149 = vector.shape_cast %1 : vector<16x16xf32> to vector<16x16x1xf32>
    %150 = vector.broadcast %149 : vector<16x16x1xf32> to vector<16x16x32xf32>
    %151 = arith.mulf %148, %150 : vector<16x16x32xf32>
    %cst_80 = arith.constant dense<0.000000e+00> : vector<16x32xf32>
    %152 = vector.multi_reduction <add>, %151, %cst_80 [1] : vector<16x16x32xf32> to vector<16x32xf32>
    %c1_81 = arith.constant 1 : index
    %c0_82 = arith.constant 0 : index
    %c0_83 = arith.constant 0 : index
    %153 = vector.load %arg14[%c1_81, %c0_82, %c0_83] : memref<2x32x32xbf16, #tpu.memory_space<vmem>>, vector<1x32x32xbf16>
    %154 = vector.shape_cast %153 : vector<1x32x32xbf16> to vector<32x32xbf16>
    %155 = arith.truncf %100 : vector<16x32xf32> to vector<16x32xbf16>
    %cst_84 = arith.constant dense<0.000000e+00> : vector<16x32xf32>
    %156 = tpu.matmul %155, %154, %cst_84 {dimension_numbers = #tpu.dot_dimension_numbers<[1], [0], [0], [1], [0, 0, 1, 1], [], []>} : vector<16x32xbf16>, vector<32x32xbf16>, vector<16x32xf32> -> vector<16x32xf32>
    %c1_85 = arith.constant 1 : index
    %c0_86 = arith.constant 0 : index
    %c0_87 = arith.constant 0 : index
    %157 = vector.load %arg15[%c1_85, %c0_86, %c0_87] : memref<2x32x32xbf16, #tpu.memory_space<vmem>>, vector<1x32x32xbf16>
    %158 = vector.shape_cast %157 : vector<1x32x32xbf16> to vector<32x32xbf16>
    %159 = arith.truncf %152 : vector<16x32xf32> to vector<16x32xbf16>
    %cst_88 = arith.constant dense<0.000000e+00> : vector<16x32xf32>
    %160 = tpu.matmul %159, %158, %cst_88 {dimension_numbers = #tpu.dot_dimension_numbers<[1], [0], [0], [1], [0, 0, 1, 1], [], []>} : vector<16x32xbf16>, vector<32x32xbf16>, vector<16x32xf32> -> vector<16x32xf32>
    %161 = arith.addf %156, %160 : vector<16x32xf32>
    %c1_89 = arith.constant 1 : index
    %c0_90 = arith.constant 0 : index
    %c0_91 = arith.constant 0 : index
    %162 = vector.load %arg16[%c1_89, %c0_90, %c0_91] : memref<2x1x32xf32, #tpu.memory_space<vmem>>, vector<1x1x32xf32>
    %163 = vector.shape_cast %162 : vector<1x1x32xf32> to vector<1x32xf32>
    %164 = vector.broadcast %163 : vector<1x32xf32> to vector<16x32xf32>
    %165 = arith.addf %161, %164 : vector<16x32xf32>
    %166 = arith.negf %165 : vector<16x32xf32>
    %167 = math.exp %166 : vector<16x32xf32>
    %cst_92 = arith.constant 1.000000e+00 : f32
    %168 = vector.broadcast %cst_92 : f32 to vector<16x32xf32>
    %169 = arith.addf %168, %167 : vector<16x32xf32>
    %170 = arith.divf %168, %169 : vector<16x32xf32>
    %171 = arith.mulf %165, %170 : vector<16x32xf32>
    %c1_93 = arith.constant 1 : index
    %c0_94 = arith.constant 0 : index
    %c0_95 = arith.constant 0 : index
    %172 = vector.load %arg17[%c1_93, %c0_94, %c0_95] : memref<2x32x32xbf16, #tpu.memory_space<vmem>>, vector<1x32x32xbf16>
    %173 = vector.shape_cast %172 : vector<1x32x32xbf16> to vector<32x32xbf16>
    %c1_96 = arith.constant 1 : index
    %c0_97 = arith.constant 0 : index
    %c0_98 = arith.constant 0 : index
    %174 = vector.load %arg18[%c1_96, %c0_97, %c0_98] : memref<2x1x32xf32, #tpu.memory_space<vmem>>, vector<1x1x32xf32>
    %175 = vector.shape_cast %174 : vector<1x1x32xf32> to vector<1x32xf32>
    %176 = arith.truncf %171 : vector<16x32xf32> to vector<16x32xbf16>
    %cst_99 = arith.constant dense<0.000000e+00> : vector<16x32xf32>
    %177 = tpu.matmul %176, %173, %cst_99 {dimension_numbers = #tpu.dot_dimension_numbers<[1], [0], [0], [1], [0, 0, 1, 1], [], []>} : vector<16x32xbf16>, vector<32x32xbf16>, vector<16x32xf32> -> vector<16x32xf32>
    %178 = vector.broadcast %175 : vector<1x32xf32> to vector<16x32xf32>
    %179 = arith.addf %177, %178 : vector<16x32xf32>
    %180 = arith.addf %100, %179 : vector<16x32xf32>
    %c0_100 = arith.constant 0 : index
    %c0_101 = arith.constant 0 : index
    %181 = vector.load %arg19[%c0_100, %c0_101] : memref<32x32xbf16, #tpu.memory_space<vmem>>, vector<32x32xbf16>
    %c0_102 = arith.constant 0 : index
    %c0_103 = arith.constant 0 : index
    %182 = vector.load %arg20[%c0_102, %c0_103] : memref<1x32xf32, #tpu.memory_space<vmem>>, vector<1x32xf32>
    %183 = arith.truncf %180 : vector<16x32xf32> to vector<16x32xbf16>
    %cst_104 = arith.constant dense<0.000000e+00> : vector<16x32xf32>
    %184 = tpu.matmul %183, %181, %cst_104 {dimension_numbers = #tpu.dot_dimension_numbers<[1], [0], [0], [1], [0, 0, 1, 1], [], []>} : vector<16x32xbf16>, vector<32x32xbf16>, vector<16x32xf32> -> vector<16x32xf32>
    %185 = vector.broadcast %182 : vector<1x32xf32> to vector<16x32xf32>
    %186 = arith.addf %184, %185 : vector<16x32xf32>
    %187 = arith.negf %186 : vector<16x32xf32>
    %188 = math.exp %187 : vector<16x32xf32>
    %cst_105 = arith.constant 1.000000e+00 : f32
    %189 = vector.broadcast %cst_105 : f32 to vector<16x32xf32>
    %190 = arith.addf %189, %188 : vector<16x32xf32>
    %191 = arith.divf %189, %190 : vector<16x32xf32>
    %192 = arith.mulf %186, %191 : vector<16x32xf32>
    %c0_106 = arith.constant 0 : index
    %c0_107 = arith.constant 0 : index
    %193 = vector.load %arg21[%c0_106, %c0_107] : memref<32x32xbf16, #tpu.memory_space<vmem>>, vector<32x32xbf16>
    %c0_108 = arith.constant 0 : index
    %c0_109 = arith.constant 0 : index
    %194 = vector.load %arg22[%c0_108, %c0_109] : memref<1x32xf32, #tpu.memory_space<vmem>>, vector<1x32xf32>
    %195 = arith.truncf %192 : vector<16x32xf32> to vector<16x32xbf16>
    %cst_110 = arith.constant dense<0.000000e+00> : vector<16x32xf32>
    %196 = tpu.matmul %195, %193, %cst_110 {dimension_numbers = #tpu.dot_dimension_numbers<[1], [0], [0], [1], [0, 0, 1, 1], [], []>} : vector<16x32xbf16>, vector<32x32xbf16>, vector<16x32xf32> -> vector<16x32xf32>
    %197 = vector.broadcast %194 : vector<1x32xf32> to vector<16x32xf32>
    %198 = arith.addf %196, %197 : vector<16x32xf32>
    %c0_111 = arith.constant 0 : index
    %c0_112 = arith.constant 0 : index
    %199 = vector.load %arg3[%c0_111, %c0_112] : memref<2x16xf32, #tpu.memory_space<vmem>>, vector<2x16xf32>
    %cst_113 = arith.constant dense<0.000000e+00> : vector<2x32xf32>
    %200 = tpu.matmul %199, %198, %cst_113 {dimension_numbers = #tpu.dot_dimension_numbers<[1], [0], [0], [1], [0, 0, 1, 1], [], []>} : vector<2x16xf32>, vector<16x32xf32>, vector<2x32xf32> -> vector<2x32xf32>
    %c0_114 = arith.constant 0 : index
    %c0_115 = arith.constant 0 : index
    %201 = vector.load %arg23[%c0_114, %c0_115] : memref<32x32xbf16, #tpu.memory_space<vmem>>, vector<32x32xbf16>
    %c0_116 = arith.constant 0 : index
    %c0_117 = arith.constant 0 : index
    %202 = vector.load %arg24[%c0_116, %c0_117] : memref<1x32xf32, #tpu.memory_space<vmem>>, vector<1x32xf32>
    %203 = arith.truncf %200 : vector<2x32xf32> to vector<2x32xbf16>
    %cst_118 = arith.constant dense<0.000000e+00> : vector<2x32xf32>
    %204 = tpu.matmul %203, %201, %cst_118 {dimension_numbers = #tpu.dot_dimension_numbers<[1], [0], [0], [1], [0, 0, 1, 1], [], []>} : vector<2x32xbf16>, vector<32x32xbf16>, vector<2x32xf32> -> vector<2x32xf32>
    %205 = vector.broadcast %202 : vector<1x32xf32> to vector<2x32xf32>
    %206 = arith.addf %204, %205 : vector<2x32xf32>
    %207 = arith.negf %206 : vector<2x32xf32>
    %208 = math.exp %207 : vector<2x32xf32>
    %cst_119 = arith.constant 1.000000e+00 : f32
    %209 = vector.broadcast %cst_119 : f32 to vector<2x32xf32>
    %210 = arith.addf %209, %208 : vector<2x32xf32>
    %211 = arith.divf %209, %210 : vector<2x32xf32>
    %212 = arith.mulf %206, %211 : vector<2x32xf32>
    %c0_120 = arith.constant 0 : index
    %c0_121 = arith.constant 0 : index
    %213 = vector.load %arg25[%c0_120, %c0_121] : memref<32x3xbf16, #tpu.memory_space<vmem>>, vector<32x3xbf16>
    %c0_122 = arith.constant 0 : index
    %c0_123 = arith.constant 0 : index
    %214 = vector.load %arg26[%c0_122, %c0_123] : memref<1x3xf32, #tpu.memory_space<vmem>>, vector<1x3xf32>
    %215 = arith.truncf %212 : vector<2x32xf32> to vector<2x32xbf16>
    %cst_124 = arith.constant dense<0.000000e+00> : vector<2x3xf32>
    %216 = tpu.matmul %215, %213, %cst_124 {dimension_numbers = #tpu.dot_dimension_numbers<[1], [0], [0], [1], [0, 0, 1, 1], [], []>} : vector<2x32xbf16>, vector<32x3xbf16>, vector<2x3xf32> -> vector<2x3xf32>
    %217 = vector.broadcast %214 : vector<1x3xf32> to vector<2x3xf32>
    %218 = arith.addf %216, %217 : vector<2x3xf32>
    %c0_125 = arith.constant 0 : index
    %c0_126 = arith.constant 0 : index
    %219 = vector.load %arg27[%c0_125, %c0_126] : memref<2x3xf32, #tpu.memory_space<vmem>>, vector<2x3xf32>
    tpu.vector_store %arg27[%c0_125, %c0_126], %218 {strides = array<i32>} : memref<2x3xf32, #tpu.memory_space<vmem>>, vector<2x3xf32>,
    return
  }
}

</mosaic_0001>

<bundles_post_ra>
// kernel: segnn_forward.1
= control target key start
LH: loop header
LB: loop body
LE: loop exit
PB: predicated region body
PF: predicated region fallthrough
CT: control target
= control target key end

     0   :  { %s10383_s0 = inlined_call_operand.vmem [shape: f32[16,4], index: 0, kind: input, shape index: {}]   ;;  %s10384_s1 = inlined_call_operand.vmem [shape: f32[16,16], index: 1, kind: input, shape index: {}]   ;;  %s10385_s2 = inlined_call_operand.vmem [shape: f32[16,16], index: 2, kind: input, shape index: {}]   ;;  %s10386_s3 = inlined_call_operand.vmem [shape: f32[2,16], index: 3, kind: input, shape index: {}]   ;;  %s10387_s4 = inlined_call_operand.vmem [shape: bf16[4,32], index: 4, kind: input, shape index: {}]   ;;  %s10388_s5 = inlined_call_operand.vmem [shape: f32[1,32], index: 5, kind: input, shape index: {}]   ;;  %s10389_s6 = inlined_call_operand.vmem [shape: bf16[32,32], index: 6, kind: input, shape index: {}]   ;;  %s10390_s7 = inlined_call_operand.vmem [shape: f32[1,32], index: 7, kind: input, shape index: {}]   ;;  %s10391_s8 = inlined_call_operand.vmem [shape: bf16[2,32,32], index: 8, kind: input, shape index: {}]   ;;  %s10392_s9 = inlined_call_operand.vmem [shape: bf16[2,32,32], index: 9, kind: input, shape index: {}]   ;;  %s10393_s10 = inlined_call_operand.vmem [shape: f32[2,1,32], index: 10, kind: input, shape index: {}]   ;;  %s10394_s11 = inlined_call_operand.vmem [shape: f32[2,1,32], index: 11, kind: input, shape index: {}]   ;;  %s10395_s12 = inlined_call_operand.hbm [shape: bf16[2,32,32], index: 12, kind: input, shape index: {}]   ;;  %s10396_s13 = inlined_call_operand.vmem [shape: f32[2,1,32], index: 13, kind: input, shape index: {}]   ;;  %s10397_s14 = inlined_call_operand.hbm [shape: bf16[2,32,32], index: 14, kind: input, shape index: {}]   ;;  %s10398_s15 = inlined_call_operand.hbm [shape: bf16[2,32,32], index: 15, kind: input, shape index: {}]   ;;  %s10399_s16 = inlined_call_operand.vmem [shape: f32[2,1,32], index: 16, kind: input, shape index: {}]   ;;  %s10400_s17 = inlined_call_operand.hbm [shape: bf16[2,32,32], index: 17, kind: input, shape index: {}]   ;;  %s10401_s18 = inlined_call_operand.vmem [shape: f32[2,1,32], index: 18, kind: input, shape index: {}]   ;;  %s10402_s19 = inlined_call_operand.hbm [shape: bf16[32,32], index: 19, kind: input, shape index: {}]   ;;  %s10403_s20 = inlined_call_operand.hbm [shape: f32[1,32], index: 20, kind: input, shape index: {}]   ;;  %s10404_s21 = inlined_call_operand.hbm [shape: bf16[32,32], index: 21, kind: input, shape index: {}]   ;;  %s10405_s22 = inlined_call_operand.hbm [shape: f32[1,32], index: 22, kind: input, shape index: {}]   ;;  %s10406_s23 = inlined_call_operand.vmem [shape: bf16[32,32], index: 23, kind: input, shape index: {}]   ;;  %s10407_s24 = inlined_call_operand.hbm [shape: f32[1,32], index: 24, kind: input, shape index: {}]   ;;  %s10408_s25 = inlined_call_operand.vmem [shape: bf16[32,3], index: 25, kind: input, shape index: {}]   ;;  %s10409_s26 = inlined_call_operand.hbm [shape: f32[1,3], index: 26, kind: input, shape index: {}]   ;;  %s10410_s27 = inlined_call_operand.hbm [shape: f32[2,3], index: 27, kind: output, shape index: {}]  }
   0x1   :  { %10499 = sst [smem:[#allocation93_spill]] %s10383_s0 }
   0x2   :  { %10500 = sst [smem:[#allocation94_spill]] %s10384_s1 }
   0x3   :  { %10501 = sst [smem:[#allocation95_spill]] %s10385_s2 }
   0x4   :  { %10502 = sst [smem:[#allocation96_spill]] %s10386_s3 }
   0x5   :  { %10503 = sst [smem:[#allocation97_spill]] %s10387_s4 }
   0x6   :  { %10504 = sst [smem:[#allocation98_spill]] %s10388_s5 }
   0x7   :  { %10505 = sst [smem:[#allocation99_spill]] %s10389_s6 }
   0x8   :  { %10506 = sst [smem:[#allocation100_spill]] %s10390_s7 }
   0x9   :  { %10507 = sst [smem:[#allocation101_spill]] %s10391_s8 }
   0xa   :  { %10508 = sst [smem:[#allocation102_spill]] %s10392_s9 }
   0xb   :  { %10509 = sst [smem:[#allocation103_spill]] %s10393_s10 }
   0xc   :  { %10510 = sst [smem:[#allocation104_spill]] %s10394_s11 }
   0xd   :  { %32 = vsyncpa [#allocation3], 0 }
   0xe   :  { %33 = vsyncpa [#allocation6], 0 }
   0xf   :  { %34 = vsyncpa [#allocation9], 0 }
  0x10   :  { %35 = vsyncpa [#allocation12], 0 }
  0x11   :  { %36 = vsyncpa [#allocation15], 0 }
  0x12   :  { %37 = vsyncpa [#allocation18], 0 }
  0x13   :  { %38 = vsyncpa [#allocation4], 0  ;;  %s82_s8 = sshll.u32 %s10397_s14, 4  ;;  %s6491_s30 = smov [#allocation5]   ;;  %s83_s8 = int_to_ptr.hbm [resolvable:$true] %s82_s8 }
  0x14   :  { %s84_s9 = sshll.u32 %s6491_s30, 4  ;;  %s110_s0 = sshll.u32 %s10400_s17, 4  ;;  %s85_s9 = int_to_ptr.vmem [resolvable:$true] %s84_s9  ;;  %s111_s0 = int_to_ptr.hbm [resolvable:$true] %s110_s0 }
  0x15   :  { %s6492_s10 = smov 64   ;;  %s6493_s29 = smov 4  }
  0x16   :  { %90 = dma.hbm_to_vmem [thread:$0]  %s83_s8, 512, %s85_s9, [#allocation6], %s6492_s10, %s6492_s10, %s6493_s29  }
  0x17   :  { %s6494_s1 = smov [#allocation8]   ;;  %s139_s14 = sshll.u32 %s10403_s20, 4  ;;  %s140_s14 = int_to_ptr.hbm [resolvable:$true] %s139_s14 }
  0x18   :  { %s112_s6 = sshll.u32 %s6494_s1, 4  ;;  %s163_s7 = sshll.u32 %s10405_s22, 4  ;;  %s113_s6 = int_to_ptr.vmem [resolvable:$true] %s112_s6  ;;  %s164_s7 = int_to_ptr.hbm [resolvable:$true] %s163_s7 }
  0x19   :  { %118 = dma.hbm_to_vmem [thread:$0]  %s111_s0, 512, %s113_s6, [#allocation9], %s6492_s10, %s6492_s10, %s6493_s29  }
  0x1a   :  { %s6495_s4 = smov [#allocation11]   ;;  %s6496_s8 = smov [#allocation14]  }
  0x1b   :  { %s141_s30 = sshll.u32 %s6495_s4, 4  ;;  %s165_s9 = sshll.u32 %s6496_s8, 4  ;;  %s142_s30 = int_to_ptr.vmem [resolvable:$true] %s141_s30  ;;  %s166_s9 = int_to_ptr.vmem [resolvable:$true] %s165_s9 }
  0x1c   :  { %144 = dma.hbm_to_vmem [thread:$0]  %s140_s14, 16, %s142_s30, [#allocation12]  }
  0x1d   :  { %s67_s20 = sshll.u32 %s10395_s12, 4  ;;  %s95_s6 = sshll.u32 %s10398_s15, 4  ;;  %s68_s20 = int_to_ptr.hbm [resolvable:$true] %s67_s20  ;;  %s96_s6 = int_to_ptr.hbm [resolvable:$true] %s95_s6 }
  0x1e   :  { %168 = dma.hbm_to_vmem [thread:$0]  %s164_s7, 16, %s166_s9, [#allocation15]  }
  0x1f   :  { %s6497_s11 = smov [#allocation2]   ;;  %s6498_s2 = smov [#allocation7]  }
  0x20   :  { %s69_s22 = sshll.u32 %s6497_s11, 4  ;;  %s97_s14 = sshll.u32 %s6498_s2, 4  ;;  %s70_s22 = int_to_ptr.vmem [resolvable:$true] %s69_s22  ;;  %s98_s14 = int_to_ptr.vmem [resolvable:$true] %s97_s14 }
  0x21   :  { %75 = dma.hbm_to_vmem [thread:$0]  %s68_s20, 512, %s70_s22, [#allocation3], %s6492_s10, %s6492_s10, %s6493_s29  }
  0x22   :  { %s125_s12 = sshll.u32 %s10402_s19, 4  ;;  %s149_s4 = sshll.u32 %s10404_s21, 4  ;;  %s126_s12 = int_to_ptr.hbm [resolvable:$true] %s125_s12  ;;  %s150_s4 = int_to_ptr.hbm [resolvable:$true] %s149_s4 }
  0x23   :  { %103 = dma.hbm_to_vmem [thread:$0]  %s96_s6, 512, %s98_s14, [#allocation6], %s6492_s10, %s6492_s10, %s6493_s29  }
  0x24   :  { %s6499_s30 = smov [#allocation10]   ;;  %s6500_s9 = smov [#allocation13]  }
  0x25   :  { %s127_s8 = sshll.u32 %s6499_s30, 4  ;;  %s151_s19 = sshll.u32 %s6500_s9, 4  ;;  %s128_s8 = int_to_ptr.vmem [resolvable:$true] %s127_s8  ;;  %s152_s19 = int_to_ptr.vmem [resolvable:$true] %s151_s19 }
  0x26   :  { %133 = dma.hbm_to_vmem [thread:$0]  %s126_s12, 256, %s128_s8, [#allocation9], %s6492_s10, %s6492_s10, %s6493_s29  }
  0x27   :  { %s176_s20 = sshll.u32 %s10407_s24, 4  ;;  %s189_s0 = sshll.u32 %s10409_s26, 4  ;;  %s177_s20 = int_to_ptr.hbm [resolvable:$true] %s176_s20  ;;  %s190_s0 = int_to_ptr.hbm [resolvable:$true] %s189_s0 }
  0x28   :  { %157 = dma.hbm_to_vmem [thread:$0]  %s150_s4, 256, %s152_s19, [#allocation12], %s6492_s10, %s6492_s10, %s6493_s29  }
  0x29   :  { %s6501_s6 = smov [#allocation16]   ;;  %s6502_s22 = smov [#allocation17]  }
  0x2a   :  { %s178_s11 = sshll.u32 %s6501_s6, 4  ;;  %s191_s2 = sshll.u32 %s6502_s22, 4  ;;  %s179_s11 = int_to_ptr.vmem [resolvable:$true] %s178_s11  ;;  %s192_s2 = int_to_ptr.vmem [resolvable:$true] %s191_s2 }
  0x2b   :  { %181 = dma.hbm_to_vmem [thread:$0]  %s177_s20, 16, %s179_s11, [#allocation15]  }
  0x2c   :  { %194 = dma.hbm_to_vmem [thread:$0]  %s190_s0, 16, %s192_s2, [#allocation18]  }
  0x2d   :  { %6477 = dma.done.wait [#allocation3], 512  }
  0x2e   :  { %6478 = vsyncadd [#allocation3], 4294966784 }
  0x2f   :  { %6479 = dma.done.wait [#allocation6], 1024  }
  0x30   :  { %6480 = vsyncadd [#allocation6], 4294966272 }
  0x31   :  { %6481 = dma.done.wait [#allocation9], 768  }
  0x32   :  { %6482 = vsyncadd [#allocation9], 4294966528 }
  0x33   :  { %6483 = dma.done.wait [#allocation12], 272  }
  0x34   :  { %6484 = vsyncadd [#allocation12], 4294967024 }
  0x35   :  { %6485 = dma.done.wait [#allocation15], 32  }
  0x36   :  { %6486 = vsyncadd [#allocation15], 4294967264 }
  0x37   :  { %6487 = dma.done.wait [#allocation18], 16  }
  0x38   :  { %6488 = vsyncadd [#allocation18], 4294967280  ;;  %vm252_vm0 = vcmask 1041408   ;;  %s10511_s10 = sld [smem:[#allocation97_spill]]  ;;  %vm248_vm1 = vcmask 31744   ;;  %v495_v15 = vlaneseq  ;;  %vm331_vm10 = vcmask 261120  }
  0x39   :  { %s10512_s17 = sld [smem:[#allocation93_spill]]  ;;  %v5564_v62 = vld [vmem:[#allocation5 + $0x8] sm:$0xff] }
  0x3a   :  { %s10513_s4 = sld [smem:[#allocation98_spill]]  ;;  %v6710_v17 = vshrl.u32 %v495_v15, 7 }
  0x3b   :  { %s10514_s9 = sld [smem:[#allocation99_spill]] }
  0x3c   :  { %5608 = vset.pattern.permute.xlu1 %v6710_v17  ;;  %5610 = vset.pattern.permute.xlu2 %v6710_v17  ;;  %s10515_s21 = sld [smem:[#allocation94_spill]]  ;;  %v6723_v27 = vadd.s32 8, %v6710_v17 }
  0x3d   :  { %5606 = vset.pattern.permute.xlu0 %v6710_v17  ;;  %s10516_s22 = sld [smem:[#allocation101_spill]] }
  0x3e   :  { %v242_v0 = vld [vmem:[%s10511_s10] sm:$0x3]  ;;  %s10517_s26 = sld [smem:[#allocation102_spill]] }
  0x3f   :  { %v240_v1 = vld [vmem:[%s10512_s17] sm:$0xff]  ;;  %v241_v2 = vld [vmem:[%s10512_s17 + $0x8] sm:$0xff]  ;;  %v254_v3 = vsel %vm252_vm0, %v242_v0, 0  ;;  %s10518_s15 = sld [smem:[#allocation100_spill]] }
  0x40   :  { %v244_v4 = vpack.c.bf16 %v241_v2, %v240_v1  ;;  %263 = vmatpush.bf16.msra.mxu2 %v254_v3  ;;  %v5641_v5 = vld [vmem:[%s10513_s4] ss:$0 sm:$0xff]  ;;  %s10541_s30 = sld [smem:[#allocation95_spill]] }
  0x41   :  { %v5556_v8 = vld [vmem:[%s10514_s9 + $0x8] sm:$0xff]  ;;  %v5555_v10 = vld [vmem:[%s10514_s9] sm:$0xff]  ;;  %s10547_s28 = sld [smem:[#allocation103_spill]] }
  0x42   :  { %341 = vmatpush.bf16.msra.mxu1 %v5556_v8  ;;  %v6717_v18 = vld [vmem:[%s10515_s21] sm:$0xff]  ;;  %v237_v53 = vld [vmem:[%s10515_s21 + $0x8] sm:$0xff]  ;;  %s10549_s1 = sld [smem:[#allocation104_spill]] }
  0x43   :  { %5220 = vmatmul.msk.bf16.vlgmr.msra.gmra.mxu2 %vm248_vm1, %v244_v4  ;;  %v507_v20 = vperm.slane %v6717_v18, 1  ;;  %v520_v25 = vperm.slane %v6717_v18, 2  ;;  %v533_v47 = vperm.slane %v6717_v18, 3  ;;  %v494_v48 = vperm.slane %v6717_v18, 0  ;;  %v5558_v57 = vld [vmem:[%s10516_s22 + $0x8] sm:$0xff]  ;;  %v5557_v59 = vld [vmem:[%s10516_s22] sm:$0xff] }
  0x44   :  { %v559_v49 = vperm.slane %v6717_v18, 5  ;;  %v546_v50 = vperm.slane %v6717_v18, 4  ;;  %v572_v51 = vperm.slane %v6717_v18, 6  ;;  %v585_v52 = vperm.slane %v6717_v18, 7  ;;  %v5560_v58 = vld [vmem:[%s10517_s26 + $0x8] sm:$0xff]  ;;  %375 = vmatpush.bf16.msrb.mxu2 %v5558_v57  ;;  %v5559_v60 = vld [vmem:[%s10517_s26] sm:$0xff] }
  0x45   :  { %512 = vperm.xlu1 %5608, %v507_v20   ;;  %525 = vperm.xlu2 %5610, %v520_v25   ;;  %v598_v54 = vperm.slane %v237_v53, 0  ;;  %v650_v55 = vperm.slane %v237_v53, 4  ;;  %v611_v56 = vperm.slane %v237_v53, 1  ;;  %v624_v61 = vperm.slane %v237_v53, 2  ;;  %v5563_v1 = vld [vmem:[#allocation5] sm:$0xff] }
  0x46   :  { %342 = vmatpush.bf16.msra.mxu1 %v5555_v10  ;;  %499 = vperm.xlu0 %5606, %v494_v48   ;;  %v663_v63 = vperm.slane %v237_v53, 5  ;;  %v676_v0 = vperm.slane %v237_v53, 6  ;;  %v637_v2 = vperm.slane %v237_v53, 3  ;;  %v5642_v4 = vld [vmem:[%s10518_s15] ss:$0 sm:$0xff] }
  0x48   :  { %376 = vmatpush.bf16.msrb.mxu2 %v5557_v59 }
  0x4a   :  { %405 = vmatpush.bf16.msrb.mxu1 %v5560_v58 }
  0x4c   :  { %2767 = vmatpush.bf16.msra.mxu2 %v5564_v62 }
  0x4d   :  { %5609 = vset.pattern.permute.xlu1 %v6723_v27  ;;  %5611 = vset.pattern.permute.xlu2 %v6723_v27 }
  0x4e   :  { %5607 = vset.pattern.permute.xlu0 %v6723_v27  ;;  %406 = vmatpush.bf16.msrb.mxu1 %v5559_v60 }
  0x50   :  { %2768 = vmatpush.bf16.msra.mxu2 %v5563_v1 }
  0x55   :  { %518 = vperm.xlu1 %5609, %v507_v20   ;;  %531 = vperm.xlu2 %5611, %v520_v25  }
  0x56   :  { %505 = vperm.xlu0 %5607, %v494_v48  }
  0x5d   :  { %5612 = vset.pattern.permute.xlu1 %v6710_v17  ;;  %544 = vperm.xlu2 %5611, %v533_v47  }
  0x5e   :  { %5613 = vset.pattern.permute.xlu0 %v6710_v17 }
  0x65   :  { %538 = vperm.xlu1 %5612, %v533_v47   ;;  %5615 = vset.pattern.permute.xlu2 %v6710_v17 }
  0x66   :  { %551 = vperm.xlu0 %5613, %v546_v50  }
  0x6d   :  { %5614 = vset.pattern.permute.xlu1 %v6723_v27  ;;  %564 = vperm.xlu2 %5615, %v559_v49  }
  0x6e   :  { %5616 = vset.pattern.permute.xlu0 %v6723_v27 }
  0x75   :  { %557 = vperm.xlu1 %5614, %v546_v50   ;;  %577 = vperm.xlu2 %5615, %v572_v51  }
  0x76   :  { %583 = vperm.xlu0 %5616, %v572_v51  }
  0x7d   :  { %570 = vperm.xlu1 %5614, %v559_v49   ;;  %5618 = vset.pattern.permute.xlu2 %v6723_v27 }
  0x7e   :  { %5619 = vset.pattern.permute.xlu0 %v6710_v17 }
  0x85   :  { %5617 = vset.pattern.permute.xlu1 %v6710_v17  ;;  %596 = vperm.xlu2 %5618, %v585_v52  }
  0x86   :  { %655 = vperm.xlu0 %5619, %v650_v55  }
  0x8d   :  { %590 = vperm.xlu1 %5617, %v585_v52   ;;  %609 = vperm.xlu2 %5618, %v598_v54  }
  0x8e   :  { %5622 = vset.pattern.permute.xlu0 %v6723_v27 }
  0x95   :  { %603 = vperm.xlu1 %5617, %v598_v54   ;;  %5621 = vset.pattern.permute.xlu2 %v6710_v17  ;;  %v5561_v54 = vld [vmem:[#allocation2] sm:$0xff] }
  0x96   :  { %674 = vperm.xlu0 %5622, %v663_v63  }
  0x9d   :  { %5620 = vset.pattern.permute.xlu1 %v6723_v27  ;;  %616 = vperm.xlu2 %5621, %v611_v56  }
  0x9e   :  { %5625 = vset.pattern.permute.xlu0 %v6710_v17 }
  0xa5   :  { %661 = vperm.xlu1 %5620, %v650_v55   ;;  %668 = vperm.xlu2 %5621, %v663_v63  }
  0xa6   :  { %642 = vperm.xlu0 %5625, %v637_v2  }
  0xad   :  { %622 = vperm.xlu1 %5620, %v611_v56   ;;  %5624 = vset.pattern.permute.xlu2 %v6723_v27  ;;  %v6875_v56 = vld [vmem:[%s10549_s1] ss:$0 sm:$0xff] }
  0xb5   :  { %5623 = vset.pattern.permute.xlu1 %v6710_v17  ;;  %635 = vperm.xlu2 %5624, %v624_v61  }
  0xb7   :  { %v6779_v10 = vpop.permute.xlu1 %512 }
  0xb8   :  { %10521 = vst [vmem:[#allocation29_spill] sm:$0xff] %v6779_v10 }
  0xbd   :  { %629 = vperm.xlu1 %5623, %v624_v61   ;;  %687 = vperm.xlu2 %5624, %v676_v0  }
  0xc5   :  { %681 = vperm.xlu1 %5623, %v676_v0   ;;  %5627 = vset.pattern.permute.xlu2 %v6710_v17 }
  0xc6   :  { %v265_v6 = vpop.f32.mrf.mxu2 }
  0xc7   :  { %v266_v7 = vadd.f32 %v5641_v5, %v265_v6 }
  0xc9   :  { %v5221_v9 = vmul.f32 -1.442695, %v266_v7 }
  0xcb   :  { %5657 = vpow2.f32 %v5221_v9 }
  0xcd   :  { %5626 = vset.pattern.permute.xlu1 %v6723_v27 }
  0xce   :  { %v267_v11 = vpop.f32.mrf.mxu2 }
  0xcf   :  { %v268_v12 = vadd.f32 %v5641_v5, %v267_v11  ;;  %v689_v5 = vperm.slane %v237_v53, 7  ;;  %v6781_v11 = vpop.permute.xlu2 %525 }
  0xd0   :  { %10522 = vst [vmem:[#allocation30_spill] sm:$0xff] %v6781_v11 }
  0xd1   :  { %v5658_v13 = vpop.eup %5657  ;;  %v5222_v14 = vmul.f32 -1.442695, %v268_v12  ;;  %694 = vperm.xlu2 %5627, %v689_v5  }
  0xd2   :  { %v276_v16 = vadd.f32 1.0, %v5658_v13 }
  0xd3   :  { %5659 = vpow2.f32 %v5222_v14 }
  0xd4   :  { %5661 = vrcp.f32 %v276_v16  ;;  %v289_v31 = vand.u32 2147483648, %v276_v16  ;;  %vm283_vm3 = vweird.f32 %v276_v16  ;;  %v287_v32 = vand.u32 2147483647, %v276_v16 }
  0xd5   :  { %648 = vperm.xlu1 %5626, %v637_v2  }
  0xd6   :  { %v290_v38 = vor.u32 1.1754944e-38, %v289_v31  ;;  %vm288_vm6 = vcmp.eq.f32.partialorder %v287_v32, 8.507059e+37 }
  0xd7   :  { %v6785_v13 = vpop.permute.xlu2 %531 }
  0xd8   :  { %10524 = vst [vmem:[#allocation32_spill] sm:$0xff] %v6785_v13 }
  0xd9   :  { %v5660_v19 = vpop.eup %5659 }
  0xda   :  { %v5662_v21 = vpop.eup %5661  ;;  %v277_v22 = vadd.f32 1.0, %v5660_v19 }
  0xdb   :  { %v279_v23 = vmul.f32 %v5662_v21, %v276_v16  ;;  %vm284_vm2 = vweird.f32 %v5662_v21 }
  0xdc   :  { %5663 = vrcp.f32 %v277_v22  ;;  %vm285_vm4 = vmor %vm283_vm3, %vm284_vm2  ;;  %v304_v34 = vand.u32 2147483648, %v277_v22  ;;  %v302_v37 = vand.u32 2147483647, %v277_v22  ;;  %vm298_vm7 = vweird.f32 %v277_v22 }
  0xdd   :  { %v280_v24 = vsub.f32 1.0, %v279_v23  ;;  %700 = vperm.xlu1 %5626, %v689_v5  }
  0xde   :  { %v305_v41 = vor.u32 1.1754944e-38, %v304_v34  ;;  %vm303_vm9 = vcmp.eq.f32.partialorder %v302_v37, 8.507059e+37  ;;  %v6834_v37 = vld [vmem:[%s10541_s30 + $0x8] sm:$0xff] }
  0xdf   :  { %v281_v26 = vmul.f32 %v5662_v21, %v280_v24  ;;  %v6789_v15 = vpop.permute.xlu2 %544  ;;  %v2375_v49 = vperm.slane %v6834_v37, 1 }
  0xe0   :  { %10526 = vst [vmem:[#allocation34_spill] sm:$0xff] %v6789_v15 }
  0xe1   :  { %v282_v29 = vadd.f32 %v5662_v21, %v281_v26  ;;  %2380 = vperm.xlu0 %5625, %v2375_v49  }
  0xe2   :  { %v5664_v28 = vpop.eup %5663 }
  0xe3   :  { %v294_v30 = vmul.f32 %v5664_v28, %v277_v22  ;;  %v286_v35 = vsel %vm285_vm4, %v5662_v21, %v282_v29  ;;  %vm299_vm5 = vweird.f32 %v5664_v28  ;;  %v6813_v29 = vpop.permute.xlu0 %499 }
  0xe4   :  { %v291_v40 = vsel %vm288_vm6, %v290_v38, %v286_v35  ;;  %vm300_vm8 = vmor %vm298_vm7, %vm299_vm5  ;;  %10537 = vst [vmem:[#allocation45_spill] sm:$0xff] %v6813_v29 }
  0xe5   :  { %v295_v33 = vsub.f32 1.0, %v294_v30  ;;  %v308_v44 = vmul.f32 %v291_v40, %v266_v7  ;;  %5628 = vset.pattern.permute.xlu1 %v6710_v17 }
  0xe7   :  { %v296_v36 = vmul.f32 %v5664_v28, %v295_v33  ;;  %v6793_v18 = vpop.permute.xlu2 %564  ;;  %v6824_v33 = vld [vmem:[%s10541_s30] sm:$0xff] }
  0xe8   :  { %10528 = vst [vmem:[#allocation36_spill] sm:$0xff] %v6793_v18  ;;  %v2271_v34 = vperm.slane %v6824_v33, 1  ;;  %v10419_v38 = vperm.slane %v6824_v33, 0 }
  0xe9   :  { %v297_v39 = vadd.f32 %v5664_v28, %v296_v36 }
  0xea   :  { %2263 = vperm.xlu2 %5627, %v10419_v38  }
  0xeb   :  { %v301_v42 = vsel %vm300_vm8, %v5664_v28, %v297_v39  ;;  %v6819_v32 = vpop.permute.xlu0 %505  ;;  %v10420_v39 = vperm.slane %v6834_v37, 0 }
  0xec   :  { %v306_v43 = vsel %vm303_vm9, %v305_v41, %v301_v42  ;;  %10540 = vst [vmem:[#allocation48_spill] sm:$0xff] %v6819_v32 }
  0xed   :  { %v309_v45 = vmul.f32 %v306_v43, %v268_v12  ;;  %v6783_v12 = vpop.permute.xlu1 %518  ;;  %2276 = vperm.xlu1 %5628, %v2271_v34  }
  0xee   :  { %10523 = vst [vmem:[#allocation31_spill] sm:$0xff] %v6783_v12 }
  0xef   :  { %v315_v46 = vpack.c.bf16 %v309_v45, %v308_v44  ;;  %v6797_v20 = vpop.permute.xlu2 %577  ;;  %v6853_v44 = vld [vmem:[%s10547_s28] ss:$0 sm:$0xff] }
  0xf0   :  { %10530 = vst [vmem:[#allocation38_spill] sm:$0xff] %v6797_v20  ;;  %v706_v47 = vmul.f32 %v6853_v44, %v6819_v32  ;;  %v708_v52 = vmul.f32 %v6853_v44, %v6783_v12  ;;  %v705_v55 = vmul.f32 %v6853_v44, %v6813_v29  ;;  %v707_v60 = vmul.f32 %v6853_v44, %v6779_v10 }
  0xf1   :  { %5231 = vmatmul.msk.bf16.vlgmr.msra.gmra.mxu1 %vm331_vm10, %v315_v46  ;;  %v5562_v46 = vld [vmem:[#allocation2 + $0x8] sm:$0xff] }
  0xf2   :  { %5629 = vset.pattern.permute.xlu2 %v6723_v27  ;;  %1535 = vmatpush.bf16.msra.mxu0 %v5562_v46 }
  0xf3   :  { %v6838_v40 = vpop.permute.xlu0 %551  ;;  %5589 = vmatpush.bf16.msra.mxu1 %v5562_v46 }
  0xf4   :  { %10544 = vst [vmem:[#allocation51_spill] sm:$0xff] %v6838_v40 }
  0xf5   :  { %v6787_v14 = vpop.permute.xlu1 %538  ;;  %2367 = vperm.xlu1 %5628, %v10420_v39  }
  0xf6   :  { %10525 = vst [vmem:[#allocation33_spill] sm:$0xff] %v6787_v14  ;;  %1536 = vmatpush.bf16.msra.mxu0 %v5561_v54 }
  0xf7   :  { %v6801_v22 = vpop.permute.xlu2 %596  ;;  %5590 = vmatpush.bf16.msra.mxu1 %v5561_v54 }
  0xf8   :  { %10532 = vst [vmem:[#allocation40_spill] sm:$0xff] %v6801_v22 }
  0xfa   :  { %2282 = vperm.xlu2 %5629, %v2271_v34  }
  0xfb   :  { %v6861_v48 = vpop.permute.xlu0 %583 }
  0xfc   :  { %10548 = vst [vmem:[#allocation54_spill] sm:$0xff] %v6861_v48 }
  0xfd   :  { %v6791_v16 = vpop.permute.xlu1 %557  ;;  %5630 = vset.pattern.permute.xlu1 %v6723_v27 }
  0xfe   :  { %10527 = vst [vmem:[#allocation35_spill] sm:$0xff] %v6791_v16 }
  0xff   :  { %v6805_v24 = vpop.permute.xlu2 %609 }
 0x105   :  { %v6795_v19 = vpop.permute.xlu1 %570  ;;  %2386 = vperm.xlu1 %5630, %v2375_v49   ;;  %v6909_v49 = vpop.permute.xlu0 %655 }
 0x106   :  { %10529 = vst [vmem:[#allocation37_spill] sm:$0xff] %v6795_v19 }
 0x107   :  { %v6809_v26 = vpop.permute.xlu2 %616  ;;  %10552 = vst [vmem:[#allocation57_spill] sm:$0xff] %v6909_v49 }
 0x108   :  { %10535 = vst [vmem:[#allocation43_spill] sm:$0xff] %v6809_v26 }
 0x10d   :  { %v6799_v21 = vpop.permute.xlu1 %590 }
 0x10e   :  { %10531 = vst [vmem:[#allocation39_spill] sm:$0xff] %v6799_v21 }
 0x10f   :  { %v6815_v30 = vpop.permute.xlu2 %668 }
 0x110   :  { %10538 = vst [vmem:[#allocation46_spill] sm:$0xff] %v6815_v30 }
 0x115   :  { %v6803_v23 = vpop.permute.xlu1 %603 }
 0x116   :  { %10533 = vst [vmem:[#allocation41_spill] sm:$0xff] %v6803_v23 }
 0x117   :  { %v6827_v35 = vpop.permute.xlu2 %635 }
 0x118   :  { %10542 = vst [vmem:[#allocation49_spill] sm:$0xff] %v6827_v35 }
 0x11d   :  { %v6807_v25 = vpop.permute.xlu1 %661 }
 0x11e   :  { %10534 = vst [vmem:[#allocation42_spill] sm:$0xff] %v6807_v25  ;;  %v730_v46 = vmul.f32 %v6853_v44, %v6807_v25 }
 0x11f   :  { %v6846_v42 = vpop.permute.xlu2 %687 }
 0x120   :  { %10545 = vst [vmem:[#allocation52_spill] sm:$0xff] %v6846_v42 }
 0x125   :  { %v6811_v28 = vpop.permute.xlu1 %622 }
 0x126   :  { %10536 = vst [vmem:[#allocation44_spill] sm:$0xff] %v6811_v28 }
 0x12b   :  { %v6883_v1 = vpop.permute.xlu2 %694 }
 0x12c   :  { %10550 = vst [vmem:[#allocation55_spill] sm:$0xff] %v6883_v1  ;;  %v735_v54 = vmul.f32 %v6853_v44, %v6883_v1  ;;  %v6930_v1 = vmul.f32 %v6853_v44, %v6787_v14 }
 0x12f   :  { %v6817_v31 = vpop.permute.xlu1 %629 }
 0x130   :  { %10539 = vst [vmem:[#allocation47_spill] sm:$0xff] %v6817_v31 }
 0x137   :  { %v6829_v36 = vpop.permute.xlu1 %681 }
 0x138   :  { %10543 = vst [vmem:[#allocation50_spill] sm:$0xff] %v6829_v36 }
 0x147   :  { %v6848_v43 = vpop.permute.xlu1 %648 }
 0x148   :  { %10546 = vst [vmem:[#allocation53_spill] sm:$0xff] %v6848_v43 }
 0x16e   :  { %v344_v3 = vpop.f32.mrf.mxu1 }
 0x16f   :  { %v6768_v7 = vadd.f32 %v5642_v4, %v344_v3 }
 0x171   :  { %10519 = vst [vmem:[#allocation27_spill] sm:$0xff] %v6768_v7 }
 0x176   :  { %v346_v6 = vpop.f32.mrf.mxu1 }
 0x177   :  { %v6770_v8 = vadd.f32 %v5642_v4, %v346_v6 }
 0x179   :  { %10520 = vst [vmem:[#allocation28_spill] sm:$0xff] %v6770_v8  ;;  %v353_v9 = vpack.c.bf16 %v6770_v8, %v6768_v7 }
 0x17b   :  { %5240 = vmatmul.msk.bf16.vlgmr.msrb.gmra.mxu2 %vm331_vm10, %v353_v9  ;;  %5249 = vmatmul.msk.bf16.vlgmr.msrb.gmra.mxu1 %vm331_vm10, %v353_v9 }
 0x18b   :  { %5355 = vmatmul.msk.bf16.vlgmr.msra.gmra.mxu2 %vm331_vm10, %v353_v9  ;;  %v6893_v9 = vpop.permute.xlu1 %700 }
 0x18c   :  { %10551 = vst [vmem:[#allocation56_spill] sm:$0xff] %v6893_v9 }
 0x1f8   :  { %v6844_v41 = vpop.f32.mrf.mxu1 }
 0x1fe   :  { %v6855_v45 = vpop.f32.mrf.mxu2 }
 0x1ff   :  { %v430_v50 = vperm.slane %v6855_v45, 0  ;;  %v416_v51 = vrot.slane %v6855_v45, 1 }
 0x200   :  { %v6868_v53 = vpop.f32.mrf.mxu1 }
 0x201   :  { %v462_v57 = vadd.f32 %v430_v50, %v6844_v41  ;;  %v463_v58 = vadd.f32 %v430_v50, %v6868_v53  ;;  %v431_v59 = vperm.slane %v416_v51, 0 }
 0x203   :  { %v737_v61 = vadd.f32 %v705_v55, %v462_v57  ;;  %v738_v62 = vadd.f32 %v706_v47, %v463_v58  ;;  %v464_v63 = vadd.f32 %v431_v59, %v6844_v41  ;;  %v465_v0 = vadd.f32 %v431_v59, %v6868_v53 }
 0x204   :  { %v736_v59 = vmul.f32 %v6853_v44, %v6893_v9 }
 0x205   :  { %v6886_v2 = vadd.f32 %v6875_v56, %v737_v61  ;;  %v6889_v3 = vadd.f32 %v6875_v56, %v738_v62  ;;  %v739_v4 = vadd.f32 %v707_v60, %v464_v63  ;;  %v740_v5 = vadd.f32 %v708_v52, %v465_v0 }
 0x206   :  { %v6891_v6 = vpop.f32.mrf.mxu2  ;;  %v729_v60 = vmul.f32 %v6853_v44, %v6909_v49  ;;  %v709_v63 = vmul.f32 %v6853_v44, %v6781_v11 }
 0x207   :  { %v426_v47 = vrot.slane %v6891_v6, 4  ;;  %v429_v50 = vrot.slane %v6891_v6, 7  ;;  %v5250_v51 = vmul.f32 -1.442695, %v6886_v2  ;;  %v5251_v52 = vmul.f32 -1.442695, %v6889_v3 }
 0x208   :  { %v6904_v55 = vadd.f32 %v6875_v56, %v739_v4  ;;  %v6907_v34 = vadd.f32 %v6875_v56, %v740_v5  ;;  %v417_v5 = vrot.slane %v6855_v45, 2  ;;  %v427_v9 = vrot.slane %v6891_v6, 5 }
 0x209   :  { %v442_v57 = vperm.slane %v426_v47, 0  ;;  %v445_v58 = vperm.slane %v429_v50, 0  ;;  %5665 = vpow2.f32 %v5250_v51  ;;  %v710_v47 = vmul.f32 %v6853_v44, %v6785_v13 }
 0x20a   :  { %5667 = vpow2.f32 %v5251_v52  ;;  %v5252_v61 = vmul.f32 -1.442695, %v6904_v55  ;;  %v5253_v62 = vmul.f32 -1.442695, %v6907_v34  ;;  %v10426_v50 = vperm.slane %v6824_v33, 2 }
 0x20b   :  { %v492_v0 = vadd.f32 %v445_v58, %v6844_v41  ;;  %v493_v4 = vadd.f32 %v445_v58, %v6868_v53  ;;  %v486_v51 = vadd.f32 %v442_v57, %v6844_v41  ;;  %v487_v52 = vadd.f32 %v442_v57, %v6868_v53 }
 0x20c   :  { %5669 = vpow2.f32 %v5252_v61  ;;  %v10553_v58 = vperm.slane %v6834_v37, 0  ;;  %2295 = vperm.xlu1 %5630, %v10426_v50   ;;  %v6942_v57 = vmul.f32 %v6853_v44, %v6791_v16  ;;  %v432_v61 = vperm.slane %v417_v5, 0 }
 0x20d   :  { %v767_v38 = vadd.f32 %v735_v54, %v492_v0  ;;  %v768_v39 = vadd.f32 %v736_v59, %v493_v4  ;;  %v761_v49 = vadd.f32 %v729_v60, %v486_v51  ;;  %v762_v25 = vadd.f32 %v730_v46, %v487_v52 }
 0x20e   :  { %2373 = vperm.xlu2 %5629, %v10553_v58   ;;  %5671 = vpow2.f32 %v5253_v62  ;;  %v6938_v54 = vmul.f32 %v6853_v44, %v6789_v15  ;;  %v6949_v4 = vmul.f32 %v6853_v44, %v6793_v18  ;;  %v6961_v51 = vmul.f32 %v6853_v44, %v6795_v19  ;;  %v6994_v15 = vpop.permute.xlu0 %674 }
 0x20f   :  { %v5666_v32 = vpop.eup %5665  ;;  %v6945_v59 = vadd.f32 %v6875_v56, %v767_v38  ;;  %v6954_v60 = vadd.f32 %v6875_v56, %v761_v49  ;;  %v6957_v62 = vadd.f32 %v6875_v56, %v762_v25  ;;  %v6965_v5 = vadd.f32 %v6875_v56, %v768_v39  ;;  %10556 = vst [vmem:[#allocation60_spill] sm:$0xff] %v6994_v15 }
 0x210   :  { %v5668_v0 = vpop.eup %5667  ;;  %v6951_v46 = vadd.f32 1.0, %v5666_v32  ;;  %v443_v52 = vperm.slane %v427_v9, 0  ;;  %v6969_v32 = vmul.f32 %v6853_v44, %v6797_v20  ;;  %v6973_v49 = vmul.f32 %v6853_v44, %v6801_v22 }
 0x211   :  { %v5280_v38 = vmul.f32 -1.442695, %v6945_v59  ;;  %v6975_v25 = vadd.f32 1.0, %v5668_v0  ;;  %v6980_v50 = vmul.f32 %v6853_v44, %v6799_v21  ;;  %v6984_v39 = vmul.f32 %v6853_v44, %v6838_v40 }
 0x212   :  { %10554 = vst [vmem:[#allocation58_spill] sm:$0xff] %v6973_v49  ;;  %5673 = vrcp.f32 %v6951_v46  ;;  %v5670_v58 = vpop.eup %5669  ;;  %v5274_v9 = vmul.f32 -1.442695, %v6954_v60  ;;  %v466_v16 = vadd.f32 %v432_v61, %v6844_v41  ;;  %v6990_v0 = vmul.f32 %v6853_v44, %v6803_v23 }
 0x213   :  { %v731_v22 = vmul.f32 %v6853_v44, %v6815_v30  ;;  %v5275_v21 = vmul.f32 -1.442695, %v6957_v62  ;;  %v467_v14 = vadd.f32 %v432_v61, %v6868_v53  ;;  %v732_v40 = vmul.f32 %v6853_v44, %v6994_v15 }
 0x214   :  { %v5672_v19 = vpop.eup %5671  ;;  %10555 = vst [vmem:[#allocation59_spill] sm:$0xff] %v6990_v0  ;;  %5675 = vpow2.f32 %v5280_v38  ;;  %v5281_v13 = vmul.f32 -1.442695, %v6965_v5  ;;  %v488_v12 = vadd.f32 %v443_v52, %v6844_v41  ;;  %5632 = vset.pattern.permute.xlu1 %v6710_v17  ;;  %v10445_v30 = vperm.slane %v6824_v33, 4 }
 0x215   :  { %5677 = vrcp.f32 %v6975_v25  ;;  %v7006_v23 = vadd.f32 1.0, %v5670_v58  ;;  %v489_v61 = vadd.f32 %v443_v52, %v6868_v53  ;;  %v7011_v15 = vmul.f32 %v6853_v44, %v6861_v48 }
 0x216   :  { %5631 = vset.pattern.permute.xlu2 %v6710_v17  ;;  %5679 = vpow2.f32 %v5274_v9  ;;  %v7013_v38 = vadd.f32 1.0, %v5672_v19  ;;  %v7015_v11 = vadd.f32 %v709_v63, %v466_v16  ;;  %v942_v20 = vand.u32 2147483647, %v6951_v46  ;;  %2315 = vperm.xlu0 %5625, %v10445_v30  }
 0x217   :  { %v944_v18 = vand.u32 2147483648, %v6951_v46  ;;  %5681 = vpow2.f32 %v5275_v21  ;;  %v7021_v58 = vadd.f32 %v710_v47, %v467_v14  ;;  %v763_v48 = vadd.f32 %v731_v22, %v488_v12 }
 0x218   :  { %v5674_v29 = vpop.eup %5673  ;;  %5683 = vpow2.f32 %v5281_v13  ;;  %v957_v16 = vand.u32 2147483647, %v6975_v25  ;;  %v959_v63 = vand.u32 2147483648, %v6975_v25  ;;  %v764_v9 = vadd.f32 %v732_v40, %v489_v61 }
 0x219   :  { %v934_v52 = vmul.f32 %v5674_v29, %v6951_v46  ;;  %5685 = vrcp.f32 %v7006_v23  ;;  %vm938_vm11 = vweird.f32 %v6951_v46  ;;  %vm7031_vm12 = vcmp.eq.f32.partialorder %v942_v20, 8.507059e+37 }
 0x21a   :  { %v5676_v10 = vpop.eup %5675  ;;  %5687 = vrcp.f32 %v7013_v38  ;;  %v945_v22 = vor.u32 1.1754944e-38, %v944_v18  ;;  %vm953_vm13 = vweird.f32 %v6975_v25  ;;  %vm939_vm14 = vweird.f32 %v5674_v29 }
 0x21b   :  { %v935_v21 = vsub.f32 1.0, %v934_v52  ;;  %v5678_v14 = vpop.eup %5677  ;;  %v7039_v52 = vadd.f32 %v6875_v56, %v763_v48  ;;  %vm7041_vm15 = vcmp.eq.f32.partialorder %v957_v16, 8.507059e+37  ;;  %v960_v20 = vor.u32 1.1754944e-38, %v959_v63  ;;  %vm940_vm0 = vmor %vm938_vm11, %vm939_vm14 }
 0x21c   :  { %v5680_v30 = vpop.eup %5679  ;;  %v949_v61 = vmul.f32 %v5678_v14, %v6975_v25  ;;  %v974_v18 = vand.u32 2147483648, %v7006_v23  ;;  %v10561_v47 = vperm.slane %v6824_v33, 2  ;;  %v989_v16 = vand.u32 2147483648, %v7013_v38 }
 0x21d   :  { %v936_v40 = vmul.f32 %v5674_v29, %v935_v21  ;;  %v5682_v19 = vpop.eup %5681  ;;  %v7045_v8 = vadd.f32 1.0, %v5680_v30  ;;  %v10562_v21 = vperm.slane %v6824_v33, 3  ;;  %vm954_vm1 = vweird.f32 %v5678_v14 }
 0x21e   :  { %2289 = vperm.xlu2 %5631, %v10561_v47   ;;  %v7052_v7 = vpop.eup %5683  ;;  %v950_v43 = vsub.f32 1.0, %v949_v61  ;;  %v7054_v35 = vadd.f32 1.0, %v5682_v19  ;;  %v972_v30 = vand.u32 2147483647, %v7006_v23  ;;  %v987_v63 = vand.u32 2147483647, %v7013_v38  ;;  %vm955_vm4 = vmor %vm953_vm13, %vm954_vm1 }
 0x21f   :  { %2302 = vperm.xlu1 %5632, %v10562_v21   ;;  %v937_v48 = vadd.f32 %v5674_v29, %v936_v40  ;;  %v7057_v31 = vpop.eup %5685  ;;  %5689 = vrcp.f32 %v7045_v8  ;;  %v10563_v47 = vperm.slane %v6834_v37, 6  ;;  %vm968_vm2 = vweird.f32 %v7006_v23 }
 0x220   :  { %v7067_v19 = vpop.eup %5687  ;;  %v951_v61 = vmul.f32 %v5678_v14, %v950_v43  ;;  %5691 = vrcp.f32 %v7054_v35  ;;  %v5276_v46 = vmul.f32 -1.442695, %v7039_v52  ;;  %v7072_v21 = vadd.f32 1.0, %v5676_v10 }
 0x221   :  { %2445 = vperm.xlu0 %5625, %v10563_v47   ;;  %v941_v40 = vsel %vm940_vm0, %v5674_v29, %v937_v48  ;;  %v7076_v0 = vor.u32 1.1754944e-38, %v974_v18  ;;  %vm983_vm3 = vweird.f32 %v7013_v38  ;;  %v7080_v47 = vadd.f32 %v6875_v56, %v764_v9 }
 0x222   :  { %v946_v28 = vsel %vm7031_vm12, %v945_v22, %v941_v40  ;;  %v952_v29 = vadd.f32 %v5678_v14, %v951_v61  ;;  %v1302_v43 = vand.u32 2147483647, %v7045_v8  ;;  %v964_v48 = vmul.f32 %v7057_v31, %v7006_v23 }
 0x223   :  { %v7085_v49 = vor.u32 1.1754944e-38, %v989_v16  ;;  %v1413_v10 = vmul.f32 %v946_v28, %v6886_v2  ;;  %v1304_v12 = vand.u32 2147483648, %v7045_v8  ;;  %v979_v9 = vmul.f32 %v7067_v19, %v7013_v38 }
 0x224   :  { %v956_v18 = vsel %vm955_vm4, %v5678_v14, %v952_v29  ;;  %vm1298_vm5 = vweird.f32 %v7045_v8  ;;  %v1319_v40 = vand.u32 2147483648, %v7054_v35  ;;  %v965_v16 = vsub.f32 1.0, %v964_v48 }
 0x225   :  { %5693 = vpow2.f32 %v5276_v46  ;;  %v5690_v61 = vpop.eup %5689  ;;  %v961_v25 = vsel %vm7041_vm15, %v960_v20, %v956_v18  ;;  %vm1313_vm6 = vweird.f32 %v7054_v35  ;;  %vm969_vm7 = vweird.f32 %v7057_v31 }
 0x226   :  { %vm7101_vm8 = vcmp.eq.f32.partialorder %v972_v30, 8.507059e+37  ;;  %v980_v2 = vsub.f32 1.0, %v979_v9  ;;  %vm7105_vm9 = vcmp.eq.f32.partialorder %v987_v63, 8.507059e+37  ;;  %v5277_v29 = vmul.f32 -1.442695, %v7080_v47  ;;  %v5692_v46 = vpop.eup %5691  ;;  %vm7127_vm13 = vmor %vm968_vm2, %vm969_vm7 }
 0x227   :  { %v1414_v48 = vmul.f32 %v961_v25, %v6889_v3  ;;  %v1294_v13 = vmul.f32 %v5690_v61, %v7045_v8  ;;  %v966_v20 = vmul.f32 %v7057_v31, %v965_v16  ;;  %v7115_v30 = vadd.f32 %v6875_v56, %v7015_v11 }
 0x228   :  { %v1309_v18 = vmul.f32 %v5692_v46, %v7054_v35  ;;  %v981_v63 = vmul.f32 %v7067_v19, %v980_v2  ;;  %vm984_vm11 = vweird.f32 %v7067_v19  ;;  %5695 = vpow2.f32 %v5277_v29 }
 0x229   :  { %5638 = vset.pattern.permute.xlu0 %v6723_v27  ;;  %v1450_v9 = vpack.c.bf16 %v1414_v48, %v1413_v10  ;;  %v1295_v22 = vsub.f32 1.0, %v1294_v13  ;;  %v967_v3 = vadd.f32 %v7057_v31, %v966_v20  ;;  %v10452_v25 = vperm.slane %v6834_v37, 2  ;;  %vm7138_vm15 = vmor %vm983_vm3, %vm984_vm11 }
 0x22a   :  { %vm1299_vm12 = vweird.f32 %v5690_v61  ;;  %v1310_v16 = vsub.f32 1.0, %v1309_v18  ;;  %v982_v2 = vadd.f32 %v7067_v19, %v981_v63  ;;  %v2401_v29 = vperm.slane %v6834_v37, 3 }
 0x22b   :  { %v5694_v10 = vpop.eup %5693  ;;  %5290 = vmatmul.msk.bf16.vlgmr.msra.gmra.mxu0 %vm331_vm10, %v1450_v9  ;;  %v1296_v48 = vmul.f32 %v5690_v61, %v1295_v22  ;;  %vm1314_vm14 = vweird.f32 %v5692_v46  ;;  %2393 = vperm.xlu2 %5631, %v10452_v25   ;;  %v7146_v23 = vadd.f32 %v6875_v56, %v7021_v58  ;;  %v5254_v20 = vmul.f32 -1.442695, %v7115_v30  ;;  %vm1300_vm1 = vmor %vm1298_vm5, %vm1299_vm12 }
 0x22c   :  { %v1311_v18 = vmul.f32 %v5692_v46, %v1310_v16  ;;  %v971_v22 = vsel %vm7127_vm13, %v7057_v31, %v967_v3  ;;  %v986_v38 = vsel %vm7138_vm15, %v7067_v19, %v982_v2  ;;  %v7155_v63 = vadd.f32 1.0, %v5694_v10  ;;  %2406 = vperm.xlu1 %5632, %v2401_v29   ;;  %vm1315_vm2 = vmor %vm1313_vm6, %vm1314_vm14 }
 0x22d   :  { %v1297_v9 = vadd.f32 %v5690_v61, %v1296_v48  ;;  %vm1303_vm0 = vcmp.eq.f32.partialorder %v1302_v43, 8.507059e+37  ;;  %v1305_v58 = vor.u32 1.1754944e-38, %v1304_v12  ;;  %5697 = vpow2.f32 %v5254_v20 }
 0x22e   :  { %v5696_v25 = vpop.eup %5695  ;;  %v1312_v16 = vadd.f32 %v5692_v46, %v1311_v18  ;;  %v1320_v31 = vor.u32 1.1754944e-38, %v1319_v40  ;;  %5699 = vrcp.f32 %v7155_v63  ;;  %v428_v19 = vrot.slane %v6891_v6, 6 }
 0x22f   :  { %v1301_v3 = vsel %vm1300_vm1, %v5690_v61, %v1297_v9  ;;  %v976_v43 = vsel %vm7101_vm8, %v7076_v0, %v971_v22  ;;  %v991_v8 = vsel %vm7105_vm9, %v7085_v49, %v986_v38  ;;  %v7173_v12 = vadd.f32 1.0, %v5696_v25 }
 0x230   :  { %v1306_v40 = vsel %vm1303_vm0, %v1305_v58, %v1301_v3  ;;  %v1316_v11 = vsel %vm1315_vm2, %v5692_v46, %v1312_v16  ;;  %v10572_v2 = vand.u32 2147483647, %v7054_v35  ;;  %v5255_v61 = vmul.f32 -1.442695, %v7146_v23 }
 0x231   :  { %v10573_v10 = vperm.slane %v6824_v33, 0  ;;  %5701 = vrcp.f32 %v7072_v21  ;;  %v7182_v0 = vadd.f32 1.0, %v7052_v7  ;;  %v1437_v49 = vmul.f32 %v1306_v40, %v6954_v60 }
 0x232   :  { %vm1318_vm3 = vcmp.eq.f32.partialorder %v10572_v2, 8.507059e+37  ;;  %v1415_v46 = vmul.f32 %v976_v43, %v6904_v55  ;;  %v1416_v35 = vmul.f32 %v991_v8, %v6907_v34  ;;  %5703 = vrcp.f32 %v7173_v12 }
 0x233   :  { %2269 = vperm.xlu0 %5638, %v10573_v10   ;;  %v1321_v28 = vsel %vm1318_vm3, %v1320_v31, %v1316_v11  ;;  %v5698_v25 = vpop.eup %5697  ;;  %v733_v48 = vmul.f32 %v6853_v44, %v6829_v36  ;;  %v1332_v13 = vand.u32 2147483647, %v7155_v63  ;;  %5705 = vpow2.f32 %v5255_v61  ;;  %5633 = vset.pattern.permute.xlu2 %v6723_v27 }
 0x234   :  { %v1438_v14 = vmul.f32 %v1321_v28, %v6957_v62  ;;  %v444_v7 = vperm.slane %v428_v19, 0  ;;  %v5700_v20 = vpop.eup %5699  ;;  %v1334_v62 = vand.u32 2147483648, %v7155_v63  ;;  %v7194_v18 = vadd.f32 1.0, %v5698_v25  ;;  %5634 = vset.pattern.permute.xlu1 %v6723_v27 }
 0x235   :  { %v10574_v55 = vrot.slane %v6855_v45, 3  ;;  %v734_v22 = vmul.f32 %v6853_v44, %v6846_v42  ;;  %5707 = vrcp.f32 %v7182_v0  ;;  %v1324_v38 = vmul.f32 %v5700_v20, %v7155_v63 }
 0x236   :  { %v1462_v60 = vpack.c.bf16 %v1438_v14, %v1437_v49  ;;  %v490_v9 = vadd.f32 %v444_v7, %v6844_v41  ;;  %v1451_v58 = vpack.c.bf16 %v1416_v35, %v1415_v46  ;;  %vm1328_vm4 = vweird.f32 %v7155_v63 }
 0x237   :  { %v433_v34 = vperm.slane %v10574_v55, 0  ;;  %v1347_v16 = vand.u32 2147483647, %v7173_v12  ;;  %5709 = vrcp.f32 %v7194_v18  ;;  %v7208_v31 = vpop.eup %5701  ;;  %v1325_v19 = vsub.f32 1.0, %v1324_v38 }
 0x238   :  { %5302 = vmatmul.msk.bf16.vlgmr.msra.gmra.mxu1 %vm331_vm10, %v1462_v60  ;;  %vm7210_vm5 = vcmp.eq.f32.partialorder %v1332_v13, 8.507059e+37  ;;  %v491_v43 = vadd.f32 %v444_v7, %v6868_v53  ;;  %v765_v8 = vadd.f32 %v733_v48, %v490_v9  ;;  %v5704_v40 = vpop.eup %5703  ;;  %v1335_v11 = vor.u32 1.1754944e-38, %v1334_v62 }
 0x239   :  { %v1349_v2 = vand.u32 2147483648, %v7173_v12  ;;  %v468_v61 = vadd.f32 %v433_v34, %v6844_v41  ;;  %v469_v10 = vadd.f32 %v433_v34, %v6868_v53  ;;  %v10577_v28 = vperm.slane %v6834_v37, 2  ;;  %v5706_v49 = vpop.eup %5705 }
 0x23a   :  { %v1326_v14 = vmul.f32 %v5700_v20, %v1325_v19  ;;  %vm1329_vm6 = vweird.f32 %v5700_v20  ;;  %v1339_v46 = vmul.f32 %v5704_v40, %v7173_v12  ;;  %v766_v35 = vadd.f32 %v734_v22, %v491_v43 }
 0x23b   :  { %2399 = vperm.xlu0 %5638, %v10577_v28   ;;  %vm1343_vm7 = vweird.f32 %v7173_v12  ;;  %vm7222_vm8 = vcmp.eq.f32.partialorder %v1347_v16, 8.507059e+37  ;;  %v7226_v48 = vadd.f32 1.0, %v5706_v49  ;;  %v7229_v13 = vadd.f32 %v6875_v56, %v765_v8  ;;  %v7231_v7 = vpop.eup %5707  ;;  %5291 = vmatmul.msk.bf16.gmra.mxu0 %vm331_vm10, %v1451_v58  ;;  %vm1330_vm9 = vmor %vm1328_vm4, %vm1329_vm6 }
 0x23c   :  { %v1327_v60 = vadd.f32 %v5700_v20, %v1326_v14  ;;  %v1340_v62 = vsub.f32 1.0, %v1339_v46  ;;  %v7235_v55 = vadd.f32 %v6875_v56, %v766_v35  ;;  %v10580_v34 = vperm.slane %v6824_v33, 3 }
 0x23d   :  { %v419_v22 = vrot.slane %v6855_v45, 4  ;;  %v5710_v38 = vpop.eup %5709  ;;  %v1350_v9 = vor.u32 1.1754944e-38, %v1349_v2  ;;  %5711 = vrcp.f32 %v7226_v48  ;;  %v10581_v58 = vperm.slane %v6824_v33, 4 }
 0x23e   :  { %2308 = vperm.xlu2 %5633, %v10580_v34   ;;  %v743_v16 = vadd.f32 %v6930_v1, %v468_v61  ;;  %v744_v19 = vadd.f32 %v6938_v54, %v469_v10  ;;  %v1331_v43 = vsel %vm1330_vm9, %v5700_v20, %v1327_v60  ;;  %v1341_v8 = vmul.f32 %v5704_v40, %v1340_v62 }
 0x23f   :  { %2321 = vperm.xlu1 %5634, %v10581_v58   ;;  %vm1344_vm11 = vweird.f32 %v5704_v40  ;;  %v994_v28 = vmul.f32 %v5710_v38, %v7194_v18  ;;  %v1336_v49 = vsel %vm7210_vm5, %v1335_v11, %v1331_v43  ;;  %v1002_v63 = vand.u32 2147483647, %v7194_v18 }
 0x240   :  { %v1004_v2 = vand.u32 2147483648, %v7194_v18  ;;  %v5278_v14 = vmul.f32 -1.442695, %v7229_v13  ;;  %v1342_v46 = vadd.f32 %v5704_v40, %v1341_v8  ;;  %vm999_vm12 = vweird.f32 %v5710_v38  ;;  %vm1345_vm13 = vmor %vm1343_vm7, %vm1344_vm11 }
 0x241   :  { %v995_v35 = vsub.f32 1.0, %v994_v28  ;;  %v5279_v1 = vmul.f32 -1.442695, %v7235_v55  ;;  %v7258_v54 = vadd.f32 %v6875_v56, %v743_v16  ;;  %v7261_v20 = vadd.f32 %v6875_v56, %v744_v19 }
 0x242   :  { %5713 = vpow2.f32 %v5278_v14  ;;  %v1384_v3 = vmul.f32 %v7208_v31, %v7072_v21  ;;  %v1346_v11 = vsel %vm1345_vm13, %v5704_v40, %v1342_v46  ;;  %v1439_v61 = vmul.f32 %v1336_v49, %v7039_v52 }
 0x243   :  { %v996_v10 = vmul.f32 %v5710_v38, %v995_v35  ;;  %5715 = vpow2.f32 %v5279_v1  ;;  %v5712_v60 = vpop.eup %5711  ;;  %v1351_v12 = vsel %vm7222_vm8, %v1350_v9, %v1346_v11  ;;  %v5256_v62 = vmul.f32 -1.442695, %v7258_v54 }
 0x244   :  { %v5257_v34 = vmul.f32 -1.442695, %v7261_v20  ;;  %v1385_v58 = vsub.f32 1.0, %v1384_v3  ;;  %v1440_v16 = vmul.f32 %v1351_v12, %v7080_v47  ;;  %vm998_vm14 = vweird.f32 %v7194_v18 }
 0x245   :  { %v997_v19 = vadd.f32 %v5710_v38, %v996_v10  ;;  %v1009_v40 = vmul.f32 %v5712_v60, %v7226_v48  ;;  %vm7276_vm15 = vmor %vm998_vm14, %vm999_vm12  ;;  %v1017_v25 = vand.u32 2147483647, %v7226_v48  ;;  %v1019_v9 = vand.u32 2147483648, %v7226_v48 }
 0x246   :  { %2412 = vperm.xlu2 %5633, %v2401_v29   ;;  %5717 = vpow2.f32 %v5256_v62  ;;  %v2414_v47 = vperm.slane %v6834_v37, 4  ;;  %v1463_v43 = vpack.c.bf16 %v1440_v16, %v1439_v61  ;;  %vm1003_vm0 = vcmp.eq.f32.partialorder %v1002_v63, 8.507059e+37 }
 0x247   :  { %v1001_v18 = vsel %vm7276_vm15, %v5710_v38, %v997_v19  ;;  %v1010_v8 = vsub.f32 1.0, %v1009_v40  ;;  %5719 = vpow2.f32 %v5257_v34  ;;  %v1005_v29 = vor.u32 1.1754944e-38, %v1004_v2 }
 0x248   :  { %v5714_v28 = vpop.eup %5713  ;;  %2425 = vperm.xlu1 %5634, %v2414_v47   ;;  %v1386_v49 = vmul.f32 %v7208_v31, %v1385_v58  ;;  %vm1388_vm1 = vweird.f32 %v7072_v21  ;;  %5303 = vmatmul.msk.bf16.gmra.mxu1 %vm331_vm10, %v1463_v43  ;;  %vm1014_vm2 = vweird.f32 %v5712_v60  ;;  %v1392_v38 = vand.u32 2147483647, %v7072_v21 }
 0x249   :  { %v5716_v14 = vpop.eup %5715  ;;  %v1011_v46 = vmul.f32 %v5712_v60, %v1010_v8  ;;  %v7290_v35 = vadd.f32 1.0, %v5714_v28  ;;  %v1006_v1 = vsel %vm1003_vm0, %v1005_v29, %v1001_v18  ;;  %vm1013_vm3 = vweird.f32 %v7226_v48 }
 0x24a   :  { %vm7294_vm4 = vcmp.eq.f32.partialorder %v1017_v25, 8.507059e+37  ;;  %v7298_v2 = vadd.f32 1.0, %v5716_v14  ;;  %v1020_v11 = vor.u32 1.1754944e-38, %v1019_v9  ;;  %vm1389_vm5 = vweird.f32 %v7208_v31  ;;  %vm1015_vm6 = vmor %vm1013_vm3, %vm1014_vm2 }
 0x24b   :  { %v1012_v3 = vadd.f32 %v5712_v60, %v1011_v46  ;;  %5721 = vrcp.f32 %v7290_v35  ;;  %v1387_v10 = vadd.f32 %v7208_v31, %v1386_v49  ;;  %v1394_v48 = vand.u32 2147483648, %v7072_v21  ;;  %vm7329_vm8 = vmor %vm1388_vm1, %vm1389_vm5 }
 0x24c   :  { %v5718_v61 = vpop.eup %5717  ;;  %5723 = vrcp.f32 %v7298_v2  ;;  %v1399_v12 = vmul.f32 %v7231_v7, %v7182_v0  ;;  %v1417_v58 = vmul.f32 %v1006_v1, %v7115_v30  ;;  %vm7310_vm7 = vcmp.eq.f32.partialorder %v1392_v38, 8.507059e+37 }
 0x24d   :  { %v5720_v62 = vpop.eup %5719  ;;  %v1016_v34 = vsel %vm1015_vm6, %v5712_v60, %v1012_v3  ;;  %v7308_v16 = vadd.f32 1.0, %v5718_v61  ;;  %v1362_v52 = vand.u32 2147483647, %v7290_v35  ;;  %v1364_v25 = vand.u32 2147483648, %v7290_v35 }
 0x24e   :  { %5635 = vset.pattern.permute.xlu2 %v6710_v17  ;;  %v1021_v40 = vsel %vm7294_vm4, %v1020_v11, %v1016_v34  ;;  %v7319_v9 = vadd.f32 1.0, %v5720_v62  ;;  %v1377_v30 = vand.u32 2147483647, %v7298_v2  ;;  %v1379_v43 = vand.u32 2147483648, %v7298_v2 }
 0x24f   :  { %v1418_v60 = vmul.f32 %v1021_v40, %v7146_v23  ;;  %5725 = vrcp.f32 %v7308_v16  ;;  %v1391_v23 = vsel %vm7329_vm8, %v7208_v31, %v1387_v10  ;;  %v1395_v8 = vor.u32 1.1754944e-38, %v1394_v48 }
 0x250   :  { %5727 = vrcp.f32 %v7319_v9  ;;  %v1400_v28 = vsub.f32 1.0, %v1399_v12  ;;  %5636 = vset.pattern.permute.xlu1 %v6710_v17  ;;  %vm1358_vm9 = vweird.f32 %v7290_v35  ;;  %vm1373_vm11 = vweird.f32 %v7298_v2 }
 0x251   :  { %v5722_v29 = vpop.eup %5721  ;;  %v1452_v49 = vpack.c.bf16 %v1418_v60, %v1417_v58  ;;  %v1034_v21 = vand.u32 2147483648, %v7308_v16  ;;  %vm7342_vm12 = vcmp.eq.f32.partialorder %v1362_v52, 8.507059e+37  ;;  %v1365_v31 = vor.u32 1.1754944e-38, %v1364_v25 }
 0x252   :  { %v5724_v14 = vpop.eup %5723  ;;  %v1354_v46 = vmul.f32 %v5722_v29, %v7290_v35  ;;  %v1032_v1 = vand.u32 2147483647, %v7308_v16  ;;  %v1049_v63 = vand.u32 2147483648, %v7319_v9  ;;  %vm7350_vm13 = vcmp.eq.f32.partialorder %v1377_v30, 8.507059e+37 }
 0x253   :  { %5292 = vmatmul.msk.bf16.gmra.mxu0 %vm331_vm10, %v1452_v49  ;;  %v1369_v3 = vmul.f32 %v5724_v14, %v7298_v2  ;;  %v1380_v61 = vor.u32 1.1754944e-38, %v1379_v43  ;;  %v1047_v10 = vand.u32 2147483647, %v7319_v9  ;;  %vm1403_vm14 = vweird.f32 %v7182_v0 }
 0x254   :  { %v1355_v48 = vsub.f32 1.0, %v1354_v46  ;;  %vm1028_vm15 = vweird.f32 %v7308_v16  ;;  %v7359_v12 = vsel %vm7310_vm7, %v1395_v8, %v1391_v23  ;;  %v1401_v62 = vmul.f32 %v7231_v7, %v1400_v28 }
 0x255   :  { %v5726_v34 = vpop.eup %5725  ;;  %vm1359_vm0 = vweird.f32 %v5722_v29  ;;  %v1370_v58 = vsub.f32 1.0, %v1369_v3  ;;  %v1035_v40 = vor.u32 1.1754944e-38, %v1034_v21  ;;  %vm1043_vm1 = vweird.f32 %v7319_v9 }
 0x256   :  { %v434_v52 = vperm.slane %v419_v22, 0  ;;  %2419 = vperm.xlu2 %5635, %v2414_v47   ;;  %v5728_v25 = vpop.eup %5727  ;;  %v1356_v60 = vmul.f32 %v5722_v29, %v1355_v48  ;;  %vm1374_vm2 = vweird.f32 %v5724_v14  ;;  %v1024_v19 = vmul.f32 %v5726_v34, %v7308_v16  ;;  %vm1360_vm6 = vmor %vm1358_vm9, %vm1359_vm0 }
 0x257   :  { %vm7368_vm3 = vcmp.eq.f32.partialorder %v1032_v1, 8.507059e+37  ;;  %v1050_v43 = vor.u32 1.1754944e-38, %v1049_v63  ;;  %v1371_v18 = vmul.f32 %v5724_v14, %v1370_v58  ;;  %v1039_v23 = vmul.f32 %v5728_v25, %v7319_v9  ;;  %vm1375_vm7 = vmor %vm1373_vm11, %vm1374_vm2 }
 0x258   :  { %vm7373_vm4 = vcmp.eq.f32.partialorder %v1047_v10, 8.507059e+37  ;;  %vm1404_vm5 = vweird.f32 %v7231_v7  ;;  %v1407_v22 = vand.u32 2147483647, %v7182_v0  ;;  %v1357_v47 = vadd.f32 %v5722_v29, %v1356_v60 }
 0x259   :  { %v1025_v28 = vsub.f32 1.0, %v1024_v19  ;;  %v1402_v49 = vadd.f32 %v7231_v7, %v1401_v62  ;;  %v1409_v21 = vand.u32 2147483648, %v7182_v0  ;;  %v1372_v46 = vadd.f32 %v5724_v14, %v1371_v18  ;;  %vm7399_vm11 = vmor %vm1403_vm14, %vm1404_vm5 }
 0x25a   :  { %v1040_v1 = vsub.f32 1.0, %v1039_v23  ;;  %v470_v63 = vadd.f32 %v434_v52, %v6844_v41  ;;  %v471_v3 = vadd.f32 %v434_v52, %v6868_v53  ;;  %v1361_v10 = vsel %vm1360_vm6, %v5722_v29, %v1357_v47 }
 0x25b   :  { %v1026_v48 = vmul.f32 %v5726_v34, %v1025_v28  ;;  %vm1029_vm8 = vweird.f32 %v5726_v34  ;;  %v420_v62 = vrot.slane %v6855_v45, 5  ;;  %v1366_v58 = vsel %vm7342_vm12, %v1365_v31, %v1361_v10 }
 0x25c   :  { %v1376_v35 = vsel %vm1375_vm7, %v5724_v14, %v1372_v46  ;;  %v1041_v60 = vmul.f32 %v5728_v25, %v1040_v1  ;;  %vm1044_vm9 = vweird.f32 %v5728_v25  ;;  %v1441_v52 = vmul.f32 %v1366_v58, %v7229_v13  ;;  %vm1030_vm12 = vmor %vm1028_vm15, %vm1029_vm8 }
 0x25d   :  { %v1381_v19 = vsel %vm7350_vm13, %v1380_v61, %v1376_v35  ;;  %v1027_v29 = vadd.f32 %v5726_v34, %v1026_v48  ;;  %v745_v38 = vadd.f32 %v6984_v39, %v470_v63  ;;  %v1406_v13 = vsel %vm7399_vm11, %v7231_v7, %v1402_v49  ;;  %vm1045_vm13 = vmor %vm1043_vm1, %vm1044_vm9 }
 0x25e   :  { %v1442_v14 = vmul.f32 %v1381_v19, %v7235_v55  ;;  %v1042_v31 = vadd.f32 %v5728_v25, %v1041_v60  ;;  %v746_v11 = vadd.f32 %v6942_v57, %v471_v3  ;;  %v435_v39 = vperm.slane %v420_v62, 0 }
 0x25f   :  { %v1031_v61 = vsel %vm1030_vm12, %v5726_v34, %v1027_v29  ;;  %v7414_v0 = vadd.f32 %v6875_v56, %v745_v38  ;;  %v421_v55 = vrot.slane %v6855_v45, 6  ;;  %v1410_v49 = vor.u32 1.1754944e-38, %v1409_v21 }
 0x260   :  { %v1464_v18 = vpack.c.bf16 %v1442_v14, %v1441_v52  ;;  %v1036_v16 = vsel %vm7368_vm3, %v1035_v40, %v1031_v61  ;;  %v1046_v23 = vsel %vm1045_vm13, %v5728_v25, %v1042_v31  ;;  %v7420_v47 = vadd.f32 %v6875_v56, %v746_v11  ;;  %v10601_v61 = vld [vmem:[#allocation59_spill] sm:$0xff] }
 0x261   :  { %v1051_v57 = vsel %vm7373_vm4, %v1050_v43, %v1046_v23  ;;  %v1419_v7 = vmul.f32 %v1036_v16, %v7258_v54  ;;  %v5258_v9 = vmul.f32 -1.442695, %v7414_v0  ;;  %v472_v34 = vadd.f32 %v435_v39, %v6844_v41  ;;  %v10603_v16 = vld [vmem:[#allocation47_spill] sm:$0xff] }
 0x262   :  { %5304 = vmatmul.msk.bf16.gmra.mxu1 %vm331_vm10, %v1464_v18  ;;  %v1420_v28 = vmul.f32 %v1051_v57, %v7261_v20  ;;  %v5259_v30 = vmul.f32 -1.442695, %v7420_v47  ;;  %v2427_v40 = vperm.slane %v6834_v37, 5  ;;  %v2323_v25 = vperm.slane %v6824_v33, 5  ;;  %v10604_v57 = vld [vmem:[#allocation49_spill] sm:$0xff] }
 0x263   :  { %5729 = vpow2.f32 %v5258_v9  ;;  %v473_v43 = vadd.f32 %v435_v39, %v6868_v53  ;;  %v747_v54 = vadd.f32 %v6949_v4, %v472_v34  ;;  %v436_v46 = vperm.slane %v421_v55, 0  ;;  %v10602_v55 = vld [vmem:[#allocation44_spill] sm:$0xff] }
 0x264   :  { %v1453_v8 = vpack.c.bf16 %v1420_v28, %v1419_v7  ;;  %5731 = vpow2.f32 %v5259_v30  ;;  %2432 = vperm.xlu1 %5636, %v2427_v40   ;;  %2328 = vperm.xlu2 %5635, %v2323_v25   ;;  %v422_v20 = vrot.slane %v6855_v45, 7  ;;  %vm1408_vm14 = vcmp.eq.f32.partialorder %v1407_v22, 8.507059e+37  ;;  %v7448_v45 = vld [vmem:[%s10541_s30] sm:$0xff] }
 0x265   :  { %v748_v1 = vadd.f32 %v6961_v51, %v473_v43  ;;  %v7439_v33 = vadd.f32 %v6875_v56, %v747_v54  ;;  %2334 = vperm.xlu0 %5638, %v2323_v25   ;;  %v438_v21 = vperm.slane %v6891_v6, 0  ;;  %v1411_v4 = vsel %vm1408_vm14, %v1410_v49, %v1406_v13  ;;  %v7514_v54 = vld [vmem:[%s10549_s1] ss:$0 sm:$0xff] }
 0x266   :  { %5293 = vmatmul.msk.bf16.gmra.mxu0 %vm331_vm10, %v1453_v8  ;;  %v474_v63 = vadd.f32 %v436_v46, %v6844_v41  ;;  %v475_v3 = vadd.f32 %v436_v46, %v6868_v53  ;;  %v437_v10 = vperm.slane %v422_v20, 0  ;;  %v2336_v51 = vperm.slane %v7448_v45, 6 }
 0x267   :  { %v7452_v22 = vadd.f32 %v6875_v56, %v748_v1  ;;  %v5260_v48 = vmul.f32 -1.442695, %v7439_v33  ;;  %v478_v62 = vadd.f32 %v438_v21, %v6844_v41  ;;  %v722_v29 = vmul.f32 %v6853_v44, %v6805_v24 }
 0x268   :  { %v749_v58 = vadd.f32 %v6969_v32, %v474_v63  ;;  %v750_v35 = vadd.f32 %v7011_v15, %v475_v3  ;;  %v476_v60 = vadd.f32 %v437_v10, %v6844_v41  ;;  %v477_v19 = vadd.f32 %v437_v10, %v6868_v53 }
 0x269   :  { %v5730_v52 = vpop.eup %5729  ;;  %v1443_v2 = vmul.f32 %v7359_v12, %v6945_v59  ;;  %5733 = vpow2.f32 %v5260_v48  ;;  %v5261_v38 = vmul.f32 -1.442695, %v7452_v22  ;;  %v1444_v31 = vmul.f32 %v1411_v4, %v6965_v5  ;;  %v7481_v12 = vld [vmem:[%s10547_s28] ss:$0 sm:$0xff] }
 0x26a   :  { %v5732_v14 = vpop.eup %5731  ;;  %v7466_v32 = vadd.f32 1.0, %v5730_v52  ;;  %v7469_v15 = vadd.f32 %v6875_v56, %v749_v58  ;;  %v7472_v13 = vadd.f32 %v6875_v56, %v750_v35  ;;  %v751_v44 = vadd.f32 %v6980_v50, %v476_v60  ;;  %v10600_v56 = vld [vmem:[#allocation58_spill] sm:$0xff] }
 0x26b   :  { %v7474_v11 = vadd.f32 1.0, %v5732_v14  ;;  %5735 = vpow2.f32 %v5261_v38  ;;  %v479_v59 = vadd.f32 %v438_v21, %v6868_v53  ;;  %v7485_v5 = vmul.f32 %v7481_v12, %v6809_v26 }
 0x26c   :  { %5737 = vrcp.f32 %v7466_v32  ;;  %2341 = vperm.xlu1 %5636, %v2336_v51   ;;  %5637 = vset.pattern.permute.xlu2 %v6723_v27  ;;  %v752_v50 = vadd.f32 %v10600_v56, %v477_v19  ;;  %v753_v39 = vadd.f32 %v10601_v61, %v478_v62  ;;  %v7495_v18 = vmul.f32 %v7481_v12, %v10602_v55 }
 0x26d   :  { %v7499_v23 = vmul.f32 %v7481_v12, %v10603_v16  ;;  %v7503_v7 = vmul.f32 %v7481_v12, %v10604_v57  ;;  %5739 = vrcp.f32 %v7474_v11  ;;  %v1465_v9 = vpack.c.bf16 %v1444_v31, %v1443_v2 }
 0x26e   :  { %v5262_v34 = vmul.f32 -1.442695, %v7469_v15  ;;  %v5263_v28 = vmul.f32 -1.442695, %v7472_v13  ;;  %v423_v30 = vrot.slane %v6891_v6, 1  ;;  %v1064_v43 = vand.u32 2147483648, %v7466_v32 }
 0x26f   :  { %v5734_v25 = vpop.eup %5733  ;;  %v1062_v49 = vand.u32 2147483647, %v7466_v32  ;;  %v7517_v8 = vadd.f32 %v7514_v54, %v751_v44  ;;  %v754_v46 = vadd.f32 %v722_v29, %v479_v59  ;;  %v7522_v1 = vadd.f32 %v7514_v54, %v752_v50 }
 0x270   :  { %v7519_v20 = vadd.f32 1.0, %v5734_v25  ;;  %5741 = vpow2.f32 %v5262_v34  ;;  %v7525_v21 = vadd.f32 %v7514_v54, %v753_v39  ;;  %vm1058_vm15 = vweird.f32 %v7466_v32 }
 0x271   :  { %v5736_v4 = vpop.eup %5735  ;;  %v1077_v63 = vand.u32 2147483647, %v7474_v11  ;;  %v1079_v3 = vand.u32 2147483648, %v7474_v11  ;;  %5743 = vpow2.f32 %v5263_v28  ;;  %vm1073_vm0 = vweird.f32 %v7474_v11 }
 0x272   :  { %v5738_v10 = vpop.eup %5737  ;;  %5305 = vmatmul.msk.bf16.gmra.mxu1 %vm331_vm10, %v1465_v9  ;;  %v7532_v48 = vadd.f32 1.0, %v5736_v4  ;;  %5745 = vrcp.f32 %v7519_v20  ;;  %v5264_v62 = vmul.f32 -1.442695, %v7517_v8  ;;  %vm7537_vm1 = vcmp.eq.f32.partialorder %v1062_v49, 8.507059e+37 }
 0x273   :  { %v5740_v58 = vpop.eup %5739  ;;  %v1054_v35 = vmul.f32 %v5738_v10, %v7466_v32  ;;  %v1065_v19 = vor.u32 1.1754944e-38, %v1064_v43  ;;  %v7542_v52 = vadd.f32 %v7514_v54, %v754_v46  ;;  %v1094_v2 = vand.u32 2147483648, %v7519_v20 }
 0x274   :  { %v1069_v29 = vmul.f32 %v5740_v58, %v7474_v11  ;;  %5747 = vrcp.f32 %v7532_v48  ;;  %5639 = vset.pattern.permute.xlu1 %v6723_v27  ;;  %2438 = vperm.xlu2 %5637, %v2427_v40   ;;  %v5265_v38 = vmul.f32 -1.442695, %v7522_v1  ;;  %vm7551_vm2 = vcmp.eq.f32.partialorder %v1077_v63, 8.507059e+37 }
 0x275   :  { %v1055_v14 = vsub.f32 1.0, %v1054_v35  ;;  %v1080_v44 = vor.u32 1.1754944e-38, %v1079_v3  ;;  %v1092_v59 = vand.u32 2147483647, %v7519_v20  ;;  %5749 = vpow2.f32 %v5264_v62 }
 0x276   :  { %v5742_v56 = vpop.eup %5741  ;;  %v1070_v50 = vsub.f32 1.0, %v1069_v29  ;;  %v5266_v61 = vmul.f32 -1.442695, %v7525_v21  ;;  %v7557_v39 = vperm.slane %v423_v30, 0  ;;  %vm1059_vm3 = vweird.f32 %v5738_v10 }
 0x277   :  { %v5744_v27 = vpop.eup %5743  ;;  %v1056_v9 = vmul.f32 %v5738_v10, %v1055_v14  ;;  %vm1074_vm4 = vweird.f32 %v5740_v58  ;;  %vm1088_vm5 = vweird.f32 %v7519_v20  ;;  %v7560_v40 = vadd.f32 1.0, %v5742_v56  ;;  %vm1060_vm8 = vmor %vm1058_vm15, %vm1059_vm3 }
 0x278   :  { %v5746_v34 = vpop.eup %5745  ;;  %v1071_v28 = vmul.f32 %v5740_v58, %v1070_v50  ;;  %v1095_v25 = vor.u32 1.1754944e-38, %v1094_v2  ;;  %5751 = vpow2.f32 %v5265_v38  ;;  %v5267_v49 = vmul.f32 -1.442695, %v7542_v52  ;;  %vm1075_vm9 = vmor %vm1073_vm0, %vm1074_vm4 }
 0x279   :  { %v1057_v43 = vadd.f32 %v5738_v10, %v1056_v9  ;;  %v1084_v46 = vmul.f32 %v5746_v34, %v7519_v20  ;;  %vm7564_vm6 = vcmp.eq.f32.partialorder %v1092_v59, 8.507059e+37  ;;  %vm1103_vm7 = vweird.f32 %v7532_v48 }
 0x27a   :  { %5753 = vrcp.f32 %v7560_v40  ;;  %v5748_v4 = vpop.eup %5747  ;;  %v1072_v63 = vadd.f32 %v5740_v58, %v1071_v28  ;;  %v1107_v3 = vand.u32 2147483647, %v7532_v48  ;;  %v1109_v62 = vand.u32 2147483648, %v7532_v48 }
 0x27b   :  { %v7575_v35 = vadd.f32 1.0, %v5744_v27  ;;  %v1061_v29 = vsel %vm1060_vm8, %v5738_v10, %v1057_v43  ;;  %v1085_v2 = vsub.f32 1.0, %v1084_v46  ;;  %v1099_v38 = vmul.f32 %v5748_v4, %v7532_v48  ;;  %v5750_v14 = vpop.eup %5749 }
 0x27c   :  { %5755 = vpow2.f32 %v5266_v61  ;;  %v1066_v32 = vsel %vm7537_vm1, %v1065_v19, %v1061_v29  ;;  %v1076_v59 = vsel %vm1075_vm9, %v5740_v58, %v1072_v63  ;;  %vm1089_vm11 = vweird.f32 %v5746_v34  ;;  %2347 = vperm.xlu2 %5637, %v2336_v51  }
 0x27d   :  { %v10611_v56 = vperm.slane %v6834_v37, 6  ;;  %5757 = vpow2.f32 %v5267_v49  ;;  %v1081_v11 = vsel %vm7551_vm2, %v1080_v44, %v1076_v59  ;;  %v1421_v10 = vmul.f32 %v1066_v32, %v7414_v0  ;;  %vm1090_vm14 = vmor %vm1088_vm5, %vm1089_vm11 }
 0x27e   :  { %v1086_v50 = vmul.f32 %v5746_v34, %v1085_v2  ;;  %v1100_v61 = vsub.f32 1.0, %v1099_v38  ;;  %v5752_v27 = vpop.eup %5751  ;;  %v1422_v60 = vmul.f32 %v1081_v11, %v7420_v47  ;;  %vm7591_vm12 = vcmp.eq.f32.partialorder %v1107_v3, 8.507059e+37 }
 0x27f   :  { %2451 = vperm.xlu1 %5639, %v10611_v56   ;;  %v1110_v37 = vor.u32 1.1754944e-38, %v1109_v62  ;;  %5759 = vrcp.f32 %v7575_v35  ;;  %vm1104_vm13 = vweird.f32 %v5748_v4  ;;  %v7596_v31 = vadd.f32 1.0, %v5750_v14 }
 0x280   :  { %v5754_v19 = vpop.eup %5753  ;;  %v1087_v51 = vadd.f32 %v5746_v34, %v1086_v50  ;;  %v1101_v9 = vmul.f32 %v5748_v4, %v1100_v61  ;;  %v1454_v44 = vpack.c.bf16 %v1422_v60, %v1421_v10  ;;  %v1122_v47 = vand.u32 2147483647, %v7560_v40  ;;  %vm1105_vm15 = vmor %vm1103_vm7, %vm1104_vm13 }
 0x281   :  { %v1114_v0 = vmul.f32 %v5754_v19, %v7560_v40  ;;  %v1124_v28 = vand.u32 2147483648, %v7560_v40  ;;  %v1137_v63 = vand.u32 2147483647, %v7575_v35  ;;  %v7605_v3 = vadd.f32 1.0, %v5752_v27 }
 0x282   :  { %v5756_v49 = vpop.eup %5755  ;;  %v1091_v43 = vsel %vm1090_vm14, %v5746_v34, %v1087_v51  ;;  %v1102_v46 = vadd.f32 %v5748_v4, %v1101_v9  ;;  %5294 = vmatmul.msk.bf16.gmra.mxu0 %vm331_vm10, %v1454_v44  ;;  %v7616_v34 = vld [vmem:[%s10541_s30 + $0x8] sm:$0xff]  ;;  %5761 = vrcp.f32 %v7596_v31  ;;  %vm1118_vm0 = vweird.f32 %v7560_v40  ;;  %s10901_s30 = sld [smem:[#allocation96_spill]] }
 0x283   :  { %v5758_v62 = vpop.eup %5757  ;;  %v1096_v20 = vsel %vm7564_vm6, %v1095_v25, %v1091_v43  ;;  %v1115_v29 = vsub.f32 1.0, %v1114_v0  ;;  %v2453_v2 = vperm.slane %v7616_v34, 7  ;;  %v1139_v25 = vand.u32 2147483648, %v7575_v35 }
 0x284   :  { %v1106_v38 = vsel %vm1105_vm15, %v5748_v4, %v1102_v46  ;;  %v7621_v14 = vmul.f32 %v1096_v20, %v7439_v33  ;;  %vm1119_vm1 = vweird.f32 %v5754_v19  ;;  %5640 = vset.pattern.permute.xlu2 %v6710_v17  ;;  %5763 = vrcp.f32 %v7605_v3 }
 0x285   :  { %v5760_v48 = vpop.eup %5759  ;;  %v1111_v30 = vsel %vm7591_vm12, %v1110_v37, %v1106_v38  ;;  %v1116_v32 = vmul.f32 %v5754_v19, %v1115_v29  ;;  %2464 = vperm.xlu0 %5638, %v2453_v2   ;;  %vm7632_vm2 = vcmp.eq.f32.partialorder %v1122_v47, 8.507059e+37  ;;  %v1152_v56 = vand.u32 2147483647, %v7596_v31  ;;  %vm1120_vm5 = vmor %vm1118_vm0, %vm1119_vm1 }
 0x286   :  { %v1424_v33 = vmul.f32 %v1111_v30, %v7452_v22  ;;  %v1129_v59 = vmul.f32 %v5760_v48, %v7575_v35  ;;  %v1125_v10 = vor.u32 1.1754944e-38, %v1124_v28  ;;  %vm1133_vm3 = vweird.f32 %v7575_v35 }
 0x287   :  { %v1117_v11 = vadd.f32 %v5754_v19, %v1116_v32  ;;  %vm7639_vm4 = vcmp.eq.f32.partialorder %v1137_v63, 8.507059e+37  ;;  %v1154_v61 = vand.u32 2147483648, %v7596_v31  ;;  %v7647_v27 = vadd.f32 1.0, %v5756_v49 }
 0x288   :  { %v1455_v50 = vpack.c.bf16 %v1424_v33, %v7621_v14  ;;  %v1130_v22 = vsub.f32 1.0, %v1129_v59  ;;  %v5762_v60 = vpop.eup %5761  ;;  %v1140_v37 = vor.u32 1.1754944e-38, %v1139_v25  ;;  %vm1148_vm6 = vweird.f32 %v7596_v31 }
 0x289   :  { %v1121_v58 = vsel %vm1120_vm5, %v5754_v19, %v1117_v11  ;;  %v7650_v51 = vadd.f32 1.0, %v5758_v62  ;;  %vm1134_vm7 = vweird.f32 %v5760_v48  ;;  %v1144_v44 = vmul.f32 %v5762_v60, %v7596_v31 }
 0x28a   :  { %v1131_v9 = vmul.f32 %v5760_v48, %v1130_v22  ;;  %vm7653_vm8 = vcmp.eq.f32.partialorder %v1152_v56, 8.507059e+37  ;;  %v5764_v40 = vpop.eup %5763  ;;  %v1126_v47 = vsel %vm7632_vm2, %v1125_v10, %v1121_v58  ;;  %v1167_v28 = vand.u32 2147483647, %v7605_v3  ;;  %vm1135_vm9 = vmor %vm1133_vm3, %vm1134_vm7 }
 0x28b   :  { %v1169_v19 = vand.u32 2147483648, %v7605_v3  ;;  %5765 = vrcp.f32 %v7647_v27  ;;  %v1145_v43 = vsub.f32 1.0, %v1144_v44  ;;  %v1155_v46 = vor.u32 1.1754944e-38, %v1154_v61 }
 0x28c   :  { %v1132_v49 = vadd.f32 %v5760_v48, %v1131_v9  ;;  %v1159_v63 = vmul.f32 %v5764_v40, %v7605_v3  ;;  %vm1149_vm11 = vweird.f32 %v5762_v60  ;;  %vm1163_vm12 = vweird.f32 %v7605_v3 }
 0x28d   :  { %5767 = vrcp.f32 %v7650_v51  ;;  %v480_v62 = vadd.f32 %v7557_v39, %v6844_v41  ;;  %v7670_v29 = vmul.f32 %v1126_v47, %v7469_v15  ;;  %v1146_v38 = vmul.f32 %v5762_v60, %v1145_v43  ;;  %vm1150_vm0 = vmor %vm1148_vm6, %vm1149_vm11 }
 0x28e   :  { %v1136_v20 = vsel %vm1135_vm9, %v5760_v48, %v1132_v49  ;;  %v1160_v14 = vsub.f32 1.0, %v1159_v63  ;;  %vm1164_vm13 = vweird.f32 %v5764_v40  ;;  %vm7674_vm14 = vcmp.eq.f32.partialorder %v1167_v28, 8.507059e+37 }
 0x28f   :  { %v1141_v25 = vsel %vm7639_vm4, %v1140_v37, %v1136_v20  ;;  %v1170_v30 = vor.u32 1.1754944e-38, %v1169_v19  ;;  %v1147_v33 = vadd.f32 %v5762_v60, %v1146_v38  ;;  %vm1178_vm15 = vweird.f32 %v7647_v27  ;;  %vm1165_vm2 = vmor %vm1163_vm12, %vm1164_vm13 }
 0x290   :  { %v7679_v32 = vmul.f32 %v1141_v25, %v7472_v13  ;;  %v1161_v4 = vmul.f32 %v5764_v40, %v1160_v14  ;;  %v1182_v15 = vand.u32 2147483647, %v7647_v27  ;;  %v1184_v59 = vand.u32 2147483648, %v7647_v27 }
 0x291   :  { %v5766_v48 = vpop.eup %5765  ;;  %v481_v56 = vadd.f32 %v7557_v39, %v6868_v53  ;;  %v755_v11 = vadd.f32 %v7485_v5, %v480_v62  ;;  %v424_v13 = vrot.slane %v6891_v6, 2  ;;  %v1151_v17 = vsel %vm1150_vm0, %v5762_v60, %v1147_v33 }
 0x292   :  { %v1456_v10 = vpack.c.bf16 %v7679_v32, %v7670_v29  ;;  %v1162_v22 = vadd.f32 %v5764_v40, %v1161_v4  ;;  %v1174_v61 = vmul.f32 %v5766_v48, %v7647_v27  ;;  %vm1193_vm1 = vweird.f32 %v7650_v51  ;;  %5295 = vmatmul.msk.bf16.gmra.mxu0 %vm331_vm10, %v1455_v50  ;;  %v10623_v29 = vld [vmem:[#allocation53_spill] sm:$0xff] }
 0x293   :  { %v5768_v31 = vpop.eup %5767  ;;  %v1156_v58 = vsel %vm7653_vm8, %v1155_v46, %v1151_v17  ;;  %v2349_v5 = vperm.slane %v7448_v45, 7  ;;  %v1197_v39 = vand.u32 2147483647, %v7650_v51  ;;  %v756_v60 = vadd.f32 %v7495_v18, %v481_v56 }
 0x294   :  { %v1166_v37 = vsel %vm1165_vm2, %v5764_v40, %v1162_v22  ;;  %v7705_v9 = vmul.f32 %v1156_v58, %v7517_v8  ;;  %v1175_v44 = vsub.f32 1.0, %v1174_v61  ;;  %v1189_v50 = vmul.f32 %v5768_v31, %v7650_v51 }
 0x295   :  { %v1171_v0 = vsel %vm7674_vm14, %v1170_v30, %v1166_v37  ;;  %2354 = vperm.xlu2 %5640, %v2349_v5   ;;  %vm1179_vm3 = vweird.f32 %v5766_v48  ;;  %v7711_v3 = vadd.f32 %v7514_v54, %v755_v11  ;;  %v7714_v45 = vadd.f32 %v7514_v54, %v756_v60  ;;  %2360 = vperm.xlu1 %5639, %v2349_v5  }
 0x296   :  { %v7717_v18 = vmul.f32 %v1171_v0, %v7522_v1  ;;  %v1176_v8 = vmul.f32 %v5766_v48, %v1175_v44  ;;  %v1190_v40 = vsub.f32 1.0, %v1189_v50  ;;  %v440_v47 = vperm.slane %v424_v13, 0  ;;  %vm1180_vm5 = vmor %vm1178_vm15, %vm1179_vm3 }
 0x297   :  { %vm1194_vm4 = vweird.f32 %v5768_v31  ;;  %v1199_v28 = vand.u32 2147483648, %v7650_v51  ;;  %v5268_v19 = vmul.f32 -1.442695, %v7711_v3  ;;  %v5269_v49 = vmul.f32 -1.442695, %v7714_v45 }
 0x298   :  { %v1457_v43 = vpack.c.bf16 %v7717_v18, %v7705_v9  ;;  %v1177_v46 = vadd.f32 %v5766_v48, %v1176_v8  ;;  %v1191_v63 = vmul.f32 %v5768_v31, %v1190_v40  ;;  %v482_v62 = vadd.f32 %v440_v47, %v6844_v41  ;;  %vm1195_vm7 = vmor %vm1193_vm1, %vm1194_vm4 }
 0x299   :  { %vm1183_vm6 = vcmp.eq.f32.partialorder %v1182_v15, 8.507059e+37  ;;  %v1185_v1 = vor.u32 1.1754944e-38, %v1184_v59  ;;  %5769 = vpow2.f32 %v5268_v19  ;;  %v483_v20 = vadd.f32 %v440_v47, %v6868_v53 }
 0x29a   :  { %v1181_v38 = vsel %vm1180_vm5, %v5766_v48, %v1177_v46  ;;  %v1192_v14 = vadd.f32 %v5768_v31, %v1191_v63  ;;  %5771 = vpow2.f32 %v5269_v49  ;;  %v757_v25 = vadd.f32 %v7499_v23, %v482_v62 }
 0x29b   :  { %v1186_v35 = vsel %vm1183_vm6, %v1185_v1, %v1181_v38  ;;  %v1200_v30 = vor.u32 1.1754944e-38, %v1199_v28  ;;  %v758_v33 = vadd.f32 %v7503_v7, %v483_v20  ;;  %vm1198_vm8 = vcmp.eq.f32.partialorder %v1197_v39, 8.507059e+37 }
 0x29c   :  { %v1196_v27 = vsel %vm1195_vm7, %v5768_v31, %v1192_v14  ;;  %v7735_v4 = vmul.f32 %v1186_v35, %v7525_v21  ;;  %v7738_v15 = vadd.f32 %v7514_v54, %v757_v25  ;;  %v425_v56 = vrot.slane %v6891_v6, 3 }
 0x29d   :  { %2458 = vperm.xlu2 %5640, %v2453_v2   ;;  %v1201_v23 = vsel %vm1198_vm8, %v1200_v30, %v1196_v27  ;;  %v7743_v48 = vadd.f32 %v7514_v54, %v758_v33  ;;  %v728_v32 = vmul.f32 %v7481_v12, %v10623_v29 }
 0x29e   :  { %v7746_v51 = vmul.f32 %v1201_v23, %v7542_v52  ;;  %v5270_v7 = vmul.f32 -1.442695, %v7738_v15  ;;  %v441_v17 = vperm.slane %v425_v56, 0  ;;  %v7757_v52 = vpop.permute.xlu0 %642 }
 0x29f   :  { %v5770_v59 = vpop.eup %5769  ;;  %v5271_v21 = vmul.f32 -1.442695, %v7743_v48  ;;  %10622 = vst [vmem:[#allocation58_spill] sm:$0xff] %v7757_v52  ;;  %v727_v31 = vmul.f32 %v7481_v12, %v7757_v52 }
 0x2a0   :  { %v5772_v11 = vpop.eup %5771  ;;  %v1458_v13 = vpack.c.bf16 %v7746_v51, %v7735_v4  ;;  %v919_v34 = vadd.f32 1.0, %v5770_v59  ;;  %5773 = vpow2.f32 %v5270_v7  ;;  %v484_v61 = vadd.f32 %v441_v17, %v6844_v41 }
 0x2a1   :  { %v920_v2 = vadd.f32 1.0, %v5772_v11  ;;  %5775 = vpow2.f32 %v5271_v21  ;;  %v485_v44 = vadd.f32 %v441_v17, %v6868_v53 }
 0x2a2   :  { %5777 = vrcp.f32 %v919_v34  ;;  %5296 = vmatmul.msk.bf16.gmra.mxu0 %vm331_vm10, %v1456_v10  ;;  %v759_v50 = vadd.f32 %v727_v31, %v484_v61  ;;  %v1212_v8 = vand.u32 2147483647, %v919_v34  ;;  %v1214_v40 = vand.u32 2147483648, %v919_v34 }
 0x2a3   :  { %5779 = vrcp.f32 %v920_v2  ;;  %v1227_v19 = vand.u32 2147483647, %v920_v2  ;;  %v1229_v49 = vand.u32 2147483648, %v920_v2  ;;  %vm1208_vm12 = vweird.f32 %v919_v34 }
 0x2a4   :  { %v7774_v12 = vadd.f32 %v7514_v54, %v759_v50  ;;  %v760_v62 = vadd.f32 %v728_v32, %v485_v44  ;;  %v1215_v1 = vor.u32 1.1754944e-38, %v1214_v40  ;;  %vm1223_vm14 = vweird.f32 %v920_v2 }
 0x2a5   :  { %vm1213_vm15 = vcmp.eq.f32.partialorder %v1212_v8, 8.507059e+37  ;;  %vm1228_vm1 = vcmp.eq.f32.partialorder %v1227_v19, 8.507059e+37  ;;  %v1230_v35 = vor.u32 1.1754944e-38, %v1229_v49 }
 0x2a6   :  { %v5774_v6 = vpop.eup %5773  ;;  %v7797_v61 = vadd.f32 %v7514_v54, %v760_v62 }
 0x2a7   :  { %v5776_v22 = vpop.eup %5775  ;;  %v7762_v58 = vadd.f32 1.0, %v5774_v6  ;;  %v5272_v6 = vmul.f32 -1.442695, %v7774_v12 }
 0x2a8   :  { %v5778_v5 = vpop.eup %5777  ;;  %v7764_v39 = vadd.f32 1.0, %v5776_v22  ;;  %v7771_v0 = vpop.f32.mrf.mxu0  ;;  %v5273_v54 = vmul.f32 -1.442695, %v7797_v61 }
 0x2a9   :  { %v5780_v60 = vpop.eup %5779  ;;  %v1204_v37 = vmul.f32 %v5778_v5, %v919_v34  ;;  %5781 = vrcp.f32 %v7762_v58  ;;  %vm1209_vm9 = vweird.f32 %v5778_v5  ;;  %v1242_v56 = vand.u32 2147483647, %v7762_v58 }
 0x2aa   :  { %v1219_v10 = vmul.f32 %v5780_v60, %v920_v2  ;;  %5783 = vrcp.f32 %v7764_v39  ;;  %vm1224_vm11 = vweird.f32 %v5780_v60  ;;  %vm1210_vm13 = vmor %vm1208_vm12, %vm1209_vm9  ;;  %v1244_v21 = vand.u32 2147483648, %v7762_v58 }
 0x2ab   :  { %v1205_v41 = vsub.f32 1.0, %v1204_v37  ;;  %vm1225_vm0 = vmor %vm1223_vm14, %vm1224_vm11  ;;  %vm1238_vm3 = vweird.f32 %v7762_v58  ;;  %vm1243_vm6 = vcmp.eq.f32.partialorder %v1242_v56, 8.507059e+37  ;;  %5785 = vpow2.f32 %v5272_v6  ;;  %v7803_v37 = vld [vmem:[%s10396_s13] ss:$0 sm:$0xff] }
 0x2ac   :  { %v1220_v47 = vsub.f32 1.0, %v1219_v10  ;;  %v1245_v22 = vor.u32 1.1754944e-38, %v1244_v21  ;;  %vm1253_vm7 = vweird.f32 %v7764_v39  ;;  %v7817_v40 = vadd.f32 %v7803_v37, %v7771_v0 }
 0x2ad   :  { %v1206_v28 = vmul.f32 %v5778_v5, %v1205_v41  ;;  %5787 = vpow2.f32 %v5273_v54 }
 0x2ae   :  { %v1221_v46 = vmul.f32 %v5780_v60, %v1220_v47 }
 0x2af   :  { %v5782_v63 = vpop.eup %5781  ;;  %v1207_v53 = vadd.f32 %v5778_v5, %v1206_v28 }
 0x2b0   :  { %v1222_v20 = vadd.f32 %v5780_v60, %v1221_v46  ;;  %v1234_v38 = vmul.f32 %v5782_v63, %v7762_v58  ;;  %v5784_v14 = vpop.eup %5783  ;;  %v1540_v11 = vpop.f32.mrf.mxu0  ;;  %vm1239_vm2 = vweird.f32 %v5782_v63 }
 0x2b1   :  { %v1211_v25 = vsel %vm1210_vm13, %v5778_v5, %v1207_v53  ;;  %v1249_v23 = vmul.f32 %v5784_v14, %v7764_v39  ;;  %vm1240_vm4 = vmor %vm1238_vm3, %vm1239_vm2  ;;  %vm1254_vm5 = vweird.f32 %v5784_v14  ;;  %v5786_v8 = vpop.eup %5785  ;;  %v7823_v28 = vadd.f32 %v7803_v37, %v1540_v11 }
 0x2b2   :  { %v1216_v30 = vsel %vm1213_vm15, %v1215_v1, %v1211_v25  ;;  %v1226_v33 = vsel %vm1225_vm0, %v5780_v60, %v1222_v20  ;;  %v1235_v27 = vsub.f32 1.0, %v1234_v38  ;;  %5297 = vmatmul.msk.bf16.gmra.mxu0 %vm331_vm10, %v1457_v43  ;;  %v1259_v43 = vand.u32 2147483648, %v7764_v39  ;;  %vm1255_vm8 = vmor %vm1253_vm7, %vm1254_vm5 }
 0x2b3   :  { %v1231_v7 = vsel %vm1228_vm1, %v1230_v35, %v1226_v33  ;;  %v7783_v59 = vmul.f32 %v1216_v30, %v7711_v3  ;;  %v1250_v17 = vsub.f32 1.0, %v1249_v23  ;;  %v7825_v19 = vadd.f32 1.0, %v5786_v8  ;;  %v5788_v46 = vpop.eup %5787 }
 0x2b4   :  { %v7788_v34 = vmul.f32 %v1231_v7, %v7714_v45  ;;  %v1236_v2 = vmul.f32 %v5782_v63, %v1235_v27  ;;  %v1257_v45 = vand.u32 2147483647, %v7764_v39  ;;  %v1260_v60 = vor.u32 1.1754944e-38, %v1259_v43  ;;  %v7859_v43 = vpop.permute.xlu2 %2263 }
 0x2b5   :  { %v1251_v18 = vmul.f32 %v5784_v14, %v1250_v17  ;;  %v5307_v0 = vmul.f32 -1.442695, %v7823_v28  ;;  %v7838_v20 = vadd.f32 1.0, %v5788_v46  ;;  %10624 = vst [vmem:[#allocation59_spill] sm:$0xff] %v7859_v43  ;;  %vm1268_vm0 = vweird.f32 %v7825_v19 }
 0x2b6   :  { %v1459_v9 = vpack.c.bf16 %v7788_v34, %v7783_v59  ;;  %v1237_v3 = vadd.f32 %v5782_v63, %v1236_v2  ;;  %vm1258_vm9 = vcmp.eq.f32.partialorder %v1257_v45, 8.507059e+37 }
 0x2b7   :  { %v1252_v5 = vadd.f32 %v5784_v14, %v1251_v18  ;;  %vm1283_vm7 = vweird.f32 %v7838_v20 }
 0x2b8   :  { %v1241_v31 = vsel %vm1240_vm4, %v5782_v63, %v1237_v3  ;;  %v1543_v44 = vpop.f32.mrf.mxu0 }
 0x2b9   :  { %v1246_v58 = vsel %vm1243_vm6, %v1245_v22, %v1241_v31  ;;  %v1256_v32 = vsel %vm1255_vm8, %v5784_v14, %v1252_v5  ;;  %v7810_v41 = vadd.f32 %v7803_v37, %v1543_v44 }
 0x2ba   :  { %v7806_v10 = vmul.f32 %v1246_v58, %v7738_v15  ;;  %v1261_v50 = vsel %vm1258_vm9, %v1260_v60, %v1256_v32 }
 0x2bb   :  { %v7813_v39 = vmul.f32 %v1261_v50, %v7743_v48  ;;  %v5308_v47 = vmul.f32 -1.442695, %v7810_v41  ;;  %v5306_v48 = vmul.f32 -1.442695, %v7817_v40  ;;  %v7870_v50 = vpop.permute.xlu0 %2380 }
 0x2bc   :  { %10625 = vst [vmem:[#allocation61_spill] sm:$0xff] %v7870_v50 }
 0x2bd   :  { %v1460_v15 = vpack.c.bf16 %v7813_v39, %v7806_v10  ;;  %5789 = vpow2.f32 %v5308_v47 }
 0x2be   :  { %5791 = vrcp.f32 %v7825_v19 }
 0x2bf   :  { %5793 = vpow2.f32 %v5306_v48 }
 0x2c0   :  { %v1545_v49 = vpop.f32.mrf.mxu0  ;;  %5795 = vpow2.f32 %v5307_v0 }
 0x2c1   :  { %v7834_v63 = vadd.f32 %v7803_v37, %v1545_v49 }
 0x2c2   :  { %5298 = vmatmul.msk.bf16.gmra.mxu0 %vm331_vm10, %v1458_v13 }
 0x2c3   :  { %v5790_v53 = vpop.eup %5789  ;;  %v5309_v62 = vmul.f32 -1.442695, %v7834_v63 }
 0x2c4   :  { %v1716_v1 = vadd.f32 1.0, %v5790_v53  ;;  %v7840_v4 = vpop.eup %5791 }
 0x2c5   :  { %5797 = vpow2.f32 %v5309_v62  ;;  %v5794_v51 = vpop.eup %5793  ;;  %v1264_v27 = vmul.f32 %v7840_v4, %v7825_v19  ;;  %vm1269_vm1 = vweird.f32 %v7840_v4 }
 0x2c6   :  { %5799 = vrcp.f32 %v1716_v1  ;;  %v5796_v13 = vpop.eup %5795  ;;  %v7843_v35 = vadd.f32 1.0, %v5794_v51  ;;  %v1787_v11 = vand.u32 2147483648, %v1716_v1  ;;  %vm1781_vm12 = vweird.f32 %v1716_v1  ;;  %vm7901_vm6 = vmor %vm1268_vm0, %vm1269_vm1 }
 0x2c7   :  { %5801 = vrcp.f32 %v7838_v20  ;;  %v7849_v23 = vadd.f32 1.0, %v5796_v13  ;;  %v1265_v2 = vsub.f32 1.0, %v1264_v27  ;;  %v1785_v6 = vand.u32 2147483647, %v1716_v1 }
 0x2c8   :  { %v1788_v22 = vor.u32 1.1754944e-38, %v1787_v11  ;;  %v1272_v51 = vand.u32 2147483647, %v7825_v19  ;;  %v1274_v13 = vand.u32 2147483648, %v7825_v19 }
 0x2c9   :  { %v1266_v31 = vmul.f32 %v7840_v4, %v1265_v2  ;;  %vm1786_vm14 = vcmp.eq.f32.partialorder %v1785_v6, 8.507059e+37  ;;  %v7907_v6 = vpop.permute.xlu2 %2282  ;;  %vm1766_vm0 = vweird.f32 %v7849_v23 }
 0x2ca   :  { %10629 = vst [vmem:[#allocation63_spill] sm:$0xff] %v7907_v6  ;;  %vm1273_vm9 = vcmp.eq.f32.partialorder %v1272_v51, 8.507059e+37 }
 0x2cb   :  { %v5798_v38 = vpop.eup %5797  ;;  %v1267_v49 = vadd.f32 %v7840_v4, %v1266_v31 }
 0x2cc   :  { %v5800_v14 = vpop.eup %5799  ;;  %v1717_v25 = vadd.f32 1.0, %v5798_v38 }
 0x2cd   :  { %v1777_v30 = vmul.f32 %v5800_v14, %v1716_v1  ;;  %v7845_v33 = vpop.eup %5801  ;;  %vm1782_vm11 = vweird.f32 %v5800_v14  ;;  %v1271_v10 = vsel %vm7901_vm6, %v7840_v4, %v1267_v49 }
 0x2ce   :  { %5803 = vrcp.f32 %v1717_v25  ;;  %v1279_v21 = vmul.f32 %v7845_v33, %v7838_v20  ;;  %vm1783_vm13 = vmor %vm1781_vm12, %vm1782_vm11  ;;  %v1802_v32 = vand.u32 2147483648, %v1717_v25  ;;  %v1800_v47 = vand.u32 2147483647, %v1717_v25 }
 0x2cf   :  { %v1778_v7 = vsub.f32 1.0, %v1777_v30  ;;  %5805 = vrcp.f32 %v7843_v35  ;;  %vm1796_vm2 = vweird.f32 %v1717_v25  ;;  %vm1284_vm5 = vweird.f32 %v7845_v33 }
 0x2d0   :  { %5807 = vrcp.f32 %v7849_v23  ;;  %v1548_v34 = vpop.f32.mrf.mxu0  ;;  %v1803_v1 = vor.u32 1.1754944e-38, %v1802_v32  ;;  %vm1801_vm4 = vcmp.eq.f32.partialorder %v1800_v47, 8.507059e+37  ;;  %vm7914_vm8 = vmor %vm1283_vm7, %vm1284_vm5 }
 0x2d1   :  { %v1779_v56 = vmul.f32 %v5800_v14, %v1778_v7  ;;  %v7862_v45 = vadd.f32 %v7803_v37, %v1548_v34 }
 0x2d2   :  { %5299 = vmatmul.msk.bf16.gmra.mxu0 %vm331_vm10, %v1459_v9  ;;  %v1280_v9 = vsub.f32 1.0, %v1279_v21 }
 0x2d3   :  { %v1780_v17 = vadd.f32 %v5800_v14, %v1779_v56  ;;  %v5310_v54 = vmul.f32 -1.442695, %v7862_v45  ;;  %v1289_v56 = vand.u32 2147483648, %v7838_v20 }
 0x2d4   :  { %v5804_v3 = vpop.eup %5803  ;;  %v1281_v48 = vmul.f32 %v7845_v33, %v1280_v9  ;;  %v7926_v9 = vpop.permute.xlu0 %2315 }
 0x2d5   :  { %v1784_v18 = vsel %vm1783_vm13, %v5800_v14, %v1780_v17  ;;  %v1792_v59 = vmul.f32 %v5804_v3, %v1717_v25  ;;  %v7865_v5 = vpop.eup %5805  ;;  %vm1797_vm15 = vweird.f32 %v5804_v3  ;;  %5809 = vpow2.f32 %v5310_v54  ;;  %10632 = vst [vmem:[#allocation64_spill] sm:$0xff] %v7926_v9 }
 0x2d6   :  { %v1789_v60 = vsel %vm1786_vm14, %v1788_v22, %v1784_v18  ;;  %v7868_v44 = vpop.eup %5807  ;;  %v1747_v0 = vmul.f32 %v7865_v5, %v7843_v35  ;;  %vm1798_vm3 = vmor %vm1796_vm2, %vm1797_vm15  ;;  %v1282_v30 = vadd.f32 %v7845_v33, %v1281_v48  ;;  %v1287_v17 = vand.u32 2147483647, %v7838_v20 }
 0x2d7   :  { %v1793_v58 = vsub.f32 1.0, %v1792_v59  ;;  %v2228_v46 = vmul.f32 %v1789_v60, %v7810_v41  ;;  %v1762_v62 = vmul.f32 %v7868_v44, %v7849_v23  ;;  %v7885_v41 = vpop.permute.xlu1 %2276  ;;  %v1275_v18 = vor.u32 1.1754944e-38, %v1274_v13 }
 0x2d8   :  { %v1550_v14 = vpop.f32.mrf.mxu0  ;;  %10626 = vst [vmem:[#allocation62_spill] sm:$0xff] %v7885_v41  ;;  %v1748_v25 = vsub.f32 1.0, %v1747_v0  ;;  %v1286_v20 = vsel %vm7914_vm8, %v7845_v33, %v1282_v30  ;;  %v1290_v4 = vor.u32 1.1754944e-38, %v1289_v56  ;;  %vm1288_vm11 = vcmp.eq.f32.partialorder %v1287_v17, 8.507059e+37 }
 0x2d9   :  { %v1794_v8 = vmul.f32 %v5804_v3, %v1793_v58  ;;  %v7888_v7 = vadd.f32 %v7803_v37, %v1550_v14  ;;  %v2468_v21 = vmul.f32 %v7885_v41, %v2228_v46  ;;  %v1276_v58 = vsel %vm1273_vm9, %v1275_v18, %v1271_v10 }
 0x2da   :  { %v1749_v59 = vmul.f32 %v7865_v5, %v1748_v25  ;;  %v1291_v33 = vsel %vm1288_vm11, %v1290_v4, %v1286_v20  ;;  %vm1752_vm12 = vweird.f32 %v7865_v5  ;;  %v1435_v47 = vmul.f32 %v1276_v58, %v7774_v12 }
 0x2db   :  { %v1795_v53 = vadd.f32 %v5804_v3, %v1794_v8  ;;  %v2507_v22 = vsel %vm331_vm10, %v2468_v21, 0.0  ;;  %v1757_v8 = vand.u32 2147483648, %v7843_v35  ;;  %v1436_v48 = vmul.f32 %v1291_v33, %v7797_v61 }
 0x2dc   :  { %v1750_v54 = vadd.f32 %v7865_v5, %v1749_v59  ;;  %vm1751_vm13 = vweird.f32 %v7843_v35  ;;  %v1755_v0 = vand.u32 2147483647, %v7843_v35  ;;  %vm1767_vm14 = vweird.f32 %v7868_v44 }
 0x2dd   :  { %v1799_v38 = vsel %vm1798_vm3, %v5804_v3, %v1795_v53  ;;  %v5311_v3 = vmul.f32 -1.442695, %v7888_v7  ;;  %vm1753_vm15 = vmor %vm1751_vm13, %vm1752_vm12  ;;  %v1772_v46 = vand.u32 2147483648, %v7849_v23  ;;  %v1770_v12 = vand.u32 2147483647, %v7849_v23 }
 0x2de   :  { %v1804_v27 = vsel %vm1801_vm4, %v1803_v1, %v1799_v38  ;;  %v1758_v61 = vor.u32 1.1754944e-38, %v1757_v8  ;;  %vm1768_vm1 = vmor %vm1766_vm0, %vm1767_vm14  ;;  %vm1756_vm2 = vcmp.eq.f32.partialorder %v1755_v0, 8.507059e+37  ;;  %v1461_v38 = vpack.c.bf16 %v1436_v48, %v1435_v47 }
 0x2df   :  { %v2229_v11 = vmul.f32 %v1804_v27, %v7834_v63  ;;  %v1763_v63 = vsub.f32 1.0, %v1762_v62  ;;  %v1754_v62 = vsel %vm1753_vm15, %v7865_v5, %v1750_v54  ;;  %v7947_v30 = vpop.permute.xlu1 %2367  ;;  %v1773_v25 = vor.u32 1.1754944e-38, %v1772_v46  ;;  %v7949_v27 = vpop.permute.xlu0 %2445 }
 0x2e0   :  { %v1759_v14 = vsel %vm1756_vm2, %v1758_v61, %v1754_v62  ;;  %10633 = vst [vmem:[#allocation65_spill] sm:$0xff] %v7947_v30  ;;  %vm1771_vm3 = vcmp.eq.f32.partialorder %v1770_v12, 8.507059e+37  ;;  %vm10484_vm13 = vcmask 1041409   ;;  %vm10483_vm14 = vcmask 1042434  }
 0x2e1   :  { %v2469_v19 = vmul.f32 %v7907_v6, %v2229_v11  ;;  %v1764_v60 = vmul.f32 %v7868_v44, %v1763_v63  ;;  %10634 = vst [vmem:[#allocation66_spill] sm:$0xff] %v7949_v27  ;;  %v2226_v2 = vmul.f32 %v1759_v14, %v7817_v40 }
 0x2e2   :  { %5300 = vmatmul.msk.bf16.gmra.mxu0 %vm331_vm10, %v1460_v15  ;;  %v5810_v15 = vpop.eup %5809 }
 0x2e3   :  { %v7924_v34 = vadd.f32 1.0, %v5810_v15  ;;  %v2508_v31 = vsel %vm331_vm10, %v2469_v19, 0.0  ;;  %v1765_v49 = vadd.f32 %v7868_v44, %v1764_v60  ;;  %v2466_v39 = vmul.f32 %v7859_v43, %v2226_v2  ;;  %v1553_v54 = vpop.f32.mrf.mxu0 }
 0x2e4   :  { %v2509_v32 = vadd.f32 %v2508_v31, %v2507_v22  ;;  %v7968_v48 = vadd.f32 %v7803_v37, %v1553_v54 }
 0x2e5   :  { %5811 = vrcp.f32 %v7924_v34  ;;  %v1769_v13 = vsel %vm1768_vm1, %v7868_v44, %v1765_v49  ;;  %v1817_v10 = vand.u32 2147483648, %v7924_v34  ;;  %vm1811_vm5 = vweird.f32 %v7924_v34 }
 0x2e6   :  { %5813 = vpow2.f32 %v5311_v3  ;;  %v2510_v51 = vrot.slane %v2509_v32, 4  ;;  %v1774_v23 = vsel %vm1771_vm3, %v1773_v25, %v1769_v13  ;;  %v1815_v15 = vand.u32 2147483647, %v7924_v34  ;;  %v7958_v3 = vpop.permute.xlu2 %2373 }
 0x2e7   :  { %v2227_v44 = vmul.f32 %v1774_v23, %v7823_v28  ;;  %10635 = vst [vmem:[#allocation67_spill] sm:$0xff] %v7958_v3  ;;  %v7960_v18 = vpop.permute.xlu0 %2269  ;;  %v7963_v59 = vpop.permute.xlu1 %2386  ;;  %v1818_v22 = vor.u32 1.1754944e-38, %v1817_v10  ;;  %v2498_v58 = vsel %vm331_vm10, %v2466_v39, 0.0  ;;  %v5312_v62 = vmul.f32 -1.442695, %v7968_v48 }
 0x2e8   :  { %v2511_v21 = vadd.f32 %v2510_v51, %v2509_v32  ;;  %10636 = vst [vmem:[#allocation68_spill] sm:$0xff] %v7960_v18  ;;  %vm1816_vm7 = vcmp.eq.f32.partialorder %v1815_v15, 8.507059e+37 }
 0x2e9   :  { %v2467_v28 = vmul.f32 %v7960_v18, %v2227_v44  ;;  %10637 = vst [vmem:[#allocation69_spill] sm:$0xff] %v7963_v59 }
 0x2ea   :  { %v2512_v63 = vrot.slane %v2511_v21, 2 }
 0x2eb   :  { %v5812_v53 = vpop.eup %5811 }
 0x2ec   :  { %v5814_v1 = vpop.eup %5813  ;;  %v1807_v35 = vmul.f32 %v5812_v53, %v7924_v34  ;;  %vm1812_vm4 = vweird.f32 %v5812_v53  ;;  %v2513_v4 = vadd.f32 %v2512_v63, %v2511_v21  ;;  %v2499_v34 = vsel %vm331_vm10, %v2467_v28, 0.0 }
 0x2ed   :  { %v1719_v56 = vadd.f32 1.0, %v5814_v1  ;;  %vm1813_vm6 = vmor %vm1811_vm5, %vm1812_vm4  ;;  %v2500_v33 = vadd.f32 %v2499_v34, %v2498_v58 }
 0x2ee   :  { %v1808_v5 = vsub.f32 1.0, %v1807_v35  ;;  %v2514_v0 = vrot.slane %v2513_v4, 1  ;;  %v7972_v51 = vpop.permute.xlu2 %2289 }
 0x2ef   :  { %5815 = vrcp.f32 %v1719_v56  ;;  %v1832_v32 = vand.u32 2147483648, %v1719_v56  ;;  %v1830_v47 = vand.u32 2147483647, %v1719_v56  ;;  %v2501_v49 = vrot.slane %v2500_v33, 4  ;;  %10638 = vst [vmem:[#allocation70_spill] sm:$0xff] %v7972_v51 }
 0x2f0   :  { %v1809_v11 = vmul.f32 %v5812_v53, %v1808_v5  ;;  %vm1826_vm9 = vweird.f32 %v1719_v56  ;;  %5817 = vpow2.f32 %v5312_v62  ;;  %v2515_v35 = vadd.f32 %v2514_v0, %v2513_v4 }
 0x2f1   :  { %v1833_v12 = vor.u32 1.1754944e-38, %v1832_v32  ;;  %v2502_v1 = vadd.f32 %v2501_v49, %v2500_v33  ;;  %vm1831_vm12 = vcmp.eq.f32.partialorder %v1830_v47, 8.507059e+37 }
 0x2f2   :  { %5301 = vmatmul.msk.bf16.gmra.mxu0 %vm331_vm10, %v1461_v38  ;;  %v1810_v17 = vadd.f32 %v5812_v53, %v1809_v11  ;;  %v2651_v23 = vpack.c.bf16 %v2515_v35, %v2515_v35  ;;  %v1555_v11 = vpop.f32.mrf.mxu0 }
 0x2f3   :  { %v2503_v38 = vrot.slane %v2502_v1, 2  ;;  %v1556_v15 = vadd.f32 %v7803_v37, %v1555_v11 }
 0x2f4   :  { %v1814_v40 = vsel %vm1813_vm6, %v5812_v53, %v1810_v17 }
 0x2f5   :  { %v5816_v19 = vpop.eup %5815  ;;  %v1819_v60 = vsel %vm1816_vm7, %v1818_v22, %v1814_v40  ;;  %v2504_v5 = vadd.f32 %v2503_v38, %v2502_v1  ;;  %v5313_v4 = vmul.f32 -1.442695, %v1556_v15  ;;  %vm10482_vm7 = vcmask 1043459  }
 0x2f6   :  { %v1822_v20 = vmul.f32 %v5816_v19, %v1719_v56  ;;  %vm1827_vm8 = vweird.f32 %v5816_v19  ;;  %v2230_v46 = vmul.f32 %v1819_v60, %v7862_v45  ;;  %v7976_v45 = vpop.permute.xlu1 %2295  ;;  %v5818_v2 = vpop.eup %5817 }
 0x2f7   :  { %vm1828_vm11 = vmor %vm1826_vm9, %vm1827_vm8  ;;  %10639 = vst [vmem:[#allocation71_spill] sm:$0xff] %v7976_v45  ;;  %v2505_v21 = vrot.slane %v2504_v5, 1  ;;  %v1720_v39 = vadd.f32 1.0, %v5818_v2  ;;  %v7986_v38 = vpop.permute.xlu2 %2393 }
 0x2f8   :  { %v1823_v31 = vsub.f32 1.0, %v1822_v20  ;;  %v2470_v14 = vmul.f32 %v7972_v51, %v2230_v46  ;;  %10640 = vst [vmem:[#allocation72_spill] sm:$0xff] %v7986_v38 }
 0x2f9   :  { %v2506_v10 = vadd.f32 %v2505_v21, %v2504_v5  ;;  %5819 = vrcp.f32 %v1720_v39  ;;  %vm1841_vm0 = vweird.f32 %v1720_v39  ;;  %v1845_v1 = vand.u32 2147483647, %v1720_v39 }
 0x2fa   :  { %v1824_v8 = vmul.f32 %v5816_v19, %v1823_v31  ;;  %v2516_v44 = vsel %vm331_vm10, %v2470_v14, 0.0  ;;  %5821 = vpow2.f32 %v5313_v4 }
 0x2fb   :  { %v2650_v40 = vpack.c.bf16 %v2506_v10, %v2506_v10  ;;  %vm1846_vm2 = vcmp.eq.f32.partialorder %v1845_v1, 8.507059e+37 }
 0x2fc   :  { %v1825_v53 = vadd.f32 %v5816_v19, %v1824_v8 }
 0x2fd   :  { %v2682_v28 = vunpack.c.l.b16 %v2650_v40 }
 0x2fe   :  { %v1829_v61 = vsel %vm1828_vm11, %v5816_v19, %v1825_v53  ;;  %v2683_v19 = vunpack.c.l.b16 %v2651_v23 }
 0x2ff   :  { %v1834_v13 = vsel %vm1831_vm12, %v1833_v12, %v1829_v61  ;;  %v5820_v58 = vpop.eup %5819  ;;  %v1847_v12 = vand.u32 2147483648, %v1720_v39  ;;  %v1558_v5 = vpop.f32.mrf.mxu0 }
 0x300   :  { %v2231_v25 = vmul.f32 %v1834_v13, %v7888_v7  ;;  %v2699_v31 = vsel %vm10484_vm13, %v2683_v19, %v2682_v28  ;;  %v1837_v60 = vmul.f32 %v5820_v58, %v1720_v39  ;;  %v5822_v8 = vpop.eup %5821  ;;  %vm1842_vm15 = vweird.f32 %v5820_v58  ;;  %v7993_v19 = vpop.permute.xlu1 %2302 }
 0x301   :  { %v1721_v0 = vadd.f32 1.0, %v5822_v8  ;;  %vm1843_vm1 = vmor %vm1841_vm0, %vm1842_vm15  ;;  %v1848_v14 = vor.u32 1.1754944e-38, %v1847_v12  ;;  %v7989_v21 = vadd.f32 %v7803_v37, %v1558_v5  ;;  %10641 = vst [vmem:[#allocation73_spill] sm:$0xff] %v7993_v19  ;;  %v7996_v4 = vpop.permute.xlu2 %2308 }
 0x302   :  { %v2471_v56 = vmul.f32 %v7976_v45, %v2231_v25  ;;  %v1838_v54 = vsub.f32 1.0, %v1837_v60  ;;  %10642 = vst [vmem:[#allocation74_spill] sm:$0xff] %v7996_v4 }
 0x303   :  { %5823 = vrcp.f32 %v1721_v0  ;;  %v1862_v23 = vand.u32 2147483648, %v1721_v0  ;;  %v1860_v2 = vand.u32 2147483647, %v1721_v0  ;;  %vm1856_vm4 = vweird.f32 %v1721_v0 }
 0x304   :  { %v2517_v17 = vsel %vm331_vm10, %v2471_v56, 0.0  ;;  %v1839_v46 = vmul.f32 %v5820_v58, %v1838_v54 }
 0x305   :  { %v2518_v63 = vadd.f32 %v2517_v17, %v2516_v44  ;;  %v5314_v44 = vmul.f32 -1.442695, %v7989_v21  ;;  %v1863_v10 = vor.u32 1.1754944e-38, %v1862_v23  ;;  %vm1861_vm6 = vcmp.eq.f32.partialorder %v1860_v2, 8.507059e+37 }
 0x306   :  { %v1840_v62 = vadd.f32 %v5820_v58, %v1839_v46 }
 0x307   :  { %v2519_v7 = vrot.slane %v2518_v63, 4  ;;  %5825 = vpow2.f32 %v5314_v44  ;;  %v1560_v28 = vpop.f32.mrf.mxu0 }
 0x308   :  { %v1844_v35 = vsel %vm1843_vm1, %v5820_v58, %v1840_v62 }
 0x309   :  { %v2520_v20 = vadd.f32 %v2519_v7, %v2518_v63  ;;  %v5824_v61 = vpop.eup %5823  ;;  %v1849_v56 = vsel %vm1846_vm2, %v1848_v14, %v1844_v35 }
 0x30a   :  { %v1852_v13 = vmul.f32 %v5824_v61, %v1721_v0  ;;  %vm1857_vm3 = vweird.f32 %v5824_v61  ;;  %v2232_v17 = vmul.f32 %v1849_v56, %v7968_v48 }
 0x30b   :  { %v2521_v22 = vrot.slane %v2520_v20, 2  ;;  %vm1858_vm5 = vmor %vm1856_vm4, %vm1857_vm3 }
 0x30c   :  { %v1853_v25 = vsub.f32 1.0, %v1852_v13  ;;  %v2472_v40 = vmul.f32 %v7993_v19, %v2232_v17 }
 0x30d   :  { %v2522_v34 = vadd.f32 %v2521_v22, %v2520_v20  ;;  %v1561_v22 = vadd.f32 %v7803_v37, %v1560_v28 }
 0x30e   :  { %v1854_v11 = vmul.f32 %v5824_v61, %v1853_v25  ;;  %v2525_v58 = vsel %vm331_vm10, %v2472_v40, 0.0 }
 0x30f   :  { %v2523_v32 = vrot.slane %v2522_v34, 1  ;;  %v5315_v60 = vmul.f32 -1.442695, %v1561_v22  ;;  %v1563_v17 = vpop.f32.mrf.mxu0 }
 0x310   :  { %v1855_v63 = vadd.f32 %v5824_v61, %v1854_v11 }
 0x311   :  { %v2524_v33 = vadd.f32 %v2523_v32, %v2522_v34 }
 0x312   :  { %v1859_v39 = vsel %vm1858_vm5, %v5824_v61, %v1855_v63  ;;  %v8006_v63 = vpop.permute.xlu1 %2406 }
 0x313   :  { %v2652_v47 = vpack.c.bf16 %v2524_v33, %v2524_v33  ;;  %v1864_v7 = vsel %vm1861_vm6, %v1863_v10, %v1859_v39  ;;  %10643 = vst [vmem:[#allocation75_spill] sm:$0xff] %v8006_v63  ;;  %v8009_v39 = vadd.f32 %v7803_v37, %v1563_v17  ;;  %vm10481_vm6 = vcmask 1044484  }
 0x314   :  { %v2233_v20 = vmul.f32 %v1864_v7, %v1556_v15 }
 0x315   :  { %v2684_v49 = vunpack.c.l.b16 %v2652_v47  ;;  %v5316_v28 = vmul.f32 -1.442695, %v8009_v39 }
 0x316   :  { %v2473_v48 = vmul.f32 %v7996_v4, %v2233_v20 }
 0x317   :  { %v7984_v53 = vsel %vm10483_vm14, %v2684_v49, %v2699_v31  ;;  %v5826_v31 = vpop.eup %5825 }
 0x318   :  { %v2526_v34 = vsel %vm331_vm10, %v2473_v48, 0.0  ;;  %v1722_v33 = vadd.f32 1.0, %v5826_v31 }
 0x319   :  { %v2527_v32 = vadd.f32 %v2526_v34, %v2525_v58  ;;  %v1598_v34 = vpop.f32.mrf.mxu1 }
 0x31a   :  { %5827 = vrcp.f32 %v1722_v33  ;;  %v1877_v5 = vand.u32 2147483648, %v1722_v33  ;;  %vm1871_vm9 = vweird.f32 %v1722_v33  ;;  %v1875_v56 = vand.u32 2147483647, %v1722_v33 }
 0x31b   :  { %v2528_v54 = vrot.slane %v2527_v32, 4  ;;  %5829 = vpow2.f32 %v5315_v60 }
 0x31c   :  { %v1878_v10 = vor.u32 1.1754944e-38, %v1877_v5  ;;  %vm1876_vm12 = vcmp.eq.f32.partialorder %v1875_v56, 8.507059e+37 }
 0x31d   :  { %v2529_v8 = vadd.f32 %v2528_v54, %v2527_v32 }
 0x31f   :  { %v2530_v15 = vrot.slane %v2529_v8, 2 }
 0x320   :  { %v5828_v47 = vpop.eup %5827 }
 0x321   :  { %v2531_v0 = vadd.f32 %v2530_v15, %v2529_v8  ;;  %v5830_v49 = vpop.eup %5829  ;;  %v1867_v46 = vmul.f32 %v5828_v47, %v1722_v33  ;;  %vm1872_vm8 = vweird.f32 %v5828_v47  ;;  %v1565_v33 = vpop.f32.mrf.mxu0 }
 0x322   :  { %v1723_v12 = vadd.f32 1.0, %v5830_v49  ;;  %vm1873_vm11 = vmor %vm1871_vm9, %vm1872_vm8  ;;  %v8014_v8 = vadd.f32 %v7803_v37, %v1565_v33  ;;  %v8017_v49 = vpop.permute.xlu1 %2321 }
 0x323   :  { %v2532_v62 = vrot.slane %v2531_v0, 1  ;;  %v1868_v1 = vsub.f32 1.0, %v1867_v46  ;;  %10644 = vst [vmem:[#allocation76_spill] sm:$0xff] %v8017_v49 }
 0x324   :  { %5831 = vrcp.f32 %v1723_v12  ;;  %v1892_v20 = vand.u32 2147483648, %v1723_v12  ;;  %vm1886_vm0 = vweird.f32 %v1723_v12 }
 0x325   :  { %v2533_v61 = vadd.f32 %v2532_v62, %v2531_v0  ;;  %v1869_v35 = vmul.f32 %v5828_v47, %v1868_v1  ;;  %5833 = vpow2.f32 %v5316_v28 }
 0x326   :  { %v1893_v60 = vor.u32 1.1754944e-38, %v1892_v20 }
 0x327   :  { %v2653_v13 = vpack.c.bf16 %v2533_v61, %v2533_v61  ;;  %v1870_v14 = vadd.f32 %v5828_v47, %v1869_v35  ;;  %v1600_v35 = vpop.f32.mrf.mxu1 }
 0x329   :  { %v2685_v25 = vunpack.c.l.b16 %v2653_v13  ;;  %v1874_v2 = vsel %vm1873_vm11, %v5828_v47, %v1870_v14 }
 0x32a   :  { %v5832_v23 = vpop.eup %5831  ;;  %v1879_v40 = vsel %vm1876_vm12, %v1878_v10, %v1874_v2 }
 0x32b   :  { %v8004_v11 = vsel %vm10482_vm7, %v2685_v25, %v7984_v53  ;;  %v1882_v44 = vmul.f32 %v5832_v23, %v1723_v12  ;;  %vm1887_vm15 = vweird.f32 %v5832_v23  ;;  %v1890_v53 = vand.u32 2147483647, %v1723_v12  ;;  %v5834_v0 = vpop.eup %5833  ;;  %v8023_v25 = vpop.permute.xlu2 %2412 }
 0x32c   :  { %v2234_v31 = vmul.f32 %v1879_v40, %v7989_v21  ;;  %vm1888_vm1 = vmor %vm1886_vm0, %vm1887_vm15  ;;  %v5317_v21 = vmul.f32 -1.442695, %v8014_v8  ;;  %v1724_v62 = vadd.f32 1.0, %v5834_v0  ;;  %10645 = vst [vmem:[#allocation77_spill] sm:$0xff] %v8023_v25 }
 0x32d   :  { %v1883_v7 = vsub.f32 1.0, %v1882_v44  ;;  %vm1891_vm2 = vcmp.eq.f32.partialorder %v1890_v53, 8.507059e+37 }
 0x32e   :  { %v2474_v15 = vmul.f32 %v7926_v9, %v2234_v31  ;;  %5835 = vpow2.f32 %v5317_v21  ;;  %v1907_v40 = vand.u32 2147483648, %v1724_v62  ;;  %vm1901_vm4 = vweird.f32 %v1724_v62 }
 0x32f   :  { %v1884_v48 = vmul.f32 %v5832_v23, %v1883_v7  ;;  %5837 = vrcp.f32 %v1724_v62  ;;  %v1603_v20 = vpop.f32.mrf.mxu1  ;;  %v1905_v53 = vand.u32 2147483647, %v1724_v62 }
 0x330   :  { %v2534_v12 = vsel %vm331_vm10, %v2474_v15, 0.0  ;;  %v8027_v15 = vpop.permute.xlu0 %2399 }
 0x331   :  { %v1885_v58 = vadd.f32 %v5832_v23, %v1884_v48  ;;  %10647 = vst [vmem:[#allocation79_spill] sm:$0xff] %v8027_v15  ;;  %vm1906_vm8 = vcmp.eq.f32.partialorder %v1905_v53, 8.507059e+37 }
 0x333   :  { %v1889_v32 = vsel %vm1888_vm1, %v5832_v23, %v1885_v58  ;;  %v8025_v58 = vpop.permute.xlu2 %2419 }
 0x334   :  { %v1894_v54 = vsel %vm1891_vm2, %v1893_v60, %v1889_v32  ;;  %v5836_v14 = vpop.eup %5835  ;;  %10646 = vst [vmem:[#allocation78_spill] sm:$0xff] %v8025_v58 }
 0x335   :  { %v2235_v47 = vmul.f32 %v1894_v54, %v1561_v22  ;;  %v5838_v5 = vpop.eup %5837  ;;  %v1725_v56 = vadd.f32 1.0, %v5836_v14  ;;  %v1908_v54 = vor.u32 1.1754944e-38, %v1907_v40 }
 0x336   :  { %v1897_v2 = vmul.f32 %v5838_v5, %v1724_v62  ;;  %vm1902_vm3 = vweird.f32 %v5838_v5  ;;  %v8033_v62 = vadd.f32 %v7803_v37, %v1598_v34 }
 0x337   :  { %v2475_v46 = vmul.f32 %v8017_v49, %v2235_v47  ;;  %5839 = vrcp.f32 %v1725_v56  ;;  %vm1903_vm5 = vmor %vm1901_vm4, %vm1902_vm3  ;;  %v1568_v47 = vpop.f32.mrf.mxu0  ;;  %vm1916_vm11 = vweird.f32 %v1725_v56  ;;  %vm10480_vm3 = vcmask 1045509  }
 0x338   :  { %v1898_v17 = vsub.f32 1.0, %v1897_v2  ;;  %v8056_v53 = vpop.permute.xlu0 %2334 }
 0x339   :  { %v2535_v1 = vsel %vm331_vm10, %v2475_v46, 0.0  ;;  %v8030_v46 = vadd.f32 %v7803_v37, %v1568_v47  ;;  %10649 = vst [vmem:[#allocation81_spill] sm:$0xff] %v8056_v53 }
 0x33a   :  { %v2536_v61 = vadd.f32 %v2535_v1, %v2534_v12  ;;  %v1899_v7 = vmul.f32 %v5838_v5, %v1898_v17  ;;  %v1920_v1 = vand.u32 2147483647, %v1725_v56  ;;  %v1605_v17 = vpop.f32.mrf.mxu1 }
 0x33c   :  { %v2537_v13 = vrot.slane %v2536_v61, 4  ;;  %v1900_v48 = vadd.f32 %v5838_v5, %v1899_v7  ;;  %vm1921_vm15 = vcmp.eq.f32.partialorder %v1920_v1, 8.507059e+37  ;;  %v8046_v7 = vpop.permute.xlu2 %2328 }
 0x33d   :  { %v5840_v31 = vpop.eup %5839  ;;  %10648 = vst [vmem:[#allocation80_spill] sm:$0xff] %v8046_v7 }
 0x33e   :  { %v2538_v22 = vadd.f32 %v2537_v13, %v2536_v61  ;;  %v1904_v32 = vsel %vm1903_vm5, %v5838_v5, %v1900_v48  ;;  %v1912_v33 = vmul.f32 %v5840_v31, %v1725_v56  ;;  %v1922_v61 = vand.u32 2147483648, %v1725_v56 }
 0x33f   :  { %v1909_v12 = vsel %vm1906_vm8, %v1908_v54, %v1904_v32  ;;  %vm1917_vm9 = vweird.f32 %v5840_v31  ;;  %v8041_v5 = vadd.f32 %v7803_v37, %v1600_v35  ;;  %v8054_v48 = vadd.f32 %v7803_v37, %v1603_v20 }
 0x340   :  { %v2539_v23 = vrot.slane %v2538_v22, 2  ;;  %v1913_v21 = vsub.f32 1.0, %v1912_v33  ;;  %vm1918_vm12 = vmor %vm1916_vm11, %vm1917_vm9  ;;  %v1923_v34 = vor.u32 1.1754944e-38, %v1922_v61 }
 0x341   :  { %v5332_v47 = vmul.f32 -1.442695, %v8054_v48 }
 0x342   :  { %v2540_v44 = vadd.f32 %v2539_v23, %v2538_v22  ;;  %v1914_v13 = vmul.f32 %v5840_v31, %v1913_v21  ;;  %v5318_v22 = vmul.f32 -1.442695, %v8030_v46  ;;  %v2236_v23 = vmul.f32 %v1909_v12, %v8009_v39  ;;  %v1608_v1 = vpop.f32.mrf.mxu1 }
 0x344   :  { %v2541_v10 = vrot.slane %v2540_v44, 1  ;;  %v1915_v2 = vadd.f32 %v5840_v31, %v1914_v13  ;;  %5841 = vpow2.f32 %v5318_v22  ;;  %v2476_v35 = vmul.f32 %v8046_v7, %v2236_v23  ;;  %v8063_v23 = vpop.permute.xlu1 %2425 }
 0x345   :  { %10650 = vst [vmem:[#allocation82_spill] sm:$0xff] %v8063_v23 }
 0x346   :  { %v2542_v28 = vadd.f32 %v2541_v10, %v2540_v44  ;;  %v5330_v44 = vmul.f32 -1.442695, %v8033_v62  ;;  %v1919_v10 = vsel %vm1918_vm12, %v5840_v31, %v1915_v2  ;;  %v2543_v54 = vsel %vm331_vm10, %v2476_v35, 0.0 }
 0x347   :  { %v1924_v40 = vsel %vm1921_vm15, %v1923_v34, %v1919_v10 }
 0x348   :  { %v2654_v60 = vpack.c.bf16 %v2542_v28, %v2542_v28  ;;  %v1570_v28 = vpop.f32.mrf.mxu0  ;;  %v2237_v39 = vmul.f32 %v1924_v40, %v8014_v8  ;;  %5843 = vpow2.f32 %v5330_v44  ;;  %v8072_v40 = vadd.f32 %v7803_v37, %v1605_v17 }
 0x349   :  { %v8051_v56 = vadd.f32 %v7803_v37, %v1570_v28 }
 0x34a   :  { %v2686_v0 = vunpack.c.l.b16 %v2654_v60  ;;  %v5842_v31 = vpop.eup %5841  ;;  %v2477_v60 = vmul.f32 %v8056_v53, %v2237_v39 }
 0x34b   :  { %v5319_v32 = vmul.f32 -1.442695, %v8051_v56  ;;  %v1726_v33 = vadd.f32 1.0, %v5842_v31 }
 0x34c   :  { %v8037_v14 = vsel %vm10481_vm6, %v2686_v0, %v8004_v11  ;;  %v5331_v11 = vmul.f32 -1.442695, %v8041_v5  ;;  %v2544_v8 = vsel %vm331_vm10, %v2477_v60, 0.0 }
 0x34d   :  { %v2545_v0 = vadd.f32 %v2544_v8, %v2543_v54  ;;  %v1937_v8 = vand.u32 2147483648, %v1726_v33  ;;  %vm1931_vm1 = vweird.f32 %v1726_v33 }
 0x34e   :  { %5845 = vpow2.f32 %v5331_v11  ;;  %v5844_v21 = vpop.eup %5843 }
 0x34f   :  { %5847 = vpow2.f32 %v5319_v32  ;;  %v2546_v20 = vrot.slane %v2545_v0, 4  ;;  %v8067_v44 = vadd.f32 1.0, %v5844_v21  ;;  %v5333_v32 = vmul.f32 -1.442695, %v8072_v40  ;;  %v1610_v21 = vpop.f32.mrf.mxu1 }
 0x350   :  { %5849 = vrcp.f32 %v1726_v33 }
 0x351   :  { %5851 = vpow2.f32 %v5332_v47  ;;  %v2547_v61 = vadd.f32 %v2546_v20, %v2545_v0  ;;  %v1935_v0 = vand.u32 2147483647, %v1726_v33 }
 0x353   :  { %v2548_v2 = vrot.slane %v2547_v61, 2  ;;  %vm1936_vm4 = vcmp.eq.f32.partialorder %v1935_v0, 8.507059e+37 }
 0x354   :  { %v5846_v12 = vpop.eup %5845 }
 0x355   :  { %v5848_v13 = vpop.eup %5847  ;;  %v8069_v11 = vadd.f32 1.0, %v5846_v12  ;;  %v2549_v28 = vadd.f32 %v2548_v2, %v2547_v61  ;;  %v8101_v61 = vadd.f32 %v7803_v37, %v1608_v1 }
 0x356   :  { %v5850_v22 = vpop.eup %5849  ;;  %v8065_v34 = vadd.f32 1.0, %v5848_v13  ;;  %v1573_v13 = vpop.f32.mrf.mxu0 }
 0x357   :  { %v1927_v10 = vmul.f32 %v5850_v22, %v1726_v33  ;;  %v5852_v39 = vpop.eup %5851  ;;  %v2550_v31 = vrot.slane %v2549_v28, 1  ;;  %vm1932_vm0 = vweird.f32 %v5850_v22  ;;  %v8092_v33 = vpop.permute.xlu2 %2438 }
 0x358   :  { %5853 = vrcp.f32 %v8065_v34  ;;  %v8078_v47 = vadd.f32 1.0, %v5852_v39  ;;  %vm8080_vm2 = vmor %vm1931_vm1, %vm1932_vm0  ;;  %10654 = vst [vmem:[#allocation84_spill] sm:$0xff] %v8092_v33  ;;  %v1950_v49 = vand.u32 2147483647, %v8065_v34  ;;  %vm1946_vm8 = vweird.f32 %v8065_v34 }
 0x359   :  { %v1928_v35 = vsub.f32 1.0, %v1927_v10  ;;  %5855 = vrcp.f32 %v8067_v44  ;;  %v2551_v54 = vadd.f32 %v2550_v31, %v2549_v28  ;;  %v8088_v28 = vadd.f32 %v7803_v37, %v1573_v13 }
 0x35a   :  { %5857 = vrcp.f32 %v8069_v11  ;;  %v1938_v31 = vor.u32 1.1754944e-38, %v1937_v8  ;;  %v1952_v8 = vand.u32 2147483648, %v8065_v34  ;;  %vm1951_vm11 = vcmp.eq.f32.partialorder %v1950_v49, 8.507059e+37 }
 0x35b   :  { %v1929_v60 = vmul.f32 %v5850_v22, %v1928_v35  ;;  %v2655_v12 = vpack.c.bf16 %v2551_v54, %v2551_v54  ;;  %5859 = vpow2.f32 %v5333_v32  ;;  %v8090_v35 = vpop.permute.xlu1 %2432  ;;  %vm2111_vm0 = vweird.f32 %v8067_v44 }
 0x35c   :  { %10653 = vst [vmem:[#allocation83_spill] sm:$0xff] %v8090_v35  ;;  %5861 = vrcp.f32 %v8078_v47 }
 0x35d   :  { %v1930_v17 = vadd.f32 %v5850_v22, %v1929_v60  ;;  %v2687_v39 = vunpack.c.l.b16 %v2655_v12 }
 0x35e   :  { %v5854_v20 = vpop.eup %5853 }
 0x35f   :  { %v1934_v2 = vsel %vm8080_vm2, %v5850_v22, %v1930_v17  ;;  %v1942_v10 = vmul.f32 %v5854_v20, %v8065_v34  ;;  %v8094_v60 = vpop.eup %5855  ;;  %v5320_v22 = vmul.f32 -1.442695, %v8088_v28  ;;  %v8105_v32 = vsel %vm10480_vm3, %v2687_v39, %v8037_v14 }
 0x360   :  { %v8098_v17 = vpop.eup %5857  ;;  %v1939_v13 = vsel %vm1936_vm4, %v1938_v31, %v1934_v2  ;;  %vm1947_vm5 = vweird.f32 %v5854_v20  ;;  %v2107_v0 = vmul.f32 %v8094_v60, %v8067_v44  ;;  %v5334_v2 = vmul.f32 -1.442695, %v8101_v61 }
 0x361   :  { %v1943_v54 = vsub.f32 1.0, %v1942_v10  ;;  %5863 = vpow2.f32 %v5320_v22  ;;  %v2238_v10 = vmul.f32 %v1939_v13, %v8030_v46  ;;  %v5860_v1 = vpop.eup %5859  ;;  %v2122_v14 = vmul.f32 %v8098_v17, %v8069_v11  ;;  %vm1948_vm9 = vmor %vm1946_vm8, %vm1947_vm5  ;;  %v1613_v13 = vpop.f32.mrf.mxu1 }
 0x362   :  { %v8117_v39 = vadd.f32 %v7803_v37, %v1610_v21  ;;  %v1953_v31 = vor.u32 1.1754944e-38, %v1952_v8  ;;  %v8119_v22 = vpop.eup %5861  ;;  %v2108_v34 = vsub.f32 1.0, %v2107_v0  ;;  %v8126_v45 = vadd.f32 1.0, %v5860_v1 }
 0x363   :  { %v1944_v12 = vmul.f32 %v5854_v20, %v1943_v54  ;;  %v1575_v54 = vpop.f32.mrf.mxu0  ;;  %v2123_v41 = vsub.f32 1.0, %v2122_v14  ;;  %5865 = vpow2.f32 %v5334_v2  ;;  %v2115_v1 = vand.u32 2147483647, %v8067_v44 }
 0x364   :  { %v8122_v46 = vadd.f32 %v7803_v37, %v1575_v54  ;;  %v8132_v37 = vpop.permute.xlu2 %2347  ;;  %v2109_v0 = vmul.f32 %v8094_v60, %v2108_v34  ;;  %vm2112_vm12 = vweird.f32 %v8094_v60  ;;  %v2130_v54 = vand.u32 2147483647, %v8069_v11 }
 0x365   :  { %v1945_v9 = vadd.f32 %v5854_v20, %v1944_v12  ;;  %v8124_v12 = vpop.permute.xlu1 %2341  ;;  %10656 = vst [vmem:[#allocation86_spill] sm:$0xff] %v8132_v37  ;;  %vm2127_vm15 = vweird.f32 %v8098_v17  ;;  %vm8159_vm1 = vcmp.eq.f32.partialorder %v2115_v1, 8.507059e+37  ;;  %vm8168_vm2 = vmor %vm2111_vm0, %vm2112_vm12  ;;  %vm2126_vm4 = vweird.f32 %v8069_v11 }
 0x366   :  { %10655 = vst [vmem:[#allocation85_spill] sm:$0xff] %v8124_v12  ;;  %v2478_v21 = vmul.f32 %v8124_v12, %v2238_v10  ;;  %v5321_v6 = vmul.f32 -1.442695, %v8122_v46  ;;  %v2124_v10 = vmul.f32 %v8098_v17, %v2123_v41  ;;  %v2110_v34 = vadd.f32 %v8094_v60, %v2109_v0  ;;  %vm8176_vm5 = vmor %vm2126_vm4, %vm2127_vm15  ;;  %v8187_v12 = vld [vmem:[%s10396_s13] ss:$0 sm:$0xff] }
 0x367   :  { %v1949_v4 = vsel %vm1948_vm9, %v5854_v20, %v1945_v9  ;;  %v5864_v51 = vpop.eup %5863  ;;  %v5335_v9 = vmul.f32 -1.442695, %v8117_v39  ;;  %vm8180_vm8 = vcmp.eq.f32.partialorder %v2130_v54, 8.507059e+37  ;;  %vm2142_vm9 = vweird.f32 %v8119_v22 }
 0x368   :  { %v1954_v19 = vsel %vm1951_vm11, %v1953_v31, %v1949_v4  ;;  %v8134_v49 = vadd.f32 1.0, %v5864_v51  ;;  %v2137_v4 = vmul.f32 %v8119_v22, %v8078_v47  ;;  %5867 = vpow2.f32 %v5321_v6 }
 0x369   :  { %v2239_v8 = vmul.f32 %v1954_v19, %v8051_v56  ;;  %v2552_v19 = vsel %vm331_vm10, %v2478_v21, 0.0  ;;  %v5866_v2 = vpop.eup %5865  ;;  %v2117_v6 = vand.u32 2147483648, %v8067_v44  ;;  %v2125_v41 = vadd.f32 %v8098_v17, %v2124_v10 }
 0x36a   :  { %5869 = vrcp.f32 %v8134_v49  ;;  %v2138_v14 = vsub.f32 1.0, %v2137_v4  ;;  %v2132_v44 = vand.u32 2147483648, %v8069_v11  ;;  %v8174_v10 = vadd.f32 1.0, %v5866_v2 }
 0x36b   :  { %v2479_v20 = vmul.f32 %v8132_v37, %v2239_v8  ;;  %5871 = vrcp.f32 %v8126_v45  ;;  %v8149_v21 = vpop.f32.mrf.mxu0  ;;  %v2118_v18 = vor.u32 1.1754944e-38, %v2117_v6  ;;  %v2114_v2 = vsel %vm8168_vm2, %v8094_v60, %v2110_v34 }
 0x36c   :  { %5873 = vpow2.f32 %v5335_v9  ;;  %v1615_v9 = vpop.f32.mrf.mxu1  ;;  %v2129_v6 = vsel %vm8176_vm5, %v8098_v17, %v2125_v41  ;;  %v2133_v36 = vor.u32 1.1754944e-38, %v2132_v44  ;;  %v2147_v60 = vand.u32 2147483648, %v8078_v47 }
 0x36d   :  { %v2553_v56 = vsel %vm331_vm10, %v2479_v20, 0.0  ;;  %v8190_v53 = vadd.f32 %v8187_v12, %v1615_v9  ;;  %5875 = vrcp.f32 %v8174_v10  ;;  %vm2141_vm11 = vweird.f32 %v8078_v47 }
 0x36e   :  { %v2554_v51 = vadd.f32 %v2553_v56, %v2552_v19  ;;  %v5868_v31 = vpop.eup %5867  ;;  %v2139_v19 = vmul.f32 %v8119_v22, %v2138_v14  ;;  %v2145_v17 = vand.u32 2147483647, %v8078_v47  ;;  %vm2143_vm12 = vmor %vm2141_vm11, %vm2142_vm9  ;;  %v2148_v44 = vor.u32 1.1754944e-38, %v2147_v60 }
 0x36f   :  { %v8192_v11 = vadd.f32 1.0, %v5868_v31  ;;  %v8207_v31 = vadd.f32 %v8187_v12, %v1613_v13  ;;  %v5337_v41 = vmul.f32 -1.442695, %v8190_v53  ;;  %v2134_v13 = vsel %vm8180_vm8, %v2133_v36, %v2129_v6 }
 0x370   :  { %v8151_v8 = vpop.eup %5869  ;;  %v2555_v1 = vrot.slane %v2554_v51, 4  ;;  %v2140_v7 = vadd.f32 %v8119_v22, %v2139_v19  ;;  %vm2146_vm15 = vcmp.eq.f32.partialorder %v2145_v17, 8.507059e+37  ;;  %v2251_v37 = vmul.f32 %v2134_v13, %v8041_v5 }
 0x371   :  { %v8156_v4 = vpop.eup %5871  ;;  %v1957_v56 = vmul.f32 %v8151_v8, %v8134_v49  ;;  %5877 = vrcp.f32 %v8192_v11  ;;  %v5336_v47 = vmul.f32 -1.442695, %v8207_v31  ;;  %vm1962_vm0 = vweird.f32 %v8151_v8 }
 0x372   :  { %v5874_v43 = vpop.eup %5873  ;;  %v2152_v54 = vmul.f32 %v8156_v4, %v8126_v45  ;;  %v2556_v34 = vadd.f32 %v2555_v1, %v2554_v51  ;;  %v2144_v51 = vsel %vm2143_vm12, %v8119_v22, %v2140_v7  ;;  %v2162_v22 = vand.u32 2147483648, %v8126_v45 }
 0x373   :  { %v8204_v42 = vadd.f32 1.0, %v5874_v43  ;;  %v1958_v9 = vsub.f32 1.0, %v1957_v56  ;;  %v2119_v43 = vsel %vm8159_vm1, %v2118_v18, %v2114_v2  ;;  %v1580_v0 = vpop.f32.mrf.mxu0  ;;  %v8226_v36 = vpop.eup %5875  ;;  %v2149_v20 = vsel %vm2146_vm15, %v2148_v44, %v2144_v51 }
 0x374   :  { %v2153_v19 = vsub.f32 1.0, %v2152_v54  ;;  %v2557_v1 = vrot.slane %v2556_v34, 2  ;;  %v2250_v18 = vmul.f32 %v2119_v43, %v8033_v62  ;;  %v8236_v62 = vadd.f32 %v8187_v12, %v1580_v0  ;;  %v8274_v44 = vpop.permute.xlu1 %2451 }
 0x375   :  { %5879 = vrcp.f32 %v8204_v42  ;;  %v1959_v56 = vmul.f32 %v8151_v8, %v1958_v9  ;;  %vm2156_vm1 = vweird.f32 %v8126_v45  ;;  %v1967_v54 = vand.u32 2147483648, %v8134_v49  ;;  %10667 = vst [vmem:[#allocation87_spill] sm:$0xff] %v8274_v44 }
 0x376   :  { %5881 = vpow2.f32 %v5337_v41  ;;  %v2154_v7 = vmul.f32 %v8156_v4, %v2153_v19  ;;  %v2558_v5 = vadd.f32 %v2557_v1, %v2556_v34  ;;  %v2167_v60 = vmul.f32 %v8226_v36, %v8174_v10 }
 0x377   :  { %v8231_v14 = vpop.eup %5877  ;;  %5883 = vpow2.f32 %v5336_v47  ;;  %v1960_v2 = vadd.f32 %v8151_v8, %v1959_v56  ;;  %vm1961_vm2 = vweird.f32 %v8134_v49  ;;  %v1965_v17 = vand.u32 2147483647, %v8134_v49 }
 0x378   :  { %v8249_v41 = vadd.f32 %v8187_v12, %v8149_v21  ;;  %v8252_v43 = vmul.f32 %v2149_v20, %v8054_v48  ;;  %vm2157_vm4 = vweird.f32 %v8156_v4  ;;  %v8255_v34 = vor.u32 1.1754944e-38, %v2162_v22  ;;  %vm8257_vm5 = vmor %vm1961_vm2, %vm1962_vm0 }
 0x379   :  { %v1972_v19 = vmul.f32 %v8231_v14, %v8192_v11  ;;  %v8264_v49 = vadd.f32 %v8156_v4, %v2154_v7  ;;  %v2490_v21 = vmul.f32 %v8025_v58, %v2250_v18  ;;  %v1964_v48 = vsel %vm8257_vm5, %v8151_v8, %v1960_v2  ;;  %vm8293_vm11 = vmor %vm2156_vm1, %vm2157_vm4 }
 0x37a   :  { %v5323_v47 = vmul.f32 -1.442695, %v8236_v62  ;;  %v2491_v56 = vmul.f32 %v8063_v23, %v2251_v37  ;;  %v2559_v1 = vrot.slane %v2558_v5, 1  ;;  %v1968_v20 = vor.u32 1.1754944e-38, %v1967_v54 }
 0x37b   :  { %v8241_v9 = vpop.eup %5879  ;;  %v2168_v7 = vsub.f32 1.0, %v2167_v60  ;;  %vm1966_vm8 = vcmp.eq.f32.partialorder %v1965_v17, 8.507059e+37  ;;  %v5322_v18 = vmul.f32 -1.442695, %v8249_v41  ;;  %v1583_v6 = vpop.f32.mrf.mxu0  ;;  %v1973_v58 = vsub.f32 1.0, %v1972_v19 }
 0x37c   :  { %v5882_v51 = vpop.eup %5881  ;;  %v2182_v0 = vmul.f32 %v8241_v9, %v8204_v42  ;;  %v1969_v8 = vsel %vm1966_vm8, %v1968_v20, %v1964_v48  ;;  %v8280_v2 = vadd.f32 %v8187_v12, %v1583_v6  ;;  %v1982_v37 = vand.u32 2147483648, %v8192_v11  ;;  %v8312_v20 = vpop.permute.xlu1 %2360 }
 0x37d   :  { %v5884_v22 = vpop.eup %5883  ;;  %v8277_v13 = vadd.f32 1.0, %v5882_v51  ;;  %5885 = vpow2.f32 %v5323_v47  ;;  %v1974_v23 = vmul.f32 %v8231_v14, %v1973_v58  ;;  %vm1977_vm9 = vweird.f32 %v8231_v14  ;;  %10671 = vst [vmem:[#allocation89_spill] sm:$0xff] %v8312_v20 }
 0x37e   :  { %v1980_v54 = vand.u32 2147483647, %v8192_v11  ;;  %v2183_v60 = vsub.f32 1.0, %v2182_v0  ;;  %v8286_v17 = vadd.f32 1.0, %v5884_v22  ;;  %v2560_v52 = vadd.f32 %v2559_v1, %v2558_v5 }
 0x37f   :  { %v5324_v19 = vmul.f32 -1.442695, %v8280_v2  ;;  %v2240_v58 = vmul.f32 %v1969_v8, %v8088_v28  ;;  %5887 = vpow2.f32 %v5322_v18  ;;  %v1975_v51 = vadd.f32 %v8231_v14, %v1974_v23 }
 0x380   :  { %vm1976_vm12 = vweird.f32 %v8192_v11  ;;  %v2175_v48 = vand.u32 2147483647, %v8174_v10  ;;  %v1983_v47 = vor.u32 1.1754944e-38, %v1982_v37  ;;  %v2169_v0 = vmul.f32 %v8226_v36, %v2168_v7  ;;  %v8310_v11 = vpop.permute.xlu2 %2354 }
 0x381   :  { %5889 = vpow2.f32 %v5324_v19  ;;  %vm1978_vm15 = vmor %vm1976_vm12, %vm1977_vm9  ;;  %vm1981_vm0 = vcmp.eq.f32.partialorder %v1980_v54, 8.507059e+37  ;;  %v2606_v23 = vsel %vm331_vm10, %v2490_v21, 0.0  ;;  %10670 = vst [vmem:[#allocation88_spill] sm:$0xff] %v8310_v11  ;;  %v2656_v1 = vpack.c.bf16 %v2560_v52, %v2560_v52 }
 0x382   :  { %5891 = vrcp.f32 %v8277_v13  ;;  %v1979_v28 = vsel %vm1978_vm15, %v8231_v14, %v1975_v51  ;;  %v2607_v8 = vsel %vm331_vm10, %v2491_v56, 0.0  ;;  %v2184_v7 = vmul.f32 %v8241_v9, %v2183_v60 }
 0x383   :  { %5893 = vrcp.f32 %v8286_v17  ;;  %v1984_v22 = vsel %vm1981_vm0, %v1983_v47, %v1979_v28  ;;  %v5886_v18 = vpop.eup %5885  ;;  %v2480_v37 = vmul.f32 %v8310_v11, %v2240_v58  ;;  %v1585_v54 = vpop.f32.mrf.mxu0  ;;  %v10672_v21 = vand.u32 2147483647, %v8126_v45 }
 0x384   :  { %v2241_v14 = vmul.f32 %v1984_v22, %v8122_v46  ;;  %vm2171_vm2 = vweird.f32 %v8174_v10  ;;  %vm8325_vm4 = vcmp.eq.f32.partialorder %v2175_v48, 8.507059e+37  ;;  %v2177_v56 = vand.u32 2147483648, %v8174_v10 }
 0x385   :  { %vm8320_vm1 = vcmp.eq.f32.partialorder %v10672_v21, 8.507059e+37  ;;  %v8331_v60 = vadd.f32 %v8187_v12, %v1585_v54  ;;  %v5888_v58 = vpop.eup %5887  ;;  %v2170_v46 = vadd.f32 %v8226_v36, %v2169_v0  ;;  %vm2172_vm5 = vweird.f32 %v8226_v36 }
 0x386   :  { %v2192_v45 = vand.u32 2147483648, %v8204_v42  ;;  %v2481_v51 = vmul.f32 %v8312_v20, %v2241_v14  ;;  %vm2187_vm8 = vweird.f32 %v8241_v9  ;;  %v2688_v48 = vunpack.c.l.b16 %v2656_v1  ;;  %vm8352_vm9 = vmor %vm2171_vm2, %vm2172_vm5 }
 0x387   :  { %v5890_v47 = vpop.eup %5889  ;;  %v8338_v28 = vadd.f32 1.0, %v5886_v18  ;;  %v5325_v22 = vmul.f32 -1.442695, %v8331_v60  ;;  %v2185_v54 = vadd.f32 %v8241_v9, %v2184_v7  ;;  %v2561_v0 = vsel %vm331_vm10, %v2480_v37, 0.0 }
 0x388   :  { %v8341_v21 = vpop.eup %5891  ;;  %v8344_v5 = vadd.f32 1.0, %v5890_v47  ;;  %v2562_v11 = vsel %vm331_vm10, %v2481_v51, 0.0  ;;  %v8356_v18 = vadd.f32 1.0, %v5888_v58  ;;  %vm10479_vm12 = vcmask 1046534  }
 0x389   :  { %v8348_v29 = vpop.eup %5893  ;;  %v2563_v14 = vadd.f32 %v2562_v11, %v2561_v0  ;;  %5895 = vpow2.f32 %v5325_v22  ;;  %v2174_v7 = vsel %vm8352_vm9, %v8226_v36, %v2170_v46  ;;  %v2178_v37 = vor.u32 1.1754944e-38, %v2177_v56 }
 0x38a   :  { %vm2186_vm15 = vweird.f32 %v8204_v42  ;;  %v2190_v51 = vand.u32 2147483647, %v8204_v42  ;;  %v2212_v11 = vmul.f32 %v8341_v21, %v8277_v13  ;;  %5897 = vrcp.f32 %v8338_v28 }
 0x38b   :  { %vm8365_vm0 = vmor %vm2186_vm15, %vm2187_vm8  ;;  %v2564_v58 = vrot.slane %v2563_v14, 4  ;;  %v8374_v36 = vsel %vm10479_vm12, %v2688_v48, %v8105_v32  ;;  %v2193_v56 = vor.u32 1.1754944e-38, %v2192_v45  ;;  %v2197_v46 = vmul.f32 %v8348_v29, %v8286_v17  ;;  %v1588_v47 = vpop.f32.mrf.mxu0 }
 0x38c   :  { %v2189_v42 = vsel %vm8365_vm0, %v8241_v9, %v2185_v54  ;;  %5899 = vrcp.f32 %v8344_v5  ;;  %v2179_v22 = vsel %vm8325_vm4, %v2178_v37, %v2174_v7  ;;  %v8386_v32 = vadd.f32 %v8187_v12, %v1588_v47 }
 0x38d   :  { %5901 = vrcp.f32 %v8356_v18  ;;  %v2565_v0 = vadd.f32 %v2564_v58, %v2563_v14  ;;  %v10681_v9 = vsel %vm8293_vm11, %v8156_v4, %v8264_v49  ;;  %v8396_v48 = vadd.f32 %v2607_v8, %v2606_v23 }
 0x38e   :  { %v2164_v45 = vsel %vm8320_vm1, %v8255_v34, %v10681_v9  ;;  %vm2191_vm2 = vcmp.eq.f32.partialorder %v2190_v51, 8.507059e+37  ;;  %v2213_v1 = vsub.f32 1.0, %v2212_v11  ;;  %v5326_v14 = vmul.f32 -1.442695, %v8386_v32 }
 0x38f   :  { %v5896_v52 = vpop.eup %5895  ;;  %v2194_v54 = vsel %vm2191_vm2, %v2193_v56, %v2189_v42  ;;  %v2566_v7 = vrot.slane %v2565_v0, 2  ;;  %v2254_v37 = vmul.f32 %v2179_v22, %v8101_v61  ;;  %v2198_v10 = vsub.f32 1.0, %v2197_v46 }
 0x390   :  { %v8400_v6 = vadd.f32 1.0, %v5896_v52  ;;  %v8402_v58 = vpop.eup %5897  ;;  %v2492_v4 = vmul.f32 %v8090_v35, %v8252_v43  ;;  %v2253_v23 = vmul.f32 %v2164_v45, %v8072_v40  ;;  %v2255_v8 = vmul.f32 %v2194_v54, %v8117_v39 }
 0x391   :  { %v2567_v34 = vadd.f32 %v2566_v7, %v2565_v0  ;;  %v2214_v51 = vmul.f32 %v8341_v21, %v2213_v1  ;;  %v8416_v42 = vmul.f32 %v7949_v27, %v2254_v37  ;;  %v2199_v43 = vmul.f32 %v8348_v29, %v2198_v10 }
 0x392   :  { %v8406_v49 = vpop.eup %5899  ;;  %5903 = vrcp.f32 %v8400_v6  ;;  %v2207_v56 = vand.u32 2147483648, %v8286_v17  ;;  %v2002_v40 = vmul.f32 %v8402_v58, %v8338_v28  ;;  %v8423_v46 = vsel %vm331_vm10, %v2492_v4, 0.0 }
 0x393   :  { %v8411_v19 = vpop.eup %5901  ;;  %v2568_v11 = vrot.slane %v2567_v34, 1  ;;  %5905 = vpow2.f32 %v5326_v14  ;;  %v1590_v39 = vpop.f32.mrf.mxu0  ;;  %v2017_v47 = vmul.f32 %v8406_v49, %v8344_v5  ;;  %v8431_v9 = vmul.f32 %v8092_v33, %v2253_v23 }
 0x394   :  { %v8428_v0 = vadd.f32 %v8187_v12, %v1590_v39  ;;  %v8434_v45 = vmul.f32 %v8274_v44, %v2255_v8  ;;  %v1987_v54 = vmul.f32 %v8411_v19, %v8356_v18  ;;  %v8440_v1 = vadd.f32 %v8341_v21, %v2214_v51 }
 0x395   :  { %v2569_v22 = vadd.f32 %v2568_v11, %v2567_v34  ;;  %vm2217_vm11 = vweird.f32 %v8341_v21  ;;  %v8447_v10 = vadd.f32 %v8348_v29, %v2199_v43  ;;  %v8449_v4 = vor.u32 1.1754944e-38, %v2207_v56 }
 0x396   :  { %v5327_v14 = vmul.f32 -1.442695, %v8428_v0  ;;  %v1997_v34 = vand.u32 2147483648, %v8356_v18  ;;  %v2003_v23 = vsub.f32 1.0, %v2002_v40  ;;  %vm2216_vm1 = vweird.f32 %v8277_v13 }
 0x397   :  { %v2657_v7 = vpack.c.bf16 %v2569_v22, %v2569_v22  ;;  %v2220_v51 = vand.u32 2147483647, %v8277_v13  ;;  %v2018_v11 = vsub.f32 1.0, %v2017_v47  ;;  %vm8456_vm4 = vmor %vm2216_vm1, %vm2217_vm11  ;;  %v1988_v43 = vsub.f32 1.0, %v1987_v54 }
 0x398   :  { %v8444_v37 = vpop.eup %5903  ;;  %5907 = vpow2.f32 %v5327_v14  ;;  %vm10476_vm5 = vcmask 1047559   ;;  %vm1991_vm8 = vweird.f32 %v8356_v18  ;;  %v1995_v44 = vand.u32 2147483647, %v8356_v18 }
 0x399   :  { %v5906_v8 = vpop.eup %5905  ;;  %v2032_v39 = vmul.f32 %v8444_v37, %v8400_v6  ;;  %v2689_v61 = vunpack.c.l.b16 %v2657_v7  ;;  %v8469_v27 = vor.u32 1.1754944e-38, %v1997_v34  ;;  %v2004_v54 = vmul.f32 %v8402_v58, %v2003_v23 }
 0x39a   :  { %v8460_v56 = vadd.f32 1.0, %v5906_v8  ;;  %vm1992_vm9 = vweird.f32 %v8411_v19  ;;  %v2019_v14 = vmul.f32 %v8406_v49, %v2018_v11  ;;  %v1989_v40 = vmul.f32 %v8411_v19, %v1988_v43 }
 0x39b   :  { %v2033_v47 = vsub.f32 1.0, %v2032_v39  ;;  %v1593_v7 = vpop.f32.mrf.mxu0  ;;  %v2010_v52 = vand.u32 2147483647, %v8338_v28  ;;  %v2012_v34 = vand.u32 2147483648, %v8338_v28  ;;  %v8484_v23 = vsel %vm10476_vm5, %v2689_v61, %v8374_v36 }
 0x39c   :  { %5909 = vrcp.f32 %v8460_v56  ;;  %v8477_v39 = vadd.f32 %v8187_v12, %v1593_v7  ;;  %vm2007_vm15 = vweird.f32 %v8402_v58  ;;  %vm2037_vm0 = vweird.f32 %v8444_v37 }
 0x39d   :  { %v2034_v8 = vmul.f32 %v8444_v37, %v2033_v47  ;;  %vm2202_vm2 = vweird.f32 %v8348_v29  ;;  %v2005_v43 = vadd.f32 %v8402_v58, %v2004_v54  ;;  %vm2022_vm11 = vweird.f32 %v8406_v49 }
 0x39e   :  { %v5328_v11 = vmul.f32 -1.442695, %v8477_v39  ;;  %v5908_v47 = vpop.eup %5907  ;;  %vm2036_vm1 = vweird.f32 %v8400_v6  ;;  %v2042_v36 = vand.u32 2147483648, %v8400_v6  ;;  %vm8495_vm5 = vcmp.eq.f32.partialorder %v1995_v44, 8.507059e+37 }
 0x39f   :  { %v2035_v35 = vadd.f32 %v8444_v37, %v2034_v8  ;;  %v2020_v7 = vadd.f32 %v8406_v49, %v2019_v14  ;;  %v2040_v8 = vand.u32 2147483647, %v8400_v6  ;;  %v8501_v33 = vadd.f32 1.0, %v5908_v47  ;;  %vm8510_vm6 = vmor %vm2036_vm1, %vm2037_vm0 }
 0x3a0   :  { %5911 = vpow2.f32 %v5328_v11  ;;  %vm2201_vm12 = vweird.f32 %v8286_v17  ;;  %v1990_v54 = vadd.f32 %v8411_v19, %v1989_v40  ;;  %vm2006_vm3 = vweird.f32 %v8338_v28 }
 0x3a1   :  { %v2025_v57 = vand.u32 2147483647, %v8344_v5  ;;  %v2027_v44 = vand.u32 2147483648, %v8344_v5  ;;  %vm8514_vm7 = vcmp.eq.f32.partialorder %v2220_v51, 8.507059e+37  ;;  %vm8520_vm14 = vmor %vm2006_vm3, %vm2007_vm15  ;;  %vm2021_vm13 = vweird.f32 %v8344_v5 }
 0x3a2   :  { %v5910_v20 = vpop.eup %5909  ;;  %v2039_v28 = vsel %vm8510_vm6, %v8444_v37, %v2035_v35  ;;  %5913 = vrcp.f32 %v8501_v33  ;;  %v2009_v51 = vsel %vm8520_vm14, %v8402_v58, %v2005_v43  ;;  %vm8533_vm0 = vcmp.eq.f32.partialorder %v2010_v52, 8.507059e+37  ;;  %vm8539_vm3 = vmor %vm2021_vm13, %vm2022_vm11 }
 0x3a3   :  { %v2047_v11 = vmul.f32 %v5910_v20, %v8460_v56  ;;  %v2013_v16 = vor.u32 1.1754944e-38, %v2012_v34  ;;  %v2043_v35 = vor.u32 1.1754944e-38, %v2042_v36  ;;  %v1595_v37 = vpop.f32.mrf.mxu0  ;;  %vm8547_vm6 = vmor %vm1991_vm8, %vm1992_vm9  ;;  %v2024_v58 = vsel %vm8539_vm3, %v8406_v49, %v2020_v7 }
 0x3a4   :  { %vm2041_vm14 = vcmp.eq.f32.partialorder %v2040_v8, 8.507059e+37  ;;  %v8555_v34 = vadd.f32 %v8187_v12, %v1595_v37  ;;  %v1994_v43 = vsel %vm8547_vm6, %v8411_v19, %v1990_v54  ;;  %vm2026_vm13 = vcmp.eq.f32.partialorder %v2025_v57, 8.507059e+37  ;;  %vm8580_vm11 = vmor %vm2201_vm12, %vm2202_vm2 }
 0x3a5   :  { %v2048_v52 = vsub.f32 1.0, %v2047_v11  ;;  %v2028_v36 = vor.u32 1.1754944e-38, %v2027_v44  ;;  %v2044_v18 = vsel %vm2041_vm14, %v2043_v35, %v2039_v28  ;;  %vm2052_vm8 = vweird.f32 %v5910_v20 }
 0x3a6   :  { %v5912_v40 = vpop.eup %5911  ;;  %v2057_v26 = vand.u32 2147483648, %v8460_v56  ;;  %v5329_v5 = vmul.f32 -1.442695, %v8555_v34  ;;  %v2014_v49 = vsel %vm8533_vm0, %v2013_v16, %v2009_v51  ;;  %v2055_v12 = vand.u32 2147483647, %v8460_v56 }
 0x3a7   :  { %v2049_v55 = vmul.f32 %v5910_v20, %v2048_v52  ;;  %v2029_v7 = vsel %vm2026_vm13, %v2028_v36, %v2024_v58  ;;  %v8565_v8 = vadd.f32 1.0, %v5912_v40  ;;  %v2245_v57 = vmul.f32 %v2044_v18, %v8331_v60  ;;  %v8615_v40 = vpop.permute.xlu0 %2464 }
 0x3a8   :  { %v5914_v11 = vpop.eup %5913  ;;  %vm2051_vm9 = vweird.f32 %v8460_v56  ;;  %5915 = vpow2.f32 %v5329_v5  ;;  %v10698_v54 = vand.u32 2147483648, %v8277_v13  ;;  %v1999_v28 = vsel %vm8495_vm5, %v8469_v27, %v1994_v43  ;;  %10703 = vst [vmem:[#allocation90_spill] sm:$0xff] %v8615_v40 }
 0x3a9   :  { %v2050_v19 = vadd.f32 %v5910_v20, %v2049_v55  ;;  %vm2053_vm15 = vmor %vm2051_vm9, %vm2052_vm8  ;;  %v2062_v16 = vmul.f32 %v5914_v11, %v8501_v33  ;;  %5917 = vrcp.f32 %v8565_v8  ;;  %v2243_v13 = vmul.f32 %v2014_v49, %v8236_v62 }
 0x3aa   :  { %v2223_v44 = vor.u32 1.1754944e-38, %v10698_v54  ;;  %v2244_v60 = vmul.f32 %v2029_v7, %v8280_v2  ;;  %v2058_v61 = vor.u32 1.1754944e-38, %v2057_v26  ;;  %v2204_v27 = vsel %vm8580_vm11, %v8348_v29, %v8447_v10 }
 0x3ab   :  { %v2054_v56 = vsel %vm2053_vm15, %v5910_v20, %v2050_v19  ;;  %v10701_v51 = vsel %vm8456_vm4, %v8341_v21, %v8440_v1  ;;  %vm2056_vm12 = vcmp.eq.f32.partialorder %v2055_v12, 8.507059e+37  ;;  %v2063_v35 = vsub.f32 1.0, %v2062_v16 }
 0x3ac   :  { %v2224_v47 = vsel %vm8514_vm7, %v2223_v44, %v10701_v51  ;;  %v2242_v62 = vmul.f32 %v1999_v28, %v8249_v41  ;;  %v2485_v2 = vmul.f32 %v7963_v59, %v2245_v57  ;;  %v2059_v26 = vsel %vm2056_vm12, %v2058_v61, %v2054_v56  ;;  %v8622_v57 = vpop.permute.xlu2 %2458 }
 0x3ad   :  { %v2072_v20 = vand.u32 2147483648, %v8501_v33  ;;  %v10702_v37 = vand.u32 2147483647, %v8286_v17  ;;  %v2064_v29 = vmul.f32 %v5914_v11, %v2063_v35  ;;  %vm2067_vm2 = vweird.f32 %v5914_v11  ;;  %10704 = vst [vmem:[#allocation91_spill] sm:$0xff] %v8622_v57 }
 0x3ae   :  { %v2070_v10 = vand.u32 2147483647, %v8501_v33  ;;  %v5916_v21 = vpop.eup %5915  ;;  %v2257_v22 = vmul.f32 %v2224_v47, %v8190_v53  ;;  %v2483_v6 = vmul.f32 %v7958_v3, %v2243_v13  ;;  %v2484_v41 = vmul.f32 %v7870_v50, %v2244_v60 }
 0x3af   :  { %vm2206_vm5 = vcmp.eq.f32.partialorder %v10702_v37, 8.507059e+37  ;;  %v5918_v14 = vpop.eup %5917  ;;  %v2246_v58 = vmul.f32 %v2059_v26, %v8386_v32  ;;  %v2065_v52 = vadd.f32 %v5914_v11, %v2064_v29  ;;  %vm2066_vm7 = vweird.f32 %v8501_v33 }
 0x3b0   :  { %v2209_v1 = vsel %vm2206_vm5, %v8449_v4, %v2204_v27  ;;  %v8609_v17 = vadd.f32 1.0, %v5916_v21  ;;  %v2482_v43 = vmul.f32 %v7947_v30, %v2242_v62  ;;  %v2580_v36 = vsel %vm331_vm10, %v2485_v2, 0.0  ;;  %vm2068_vm4 = vmor %vm2066_vm7, %vm2067_vm2 }
 0x3b1   :  { %v2073_v4 = vor.u32 1.1754944e-38, %v2072_v20  ;;  %v2077_v53 = vmul.f32 %v5918_v14, %v8565_v8  ;;  %v2256_v18 = vmul.f32 %v2209_v1, %v8207_v31  ;;  %v2069_v5 = vsel %vm2068_vm4, %v5914_v11, %v2065_v52 }
 0x3b2   :  { %vm2071_vm1 = vcmp.eq.f32.partialorder %v2070_v10, 8.507059e+37  ;;  %5919 = vrcp.f32 %v8609_v17  ;;  %v2571_v33 = vsel %vm331_vm10, %v2483_v6, 0.0  ;;  %v2579_v32 = vsel %vm331_vm10, %v2484_v41, 0.0  ;;  %v5566_v10 = vld [vmem:[#allocation7 + $0x8] sm:$0xff] }
 0x3b3   :  { %v2074_v49 = vsel %vm2071_vm1, %v2073_v4, %v2069_v5  ;;  %v2078_v7 = vsub.f32 1.0, %v2077_v53  ;;  %v2616_v12 = vsel %vm331_vm10, %v8431_v9, 0.0  ;;  %v2581_v19 = vadd.f32 %v2580_v36, %v2579_v32  ;;  %2741 = vmatpush.bf16.msrb.mxu1 %v5566_v10 }
 0x3b4   :  { %v2486_v31 = vmul.f32 %v7986_v38, %v2246_v58  ;;  %v2247_v54 = vmul.f32 %v2074_v49, %v8428_v0  ;;  %v2497_v11 = vmul.f32 %v8615_v40, %v2257_v22  ;;  %v2570_v44 = vsel %vm331_vm10, %v2482_v43, 0.0 }
 0x3b5   :  { %v2079_v28 = vmul.f32 %v5918_v14, %v2078_v7  ;;  %vm2082_vm0 = vweird.f32 %v5918_v14  ;;  %v2625_v16 = vsel %vm331_vm10, %v8434_v45, 0.0  ;;  %v2572_v55 = vadd.f32 %v2571_v33, %v2570_v44 }
 0x3b6   :  { %v2487_v13 = vmul.f32 %v8027_v15, %v2247_v54  ;;  %v2087_v9 = vand.u32 2147483648, %v8565_v8  ;;  %v2496_v60 = vmul.f32 %v8622_v57, %v2256_v18  ;;  %vm2081_vm3 = vweird.f32 %v8565_v8 }
 0x3b7   :  { %v2080_v56 = vadd.f32 %v5918_v14, %v2079_v28  ;;  %v2085_v0 = vand.u32 2147483647, %v8565_v8  ;;  %v2624_v27 = vsel %vm331_vm10, %v8416_v42, 0.0  ;;  %v2582_v51 = vrot.slane %v2581_v19, 4  ;;  %vm8639_vm6 = vmor %vm2081_vm3, %vm2082_vm0 }
 0x3b8   :  { %v5920_v61 = vpop.eup %5919  ;;  %v2588_v47 = vsel %vm331_vm10, %v2486_v31, 0.0  ;;  %v2589_v45 = vsel %vm331_vm10, %v2487_v13, 0.0  ;;  %v2634_v62 = vsel %vm331_vm10, %v2497_v11, 0.0  ;;  %v2617_v20 = vadd.f32 %v2616_v12, %v8423_v46 }
 0x3b9   :  { %v2590_v2 = vadd.f32 %v2589_v45, %v2588_v47  ;;  %v2084_v26 = vsel %vm8639_vm6, %v5918_v14, %v2080_v56  ;;  %v2092_v8 = vmul.f32 %v5920_v61, %v8609_v17  ;;  %v2626_v42 = vadd.f32 %v2625_v16, %v2624_v27  ;;  %v5565_v14 = vld [vmem:[#allocation7] sm:$0xff] }
 0x3ba   :  { %v2573_v37 = vrot.slane %v2572_v55, 4  ;;  %v2088_v29 = vor.u32 1.1754944e-38, %v2087_v9  ;;  %v2633_v21 = vsel %vm331_vm10, %v2496_v60, 0.0  ;;  %vm2086_vm14 = vcmp.eq.f32.partialorder %v2085_v0, 8.507059e+37  ;;  %2742 = vmatpush.bf16.msrb.mxu1 %v5565_v14 }
 0x3bb   :  { %v2591_v1 = vrot.slane %v2590_v2, 4  ;;  %v2093_v22 = vsub.f32 1.0, %v2092_v8  ;;  %v2635_v6 = vadd.f32 %v2634_v62, %v2633_v21  ;;  %v2583_v41 = vadd.f32 %v2582_v51, %v2581_v19 }
 0x3bc   :  { %v2089_v58 = vsel %vm2086_vm14, %v2088_v29, %v2084_v26  ;;  %v2102_v52 = vand.u32 2147483648, %v8609_v17  ;;  %vm2097_vm13 = vweird.f32 %v5920_v61  ;;  %v2100_v46 = vand.u32 2147483647, %v8609_v17 }
 0x3bd   :  { %v2592_v43 = vadd.f32 %v2591_v1, %v2590_v2  ;;  %v2094_v36 = vmul.f32 %v5920_v61, %v2093_v22  ;;  %v2618_v4 = vrot.slane %v2617_v20, 4  ;;  %v2574_v53 = vadd.f32 %v2573_v37, %v2572_v55 }
 0x3be   :  { %v2627_v18 = vrot.slane %v2626_v42, 4  ;;  %v2248_v5 = vmul.f32 %v2089_v58, %v8477_v39  ;;  %vm2096_vm8 = vweird.f32 %v8609_v17  ;;  %v2636_v32 = vrot.slane %v2635_v6, 4 }
 0x3bf   :  { %v2095_v33 = vadd.f32 %v5920_v61, %v2094_v36  ;;  %v2584_v49 = vrot.slane %v2583_v41, 2  ;;  %vm2098_vm9 = vmor %vm2096_vm8, %vm2097_vm13  ;;  %v2103_v7 = vor.u32 1.1754944e-38, %v2102_v52  ;;  %v10707_v12 = vrot.slane %v8396_v48, 4 }
 0x3c0   :  { %v2593_v31 = vrot.slane %v2592_v43, 2  ;;  %vm2101_vm15 = vcmp.eq.f32.partialorder %v2100_v46, 8.507059e+37  ;;  %v2619_v11 = vadd.f32 %v2618_v4, %v2617_v20  ;;  %v2575_v44 = vrot.slane %v2574_v53, 2 }
 0x3c1   :  { %v2610_v19 = vadd.f32 %v10707_v12, %v8396_v48  ;;  %v2099_v54 = vsel %vm2098_vm9, %v5920_v61, %v2095_v33  ;;  %v2628_v16 = vadd.f32 %v2627_v18, %v2626_v42  ;;  %v2488_v39 = vmul.f32 %v8006_v63, %v2248_v5 }
 0x3c2   :  { %v2104_v28 = vsel %vm2101_vm15, %v2103_v7, %v2099_v54  ;;  %v2637_v55 = vadd.f32 %v2636_v32, %v2635_v6  ;;  %v2585_v13 = vadd.f32 %v2584_v49, %v2583_v41  ;;  %v2594_v60 = vadd.f32 %v2593_v31, %v2592_v43 }
 0x3c3   :  { %v2249_v17 = vmul.f32 %v2104_v28, %v8555_v34  ;;  %v2611_v9 = vrot.slane %v2610_v19, 2  ;;  %v2620_v0 = vrot.slane %v2619_v11, 2  ;;  %v2576_v27 = vadd.f32 %v2575_v44, %v2574_v53 }
 0x3c4   :  { %v2629_v48 = vrot.slane %v2628_v16, 2  ;;  %v2597_v61 = vsel %vm331_vm10, %v2488_v39, 0.0  ;;  %v2638_v47 = vrot.slane %v2637_v55, 2  ;;  %v2586_v45 = vrot.slane %v2585_v13, 1 }
 0x3c5   :  { %v2489_v56 = vmul.f32 %v8023_v25, %v2249_v17  ;;  %v2612_v62 = vadd.f32 %v2611_v9, %v2610_v19  ;;  %v2595_v2 = vrot.slane %v2594_v60, 1  ;;  %v2621_v26 = vadd.f32 %v2620_v0, %v2619_v11 }
 0x3c6   :  { %v2577_v34 = vrot.slane %v2576_v27, 1  ;;  %v2630_v20 = vadd.f32 %v2629_v48, %v2628_v16  ;;  %v2639_v42 = vadd.f32 %v2638_v47, %v2637_v55  ;;  %v2587_v37 = vadd.f32 %v2586_v45, %v2585_v13 }
 0x3c7   :  { %v2598_v51 = vsel %vm331_vm10, %v2489_v56, 0.0  ;;  %v2613_v10 = vrot.slane %v2612_v62, 1  ;;  %v2596_v21 = vadd.f32 %v2595_v2, %v2594_v60  ;;  %v2622_v1 = vrot.slane %v2621_v26, 1 }
 0x3c8   :  { %v2599_v35 = vadd.f32 %v2598_v51, %v2597_v61  ;;  %v2578_v22 = vadd.f32 %v2577_v34, %v2576_v27  ;;  %v2631_v41 = vrot.slane %v2630_v20, 1  ;;  %v2640_v58 = vrot.slane %v2639_v42, 1  ;;  %v2770_v61 = vpop.f32.mrf.mxu2  ;;  %v5647_v51 = vld [vmem:[%s10399_s16] ss:$0 sm:$0xff] }
 0x3c9   :  { %v2659_v52 = vpack.c.bf16 %v2587_v37, %v2587_v37  ;;  %v2614_v43 = vadd.f32 %v2613_v10, %v2612_v62  ;;  %v2660_v36 = vpack.c.bf16 %v2596_v21, %v2596_v21  ;;  %v2623_v46 = vadd.f32 %v2622_v1, %v2621_v26 }
 0x3ca   :  { %v2600_v8 = vrot.slane %v2599_v35, 4  ;;  %v2658_v4 = vpack.c.bf16 %v2578_v22, %v2578_v22  ;;  %v2632_v18 = vadd.f32 %v2631_v41, %v2630_v20  ;;  %v2641_v5 = vadd.f32 %v2640_v58, %v2639_v42  ;;  %v5567_v42 = vld [vmem:[#allocation8] sm:$0xff] }
 0x3cb   :  { %v2691_v33 = vunpack.c.l.b16 %v2659_v52  ;;  %v2662_v49 = vpack.c.bf16 %v2614_v43, %v2614_v43  ;;  %v2692_v7 = vunpack.c.l.b16 %v2660_v36  ;;  %v2663_v12 = vpack.c.bf16 %v2623_v46, %v2623_v46 }
 0x3cc   :  { %v2601_v29 = vadd.f32 %v2600_v8, %v2599_v35  ;;  %v2690_v19 = vunpack.c.l.b16 %v2658_v4  ;;  %v2664_v54 = vpack.c.bf16 %v2632_v18, %v2632_v18  ;;  %v2665_v11 = vpack.c.bf16 %v2641_v5, %v2641_v5  ;;  %v5568_v8 = vld [vmem:[#allocation8 + $0x8] sm:$0xff] }
 0x3cd   :  { %vm10708_vm11 = vcmask 1041409   ;;  %v2694_v16 = vunpack.c.l.b16 %v2662_v49  ;;  %vm10709_vm12 = vcmask 1042434   ;;  %v2695_v17 = vunpack.c.l.b16 %v2663_v12  ;;  %2851 = vmatpush.bf16.msra.mxu3 %v5568_v8  ;;  %v10720_v8 = vld [vmem:[#allocation29_spill] sm:$0xff] }
 0x3ce   :  { %v2602_v6 = vrot.slane %v2601_v29, 2  ;;  %v2712_v44 = vsel %vm10708_vm11, %v2691_v33, %v2690_v19  ;;  %vm10710_vm5 = vcmask 1043459   ;;  %v2696_v13 = vunpack.c.l.b16 %v2664_v54 }
 0x3cf   :  { %v2713_v39 = vsel %vm10709_vm12, %v2692_v7, %v2712_v44  ;;  %vm10711_vm2 = vcmask 1044484   ;;  %v2697_v60 = vunpack.c.l.b16 %v2665_v11  ;;  %vm10712_vm7 = vcmask 1045509   ;;  %v5570_v44 = vld [vmem:[%s10516_s22 + $0x18] sm:$0xff] }
 0x3d0   :  { %v2603_v14 = vadd.f32 %v2602_v6, %v2601_v29  ;;  %vm10713_vm4 = vcmask 1046534   ;;  %vm10714_vm1 = vcmask 1047559   ;;  %v2772_v2 = vpop.f32.mrf.mxu2  ;;  %2888 = vmatpush.bf16.msra.mxu1 %v5570_v44 }
 0x3d1   :  { %2852 = vmatpush.bf16.msra.mxu3 %v5567_v42 }
 0x3d2   :  { %v2604_v53 = vrot.slane %v2603_v14, 1 }
 0x3d4   :  { %v2605_v32 = vadd.f32 %v2604_v53, %v2603_v14 }
 0x3d6   :  { %v2661_v31 = vpack.c.bf16 %v2605_v32, %v2605_v32 }
 0x3d8   :  { %v2693_v28 = vunpack.c.l.b16 %v2661_v31 }
 0x3da   :  { %v2714_v55 = vsel %vm10710_vm5, %v2693_v28, %v2713_v39  ;;  %v5572_v28 = vld [vmem:[%s10517_s26 + $0x18] sm:$0xff]  ;;  %v5571_v39 = vld [vmem:[%s10517_s26 + $0x10] sm:$0xff]  ;;  %s5205_s26 = sshll.u32 %s10410_s27, 4  ;;  %s5206_s26 = int_to_ptr.hbm [resolvable:$true] %s5205_s26 }
 0x3db   :  { %v2715_v9 = vsel %vm10711_vm2, %v2694_v16, %v2714_v55  ;;  %2919 = vmatpush.bf16.msrb.mxu2 %v5572_v28  ;;  %v5569_v16 = vld [vmem:[%s10516_s22 + $0x10] sm:$0xff]  ;;  %v5648_v55 = vld [vmem:[%s10401_s18] ss:$0 sm:$0xff] }
 0x3dc   :  { %v2716_v56 = vsel %vm10712_vm7, %v2695_v17, %v2715_v9  ;;  %2889 = vmatpush.bf16.msra.mxu1 %v5569_v16  ;;  %v10726_v28 = vld [vmem:[#allocation32_spill] sm:$0xff] }
 0x3dd   :  { %v2717_v0 = vsel %vm10713_vm4, %v2696_v13, %v2716_v56  ;;  %v10715_v56 = vld [vmem:[#allocation27_spill] sm:$0xff] }
 0x3de   :  { %v2718_v27 = vsel %vm10714_vm1, %v2697_v60, %v2717_v0 }
 0x3df   :  { %v2719_v48 = vpack.c.b16 %v2718_v27, %v8484_v23  ;;  %2920 = vmatpush.bf16.msrb.mxu2 %v5571_v39  ;;  %v10717_v27 = vld [vmem:[#allocation28_spill] sm:$0xff] }
 0x3e1   :  { %5346 = vmatmul.msk.bf16.vlgmr.msrb.gmra.mxu1 %vm331_vm10, %v2719_v48 }
 0x45e   :  { %v2744_v47 = vpop.f32.mrf.mxu1 }
 0x45f   :  { %v2771_v45 = vadd.f32 %v2770_v61, %v2744_v47  ;;  %v5573_v47 = vld [vmem:[#allocation2 + $0x10] sm:$0xff] }
 0x461   :  { %v2779_v35 = vadd.f32 %v5647_v51, %v2771_v45 }
 0x463   :  { %v5356_v62 = vmul.f32 -1.442695, %v2779_v35 }
 0x465   :  { %5921 = vpow2.f32 %v5356_v62 }
 0x466   :  { %v2746_v26 = vpop.f32.mrf.mxu1 }
 0x467   :  { %v2773_v34 = vadd.f32 %v2772_v2, %v2746_v26  ;;  %v8711_v26 = vld [vmem:[%s10547_s28 + $0x1] ss:$0 sm:$0xff] }
 0x468   :  { %v3017_v16 = vmul.f32 %v8711_v26, %v10726_v28 }
 0x469   :  { %v2780_v20 = vadd.f32 %v5647_v51, %v2773_v34  ;;  %v5574_v51 = vld [vmem:[#allocation2 + $0x18] sm:$0xff] }
 0x46a   :  { %3845 = vmatpush.bf16.msra.mxu2 %v5574_v51  ;;  %5591 = vmatpush.bf16.msrb.mxu3 %v5574_v51 }
 0x46b   :  { %v5922_v23 = vpop.eup %5921  ;;  %v5357_v37 = vmul.f32 -1.442695, %v2780_v20 }
 0x46c   :  { %v2787_v29 = vadd.f32 1.0, %v5922_v23 }
 0x46d   :  { %5923 = vpow2.f32 %v5357_v37 }
 0x46e   :  { %5925 = vrcp.f32 %v2787_v29  ;;  %v2800_v43 = vand.u32 2147483648, %v2787_v29  ;;  %vm2794_vm3 = vweird.f32 %v2787_v29  ;;  %v2798_v36 = vand.u32 2147483647, %v2787_v29  ;;  %3846 = vmatpush.bf16.msra.mxu2 %v5573_v47  ;;  %5592 = vmatpush.bf16.msrb.mxu3 %v5573_v47 }
 0x470   :  { %v2801_v33 = vor.u32 1.1754944e-38, %v2800_v43  ;;  %vm2799_vm13 = vcmp.eq.f32.partialorder %v2798_v36, 8.507059e+37  ;;  %v8730_v36 = vld [vmem:[%s10549_s1 + $0x1] ss:$0 sm:$0xff] }
 0x473   :  { %v5924_v10 = vpop.eup %5923 }
 0x474   :  { %v5926_v21 = vpop.eup %5925  ;;  %v2788_v1 = vadd.f32 1.0, %v5924_v10 }
 0x475   :  { %v2790_v22 = vmul.f32 %v5926_v21, %v2787_v29  ;;  %vm2795_vm0 = vweird.f32 %v5926_v21 }
 0x476   :  { %5927 = vrcp.f32 %v2788_v1  ;;  %vm2796_vm6 = vmor %vm2794_vm3, %vm2795_vm0  ;;  %v2815_v4 = vand.u32 2147483648, %v2788_v1  ;;  %v2813_v5 = vand.u32 2147483647, %v2788_v1  ;;  %vm2809_vm8 = vweird.f32 %v2788_v1 }
 0x477   :  { %v2791_v6 = vsub.f32 1.0, %v2790_v22  ;;  %v10722_v22 = vld [vmem:[#allocation38_spill] sm:$0xff] }
 0x478   :  { %v2816_v7 = vor.u32 1.1754944e-38, %v2815_v4  ;;  %vm2814_vm15 = vcmp.eq.f32.partialorder %v2813_v5, 8.507059e+37 }
 0x479   :  { %v2792_v41 = vmul.f32 %v5926_v21, %v2791_v6  ;;  %v3024_v6 = vmul.f32 %v8711_v26, %v10722_v22 }
 0x47b   :  { %v2793_v52 = vadd.f32 %v5926_v21, %v2792_v41  ;;  %v10723_v41 = vld [vmem:[#allocation45_spill] sm:$0xff] }
 0x47c   :  { %v5928_v58 = vpop.eup %5927 }
 0x47d   :  { %v2805_v14 = vmul.f32 %v5928_v58, %v2788_v1  ;;  %v2797_v53 = vsel %vm2796_vm6, %v5926_v21, %v2793_v52  ;;  %vm2810_vm14 = vweird.f32 %v5928_v58  ;;  %v10721_v21 = vld [vmem:[#allocation36_spill] sm:$0xff] }
 0x47e   :  { %v2802_v49 = vsel %vm2799_vm13, %v2801_v33, %v2797_v53  ;;  %vm2811_vm9 = vmor %vm2809_vm8, %vm2810_vm14  ;;  %v3022_v1 = vmul.f32 %v8711_v26, %v10721_v21 }
 0x47f   :  { %v2806_v46 = vsub.f32 1.0, %v2805_v14  ;;  %v2819_v31 = vmul.f32 %v2802_v49, %v2779_v35 }
 0x481   :  { %v2807_v18 = vmul.f32 %v5928_v58, %v2806_v46 }
 0x483   :  { %v2808_v32 = vadd.f32 %v5928_v58, %v2807_v18  ;;  %v10724_v18 = vld [vmem:[#allocation30_spill] sm:$0xff] }
 0x484   :  { %v3016_v5 = vmul.f32 %v8711_v26, %v10724_v18 }
 0x485   :  { %v2812_v12 = vsel %vm2811_vm9, %v5928_v58, %v2808_v32  ;;  %v3012_v58 = vmul.f32 %v8711_v26, %v10723_v41 }
 0x486   :  { %v2817_v19 = vsel %vm2814_vm15, %v2816_v7, %v2812_v12 }
 0x487   :  { %v2820_v54 = vmul.f32 %v2817_v19, %v2780_v20  ;;  %v3014_v20 = vmul.f32 %v8711_v26, %v10720_v8 }
 0x489   :  { %v2826_v11 = vpack.c.bf16 %v2820_v54, %v2819_v31  ;;  %v10725_v31 = vld [vmem:[#allocation31_spill] sm:$0xff] }
 0x48a   :  { %v3015_v54 = vmul.f32 %v8711_v26, %v10725_v31 }
 0x48b   :  { %5366 = vmatmul.msk.bf16.vlgmr.msra.gmra.mxu3 %vm331_vm10, %v2826_v11 }
 0x50e   :  { %v2854_v17 = vpop.f32.mrf.mxu3 }
 0x50f   :  { %v2855_v13 = vadd.f32 %v5648_v55, %v2854_v17 }
 0x511   :  { %v8690_v0 = vadd.f32 %v2855_v13, %v10715_v56  ;;  %v10727_v13 = vld [vmem:[#allocation33_spill] sm:$0xff] }
 0x513   :  { %10716 = vst [vmem:[#allocation27_spill] sm:$0xff] %v8690_v0 }
 0x516   :  { %v2856_v9 = vpop.f32.mrf.mxu3 }
 0x517   :  { %v2857_v60 = vadd.f32 %v5648_v55, %v2856_v9  ;;  %v8754_v9 = vmul.f32 %v8711_v26, %v10727_v13 }
 0x519   :  { %v8693_v48 = vadd.f32 %v2857_v60, %v10717_v27  ;;  %v10728_v60 = vld [vmem:[#allocation34_spill] sm:$0xff]  ;;  %v10729_v27 = vld [vmem:[#allocation39_spill] sm:$0xff] }
 0x51a   :  { %v8758_v56 = vmul.f32 %v8711_v26, %v10728_v60  ;;  %v3026_v51 = vmul.f32 %v8711_v26, %v10729_v27 }
 0x51b   :  { %10718 = vst [vmem:[#allocation28_spill] sm:$0xff] %v8693_v48  ;;  %v8697_v61 = vpack.c.bf16 %v8693_v48, %v8690_v0 }
 0x51d   :  { %10719 = vst [vmem:[#allocation92_spill] sm:$0xff] %v8697_v61  ;;  %5379 = vmatmul.msk.bf16.vlgmr.msra.gmra.mxu1 %vm331_vm10, %v8697_v61  ;;  %5392 = vmatmul.msk.bf16.vlgmr.msrb.gmra.mxu2 %vm331_vm10, %v8697_v61 }
 0x59a   :  { %v8703_v45 = vpop.f32.mrf.mxu1 }
 0x59b   :  { %v2935_v35 = vrot.slane %v8703_v45, 5  ;;  %v2931_v62 = vrot.slane %v8703_v45, 1  ;;  %v2936_v2 = vrot.slane %v8703_v45, 6  ;;  %v2932_v34 = vrot.slane %v8703_v45, 2 }
 0x59c   :  { %v2937_v42 = vrot.slane %v8703_v45, 7  ;;  %v2945_v23 = vperm.slane %v8703_v45, 0 }
 0x59d   :  { %v2950_v37 = vperm.slane %v2935_v35, 0  ;;  %v2946_v29 = vperm.slane %v2931_v62, 0  ;;  %v2951_v10 = vperm.slane %v2936_v2, 0  ;;  %v2947_v14 = vperm.slane %v2932_v34, 0  ;;  %v10730_v35 = vld [vmem:[#allocation37_spill] sm:$0xff] }
 0x59e   :  { %v2952_v32 = vperm.slane %v2937_v42, 0  ;;  %v3023_v62 = vmul.f32 %v8711_v26, %v10730_v35 }
 0x5a0   :  { %v8724_v52 = vpop.f32.mrf.mxu2 }
 0x5a1   :  { %v2977_v43 = vadd.f32 %v2945_v23, %v8724_v52  ;;  %v2987_v46 = vadd.f32 %v2950_v37, %v8724_v52  ;;  %v2979_v4 = vadd.f32 %v2946_v29, %v8724_v52  ;;  %v2989_v53 = vadd.f32 %v2951_v10, %v8724_v52 }
 0x5a2   :  { %v2981_v33 = vadd.f32 %v2947_v14, %v8724_v52  ;;  %v2991_v44 = vadd.f32 %v2952_v32, %v8724_v52 }
 0x5a3   :  { %v3044_v49 = vadd.f32 %v3012_v58, %v2977_v43  ;;  %v3054_v7 = vadd.f32 %v3022_v1, %v2987_v46  ;;  %v3046_v12 = vadd.f32 %v3014_v20, %v2979_v4  ;;  %v3056_v19 = vadd.f32 %v3024_v6, %v2989_v53  ;;  %v10731_v20 = vld [vmem:[#allocation48_spill] sm:$0xff] }
 0x5a4   :  { %v3048_v11 = vadd.f32 %v3016_v5, %v2981_v33  ;;  %v3013_v42 = vmul.f32 %v8711_v26, %v10731_v20  ;;  %v3058_v22 = vadd.f32 %v3026_v51, %v2991_v44  ;;  %v2933_v6 = vrot.slane %v8703_v45, 3 }
 0x5a5   :  { %v8744_v39 = vadd.f32 %v8730_v36, %v3044_v49  ;;  %v8747_v17 = vadd.f32 %v8730_v36, %v3054_v7  ;;  %v8750_v55 = vadd.f32 %v8730_v36, %v3046_v12  ;;  %v8763_v47 = vadd.f32 %v8730_v36, %v3056_v19  ;;  %v10732_v49 = vld [vmem:[#allocation35_spill] sm:$0xff] }
 0x5a6   :  { %v8775_v1 = vadd.f32 %v8730_v36, %v3048_v11  ;;  %v8786_v7 = vmul.f32 %v8711_v26, %v10732_v49  ;;  %v10735_v11 = vld [vmem:[#allocation51_spill] sm:$0xff]  ;;  %v8808_v13 = vadd.f32 %v8730_v36, %v3058_v22 }
 0x5a7   :  { %v5395_v2 = vmul.f32 -1.442695, %v8744_v39  ;;  %v5405_v34 = vmul.f32 -1.442695, %v8747_v17  ;;  %v5397_v8 = vmul.f32 -1.442695, %v8750_v55  ;;  %v8805_v44 = vmul.f32 %v8711_v26, %v10735_v11 }
 0x5a8   :  { %v8772_v21 = vpop.f32.mrf.mxu2  ;;  %v5407_v4 = vmul.f32 -1.442695, %v8763_v47 }
 0x5a9   :  { %v2978_v41 = vadd.f32 %v2945_v23, %v8772_v21  ;;  %5929 = vpow2.f32 %v5395_v2  ;;  %v2988_v58 = vadd.f32 %v2950_v37, %v8772_v21  ;;  %v2980_v43 = vadd.f32 %v2946_v29, %v8772_v21  ;;  %v10733_v23 = vld [vmem:[#allocation54_spill] sm:$0xff] }
 0x5aa   :  { %5931 = vpow2.f32 %v5405_v34  ;;  %v2990_v46 = vadd.f32 %v2951_v10, %v8772_v21  ;;  %v2982_v53 = vadd.f32 %v2947_v14, %v8772_v21  ;;  %v3025_v37 = vmul.f32 %v8711_v26, %v10733_v23  ;;  %v10734_v10 = vld [vmem:[#allocation40_spill] sm:$0xff] }
 0x5ab   :  { %v3045_v18 = vadd.f32 %v3013_v42, %v2978_v41  ;;  %v3055_v5 = vadd.f32 %v3023_v62, %v2988_v58  ;;  %v3047_v33 = vadd.f32 %v3015_v54, %v2980_v43  ;;  %5933 = vpow2.f32 %v5397_v8  ;;  %v10736_v41 = vld [vmem:[#allocation41_spill] sm:$0xff]  ;;  %v10737_v58 = vld [vmem:[#allocation42_spill] sm:$0xff] }
 0x5ac   :  { %v5399_v29 = vmul.f32 -1.442695, %v8775_v1  ;;  %v2992_v12 = vadd.f32 %v2952_v32, %v8772_v21  ;;  %v3027_v19 = vmul.f32 %v8711_v26, %v10734_v10  ;;  %v3057_v28 = vadd.f32 %v3025_v37, %v2990_v46  ;;  %v10739_v46 = vld [vmem:[#allocation43_spill] sm:$0xff]  ;;  %v10740_v37 = vld [vmem:[#allocation44_spill] sm:$0xff] }
 0x5ad   :  { %v8795_v14 = vadd.f32 %v8730_v36, %v3045_v18  ;;  %v8798_v31 = vadd.f32 %v8730_v36, %v3055_v5  ;;  %v8801_v54 = vadd.f32 %v8730_v36, %v3047_v33  ;;  %v2948_v32 = vperm.slane %v2933_v6, 0 }
 0x5ae   :  { %5935 = vpow2.f32 %v5407_v4  ;;  %v3049_v35 = vadd.f32 %v3017_v16, %v2982_v53  ;;  %v3059_v34 = vadd.f32 %v3027_v19, %v2992_v12  ;;  %v8817_v42 = vmul.f32 %v8711_v26, %v6805_v24  ;;  %v10741_v12 = vld [vmem:[#allocation47_spill] sm:$0xff] }
 0x5af   :  { %v5930_v60 = vpop.eup %5929  ;;  %v5396_v27 = vmul.f32 -1.442695, %v8795_v14  ;;  %v5406_v51 = vmul.f32 -1.442695, %v8798_v31  ;;  %5937 = vpow2.f32 %v5399_v29  ;;  %v2983_v8 = vadd.f32 %v2948_v32, %v8724_v52 }
 0x5b0   :  { %v5932_v62 = vpop.eup %5931  ;;  %v8812_v2 = vadd.f32 1.0, %v5930_v60  ;;  %v5398_v6 = vmul.f32 -1.442695, %v8801_v54  ;;  %v8824_v16 = vmul.f32 %v8711_v26, %v10736_v41  ;;  %v8828_v43 = vmul.f32 %v8711_v26, %v10737_v58 }
 0x5b1   :  { %v5934_v20 = vpop.eup %5933  ;;  %5939 = vpow2.f32 %v5396_v27  ;;  %v8819_v22 = vadd.f32 1.0, %v5932_v62  ;;  %v8832_v4 = vmul.f32 %v8711_v26, %v10739_v46  ;;  %v8836_v24 = vadd.f32 %v8730_v36, %v3057_v28  ;;  %v10743_v28 = vld [vmem:[#allocation49_spill] sm:$0xff] }
 0x5b2   :  { %10738 = vst [vmem:[#allocation29_spill] sm:$0xff] %v8828_v43  ;;  %5941 = vrcp.f32 %v8812_v2  ;;  %v8839_v53 = vadd.f32 %v8730_v36, %v3049_v35  ;;  %v5409_v18 = vmul.f32 -1.442695, %v8808_v13  ;;  %v8843_v5 = vadd.f32 1.0, %v5934_v20 }
 0x5b3   :  { %5943 = vpow2.f32 %v5406_v51  ;;  %v8846_v33 = vadd.f32 %v8730_v36, %v3059_v34  ;;  %v3050_v49 = vadd.f32 %v8754_v9, %v2983_v8  ;;  %v8851_v29 = vmul.f32 %v8711_v26, %v10740_v37 }
 0x5b4   :  { %5945 = vrcp.f32 %v8819_v22  ;;  %v5936_v23 = vpop.eup %5935  ;;  %v8855_v10 = vmul.f32 %v8711_v26, %v10741_v12  ;;  %v2984_v19 = vadd.f32 %v2948_v32, %v8772_v21  ;;  %v8862_v60 = vmul.f32 %v8711_v26, %v10743_v28 }
 0x5b5   :  { %5947 = vpow2.f32 %v5398_v6  ;;  %v8858_v11 = vpop.eup %5937  ;;  %v3252_v9 = vand.u32 2147483648, %v8812_v2  ;;  %v3402_v27 = vand.u32 2147483648, %v8819_v22  ;;  %v3250_v35 = vand.u32 2147483647, %v8812_v2 }
 0x5b6   :  { %10742 = vst [vmem:[#allocation36_spill] sm:$0xff] %v8855_v10  ;;  %5949 = vrcp.f32 %v8843_v5  ;;  %v5408_v62 = vmul.f32 -1.442695, %v8836_v24  ;;  %v5400_v34 = vmul.f32 -1.442695, %v8839_v53  ;;  %v8874_v20 = vadd.f32 1.0, %v5936_v23 }
 0x5b7   :  { %10744 = vst [vmem:[#allocation38_spill] sm:$0xff] %v8862_v60  ;;  %v5940_v51 = vpop.eup %5939  ;;  %5951 = vpow2.f32 %v5409_v18  ;;  %v8877_v6 = vmul.f32 -1.442695, %v8846_v33  ;;  %v8880_v41 = vadd.f32 %v8730_v36, %v3050_v49  ;;  %vm3246_vm11 = vweird.f32 %v8812_v2 }
 0x5b8   :  { %v8870_v32 = vpop.eup %5941  ;;  %v8872_v8 = vadd.f32 1.0, %v5940_v51  ;;  %v3400_v18 = vand.u32 2147483647, %v8819_v22  ;;  %v8887_v37 = vadd.f32 %v8758_v56, %v2984_v19  ;;  %v3253_v23 = vor.u32 1.1754944e-38, %v3252_v9 }
 0x5b9   :  { %v5944_v58 = vpop.eup %5943  ;;  %v3242_v46 = vmul.f32 %v8870_v32, %v8812_v2  ;;  %vm3396_vm12 = vweird.f32 %v8819_v22  ;;  %v8893_v49 = vor.u32 1.1754944e-38, %v3402_v27  ;;  %v3282_v28 = vand.u32 2147483648, %v8843_v5 }
 0x5ba   :  { %v8889_v12 = vpop.eup %5945  ;;  %5953 = vrcp.f32 %v8872_v8  ;;  %vm8896_vm5 = vcmp.eq.f32.partialorder %v3250_v35, 8.507059e+37  ;;  %v8900_v40 = vadd.f32 1.0, %v5944_v58  ;;  %vm3247_vm2 = vweird.f32 %v8870_v32 }
 0x5bb   :  { %v5948_v51 = vpop.eup %5947  ;;  %v3243_v48 = vsub.f32 1.0, %v3242_v46  ;;  %v3392_v56 = vmul.f32 %v8889_v12, %v8819_v22  ;;  %5955 = vpow2.f32 %v5408_v62  ;;  %v3280_v27 = vand.u32 2147483647, %v8843_v5  ;;  %vm8935_vm1 = vmor %vm3246_vm11, %vm3247_vm2 }
 0x5bc   :  { %v8904_v19 = vpop.eup %5949  ;;  %v8907_v9 = vadd.f32 1.0, %v5948_v51  ;;  %5957 = vrcp.f32 %v8874_v20  ;;  %v3265_v58 = vand.u32 2147483647, %v8872_v8  ;;  %v3267_v62 = vand.u32 2147483648, %v8872_v8 }
 0x5bd   :  { %v8911_v35 = vpop.eup %5951  ;;  %v3244_v46 = vmul.f32 %v8870_v32, %v3243_v48  ;;  %v3393_v57 = vsub.f32 1.0, %v3392_v56  ;;  %5959 = vrcp.f32 %v8900_v40  ;;  %vm8917_vm7 = vcmp.eq.f32.partialorder %v3400_v18, 8.507059e+37 }
 0x5be   :  { %v3272_v51 = vmul.f32 %v8904_v19, %v8843_v5  ;;  %vm3276_vm4 = vweird.f32 %v8843_v5  ;;  %v3430_v63 = vand.u32 2147483647, %v8874_v20  ;;  %v8928_v38 = vor.u32 1.1754944e-38, %v3282_v28 }
 0x5bf   :  { %v3245_v15 = vadd.f32 %v8870_v32, %v3244_v46  ;;  %v3394_v56 = vmul.f32 %v8889_v12, %v3393_v57  ;;  %5961 = vrcp.f32 %v8907_v9  ;;  %vm3261_vm0 = vweird.f32 %v8872_v8 }
 0x5c0   :  { %v5954_v18 = vpop.eup %5953  ;;  %vm3397_vm3 = vweird.f32 %v8889_v12  ;;  %v3415_v46 = vand.u32 2147483647, %v8900_v40  ;;  %v3273_v57 = vsub.f32 1.0, %v3272_v51  ;;  %vm8946_vm6 = vcmp.eq.f32.partialorder %v3265_v58, 8.507059e+37 }
 0x5c1   :  { %v5956_v28 = vpop.eup %5955  ;;  %v3249_v48 = vsel %vm8935_vm1, %v8870_v32, %v3245_v15  ;;  %v3257_v50 = vmul.f32 %v5954_v18, %v8872_v8  ;;  %v3395_v3 = vadd.f32 %v8889_v12, %v3394_v56  ;;  %v3268_v61 = vor.u32 1.1754944e-38, %v3267_v62  ;;  %vm8959_vm13 = vmor %vm3396_vm12, %vm3397_vm3 }
 0x5c2   :  { %v8951_v30 = vpop.eup %5957  ;;  %v3417_v43 = vand.u32 2147483648, %v8900_v40  ;;  %v3274_v51 = vmul.f32 %v8904_v19, %v3273_v57  ;;  %5963 = vpow2.f32 %v5400_v34  ;;  %vm3262_vm14 = vweird.f32 %v5954_v18 }
 0x5c3   :  { %v5960_v60 = vpop.eup %5959  ;;  %v3258_v10 = vsub.f32 1.0, %v3257_v50  ;;  %vm3411_vm8 = vweird.f32 %v8900_v40  ;;  %vm3277_vm9 = vweird.f32 %v8904_v19  ;;  %vm8965_vm15 = vcmp.eq.f32.partialorder %v3280_v27, 8.507059e+37  ;;  %vm3263_vm1 = vmor %vm3261_vm0, %vm3262_vm14 }
 0x5c4   :  { %v3254_v50 = vsel %vm8896_vm5, %v3253_v23, %v3249_v48  ;;  %v3399_v34 = vsel %vm8959_vm13, %v8889_v12, %v3395_v3  ;;  %v3407_v22 = vmul.f32 %v5960_v60, %v8900_v40  ;;  %vm8975_vm11 = vcmp.eq.f32.partialorder %v3415_v46, 8.507059e+37  ;;  %vm8997_vm2 = vmor %vm3276_vm4, %vm3277_vm9 }
 0x5c5   :  { %vm3291_vm12 = vweird.f32 %v8907_v9  ;;  %v8980_v58 = vadd.f32 1.0, %v5956_v28  ;;  %v5962_v27 = vpop.eup %5961  ;;  %v3259_v62 = vmul.f32 %v5954_v18, %v3258_v10  ;;  %v3275_v56 = vadd.f32 %v8904_v19, %v3274_v51 }
 0x5c6   :  { %v3297_v0 = vand.u32 2147483648, %v8907_v9  ;;  %v3422_v23 = vmul.f32 %v8951_v30, %v8874_v20  ;;  %vm3426_vm5 = vweird.f32 %v8874_v20  ;;  %v3408_v3 = vsub.f32 1.0, %v3407_v22 }
 0x5c7   :  { %v3418_v12 = vor.u32 1.1754944e-38, %v3417_v43  ;;  %v3287_v48 = vmul.f32 %v5962_v27, %v8907_v9  ;;  %v3295_v46 = vand.u32 2147483647, %v8907_v9  ;;  %v3260_v57 = vadd.f32 %v5954_v18, %v3259_v62 }
 0x5c8   :  { %v3721_v28 = vmul.f32 %v3254_v50, %v8744_v39  ;;  %v3404_v10 = vsel %vm8917_vm7, %v8893_v49, %v3399_v34  ;;  %v3423_v43 = vsub.f32 1.0, %v3422_v23  ;;  %v5964_v59 = vpop.eup %5963  ;;  %v3409_v22 = vmul.f32 %v5960_v60, %v3408_v3 }
 0x5c9   :  { %vm3412_vm3 = vweird.f32 %v5960_v60  ;;  %v3288_v39 = vsub.f32 1.0, %v3287_v48  ;;  %5965 = vrcp.f32 %v8980_v58  ;;  %v3264_v25 = vsel %vm3263_vm1, %v5954_v18, %v3260_v57 }
 0x5ca   :  { %v3279_v5 = vsel %vm8997_vm2, %v8904_v19, %v3275_v56  ;;  %v3298_v49 = vor.u32 1.1754944e-38, %v3297_v0  ;;  %v3424_v50 = vmul.f32 %v8951_v30, %v3423_v43  ;;  %vm9009_vm7 = vcmp.eq.f32.partialorder %v3430_v63, 8.507059e+37  ;;  %vm3413_vm0 = vmor %vm3411_vm8, %vm3412_vm3 }
 0x5cb   :  { %v3269_v8 = vsel %vm8946_vm6, %v3268_v61, %v3264_v25  ;;  %v3410_v62 = vadd.f32 %v5960_v60, %v3409_v22  ;;  %v3289_v23 = vmul.f32 %v5962_v27, %v3288_v39  ;;  %vm3292_vm4 = vweird.f32 %v5962_v27  ;;  %v9075_v39 = vpop.f32.mrf.mxu1 }
 0x5cc   :  { %v3722_v3 = vmul.f32 %v3269_v8, %v8795_v14  ;;  %v3425_v19 = vadd.f32 %v8951_v30, %v3424_v50  ;;  %vm3427_vm14 = vweird.f32 %v8951_v30  ;;  %v9021_v63 = vadd.f32 1.0, %v8858_v11  ;;  %vm3293_vm6 = vmor %vm3291_vm12, %vm3292_vm4 }
 0x5cd   :  { %v3414_v18 = vsel %vm3413_vm0, %v5960_v60, %v3410_v62  ;;  %v3284_v61 = vsel %vm8965_vm15, %v8928_v38, %v3279_v5  ;;  %v3290_v2 = vadd.f32 %v5962_v27, %v3289_v23  ;;  %v3445_v56 = vand.u32 2147483647, %v8980_v58  ;;  %vm9040_vm8 = vmor %vm3426_vm5, %vm3427_vm14 }
 0x5ce   :  { %v3760_v0 = vpack.c.bf16 %v3722_v3, %v3721_v28  ;;  %v3419_v40 = vsel %vm8975_vm11, %v3418_v12, %v3414_v18  ;;  %v9031_v14 = vadd.f32 1.0, %v5964_v59  ;;  %5967 = vrcp.f32 %v9021_v63 }
 0x5cf   :  { %v5966_v11 = vpop.eup %5965  ;;  %v3731_v60 = vmul.f32 %v3404_v10, %v8747_v17  ;;  %v3732_v15 = vmul.f32 %v3419_v40, %v8798_v31  ;;  %v3294_v38 = vsel %vm3293_vm6, %v5962_v27, %v3290_v2  ;;  %vm3296_vm13 = vcmp.eq.f32.partialorder %v3295_v46, 8.507059e+37 }
 0x5d0   :  { %5436 = vmatmul.msk.bf16.vlgmr.msra.gmra.mxu2 %vm331_vm10, %v3760_v0  ;;  %v3299_v9 = vsel %vm3296_vm13, %v3298_v49, %v3294_v38  ;;  %v3429_v12 = vsel %vm9040_vm8, %v8951_v30, %v3425_v19  ;;  %v10765_v17 = vand.u32 2147483648, %v8874_v20  ;;  %v3437_v27 = vmul.f32 %v5966_v11, %v8980_v58 }
 0x5d1   :  { %v3765_v48 = vpack.c.bf16 %v3732_v15, %v3731_v60  ;;  %v9052_v46 = vmul.f32 %v3284_v61, %v8750_v55  ;;  %v9055_v57 = vmul.f32 %v3299_v9, %v8801_v54  ;;  %v3447_v28 = vand.u32 2147483648, %v8980_v58 }
 0x5d2   :  { %v3433_v31 = vor.u32 1.1754944e-38, %v10765_v17  ;;  %v3438_v10 = vsub.f32 1.0, %v3437_v27  ;;  %vm3441_vm9 = vweird.f32 %v8980_v58  ;;  %vm9059_vm15 = vcmp.eq.f32.partialorder %v3445_v56, 8.507059e+37 }
 0x5d3   :  { %5969 = vrcp.f32 %v9031_v14  ;;  %5441 = vmatmul.msk.bf16.vlgmr.msrb.gmra.mxu3 %vm331_vm10, %v3765_v48  ;;  %v3761_v30 = vpack.c.bf16 %v9055_v57, %v9052_v46  ;;  %vm3442_vm11 = vweird.f32 %v5966_v11  ;;  %v3310_v54 = vand.u32 2147483647, %v9021_v63 }
 0x5d4   :  { %v3434_v55 = vsel %vm9009_vm7, %v3433_v31, %v3429_v12  ;;  %v5968_v20 = vpop.eup %5967  ;;  %v3439_v43 = vmul.f32 %v5966_v11, %v3438_v10  ;;  %v3312_v59 = vand.u32 2147483648, %v9021_v63  ;;  %5971 = vpow2.f32 %v8877_v6  ;;  %vm3443_vm5 = vmor %vm3441_vm9, %vm3442_vm11 }
 0x5d5   :  { %v9073_v22 = vadd.f32 1.0, %v8911_v35  ;;  %v3448_v25 = vor.u32 1.1754944e-38, %v3447_v28  ;;  %v3302_v5 = vmul.f32 %v5968_v20, %v9021_v63  ;;  %vm3306_vm12 = vweird.f32 %v9021_v63 }
 0x5d6   :  { %v9081_v49 = vadd.f32 %v8730_v36, %v8887_v37  ;;  %v3440_v50 = vadd.f32 %v5966_v11, %v3439_v43  ;;  %v3733_v34 = vmul.f32 %v3434_v55, %v8763_v47  ;;  %v3325_v8 = vand.u32 2147483647, %v9031_v14 }
 0x5d7   :  { %5973 = vrcp.f32 %v9073_v22  ;;  %v3303_v6 = vsub.f32 1.0, %v3302_v5  ;;  %vm9089_vm2 = vcmp.eq.f32.partialorder %v3310_v54, 8.507059e+37  ;;  %vm3321_vm1 = vweird.f32 %v9031_v14 }
 0x5d8   :  { %v5401_v37 = vmul.f32 -1.442695, %v8880_v41  ;;  %v5402_v62 = vmul.f32 -1.442695, %v9081_v49  ;;  %v3444_v23 = vsel %vm3443_vm5, %v5966_v11, %v3440_v50  ;;  %v3313_v3 = vor.u32 1.1754944e-38, %v3312_v59 }
 0x5d9   :  { %v5970_v47 = vpop.eup %5969  ;;  %v3327_v19 = vand.u32 2147483648, %v9031_v14  ;;  %v2953_v18 = vperm.slane %v9075_v39, 0  ;;  %v3449_v58 = vsel %vm9059_vm15, %v3448_v25, %v3444_v23  ;;  %v3304_v61 = vmul.f32 %v5968_v20, %v3303_v6 }
 0x5da   :  { %vm3307_vm3 = vweird.f32 %v5968_v20  ;;  %v3317_v2 = vmul.f32 %v5970_v47, %v9031_v14  ;;  %v5972_v56 = vpop.eup %5971  ;;  %v3734_v0 = vmul.f32 %v3449_v58, %v8836_v24  ;;  %vm9102_vm7 = vcmp.eq.f32.partialorder %v3325_v8, 8.507059e+37 }
 0x5db   :  { %5975 = vpow2.f32 %v5401_v37  ;;  %v2993_v11 = vadd.f32 %v2953_v18, %v8724_v52  ;;  %v3305_v60 = vadd.f32 %v5968_v20, %v3304_v61  ;;  %v9107_v38 = vadd.f32 1.0, %v5972_v56  ;;  %vm3308_vm4 = vmor %vm3306_vm12, %vm3307_vm3  ;;  %v10772_v37 = vld [vmem:[#allocation53_spill] sm:$0xff] }
 0x5dc   :  { %v3318_v15 = vsub.f32 1.0, %v3317_v2  ;;  %5977 = vpow2.f32 %v5402_v62  ;;  %v3766_v9 = vpack.c.bf16 %v3734_v0, %v3733_v34  ;;  %v2994_v12 = vadd.f32 %v2953_v18, %v8772_v21 }
 0x5dd   :  { %v5974_v32 = vpop.eup %5973  ;;  %v3060_v24 = vadd.f32 %v8824_v16, %v2993_v11  ;;  %v2934_v17 = vrot.slane %v8703_v45, 4  ;;  %v3309_v31 = vsel %vm3308_vm4, %v5968_v20, %v3305_v60  ;;  %vm3322_vm0 = vweird.f32 %v5970_v47 }
 0x5de   :  { %v3319_v27 = vmul.f32 %v5970_v47, %v3318_v15  ;;  %v3452_v48 = vmul.f32 %v5974_v32, %v9073_v22  ;;  %v3328_v46 = vor.u32 1.1754944e-38, %v3327_v19  ;;  %vm3456_vm14 = vweird.f32 %v9073_v22  ;;  %vm3323_vm6 = vmor %vm3321_vm1, %vm3322_vm0 }
 0x5df   :  { %v3460_v57 = vand.u32 2147483647, %v9073_v22  ;;  %5979 = vrcp.f32 %v9107_v38  ;;  %v3314_v63 = vsel %vm9089_vm2, %v3313_v3, %v3309_v31  ;;  %v3462_v16 = vand.u32 2147483648, %v9073_v22 }
 0x5e0   :  { %v3320_v28 = vadd.f32 %v5970_v47, %v3319_v27  ;;  %v3453_v10 = vsub.f32 1.0, %v3452_v48  ;;  %5437 = vmatmul.msk.bf16.gmra.mxu2 %vm331_vm10, %v3761_v30  ;;  %vm3457_vm13 = vweird.f32 %v5974_v32  ;;  %v3061_v51 = vadd.f32 %v8817_v42, %v2994_v12 }
 0x5e1   :  { %v5976_v45 = vpop.eup %5975  ;;  %v9126_v55 = vadd.f32 %v8730_v36, %v3060_v24  ;;  %v2949_v54 = vperm.slane %v2934_v17, 0  ;;  %v3475_v25 = vand.u32 2147483647, %v9107_v38  ;;  %v9134_v14 = vmul.f32 %v3314_v63, %v8775_v1  ;;  %vm9152_vm8 = vmor %vm3456_vm14, %vm3457_vm13 }
 0x5e2   :  { %v5978_v20 = vpop.eup %5977  ;;  %v3324_v43 = vsel %vm3323_vm6, %v5970_v47, %v3320_v28  ;;  %v3454_v59 = vmul.f32 %v5974_v32, %v3453_v10  ;;  %v9129_v5 = vadd.f32 1.0, %v5976_v45  ;;  %v3477_v50 = vand.u32 2147483648, %v9107_v38 }
 0x5e3   :  { %v3329_v30 = vsel %vm9102_vm7, %v3328_v46, %v3324_v43  ;;  %v9137_v42 = vadd.f32 1.0, %v5978_v20  ;;  %5442 = vmatmul.msk.bf16.gmra.mxu3 %vm331_vm10, %v3766_v9  ;;  %v5411_v6 = vmul.f32 -1.442695, %v9126_v55  ;;  %v9147_v62 = vmul.f32 %v8711_v26, %v10772_v37 }
 0x5e4   :  { %v9141_v34 = vmul.f32 %v3329_v30, %v8839_v53  ;;  %v3455_v8 = vadd.f32 %v5974_v32, %v3454_v59  ;;  %5981 = vrcp.f32 %v9129_v5  ;;  %v9158_v53 = vadd.f32 %v8730_v36, %v3061_v51 }
 0x5e5   :  { %v5980_v35 = vpop.eup %5979  ;;  %5983 = vrcp.f32 %v9137_v42  ;;  %v2985_v47 = vadd.f32 %v2949_v54, %v8724_v52  ;;  %v3342_v22 = vand.u32 2147483648, %v9129_v5  ;;  %vm3461_vm9 = vcmp.eq.f32.partialorder %v3460_v57, 8.507059e+37 }
 0x5e6   :  { %v3762_v23 = vpack.c.bf16 %v9141_v34, %v9134_v14  ;;  %v3459_v3 = vsel %vm9152_vm8, %v5974_v32, %v3455_v8  ;;  %v3467_v19 = vmul.f32 %v5980_v35, %v9107_v38  ;;  %v3463_v18 = vor.u32 1.1754944e-38, %v3462_v16 }
 0x5e7   :  { %vm3471_vm15 = vweird.f32 %v9107_v38  ;;  %v3340_v58 = vand.u32 2147483647, %v9129_v5  ;;  %vm9169_vm11 = vcmp.eq.f32.partialorder %v3475_v25, 8.507059e+37  ;;  %v3478_v56 = vor.u32 1.1754944e-38, %v3477_v50 }
 0x5e8   :  { %v3468_v61 = vsub.f32 1.0, %v3467_v19  ;;  %5985 = vpow2.f32 %v5411_v6  ;;  %v3464_v0 = vsel %vm3461_vm9, %v3463_v18, %v3459_v3  ;;  %vm3336_vm12 = vweird.f32 %v9129_v5 }
 0x5e9   :  { %v5412_v40 = vmul.f32 -1.442695, %v9158_v53  ;;  %v2986_v11 = vadd.f32 %v2949_v54, %v8772_v21  ;;  %v3052_v60 = vadd.f32 %v8805_v44, %v2985_v47  ;;  %vm3472_vm5 = vweird.f32 %v5980_v35 }
 0x5ea   :  { %v5982_v15 = vpop.eup %5981  ;;  %v3469_v32 = vmul.f32 %v5980_v35, %v3468_v61  ;;  %v3343_v9 = vor.u32 1.1754944e-38, %v3342_v22  ;;  %vm3351_vm2 = vweird.f32 %v9137_v42  ;;  %v2938_v12 = vrot.slane %v9075_v39, 1  ;;  %vm3473_vm3 = vmor %vm3471_vm15, %vm3472_vm5  ;;  %v10781_v22 = vld [vmem:[#allocation58_spill] sm:$0xff] }
 0x5eb   :  { %v5984_v24 = vpop.eup %5983  ;;  %v3332_v17 = vmul.f32 %v5982_v15, %v9129_v5  ;;  %vm9180_vm1 = vcmp.eq.f32.partialorder %v3340_v58, 8.507059e+37  ;;  %v3355_v27 = vand.u32 2147483647, %v9137_v42  ;;  %5987 = vpow2.f32 %v5412_v40 }
 0x5ec   :  { %v3053_v44 = vadd.f32 %v8786_v7, %v2986_v11  ;;  %v3470_v48 = vadd.f32 %v5980_v35, %v3469_v32  ;;  %v3735_v46 = vmul.f32 %v3464_v0, %v8808_v13  ;;  %v3347_v57 = vmul.f32 %v5984_v24, %v9137_v42 }
 0x5ed   :  { %v9189_v63 = vadd.f32 %v8730_v36, %v3052_v60  ;;  %v3333_v28 = vsub.f32 1.0, %v3332_v17  ;;  %vm3337_vm7 = vweird.f32 %v5982_v15  ;;  %v3357_v10 = vand.u32 2147483648, %v9137_v42 }
 0x5ee   :  { %v9195_v16 = vadd.f32 %v8730_v36, %v3053_v44  ;;  %v5986_v45 = vpop.eup %5985  ;;  %v3474_v7 = vsel %vm3473_vm3, %v5980_v35, %v3470_v48  ;;  %v3348_v51 = vsub.f32 1.0, %v3347_v57  ;;  %v2954_v54 = vperm.slane %v2938_v12, 0  ;;  %vm3338_vm14 = vmor %vm3336_vm12, %vm3337_vm7 }
 0x5ef   :  { %v5403_v13 = vmul.f32 -1.442695, %v9189_v63  ;;  %v3479_v20 = vsel %vm9169_vm11, %v3478_v56, %v3474_v7  ;;  %v3334_v43 = vmul.f32 %v5982_v15, %v3333_v28  ;;  %v9200_v59 = vadd.f32 1.0, %v5986_v45 }
 0x5f0   :  { %v5404_v38 = vmul.f32 -1.442695, %v9195_v16  ;;  %v3736_v25 = vmul.f32 %v3479_v20, %v8846_v33  ;;  %v3349_v30 = vmul.f32 %v5984_v24, %v3348_v51  ;;  %vm3352_vm4 = vweird.f32 %v5984_v24  ;;  %5438 = vmatmul.msk.bf16.gmra.mxu2 %vm331_vm10, %v3762_v23 }
 0x5f1   :  { %5989 = vpow2.f32 %v5403_v13  ;;  %v5988_v14 = vpop.eup %5987  ;;  %v3335_v50 = vadd.f32 %v5982_v15, %v3334_v43  ;;  %vm9205_vm0 = vcmp.eq.f32.partialorder %v3355_v27, 8.507059e+37  ;;  %v2939_v8 = vrot.slane %v9075_v39, 2  ;;  %vm3353_vm6 = vmor %vm3351_vm2, %vm3352_vm4 }
 0x5f2   :  { %5991 = vrcp.f32 %v9200_v59  ;;  %v3767_v6 = vpack.c.bf16 %v3736_v25, %v3735_v46  ;;  %v3350_v33 = vadd.f32 %v5984_v24, %v3349_v30  ;;  %v9214_v35 = vadd.f32 1.0, %v5988_v14  ;;  %v5576_v25 = vld [vmem:[#allocation5 + $0x18] sm:$0xff] }
 0x5f3   :  { %v2995_v37 = vadd.f32 %v2954_v54, %v8724_v52  ;;  %v3339_v1 = vsel %vm3338_vm14, %v5982_v15, %v3335_v50  ;;  %v3358_v47 = vor.u32 1.1754944e-38, %v3357_v10  ;;  %5993 = vpow2.f32 %v5404_v38  ;;  %v10786_v30 = vld [vmem:[#allocation36_spill] sm:$0xff]  ;;  %v10787_v50 = vld [vmem:[#allocation38_spill] sm:$0xff]  ;;  %4864 = vmatpush.bf16.msrb.mxu2 %v5576_v25 }
 0x5f4   :  { %v2996_v23 = vadd.f32 %v2954_v54, %v8772_v21  ;;  %5443 = vmatmul.msk.bf16.gmra.mxu3 %vm331_vm10, %v3767_v6  ;;  %v3344_v3 = vsel %vm9180_vm1, %v3343_v9, %v3339_v1  ;;  %v3354_v5 = vsel %vm3353_vm6, %v5984_v24, %v3350_v33  ;;  %v3490_v19 = vand.u32 2147483647, %v9200_v59 }
 0x5f5   :  { %5995 = vrcp.f32 %v9214_v35  ;;  %v9227_v18 = vmul.f32 %v8711_v26, %v10781_v22  ;;  %v3359_v42 = vsel %vm9205_vm0, %v3358_v47, %v3354_v5  ;;  %v3492_v58 = vand.u32 2147483648, %v9200_v59 }
 0x5f6   :  { %v2955_v61 = vperm.slane %v2939_v8, 0  ;;  %v3727_v56 = vmul.f32 %v3344_v3, %v8880_v41  ;;  %v3728_v0 = vmul.f32 %v3359_v42, %v9081_v49  ;;  %v3062_v40 = vadd.f32 %v8832_v4, %v2995_v37  ;;  %v5575_v3 = vld [vmem:[#allocation5 + $0x10] sm:$0xff] }
 0x5f7   :  { %v5990_v2 = vpop.eup %5989  ;;  %v3063_v11 = vadd.f32 %v8851_v29, %v2996_v23  ;;  %vm3486_vm13 = vweird.f32 %v9200_v59  ;;  %v3505_v15 = vand.u32 2147483647, %v9214_v35  ;;  %v2940_v9 = vrot.slane %v9075_v39, 3  ;;  %4865 = vmatpush.bf16.msrb.mxu2 %v5575_v3 }
 0x5f8   :  { %v5992_v60 = vpop.eup %5991  ;;  %v9238_v32 = vadd.f32 1.0, %v5990_v2  ;;  %v3763_v12 = vpack.c.bf16 %v3728_v0, %v3727_v56  ;;  %vm9242_vm8 = vcmp.eq.f32.partialorder %v3490_v19, 8.507059e+37  ;;  %v3507_v4 = vand.u32 2147483648, %v9214_v35 }
 0x5f9   :  { %v3482_v24 = vmul.f32 %v5992_v60, %v9200_v59  ;;  %v5994_v49 = vpop.eup %5993  ;;  %v3493_v29 = vor.u32 1.1754944e-38, %v3492_v58  ;;  %v2997_v17 = vadd.f32 %v2955_v61, %v8724_v52  ;;  %v2998_v31 = vadd.f32 %v2955_v61, %v8772_v21 }
 0x5fa   :  { %5997 = vrcp.f32 %v9238_v32  ;;  %v9250_v48 = vadd.f32 1.0, %v5994_v49  ;;  %v9253_v46 = vadd.f32 %v8730_v36, %v3062_v40  ;;  %v9256_v57 = vadd.f32 %v8730_v36, %v3063_v11 }
 0x5fb   :  { %v5996_v27 = vpop.eup %5995  ;;  %v3483_v44 = vsub.f32 1.0, %v3482_v24  ;;  %vm3487_vm9 = vweird.f32 %v5992_v60  ;;  %vm3501_vm15 = vweird.f32 %v9214_v35  ;;  %vm9260_vm11 = vcmp.eq.f32.partialorder %v3505_v15, 8.507059e+37 }
 0x5fc   :  { %v3497_v28 = vmul.f32 %v5996_v27, %v9214_v35  ;;  %v3508_v7 = vor.u32 1.1754944e-38, %v3507_v4  ;;  %v3370_v51 = vand.u32 2147483647, %v9238_v32  ;;  %5999 = vrcp.f32 %v9250_v48  ;;  %vm3488_vm2 = vmor %vm3486_vm13, %vm3487_vm9 }
 0x5fd   :  { %v3484_v45 = vmul.f32 %v5992_v60, %v3483_v44  ;;  %v3372_v54 = vand.u32 2147483648, %v9238_v32  ;;  %v5413_v20 = vmul.f32 -1.442695, %v9253_v46  ;;  %v5414_v43 = vmul.f32 -1.442695, %v9256_v57 }
 0x5fe   :  { %v3498_v13 = vsub.f32 1.0, %v3497_v28  ;;  %vm3502_vm12 = vweird.f32 %v5996_v27  ;;  %vm3366_vm5 = vweird.f32 %v9238_v32  ;;  %v3064_v14 = vadd.f32 %v10786_v30, %v2997_v17 }
 0x5ff   :  { %v3485_v38 = vadd.f32 %v5992_v60, %v3484_v45  ;;  %v3065_v34 = vadd.f32 %v10787_v50, %v2998_v31  ;;  %v3385_v33 = vand.u32 2147483647, %v9250_v48  ;;  %6001 = vpow2.f32 %v5413_v20  ;;  %vm3503_vm1 = vmor %vm3501_vm15, %vm3502_vm12  ;;  %v10789_v45 = vld [vmem:[#allocation50_spill] sm:$0xff] }
 0x600   :  { %v5998_v8 = vpop.eup %5997  ;;  %v3499_v6 = vmul.f32 %v5996_v27, %v3498_v13  ;;  %v2956_v37 = vperm.slane %v2940_v9, 0  ;;  %v3387_v23 = vand.u32 2147483648, %v9250_v48  ;;  %6003 = vpow2.f32 %v5414_v43  ;;  %5439 = vmatmul.msk.bf16.gmra.mxu2 %vm331_vm10, %v3763_v12 }
 0x601   :  { %v3489_v1 = vsel %vm3488_vm2, %v5992_v60, %v3485_v38  ;;  %v3362_v47 = vmul.f32 %v5998_v8, %v9238_v32  ;;  %v9282_v19 = vadd.f32 %v8730_v36, %v3064_v14  ;;  %v9285_v22 = vadd.f32 %v8730_v36, %v3065_v34  ;;  %v9332_v32 = vld [vmem:[%s10547_s28 + $0x1] ss:$0 sm:$0xff]  ;;  %v10791_v14 = vld [vmem:[#allocation52_spill] sm:$0xff] }
 0x602   :  { %v3494_v5 = vsel %vm9242_vm8, %v3493_v29, %v3489_v1  ;;  %v3500_v59 = vadd.f32 %v5996_v27, %v3499_v6  ;;  %v6000_v42 = vpop.eup %5999  ;;  %vm3367_vm3 = vweird.f32 %v5998_v8  ;;  %v2999_v61 = vadd.f32 %v2956_v37, %v8724_v52 }
 0x603   :  { %v3363_v58 = vsub.f32 1.0, %v3362_v47  ;;  %v3000_v2 = vadd.f32 %v2956_v37, %v8772_v21  ;;  %v3737_v0 = vmul.f32 %v3494_v5, %v9126_v55  ;;  %v3377_v40 = vmul.f32 %v6000_v42, %v9250_v48  ;;  %vm3368_vm4 = vmor %vm3366_vm5, %vm3367_vm3 }
 0x604   :  { %v3504_v56 = vsel %vm3503_vm1, %v5996_v27, %v3500_v59  ;;  %v5415_v11 = vmul.f32 -1.442695, %v9282_v19  ;;  %v5416_v35 = vmul.f32 -1.442695, %v9285_v22  ;;  %v3066_v9 = vadd.f32 %v9227_v18, %v2999_v61  ;;  %v10788_v27 = vld [vmem:[#allocation46_spill] sm:$0xff] }
 0x605   :  { %v3509_v60 = vsel %vm9260_vm11, %v3508_v7, %v3504_v56  ;;  %v3364_v15 = vmul.f32 %v5998_v8, %v3363_v58  ;;  %v6002_v12 = vpop.eup %6001  ;;  %v3378_v41 = vsub.f32 1.0, %v3377_v40  ;;  %vm3382_vm7 = vweird.f32 %v6000_v42 }
 0x606   :  { %v3738_v24 = vmul.f32 %v3509_v60, %v9158_v53  ;;  %6005 = vpow2.f32 %v5415_v11  ;;  %v6004_v55 = vpop.eup %6003  ;;  %v9300_v49 = vadd.f32 1.0, %v6002_v12  ;;  %v3067_v29 = vadd.f32 %v9147_v62, %v3000_v2 }
 0x607   :  { %v3365_v4 = vadd.f32 %v5998_v8, %v3364_v15  ;;  %6007 = vpow2.f32 %v5416_v35  ;;  %v3379_v31 = vmul.f32 %v6000_v42, %v3378_v41  ;;  %v9306_v18 = vadd.f32 1.0, %v6004_v55 }
 0x608   :  { %v3768_v17 = vpack.c.bf16 %v3738_v24, %v3737_v0  ;;  %v9309_v53 = vadd.f32 %v8730_v36, %v3066_v9  ;;  %v9313_v44 = vmul.f32 %v8711_v26, %v10788_v27  ;;  %v3373_v10 = vor.u32 1.1754944e-38, %v3372_v54 }
 0x609   :  { %v3369_v28 = vsel %vm3368_vm4, %v5998_v8, %v3365_v4  ;;  %6009 = vrcp.f32 %v9300_v49  ;;  %vm3371_vm0 = vcmp.eq.f32.partialorder %v3370_v51, 8.507059e+37  ;;  %v3380_v62 = vadd.f32 %v6000_v42, %v3379_v31  ;;  %v10790_v51 = vld [vmem:[#allocation57_spill] sm:$0xff] }
 0x60a   :  { %5444 = vmatmul.msk.bf16.gmra.mxu3 %vm331_vm10, %v3768_v17  ;;  %vm3381_vm14 = vweird.f32 %v9250_v48  ;;  %6011 = vrcp.f32 %v9306_v18  ;;  %v9323_v7 = vmul.f32 %v8711_v26, %v10789_v45  ;;  %v3374_v13 = vsel %vm3371_vm0, %v3373_v10, %v3369_v28 }
 0x60b   :  { %vm3383_vm6 = vmor %vm3381_vm14, %vm3382_vm7  ;;  %v3388_v54 = vor.u32 1.1754944e-38, %v3387_v23  ;;  %v9327_v20 = vadd.f32 %v8730_v36, %v3067_v29  ;;  %v9336_v38 = vmul.f32 %v9332_v32, %v10790_v51  ;;  %vm3386_vm13 = vcmp.eq.f32.partialorder %v3385_v33, 8.507059e+37 }
 0x60c   :  { %v6006_v43 = vpop.eup %6005  ;;  %v3384_v25 = vsel %vm3383_vm6, %v6000_v42, %v3380_v62  ;;  %v5417_v26 = vmul.f32 -1.442695, %v9309_v53  ;;  %v9343_v36 = vmul.f32 %v9332_v32, %v10791_v14  ;;  %v3520_v34 = vand.u32 2147483647, %v9300_v49 }
 0x60d   :  { %v6008_v30 = vpop.eup %6007  ;;  %v3389_v50 = vsel %vm3386_vm13, %v3388_v54, %v3384_v25  ;;  %v9346_v8 = vadd.f32 1.0, %v6006_v43  ;;  %v3729_v6 = vmul.f32 %v3374_v13, %v9189_v63  ;;  %v3522_v33 = vand.u32 2147483648, %v9300_v49 }
 0x60e   :  { %v3730_v37 = vmul.f32 %v3389_v50, %v9195_v16  ;;  %v9350_v1 = vadd.f32 1.0, %v6008_v30  ;;  %6013 = vpow2.f32 %v5417_v26  ;;  %v3535_v47 = vand.u32 2147483647, %v9306_v18  ;;  %v10792_v16 = vld [vmem:[#allocation60_spill] sm:$0xff] }
 0x60f   :  { %v6010_v48 = vpop.eup %6009  ;;  %6015 = vrcp.f32 %v9346_v8  ;;  %v5418_v23 = vmul.f32 -1.442695, %v9327_v20  ;;  %v3537_v63 = vand.u32 2147483648, %v9306_v18  ;;  %v9361_v42 = vmul.f32 %v9332_v32, %v10792_v16 }
 0x610   :  { %v6012_v3 = vpop.eup %6011  ;;  %v3764_v5 = vpack.c.bf16 %v3730_v37, %v3729_v6  ;;  %v3512_v59 = vmul.f32 %v6010_v48, %v9300_v49  ;;  %6017 = vrcp.f32 %v9350_v1  ;;  %vm3516_vm8 = vweird.f32 %v9300_v49 }
 0x611   :  { %vm9364_vm9 = vcmp.eq.f32.partialorder %v3520_v34, 8.507059e+37  ;;  %v3527_v61 = vmul.f32 %v6012_v3, %v9306_v18  ;;  %vm3531_vm15 = vweird.f32 %v9306_v18  ;;  %v3550_v56 = vand.u32 2147483647, %v9346_v8 }
 0x612   :  { %5440 = vmatmul.msk.bf16.gmra.mxu2 %vm331_vm10, %v3764_v5  ;;  %v3513_v2 = vsub.f32 1.0, %v3512_v59  ;;  %v3552_v0 = vand.u32 2147483648, %v9346_v8  ;;  %v3523_v40 = vor.u32 1.1754944e-38, %v3522_v33  ;;  %vm9373_vm11 = vcmp.eq.f32.partialorder %v3535_v47, 8.507059e+37 }
 0x613   :  { %v3528_v11 = vsub.f32 1.0, %v3527_v61  ;;  %6019 = vpow2.f32 %v5418_v23  ;;  %vm3517_vm12 = vweird.f32 %v6010_v48  ;;  %v3538_v9 = vor.u32 1.1754944e-38, %v3537_v63 }
 0x614   :  { %v6014_v15 = vpop.eup %6013  ;;  %v3514_v35 = vmul.f32 %v6010_v48, %v3513_v2  ;;  %vm3546_vm5 = vweird.f32 %v9346_v8  ;;  %vm3532_vm2 = vweird.f32 %v6012_v3  ;;  %v2941_v55 = vrot.slane %v9075_v39, 4  ;;  %vm3518_vm3 = vmor %vm3516_vm8, %vm3517_vm12 }
 0x615   :  { %v6016_v12 = vpop.eup %6015  ;;  %v3529_v24 = vmul.f32 %v6012_v3, %v3528_v11  ;;  %v9378_v41 = vadd.f32 1.0, %v6014_v15  ;;  %vm9382_vm1 = vcmp.eq.f32.partialorder %v3550_v56, 8.507059e+37  ;;  %v3553_v27 = vor.u32 1.1754944e-38, %v3552_v0  ;;  %vm3533_vm7 = vmor %vm3531_vm15, %vm3532_vm2  ;;  %v10801_v15 = vld [vmem:[#allocation29_spill] sm:$0xff] }
 0x616   :  { %v6018_v4 = vpop.eup %6017  ;;  %v3515_v29 = vadd.f32 %v6010_v48, %v3514_v35  ;;  %v3542_v17 = vmul.f32 %v6016_v12, %v9346_v8  ;;  %v3565_v28 = vand.u32 2147483647, %v9350_v1  ;;  %v3567_v45 = vand.u32 2147483648, %v9350_v1 }
 0x617   :  { %v3530_v10 = vadd.f32 %v6012_v3, %v3529_v24  ;;  %v3557_v62 = vmul.f32 %v6018_v4, %v9350_v1  ;;  %6021 = vrcp.f32 %v9378_v41  ;;  %v2942_v43 = vrot.slane %v9075_v39, 5 }
 0x618   :  { %v3519_v13 = vsel %vm3518_vm3, %v6010_v48, %v3515_v29  ;;  %v3543_v54 = vsub.f32 1.0, %v3542_v17  ;;  %v2943_v51 = vrot.slane %v9075_v39, 6  ;;  %v2957_v14 = vperm.slane %v2941_v55, 0  ;;  %v10802_v55 = vld [vmem:[#allocation92_spill] sm:$0xff] }
 0x619   :  { %v6020_v25 = vpop.eup %6019  ;;  %v3524_v49 = vsel %vm9364_vm9, %v3523_v40, %v3519_v13  ;;  %v3534_v26 = vsel %vm3533_vm7, %v6012_v3, %v3530_v10  ;;  %v3558_v30 = vsub.f32 1.0, %v3557_v62  ;;  %vm3547_vm4 = vweird.f32 %v6016_v12 }
 0x61a   :  { %v3539_v50 = vsel %vm9373_vm11, %v3538_v9, %v3534_v26  ;;  %v3544_v34 = vmul.f32 %v6016_v12, %v3543_v54  ;;  %v9401_v6 = vadd.f32 1.0, %v6020_v25  ;;  %v3739_v18 = vmul.f32 %v3524_v49, %v9253_v46  ;;  %vm3548_vm13 = vmor %vm3546_vm5, %vm3547_vm4 }
 0x61b   :  { %v3740_v37 = vmul.f32 %v3539_v50, %v9256_v57  ;;  %v3559_v48 = vmul.f32 %v6018_v4, %v3558_v30  ;;  %vm3562_vm0 = vweird.f32 %v6018_v4  ;;  %vm3561_vm14 = vweird.f32 %v9350_v1 }
 0x61c   :  { %v3545_v33 = vadd.f32 %v6016_v12, %v3544_v34  ;;  %vm9406_vm6 = vcmp.eq.f32.partialorder %v3565_v28, 8.507059e+37  ;;  %6023 = vrcp.f32 %v9401_v6  ;;  %v3001_v57 = vadd.f32 %v2957_v14, %v8724_v52  ;;  %vm3563_vm8 = vmor %vm3561_vm14, %vm3562_vm0 }
 0x61d   :  { %v9411_v23 = vpop.eup %6021  ;;  %v3769_v3 = vpack.c.bf16 %v3740_v37, %v3739_v18  ;;  %v3560_v46 = vadd.f32 %v6018_v4, %v3559_v48  ;;  %v2958_v5 = vperm.slane %v2942_v43, 0  ;;  %v3568_v63 = vor.u32 1.1754944e-38, %v3567_v45 }
 0x61e   :  { %v3549_v59 = vsel %vm3548_vm13, %v6016_v12, %v3545_v33  ;;  %v3572_v1 = vmul.f32 %v9411_v23, %v9378_v41  ;;  %v2959_v16 = vperm.slane %v2943_v51, 0  ;;  %v3582_v8 = vand.u32 2147483648, %v9378_v41 }
 0x61f   :  { %5445 = vmatmul.msk.bf16.gmra.mxu3 %vm331_vm10, %v3769_v3  ;;  %v3554_v58 = vsel %vm9382_vm1, %v3553_v27, %v3549_v59  ;;  %v3564_v61 = vsel %vm3563_vm8, %v6018_v4, %v3560_v46  ;;  %v3002_v2 = vadd.f32 %v2957_v14, %v8772_v21  ;;  %vm3576_vm9 = vweird.f32 %v9378_v41  ;;  %v9440_v4 = vld [vmem:[%s10549_s1 + $0x1] ss:$0 sm:$0xff] }
 0x620   :  { %v3569_v56 = vsel %vm9406_vm6, %v3568_v63, %v3564_v61  ;;  %v9426_v0 = vmul.f32 %v3554_v58, %v9282_v19  ;;  %v3573_v40 = vsub.f32 1.0, %v3572_v1  ;;  %v3068_v11 = vadd.f32 %v9336_v38, %v3001_v57 }
 0x621   :  { %v3742_v60 = vmul.f32 %v3569_v56, %v9285_v22  ;;  %v3069_v35 = vadd.f32 %v10801_v15, %v3002_v2  ;;  %v3003_v9 = vadd.f32 %v2958_v5, %v8724_v52  ;;  %v3004_v12 = vadd.f32 %v2958_v5, %v8772_v21 }
 0x622   :  { %v6024_v24 = vpop.eup %6023  ;;  %5501 = vmatmul.msk.bf16.vlgmr.msrb.gmra.mxu2 %vm331_vm10, %v10802_v55  ;;  %v3597_v19 = vand.u32 2147483648, %v9401_v6  ;;  %v9443_v38 = vadd.f32 %v9440_v4, %v3068_v11  ;;  %v3005_v22 = vadd.f32 %v2959_v16, %v8724_v52  ;;  %v3006_v29 = vadd.f32 %v2959_v16, %v8772_v21 }
 0x623   :  { %v3770_v17 = vpack.c.bf16 %v3742_v60, %v9426_v0  ;;  %v3574_v31 = vmul.f32 %v9411_v23, %v3573_v40  ;;  %v3587_v27 = vmul.f32 %v6024_v24, %v9401_v6  ;;  %v9451_v28 = vadd.f32 %v9440_v4, %v3069_v35 }
 0x624   :  { %vm3577_vm15 = vweird.f32 %v9411_v23  ;;  %v5419_v10 = vmul.f32 -1.442695, %v9443_v38  ;;  %v3070_v62 = vadd.f32 %v9313_v44, %v3003_v9  ;;  %v3071_v45 = vadd.f32 %v9361_v42, %v3004_v12  ;;  %v10806_v9 = vld [vmem:[#allocation56_spill] sm:$0xff] }
 0x625   :  { %v3588_v13 = vsub.f32 1.0, %v3587_v27  ;;  %v5420_v54 = vmul.f32 -1.442695, %v9451_v28  ;;  %v3072_v43 = vadd.f32 %v9323_v7, %v3005_v22  ;;  %v3073_v51 = vadd.f32 %v9343_v36, %v3006_v29  ;;  %vm9480_vm12 = vmor %vm3576_vm9, %vm3577_vm15 }
 0x626   :  { %vm3592_vm11 = vweird.f32 %v6024_v24  ;;  %6025 = vpow2.f32 %v5419_v10  ;;  %v9461_v25 = vadd.f32 %v9440_v4, %v3070_v62  ;;  %v9464_v49 = vadd.f32 %v9440_v4, %v3071_v45 }
 0x627   :  { %v3575_v26 = vadd.f32 %v9411_v23, %v3574_v31  ;;  %v3589_v44 = vmul.f32 %v6024_v24, %v3588_v13  ;;  %6027 = vpow2.f32 %v5420_v54  ;;  %v9468_v42 = vadd.f32 %v9440_v4, %v3072_v43 }
 0x628   :  { %v3595_v30 = vand.u32 2147483647, %v9401_v6  ;;  %v5421_v7 = vmul.f32 -1.442695, %v9461_v25  ;;  %v5422_v36 = vmul.f32 -1.442695, %v9464_v49  ;;  %v9474_v14 = vadd.f32 %v9440_v4, %v3073_v51 }
 0x629   :  { %v3580_v34 = vand.u32 2147483647, %v9378_v41  ;;  %v3590_v18 = vadd.f32 %v6024_v24, %v3589_v44  ;;  %vm3591_vm5 = vweird.f32 %v9401_v6  ;;  %v5423_v37 = vmul.f32 -1.442695, %v9468_v42 }
 0x62a   :  { %vm3593_vm2 = vmor %vm3591_vm5, %vm3592_vm11  ;;  %6029 = vpow2.f32 %v5421_v7  ;;  %v5424_v48 = vmul.f32 -1.442695, %v9474_v14  ;;  %v2944_v33 = vrot.slane %v9075_v39, 7  ;;  %v3579_v47 = vsel %vm9480_vm12, %v9411_v23, %v3575_v26 }
 0x62b   :  { %v3594_v3 = vsel %vm3593_vm2, %v6024_v24, %v3590_v18  ;;  %v3598_v46 = vor.u32 1.1754944e-38, %v3597_v19  ;;  %6031 = vpow2.f32 %v5422_v36  ;;  %v3583_v57 = vor.u32 1.1754944e-38, %v3582_v8 }
 0x62c   :  { %v6026_v41 = vpop.eup %6025  ;;  %vm3596_vm1 = vcmp.eq.f32.partialorder %v3595_v30, 8.507059e+37  ;;  %6033 = vpow2.f32 %v5423_v37  ;;  %vm3581_vm3 = vcmp.eq.f32.partialorder %v3580_v34, 8.507059e+37  ;;  %v2960_v39 = vperm.slane %v2944_v33, 0 }
 0x62d   :  { %v6028_v6 = vpop.eup %6027  ;;  %v3599_v5 = vsel %vm3596_vm1, %v3598_v46, %v3594_v3  ;;  %v9493_v59 = vadd.f32 1.0, %v6026_v41  ;;  %6035 = vpow2.f32 %v5424_v48  ;;  %v3584_v63 = vsel %vm3581_vm3, %v3583_v57, %v3579_v47 }
 0x62e   :  { %v9495_v1 = vadd.f32 1.0, %v6028_v6  ;;  %v9500_v16 = vmul.f32 %v3599_v5, %v9327_v20  ;;  %v9504_v61 = vmul.f32 %v3584_v63, %v9309_v53  ;;  %v3007_v11 = vadd.f32 %v2960_v39, %v8724_v52  ;;  %v10805_v20 = vld [vmem:[#allocation55_spill] sm:$0xff] }
 0x62f   :  { %5446 = vmatmul.msk.bf16.gmra.mxu3 %vm331_vm10, %v3770_v17  ;;  %6037 = vrcp.f32 %v9493_v59  ;;  %v3610_v56 = vand.u32 2147483647, %v9493_v59  ;;  %v3612_v0 = vand.u32 2147483648, %v9493_v59  ;;  %v3042_v15 = vmul.f32 %v9332_v32, %v10805_v20 }
 0x630   :  { %v6030_v23 = vpop.eup %6029  ;;  %6039 = vrcp.f32 %v9495_v1  ;;  %v3625_v35 = vand.u32 2147483647, %v9495_v1  ;;  %v3008_v53 = vadd.f32 %v2960_v39, %v8772_v21  ;;  %v3043_v12 = vmul.f32 %v9332_v32, %v10806_v9 }
 0x631   :  { %v6032_v58 = vpop.eup %6031  ;;  %v9506_v8 = vadd.f32 1.0, %v6030_v23  ;;  %v3771_v24 = vpack.c.bf16 %v9500_v16, %v9504_v61  ;;  %v3627_v55 = vand.u32 2147483648, %v9495_v1  ;;  %vm3606_vm7 = vweird.f32 %v9493_v59 }
 0x632   :  { %v6034_v2 = vpop.eup %6033  ;;  %v9510_v40 = vadd.f32 1.0, %v6032_v58  ;;  %vm3621_vm4 = vweird.f32 %v9495_v1  ;;  %vm9531_vm0 = vcmp.eq.f32.partialorder %v3610_v56, 8.507059e+37  ;;  %v3613_v17 = vor.u32 1.1754944e-38, %v3612_v0 }
 0x633   :  { %v6036_v60 = vpop.eup %6035  ;;  %6041 = vrcp.f32 %v9506_v8  ;;  %v9526_v19 = vadd.f32 1.0, %v6034_v2  ;;  %v3640_v31 = vand.u32 2147483647, %v9506_v8  ;;  %v9536_v27 = vadd.f32 %v3042_v15, %v3007_v11 }
 0x634   :  { %6043 = vrcp.f32 %v9510_v40  ;;  %v9528_v22 = vadd.f32 1.0, %v6036_v60  ;;  %vm9539_vm14 = vcmp.eq.f32.partialorder %v3625_v35, 8.507059e+37  ;;  %v3642_v45 = vand.u32 2147483648, %v9506_v8 }
 0x635   :  { %v6038_v52 = vpop.eup %6037  ;;  %6045 = vrcp.f32 %v9526_v19  ;;  %v3075_v13 = vadd.f32 %v3043_v12, %v3008_v53  ;;  %v3628_v43 = vor.u32 1.1754944e-38, %v3627_v55  ;;  %v3655_v51 = vand.u32 2147483647, %v9510_v40 }
 0x636   :  { %v6040_v21 = vpop.eup %6039  ;;  %v3602_v29 = vmul.f32 %v6038_v52, %v9493_v59  ;;  %v3657_v26 = vand.u32 2147483648, %v9510_v40  ;;  %vm3636_vm6 = vweird.f32 %v9506_v8  ;;  %vm3651_vm13 = vweird.f32 %v9510_v40 }
 0x637   :  { %v3617_v10 = vmul.f32 %v6040_v21, %v9495_v1  ;;  %6047 = vrcp.f32 %v9528_v22  ;;  %vm3607_vm8 = vweird.f32 %v6038_v52  ;;  %vm9551_vm9 = vcmp.eq.f32.partialorder %v3640_v31, 8.507059e+37 }
 0x638   :  { %v3603_v54 = vsub.f32 1.0, %v3602_v29  ;;  %vm3622_vm15 = vweird.f32 %v6040_v21  ;;  %v3643_v37 = vor.u32 1.1754944e-38, %v3642_v45  ;;  %vm9556_vm11 = vcmp.eq.f32.partialorder %v3655_v51, 8.507059e+37  ;;  %vm3608_vm12 = vmor %vm3606_vm7, %vm3607_vm8 }
 0x639   :  { %v6042_v44 = vpop.eup %6041  ;;  %v3618_v30 = vsub.f32 1.0, %v3617_v10  ;;  %v3658_v46 = vor.u32 1.1754944e-38, %v3657_v26  ;;  %vm3666_vm5 = vweird.f32 %v9526_v19  ;;  %v3670_v5 = vand.u32 2147483647, %v9526_v19  ;;  %vm3623_vm2 = vmor %vm3621_vm4, %vm3622_vm15 }
 0x63a   :  { %v6044_v7 = vpop.eup %6043  ;;  %v3604_v36 = vmul.f32 %v6038_v52, %v3603_v54  ;;  %v3632_v50 = vmul.f32 %v6042_v44, %v9506_v8  ;;  %vm3637_vm1 = vweird.f32 %v6042_v44  ;;  %v3672_v1 = vand.u32 2147483648, %v9526_v19 }
 0x63b   :  { %v3619_v18 = vmul.f32 %v6040_v21, %v3618_v30  ;;  %v3647_v48 = vmul.f32 %v6044_v7, %v9510_v40  ;;  %v6046_v41 = vpop.eup %6045  ;;  %vm3652_vm3 = vweird.f32 %v6044_v7  ;;  %vm3638_vm7 = vmor %vm3636_vm6, %vm3637_vm1  ;;  %v3685_v9 = vand.u32 2147483647, %v9528_v22 }
 0x63c   :  { %v3605_v33 = vadd.f32 %v6038_v52, %v3604_v36  ;;  %v3633_v47 = vsub.f32 1.0, %v3632_v50  ;;  %v3662_v23 = vmul.f32 %v6046_v41, %v9526_v19  ;;  %vm3653_vm4 = vmor %vm3651_vm13, %vm3652_vm3  ;;  %v3673_v31 = vor.u32 1.1754944e-38, %v3672_v1 }
 0x63d   :  { %v3620_v57 = vadd.f32 %v6040_v21, %v3619_v18  ;;  %v3648_v6 = vsub.f32 1.0, %v3647_v48  ;;  %v6048_v16 = vpop.eup %6047  ;;  %vm3681_vm13 = vweird.f32 %v9528_v22  ;;  %vm3671_vm8 = vcmp.eq.f32.partialorder %v3670_v5, 8.507059e+37 }
 0x63e   :  { %v3609_v63 = vsel %vm3608_vm12, %v6038_v52, %v3605_v33  ;;  %v3634_v39 = vmul.f32 %v6042_v44, %v3633_v47  ;;  %v3663_v0 = vsub.f32 1.0, %v3662_v23  ;;  %v3677_v15 = vmul.f32 %v6048_v16, %v9528_v22 }
 0x63f   :  { %5447 = vmatmul.msk.bf16.gmra.mxu3 %vm331_vm10, %v3771_v24  ;;  %v3614_v59 = vsel %vm9531_vm0, %v3613_v17, %v3609_v63  ;;  %v3624_v58 = vsel %vm3623_vm2, %v6040_v21, %v3620_v57  ;;  %v3649_v61 = vmul.f32 %v6044_v7, %v3648_v6  ;;  %vm3667_vm0 = vweird.f32 %v6046_v41 }
 0x640   :  { %v3629_v2 = vsel %vm9539_vm14, %v3628_v43, %v3624_v58  ;;  %v3635_v56 = vadd.f32 %v6042_v44, %v3634_v39  ;;  %v3745_v11 = vmul.f32 %v3614_v59, %v9443_v38  ;;  %v3664_v53 = vmul.f32 %v6046_v41, %v3663_v0  ;;  %vm3668_vm14 = vmor %vm3666_vm5, %vm3667_vm0 }
 0x641   :  { %v3746_v60 = vmul.f32 %v3629_v2, %v9451_v28  ;;  %v3650_v20 = vadd.f32 %v6044_v7, %v3649_v61  ;;  %v3678_v28 = vsub.f32 1.0, %v3677_v15  ;;  %v3687_v52 = vand.u32 2147483648, %v9528_v22 }
 0x642   :  { %v3639_v35 = vsel %vm3638_vm7, %v6042_v44, %v3635_v56  ;;  %v3665_v55 = vadd.f32 %v6046_v41, %v3664_v53  ;;  %v9587_v21 = vadd.f32 %v9440_v4, %v3075_v13  ;;  %vm3682_vm6 = vweird.f32 %v6048_v16  ;;  %v9606_v44 = vld [vmem:[%s10396_s13 + $0x1] ss:$0 sm:$0xff] }
 0x643   :  { %v3772_v12 = vpack.c.bf16 %v3746_v60, %v3745_v11  ;;  %v3644_v38 = vsel %vm9551_vm9, %v3643_v37, %v3639_v35  ;;  %v3654_v24 = vsel %vm3653_vm4, %v6044_v7, %v3650_v20  ;;  %v3679_v32 = vmul.f32 %v6048_v16, %v3678_v28  ;;  %vm3683_vm9 = vmor %vm3681_vm13, %vm3682_vm6 }
 0x644   :  { %v3659_v8 = vsel %vm9556_vm11, %v3658_v46, %v3654_v24  ;;  %v3747_v40 = vmul.f32 %v3644_v38, %v9461_v25  ;;  %v3669_v17 = vsel %vm3668_vm14, %v6046_v41, %v3665_v55  ;;  %v9596_v45 = vadd.f32 %v9440_v4, %v9536_v27 }
 0x645   :  { %v3748_v29 = vmul.f32 %v3659_v8, %v9464_v49  ;;  %v3680_v62 = vadd.f32 %v6048_v16, %v3679_v32  ;;  %v3674_v13 = vsel %vm3671_vm8, %v3673_v31, %v3669_v17  ;;  %v3688_v25 = vor.u32 1.1754944e-38, %v3687_v52 }
 0x646   :  { %vm3686_vm15 = vcmp.eq.f32.partialorder %v3685_v9, 8.507059e+37  ;;  %v5426_v19 = vmul.f32 -1.442695, %v9587_v21  ;;  %v3749_v43 = vmul.f32 %v3674_v13, %v9468_v42  ;;  %v5425_v22 = vmul.f32 -1.442695, %v9596_v45 }
 0x647   :  { %v3773_v10 = vpack.c.bf16 %v3748_v29, %v3747_v40  ;;  %v3684_v49 = vsel %vm3683_vm9, %v6048_v16, %v3680_v62 }
 0x648   :  { %v3689_v54 = vsel %vm3686_vm15, %v3688_v25, %v3684_v49  ;;  %6049 = vpow2.f32 %v5426_v19 }
 0x649   :  { %v3750_v51 = vmul.f32 %v3689_v54, %v9474_v14  ;;  %6051 = vpow2.f32 %v5425_v22 }
 0x64b   :  { %v3774_v26 = vpack.c.bf16 %v3750_v51, %v3749_v43 }
 0x64e   :  { %v6050_v4 = vpop.eup %6049 }
 0x64f   :  { %5448 = vmatmul.msk.bf16.gmra.mxu3 %vm331_vm10, %v3772_v12  ;;  %v6052_v27 = vpop.eup %6051  ;;  %v3240_v30 = vadd.f32 1.0, %v6050_v4 }
 0x650   :  { %v3239_v36 = vadd.f32 1.0, %v6052_v27 }
 0x651   :  { %6053 = vrcp.f32 %v3240_v30  ;;  %v3717_v6 = vand.u32 2147483648, %v3240_v30  ;;  %vm3711_vm5 = vweird.f32 %v3240_v30  ;;  %v3715_v39 = vand.u32 2147483647, %v3240_v30 }
 0x652   :  { %6055 = vrcp.f32 %v3239_v36  ;;  %v3702_v16 = vand.u32 2147483648, %v3239_v36  ;;  %vm3696_vm1 = vweird.f32 %v3239_v36  ;;  %v3700_v58 = vand.u32 2147483647, %v3239_v36 }
 0x653   :  { %v3718_v56 = vor.u32 1.1754944e-38, %v3717_v6  ;;  %vm3716_vm7 = vcmp.eq.f32.partialorder %v3715_v39, 8.507059e+37  ;;  %v3848_v51 = vpop.f32.mrf.mxu2 }
 0x654   :  { %v3703_v11 = vor.u32 1.1754944e-38, %v3702_v16  ;;  %vm3701_vm4 = vcmp.eq.f32.partialorder %v3700_v58, 8.507059e+37 }
 0x656   :  { %v3873_v7 = vpop.f32.mrf.mxu3 }
 0x657   :  { %v9609_v42 = vadd.f32 %v9606_v44, %v3873_v7  ;;  %v6054_v50 = vpop.eup %6053 }
 0x658   :  { %v6056_v34 = vpop.eup %6055  ;;  %v3707_v18 = vmul.f32 %v6054_v50, %v3240_v30  ;;  %vm3712_vm11 = vweird.f32 %v6054_v50  ;;  %v10816_v30 = vld [vmem:[#allocation81_spill] sm:$0xff] }
 0x659   :  { %v5462_v14 = vmul.f32 -1.442695, %v9609_v42  ;;  %v3692_v37 = vmul.f32 %v6056_v34, %v3239_v36  ;;  %vm3697_vm12 = vweird.f32 %v6056_v34  ;;  %vm3713_vm2 = vmor %vm3711_vm5, %vm3712_vm11 }
 0x65a   :  { %v3708_v33 = vsub.f32 1.0, %v3707_v18  ;;  %vm3698_vm3 = vmor %vm3696_vm1, %vm3697_vm12 }
 0x65b   :  { %6057 = vpow2.f32 %v5462_v14  ;;  %v3693_v3 = vsub.f32 1.0, %v3692_v37 }
 0x65c   :  { %v3709_v46 = vmul.f32 %v6054_v50, %v3708_v33 }
 0x65d   :  { %v3694_v41 = vmul.f32 %v6056_v34, %v3693_v3 }
 0x65e   :  { %v3710_v57 = vadd.f32 %v6054_v50, %v3709_v46  ;;  %v3875_v5 = vpop.f32.mrf.mxu3  ;;  %v9636_v46 = vadd.f32 %v9606_v44, %v3848_v51 }
 0x65f   :  { %5449 = vmatmul.msk.bf16.gmra.mxu3 %vm331_vm10, %v3773_v10  ;;  %v3695_v63 = vadd.f32 %v6056_v34, %v3694_v41  ;;  %v3876_v23 = vadd.f32 %v9606_v44, %v3875_v5 }
 0x660   :  { %v3714_v61 = vsel %vm3713_vm2, %v6054_v50, %v3710_v57  ;;  %v5452_v5 = vmul.f32 -1.442695, %v9636_v46 }
 0x661   :  { %v6058_v48 = vpop.eup %6057  ;;  %v5463_v2 = vmul.f32 -1.442695, %v3876_v23  ;;  %v3699_v0 = vsel %vm3698_vm3, %v6056_v34, %v3695_v63  ;;  %v3719_v60 = vsel %vm3716_vm7, %v3718_v56, %v3714_v61  ;;  %v3850_v34 = vpop.f32.mrf.mxu2 }
 0x662   :  { %v4034_v47 = vadd.f32 1.0, %v6058_v48  ;;  %v3704_v20 = vsel %vm3701_vm4, %v3703_v11, %v3699_v0  ;;  %v3752_v15 = vmul.f32 %v3719_v60, %v9587_v21  ;;  %v9630_v33 = vadd.f32 %v9606_v44, %v3850_v34 }
 0x663   :  { %v3751_v53 = vmul.f32 %v3704_v20, %v9596_v45 }
 0x664   :  { %6059 = vrcp.f32 %v4034_v47  ;;  %v4217_v8 = vand.u32 2147483648, %v4034_v47  ;;  %vm4211_vm14 = vweird.f32 %v4034_v47  ;;  %v4215_v55 = vand.u32 2147483647, %v4034_v47 }
 0x665   :  { %6061 = vpow2.f32 %v5463_v2  ;;  %v3775_v38 = vpack.c.bf16 %v3752_v15, %v3751_v53  ;;  %v5453_v57 = vmul.f32 -1.442695, %v9630_v33 }
 0x666   :  { %v4218_v21 = vor.u32 1.1754944e-38, %v4217_v8  ;;  %vm4216_vm13 = vcmp.eq.f32.partialorder %v4215_v55, 8.507059e+37  ;;  %v3878_v17 = vpop.f32.mrf.mxu3 }
 0x667   :  { %v9619_v13 = vadd.f32 %v9606_v44, %v3878_v17 }
 0x669   :  { %v5464_v43 = vmul.f32 -1.442695, %v9619_v13  ;;  %v3853_v37 = vpop.f32.mrf.mxu2 }
 0x66a   :  { %v6060_v59 = vpop.eup %6059  ;;  %v9642_v63 = vadd.f32 %v9606_v44, %v3853_v37 }
 0x66b   :  { %v4207_v1 = vmul.f32 %v6060_v59, %v4034_v47  ;;  %v6062_v9 = vpop.eup %6061  ;;  %vm4212_vm0 = vweird.f32 %v6060_v59 }
 0x66c   :  { %v4035_v12 = vadd.f32 1.0, %v6062_v9  ;;  %vm4213_vm6 = vmor %vm4211_vm14, %vm4212_vm0 }
 0x66d   :  { %v4208_v35 = vsub.f32 1.0, %v4207_v1 }
 0x66e   :  { %6063 = vrcp.f32 %v4035_v12  ;;  %v4232_v10 = vand.u32 2147483648, %v4035_v12  ;;  %v4230_v45 = vand.u32 2147483647, %v4035_v12  ;;  %vm4226_vm9 = vweird.f32 %v4035_v12  ;;  %v3880_v48 = vpop.f32.mrf.mxu3 }
 0x66f   :  { %5450 = vmatmul.msk.bf16.gmra.mxu3 %vm331_vm10, %v3774_v26  ;;  %v4209_v24 = vmul.f32 %v6060_v59, %v4208_v35  ;;  %v10815_v26 = vld [vmem:[#allocation80_spill] sm:$0xff]  ;;  %6065 = vpow2.f32 %v5464_v43  ;;  %v9633_v47 = vadd.f32 %v9606_v44, %v3880_v48 }
 0x670   :  { %v4233_v19 = vor.u32 1.1754944e-38, %v4232_v10  ;;  %vm4231_vm11 = vcmp.eq.f32.partialorder %v4230_v45, 8.507059e+37 }
 0x671   :  { %v4210_v28 = vadd.f32 %v6060_v59, %v4209_v24  ;;  %v5465_v41 = vmul.f32 -1.442695, %v9633_v47 }
 0x673   :  { %v4214_v40 = vsel %vm4213_vm6, %v6060_v59, %v4210_v28  ;;  %v5454_v59 = vmul.f32 -1.442695, %v9642_v63 }
 0x674   :  { %v6064_v52 = vpop.eup %6063  ;;  %v4219_v31 = vsel %vm4216_vm13, %v4218_v21, %v4214_v40 }
 0x675   :  { %v4222_v29 = vmul.f32 %v6064_v52, %v4035_v12  ;;  %vm4227_vm8 = vweird.f32 %v6064_v52  ;;  %v4546_v25 = vmul.f32 %v4219_v31, %v9609_v42  ;;  %v6066_v50 = vpop.eup %6065 }
 0x676   :  { %vm4228_vm15 = vmor %vm4226_vm9, %vm4227_vm8  ;;  %v4036_v18 = vadd.f32 1.0, %v6066_v50  ;;  %v10818_v50 = vld [vmem:[#allocation86_spill] sm:$0xff] }
 0x677   :  { %v4223_v32 = vsub.f32 1.0, %v4222_v29  ;;  %v4578_v4 = vmul.f32 %v4546_v25, %v10815_v26  ;;  %v3883_v55 = vpop.f32.mrf.mxu3 }
 0x678   :  { %6067 = vrcp.f32 %v4036_v18  ;;  %v4247_v20 = vand.u32 2147483648, %v4036_v18  ;;  %vm4241_vm5 = vweird.f32 %v4036_v18  ;;  %v4245_v35 = vand.u32 2147483647, %v4036_v18 }
 0x679   :  { %v4224_v62 = vmul.f32 %v6064_v52, %v4223_v32  ;;  %v4645_v36 = vsel %vm331_vm10, %v4578_v4, 0.0  ;;  %6069 = vpow2.f32 %v5465_v41  ;;  %v9658_v17 = vadd.f32 %v9606_v44, %v3883_v55  ;;  %v10817_v4 = vld [vmem:[#allocation85_spill] sm:$0xff] }
 0x67a   :  { %6071 = vpow2.f32 %v5453_v57  ;;  %v4248_v28 = vor.u32 1.1754944e-38, %v4247_v20  ;;  %vm4246_vm1 = vcmp.eq.f32.partialorder %v4245_v35, 8.507059e+37 }
 0x67b   :  { %v4225_v49 = vadd.f32 %v6064_v52, %v4224_v62  ;;  %6073 = vpow2.f32 %v5452_v5  ;;  %v5466_v43 = vmul.f32 -1.442695, %v9658_v17 }
 0x67d   :  { %v4229_v54 = vsel %vm4228_vm15, %v6064_v52, %v4225_v49 }
 0x67e   :  { %v4234_v22 = vsel %vm4231_vm11, %v4233_v19, %v4229_v54  ;;  %v6068_v3 = vpop.eup %6067 }
 0x67f   :  { %5451 = vmatmul.msk.bf16.gmra.mxu3 %vm331_vm10, %v3775_v38  ;;  %v4547_v27 = vmul.f32 %v4234_v22, %v3876_v23  ;;  %v4237_v6 = vmul.f32 %v6068_v3, %v4036_v18  ;;  %v3855_v23 = vpop.f32.mrf.mxu2  ;;  %v6070_v16 = vpop.eup %6069  ;;  %vm4242_vm12 = vweird.f32 %v6068_v3 }
 0x680   :  { %v4037_v58 = vadd.f32 1.0, %v6070_v16  ;;  %v9646_v2 = vadd.f32 %v9606_v44, %v3855_v23  ;;  %v6072_v56 = vpop.eup %6071  ;;  %vm4243_vm2 = vmor %vm4241_vm5, %vm4242_vm12 }
 0x681   :  { %v4579_v7 = vmul.f32 %v4547_v27, %v10816_v30  ;;  %v4238_v39 = vsub.f32 1.0, %v4237_v6  ;;  %v6074_v0 = vpop.eup %6073  ;;  %v9649_v60 = vadd.f32 1.0, %v6072_v56 }
 0x682   :  { %6075 = vrcp.f32 %v4037_v58  ;;  %v5455_v11 = vmul.f32 -1.442695, %v9646_v2  ;;  %v9651_v15 = vadd.f32 1.0, %v6074_v0  ;;  %v4262_v29 = vand.u32 2147483648, %v4037_v58 }
 0x683   :  { %v4646_v42 = vsel %vm331_vm10, %v4579_v7, 0.0  ;;  %v4239_v61 = vmul.f32 %v6068_v3, %v4238_v39  ;;  %6077 = vpow2.f32 %v5454_v59  ;;  %v4260_v32 = vand.u32 2147483647, %v4037_v58 }
 0x684   :  { %v9627_v14 = vadd.f32 %v4646_v42, %v4645_v36  ;;  %6079 = vpow2.f32 %v5455_v11  ;;  %vm4256_vm7 = vweird.f32 %v4037_v58  ;;  %v4263_v25 = vor.u32 1.1754944e-38, %v4262_v29 }
 0x685   :  { %v4240_v1 = vadd.f32 %v6068_v3, %v4239_v61  ;;  %6081 = vrcp.f32 %v9649_v60  ;;  %vm4261_vm0 = vcmp.eq.f32.partialorder %v4260_v32, 8.507059e+37  ;;  %v4065_v11 = vand.u32 2147483647, %v9651_v15 }
 0x686   :  { %6083 = vrcp.f32 %v9651_v15  ;;  %v4082_v20 = vand.u32 2147483648, %v9649_v60  ;;  %vm4076_vm13 = vweird.f32 %v9649_v60  ;;  %vm4061_vm8 = vweird.f32 %v9651_v15 }
 0x687   :  { %v3858_v9 = vpop.f32.mrf.mxu2  ;;  %v4244_v38 = vsel %vm4243_vm2, %v6068_v3, %v4240_v1  ;;  %vm4066_vm11 = vcmp.eq.f32.partialorder %v4065_v11, 8.507059e+37 }
 0x688   :  { %v6076_v53 = vpop.eup %6075  ;;  %v4249_v40 = vsel %vm4246_vm1, %v4248_v28, %v4244_v38  ;;  %v9677_v7 = vadd.f32 %v9606_v44, %v3858_v9  ;;  %v4080_v9 = vand.u32 2147483647, %v9649_v60  ;;  %v4083_v55 = vor.u32 1.1754944e-38, %v4082_v20 }
 0x689   :  { %v6078_v12 = vpop.eup %6077  ;;  %v4252_v24 = vmul.f32 %v6076_v53, %v4037_v58  ;;  %vm4257_vm3 = vweird.f32 %v6076_v53  ;;  %v4548_v10 = vmul.f32 %v4249_v40, %v9619_v13 }
 0x68a   :  { %v9655_v52 = vadd.f32 1.0, %v6078_v12  ;;  %v6080_v31 = vpop.eup %6079  ;;  %vm4258_vm4 = vmor %vm4256_vm7, %vm4257_vm3  ;;  %v5456_v3 = vmul.f32 -1.442695, %v9677_v7  ;;  %vm4081_vm12 = vcmp.eq.f32.partialorder %v4080_v9, 8.507059e+37 }
 0x68b   :  { %v4253_v8 = vsub.f32 1.0, %v4252_v24  ;;  %v9661_v45 = vpop.eup %6081  ;;  %v9670_v22 = vadd.f32 1.0, %v6080_v31  ;;  %v4580_v27 = vmul.f32 %v4548_v10, %v10817_v4  ;;  %v3885_v31 = vpop.f32.mrf.mxu3 }
 0x68c   :  { %6085 = vrcp.f32 %v9655_v52  ;;  %v9664_v19 = vpop.eup %6083  ;;  %v4072_v26 = vmul.f32 %v9661_v45, %v9649_v60  ;;  %vm4077_vm14 = vweird.f32 %v9661_v45  ;;  %v4097_v32 = vand.u32 2147483648, %v9655_v52 }
 0x68d   :  { %v4254_v21 = vmul.f32 %v6076_v53, %v4253_v8  ;;  %v4057_v36 = vmul.f32 %v9664_v19, %v9651_v15  ;;  %6087 = vpow2.f32 %v5466_v43  ;;  %v4654_v48 = vsel %vm331_vm10, %v4580_v27, 0.0  ;;  %vm4078_vm9 = vmor %vm4076_vm13, %vm4077_vm14 }
 0x68e   :  { %6089 = vrcp.f32 %v9670_v22  ;;  %v4073_v37 = vsub.f32 1.0, %v4072_v26  ;;  %vm4062_vm6 = vweird.f32 %v9664_v19  ;;  %vm4091_vm2 = vweird.f32 %v9655_v52 }
 0x68f   :  { %v4255_v62 = vadd.f32 %v6076_v53, %v4254_v21  ;;  %v3860_v49 = vpop.f32.mrf.mxu2  ;;  %v4058_v41 = vsub.f32 1.0, %v4057_v36  ;;  %vm9715_vm15 = vmor %vm4061_vm8, %vm4062_vm6  ;;  %v4098_v26 = vor.u32 1.1754944e-38, %v4097_v32 }
 0x690   :  { %v9668_v51 = vadd.f32 %v9606_v44, %v3860_v49  ;;  %v4074_v39 = vmul.f32 %v9661_v45, %v4073_v37  ;;  %v4095_v49 = vand.u32 2147483647, %v9655_v52 }
 0x691   :  { %v4259_v54 = vsel %vm4258_vm4, %v6076_v53, %v4255_v62  ;;  %v4059_v16 = vmul.f32 %v9664_v19, %v4058_v41  ;;  %v4067_v53 = vand.u32 2147483648, %v9651_v15  ;;  %vm4106_vm4 = vweird.f32 %v9670_v22 }
 0x692   :  { %v4264_v13 = vsel %vm4261_vm0, %v4263_v25, %v4259_v54  ;;  %v5457_v42 = vmul.f32 -1.442695, %v9668_v51  ;;  %v9683_v18 = vpop.eup %6085  ;;  %v4075_v56 = vadd.f32 %v9661_v45, %v4074_v39  ;;  %vm4096_vm7 = vcmp.eq.f32.partialorder %v4095_v49, 8.507059e+37 }
 0x693   :  { %v4549_v30 = vmul.f32 %v4264_v13, %v9633_v47  ;;  %v4087_v6 = vmul.f32 %v9683_v18, %v9655_v52  ;;  %v6088_v5 = vpop.eup %6087  ;;  %v4060_v1 = vadd.f32 %v9664_v19, %v4059_v16  ;;  %v4068_v15 = vor.u32 1.1754944e-38, %v4067_v53 }
 0x694   :  { %6091 = vpow2.f32 %v5457_v42  ;;  %v9694_v23 = vpop.eup %6089  ;;  %v9697_v61 = vadd.f32 1.0, %v6088_v5  ;;  %v4079_v28 = vsel %vm4078_vm9, %v9661_v45, %v4075_v56  ;;  %vm4092_vm5 = vweird.f32 %v9683_v18 }
 0x695   :  { %v4581_v34 = vmul.f32 %v4549_v30, %v10818_v50  ;;  %6093 = vpow2.f32 %v5456_v3  ;;  %v4088_v58 = vsub.f32 1.0, %v4087_v6  ;;  %v4102_v0 = vmul.f32 %v9694_v23, %v9670_v22  ;;  %vm4093_vm1 = vmor %vm4091_vm2, %vm4092_vm5  ;;  %v10821_v30 = vld [vmem:[#allocation68_spill] sm:$0xff] }
 0x696   :  { %6095 = vrcp.f32 %v9697_v61  ;;  %v4064_v60 = vsel %vm9715_vm15, %v9664_v19, %v4060_v1  ;;  %v4084_v29 = vsel %vm4081_vm12, %v4083_v55, %v4079_v28  ;;  %v9731_v45 = vadd.f32 %v9606_v44, %v3885_v31  ;;  %v10824_v28 = vld [vmem:[#allocation63_spill] sm:$0xff] }
 0x697   :  { %v4655_v47 = vsel %vm331_vm10, %v4581_v34, 0.0  ;;  %v4089_v38 = vmul.f32 %v9683_v18, %v4088_v58  ;;  %v4103_v8 = vsub.f32 1.0, %v4102_v0  ;;  %v4069_v10 = vsel %vm4066_vm11, %v4068_v15, %v4064_v60  ;;  %v10823_v0 = vld [vmem:[#allocation62_spill] sm:$0xff]  ;;  %v3863_v32 = vpop.f32.mrf.mxu2 }
 0x698   :  { %v9689_v57 = vadd.f32 %v4655_v47, %v4654_v48  ;;  %v4537_v19 = vmul.f32 %v4084_v29, %v9630_v33  ;;  %v5467_v54 = vmul.f32 -1.442695, %v9731_v45  ;;  %v4536_v43 = vmul.f32 %v4069_v10, %v9636_v46 }
 0x699   :  { %v4090_v21 = vadd.f32 %v9683_v18, %v4089_v38  ;;  %v4104_v62 = vmul.f32 %v9694_v23, %v4103_v8  ;;  %vm4107_vm3 = vweird.f32 %v9694_v23  ;;  %v4112_v33 = vand.u32 2147483648, %v9670_v22 }
 0x69a   :  { %v6092_v59 = vpop.eup %6091  ;;  %v4569_v36 = vmul.f32 %v4537_v19, %v10821_v30  ;;  %v4110_v46 = vand.u32 2147483647, %v9670_v22  ;;  %vm4108_vm0 = vmor %vm4106_vm4, %vm4107_vm3  ;;  %v4275_v53 = vand.u32 2147483647, %v9697_v61  ;;  %v4277_v24 = vand.u32 2147483648, %v9697_v61 }
 0x69b   :  { %v6094_v35 = vpop.eup %6093  ;;  %v9710_v12 = vadd.f32 1.0, %v6092_v59  ;;  %v4094_v13 = vsel %vm4093_vm1, %v9683_v18, %v4090_v21  ;;  %v4105_v27 = vadd.f32 %v9694_v23, %v4104_v62  ;;  %v10822_v18 = vld [vmem:[#allocation59_spill] sm:$0xff]  ;;  %v4113_v41 = vor.u32 1.1754944e-38, %v4112_v33 }
 0x69c   :  { %v9723_v40 = vadd.f32 1.0, %v6094_v35  ;;  %v9733_v25 = vpop.eup %6095  ;;  %v4099_v42 = vsel %vm4096_vm7, %v4098_v26, %v4094_v13  ;;  %v4568_v37 = vmul.f32 %v4536_v43, %v10822_v18  ;;  %v4601_v5 = vsel %vm331_vm10, %v4569_v36, 0.0  ;;  %v3888_v26 = vpop.f32.mrf.mxu3 }
 0x69d   :  { %6097 = vrcp.f32 %v9710_v12  ;;  %v4267_v52 = vmul.f32 %v9733_v25, %v9697_v61  ;;  %v4109_v48 = vsel %vm4108_vm0, %v9694_v23, %v4105_v27  ;;  %v4538_v3 = vmul.f32 %v4099_v42, %v9642_v63 }
 0x69e   :  { %6099 = vrcp.f32 %v9723_v40  ;;  %vm4111_vm14 = vcmp.eq.f32.partialorder %v4110_v46, 8.507059e+37  ;;  %v4600_v58 = vsel %vm331_vm10, %v4568_v37, 0.0  ;;  %vm4272_vm6 = vweird.f32 %v9733_v25 }
 0x69f   :  { %6101 = vpow2.f32 %v5467_v54  ;;  %v4268_v47 = vsub.f32 1.0, %v4267_v52  ;;  %v4114_v39 = vsel %vm4111_vm14, %v4113_v41, %v4109_v48  ;;  %v9766_v23 = vadd.f32 %v4601_v5, %v4600_v58  ;;  %v3865_v41 = vpop.f32.mrf.mxu2 }
 0x6a0   :  { %v4570_v63 = vmul.f32 %v4538_v3, %v10823_v0  ;;  %v4539_v1 = vmul.f32 %v4114_v39, %v9646_v2  ;;  %vm4121_vm13 = vweird.f32 %v9723_v40  ;;  %vm4271_vm8 = vweird.f32 %v9697_v61 }
 0x6a1   :  { %v4269_v56 = vmul.f32 %v9733_v25, %v4268_v47  ;;  %v4603_v9 = vrot.slane %v9766_v23, 4  ;;  %v4125_v55 = vand.u32 2147483647, %v9723_v40  ;;  %v4127_v15 = vand.u32 2147483648, %v9723_v40  ;;  %vm9784_vm9 = vmor %vm4271_vm8, %vm4272_vm6 }
 0x6a2   :  { %v4609_v38 = vsel %vm331_vm10, %v4570_v63, 0.0  ;;  %v4571_v8 = vmul.f32 %v4539_v1, %v10824_v28  ;;  %vm4276_vm11 = vcmp.eq.f32.partialorder %v4275_v53, 8.507059e+37  ;;  %v9795_v10 = vadd.f32 %v9606_v44, %v3863_v32 }
 0x6a3   :  { %v9742_v4 = vpop.eup %6097  ;;  %v4270_v35 = vadd.f32 %v9733_v25, %v4269_v56  ;;  %v4278_v62 = vor.u32 1.1754944e-38, %v4277_v24  ;;  %vm4136_vm12 = vweird.f32 %v9710_v12  ;;  %v4140_v49 = vand.u32 2147483647, %v9710_v12 }
 0x6a4   :  { %v9752_v50 = vpop.eup %6099  ;;  %v4132_v34 = vmul.f32 %v9742_v4, %v9710_v12  ;;  %vm4137_vm15 = vweird.f32 %v9742_v4  ;;  %v4142_v19 = vand.u32 2147483648, %v9710_v12  ;;  %v5458_v13 = vmul.f32 -1.442695, %v9795_v10 }
 0x6a5   :  { %v6102_v6 = vpop.eup %6101  ;;  %v4117_v22 = vmul.f32 %v9752_v50, %v9723_v40  ;;  %v4274_v31 = vsel %vm9784_vm9, %v9733_v25, %v4270_v35  ;;  %vm4122_vm5 = vweird.f32 %v9752_v50  ;;  %vm9802_vm2 = vmor %vm4136_vm12, %vm4137_vm15  ;;  %v9812_v12 = vadd.f32 %v9606_v44, %v3888_v26 }
 0x6a6   :  { %v4133_v16 = vsub.f32 1.0, %v4132_v34  ;;  %v9762_v59 = vadd.f32 1.0, %v6102_v6  ;;  %v4279_v27 = vsel %vm4276_vm11, %v4278_v62, %v4274_v31  ;;  %v4610_v42 = vsel %vm331_vm10, %v4571_v8, 0.0  ;;  %vm9818_vm3 = vmor %vm4121_vm13, %vm4122_vm5 }
 0x6a7   :  { %v4118_v11 = vsub.f32 1.0, %v4117_v22  ;;  %vm4141_vm7 = vcmp.eq.f32.partialorder %v4140_v49, 8.507059e+37  ;;  %v5468_v34 = vmul.f32 -1.442695, %v9812_v12  ;;  %v4550_v37 = vmul.f32 %v4279_v27, %v9658_v17  ;;  %v10831_v17 = vld [vmem:[#allocation88_spill] sm:$0xff] }
 0x6a8   :  { %6103 = vrcp.f32 %v9762_v59  ;;  %v4134_v20 = vmul.f32 %v9742_v4, %v4133_v16  ;;  %v4292_v33 = vand.u32 2147483648, %v9762_v59  ;;  %v4290_v36 = vand.u32 2147483647, %v9762_v59 }
 0x6a9   :  { %v4119_v60 = vmul.f32 %v9752_v50, %v4118_v11  ;;  %6105 = vpow2.f32 %v5458_v13  ;;  %vm4286_vm4 = vweird.f32 %v9762_v59  ;;  %v4128_v47 = vor.u32 1.1754944e-38, %v4127_v15 }
 0x6aa   :  { %v4135_v21 = vadd.f32 %v9742_v4, %v4134_v20  ;;  %v4293_v40 = vor.u32 1.1754944e-38, %v4292_v33  ;;  %6107 = vpow2.f32 %v5468_v34  ;;  %vm4126_vm14 = vcmp.eq.f32.partialorder %v4125_v55, 8.507059e+37  ;;  %v10832_v20 = vld [vmem:[#allocation89_spill] sm:$0xff] }
 0x6ab   :  { %v4120_v54 = vadd.f32 %v9752_v50, %v4119_v60  ;;  %vm4291_vm6 = vcmp.eq.f32.partialorder %v4290_v36, 8.507059e+37  ;;  %v9829_v5 = vadd.f32 %v9606_v44, %v3865_v41  ;;  %v4611_v22 = vadd.f32 %v4610_v42, %v4609_v38 }
 0x6ac   :  { %v4139_v52 = vsel %vm9802_vm2, %v9742_v4, %v4135_v21  ;;  %v4143_v4 = vor.u32 1.1754944e-38, %v4142_v19  ;;  %v4582_v58 = vmul.f32 %v4550_v37, %v10831_v17  ;;  %v4604_v63 = vadd.f32 %v4603_v9, %v9766_v23 }
 0x6ad   :  { %v4124_v18 = vsel %vm9818_vm3, %v9752_v50, %v4120_v54  ;;  %v5459_v0 = vmul.f32 -1.442695, %v9829_v5  ;;  %v4612_v38 = vrot.slane %v4611_v22, 4  ;;  %v4648_v23 = vrot.slane %v9627_v14, 4 }
 0x6ae   :  { %v6104_v2 = vpop.eup %6103  ;;  %v4144_v3 = vsel %vm4141_vm7, %v4143_v4, %v4139_v52  ;;  %v4129_v39 = vsel %vm4126_vm14, %v4128_v47, %v4124_v18  ;;  %v4663_v24 = vsel %vm331_vm10, %v4582_v58, 0.0  ;;  %v4605_v60 = vrot.slane %v4604_v63, 2  ;;  %v3868_v58 = vpop.f32.mrf.mxu2 }
 0x6af   :  { %v4282_v61 = vmul.f32 %v6104_v2, %v9762_v59  ;;  %vm4287_vm1 = vweird.f32 %v6104_v2  ;;  %v6106_v16 = vpop.eup %6105  ;;  %v4541_v59 = vmul.f32 %v4144_v3, %v9668_v51  ;;  %v4540_v11 = vmul.f32 %v4129_v39, %v9677_v7  ;;  %v10833_v51 = vld [vmem:[#allocation71_spill] sm:$0xff]  ;;  %v10834_v7 = vld [vmem:[#allocation70_spill] sm:$0xff] }
 0x6b0   :  { %vm4288_vm0 = vmor %vm4286_vm4, %vm4287_vm1  ;;  %v4030_v1 = vadd.f32 1.0, %v6106_v16  ;;  %6109 = vpow2.f32 %v5459_v0  ;;  %v6108_v53 = vpop.eup %6107  ;;  %v4613_v55 = vadd.f32 %v4612_v38, %v4611_v22  ;;  %v4606_v32 = vadd.f32 %v4605_v60, %v4604_v63 }
 0x6b1   :  { %v4283_v25 = vsub.f32 1.0, %v4282_v61  ;;  %v4573_v28 = vmul.f32 %v4541_v59, %v10833_v51  ;;  %v9843_v8 = vadd.f32 1.0, %v6108_v53  ;;  %v4649_v31 = vadd.f32 %v4648_v23, %v9627_v14 }
 0x6b2   :  { %6111 = vrcp.f32 %v4030_v1  ;;  %v4614_v19 = vrot.slane %v4613_v55, 2  ;;  %v4607_v26 = vrot.slane %v4606_v32, 1  ;;  %v4657_v52 = vrot.slane %v9689_v57, 4 }
 0x6b3   :  { %v4284_v30 = vmul.f32 %v6104_v2, %v4283_v25  ;;  %6113 = vrcp.f32 %v9843_v8  ;;  %v4619_v29 = vsel %vm331_vm10, %v4573_v28, 0.0  ;;  %v3890_v25 = vpop.f32.mrf.mxu3  ;;  %v4650_v27 = vrot.slane %v4649_v31, 2 }
 0x6b4   :  { %v9860_v14 = vadd.f32 %v9606_v44, %v3890_v25  ;;  %vm4151_vm8 = vweird.f32 %v4030_v1  ;;  %v4157_v42 = vand.u32 2147483648, %v4030_v1  ;;  %v4155_v4 = vand.u32 2147483647, %v4030_v1 }
 0x6b5   :  { %v4285_v48 = vadd.f32 %v6104_v2, %v4284_v30  ;;  %v4615_v30 = vadd.f32 %v4614_v19, %v4613_v55  ;;  %v4658_v47 = vadd.f32 %v4657_v52, %v9689_v57  ;;  %v9873_v41 = vadd.f32 %v4607_v26, %v4606_v32  ;;  %v10837_v32 = vld [vmem:[#allocation73_spill] sm:$0xff] }
 0x6b6   :  { %v6110_v15 = vpop.eup %6109  ;;  %v5469_v18 = vmul.f32 -1.442695, %v9860_v14  ;;  %v4158_v39 = vor.u32 1.1754944e-38, %v4157_v42  ;;  %vm4156_vm15 = vcmp.eq.f32.partialorder %v4155_v4, 8.507059e+37  ;;  %v9877_v0 = vadd.f32 %v9606_v44, %v3868_v58 }
 0x6b7   :  { %v4289_v6 = vsel %vm4288_vm0, %v6104_v2, %v4285_v48  ;;  %v4572_v2 = vmul.f32 %v4540_v11, %v10834_v7  ;;  %v9852_v61 = vadd.f32 1.0, %v6110_v15  ;;  %vm4301_vm3 = vweird.f32 %v9843_v8 }
 0x6b8   :  { %v4294_v50 = vsel %vm4291_vm6, %v4293_v40, %v4289_v6  ;;  %v6112_v21 = vpop.eup %6111  ;;  %v4651_v6 = vadd.f32 %v4650_v27, %v4649_v31  ;;  %v5460_v38 = vmul.f32 -1.442695, %v9877_v0  ;;  %v4307_v52 = vand.u32 2147483648, %v9843_v8 }
 0x6b9   :  { %v4551_v56 = vmul.f32 %v4294_v50, %v9731_v45  ;;  %v4618_v62 = vsel %vm331_vm10, %v4572_v2, 0.0  ;;  %v4147_v49 = vmul.f32 %v6112_v21, %v4030_v1  ;;  %6115 = vrcp.f32 %v9852_v61  ;;  %v9856_v13 = vpop.eup %6113 }
 0x6ba   :  { %v4620_v54 = vadd.f32 %v4619_v29, %v4618_v62  ;;  %vm4152_vm13 = vweird.f32 %v6112_v21  ;;  %v4297_v34 = vmul.f32 %v9856_v13, %v9843_v8  ;;  %6117 = vpow2.f32 %v5469_v18 }
 0x6bb   :  { %v4583_v35 = vmul.f32 %v4551_v56, %v10832_v20  ;;  %v4148_v43 = vsub.f32 1.0, %v4147_v49  ;;  %vm9865_vm9 = vmor %vm4151_vm8, %vm4152_vm13  ;;  %v4616_v50 = vrot.slane %v4615_v30, 1  ;;  %v3893_v59 = vpop.f32.mrf.mxu3  ;;  %v4172_v57 = vand.u32 2147483648, %v9852_v61  ;;  %v3870_v49 = vpop.f32.mrf.mxu2 }
 0x6bc   :  { %v4621_v36 = vrot.slane %v4620_v54, 4  ;;  %v4298_v16 = vsub.f32 1.0, %v4297_v34  ;;  %v9880_v63 = vadd.f32 %v9606_v44, %v3893_v59  ;;  %v4659_v1 = vrot.slane %v4658_v47, 2 }
 0x6bd   :  { %v4664_v45 = vsel %vm331_vm10, %v4583_v35, 0.0  ;;  %v4149_v33 = vmul.f32 %v6112_v21, %v4148_v43  ;;  %v4170_v20 = vand.u32 2147483647, %v9852_v61  ;;  %v4652_v35 = vrot.slane %v4651_v6, 1 }
 0x6be   :  { %v9846_v9 = vadd.f32 %v4664_v45, %v4663_v24  ;;  %v4622_v22 = vadd.f32 %v4621_v36, %v4620_v54  ;;  %v5470_v24 = vmul.f32 -1.442695, %v9880_v63  ;;  %v4299_v45 = vmul.f32 %v9856_v13, %v4298_v16 }
 0x6bf   :  { %v4150_v46 = vadd.f32 %v6112_v21, %v4149_v33  ;;  %v6116_v37 = vpop.eup %6115  ;;  %vm4166_vm12 = vweird.f32 %v9852_v61  ;;  %v9888_v23 = vadd.f32 %v4616_v50, %v4615_v30  ;;  %v4173_v7 = vor.u32 1.1754944e-38, %v4172_v57  ;;  %v10838_v33 = vld [vmem:[#allocation74_spill] sm:$0xff] }
 0x6c0   :  { %v4162_v40 = vmul.f32 %v6116_v37, %v9852_v61  ;;  %vm4167_vm11 = vweird.f32 %v6116_v37  ;;  %v4623_v53 = vrot.slane %v4622_v22, 2  ;;  %v6118_v51 = vpop.eup %6117  ;;  %6119 = vpow2.f32 %v5460_v38 }
 0x6c1   :  { %v4154_v3 = vsel %vm9865_vm9, %v6112_v21, %v4150_v46  ;;  %vm4168_vm5 = vmor %vm4166_vm12, %vm4167_vm11  ;;  %v9890_v2 = vadd.f32 1.0, %v6118_v51  ;;  %v4660_v55 = vadd.f32 %v4659_v1, %v4658_v47  ;;  %vm4171_vm2 = vcmp.eq.f32.partialorder %v4170_v20, 8.507059e+37  ;;  %v10842_v46 = vld [vmem:[#allocation67_spill] sm:$0xff] }
 0x6c2   :  { %v4163_v17 = vsub.f32 1.0, %v4162_v40  ;;  %v4159_v56 = vsel %vm4156_vm15, %v4158_v39, %v4154_v3  ;;  %6121 = vpow2.f32 %v5470_v24  ;;  %v4754_v29 = vpack.c.bf16 %v9873_v41, %v9873_v41 }
 0x6c3   :  { %v4542_v28 = vmul.f32 %v4159_v56, %v9795_v10  ;;  %v4624_v10 = vadd.f32 %v4623_v53, %v4622_v22  ;;  %6123 = vrcp.f32 %v9890_v2  ;;  %v4300_v61 = vadd.f32 %v9856_v13, %v4299_v45  ;;  %v3895_v19 = vpop.f32.mrf.mxu3 }
 0x6c4   :  { %v4164_v11 = vmul.f32 %v6116_v37, %v4163_v17  ;;  %vm4302_vm1 = vweird.f32 %v9856_v13  ;;  %v9899_v54 = vadd.f32 %v4652_v35, %v4651_v6  ;;  %v4755_v43 = vpack.c.bf16 %v9888_v23, %v9888_v23 }
 0x6c5   :  { %v4574_v31 = vmul.f32 %v4542_v28, %v10837_v32  ;;  %v9904_v25 = vadd.f32 %v9606_v44, %v3870_v49  ;;  %v9907_v26 = vadd.f32 %v9606_v44, %v3895_v19  ;;  %v4661_v27 = vrot.slane %v4660_v55, 1  ;;  %vm9915_vm7 = vmor %vm4301_vm3, %vm4302_vm1 }
 0x6c6   :  { %v4165_v60 = vadd.f32 %v6116_v37, %v4164_v11  ;;  %v6120_v30 = vpop.eup %6119  ;;  %v4625_v36 = vrot.slane %v4624_v10, 1  ;;  %v4666_v42 = vrot.slane %v9846_v9, 4  ;;  %v4305_v4 = vand.u32 2147483647, %v9843_v8 }
 0x6c7   :  { %v5461_v34 = vmul.f32 -1.442695, %v9904_v25  ;;  %v4304_v48 = vsel %vm9915_vm7, %v9856_v13, %v4300_v61  ;;  %v9926_v3 = vadd.f32 1.0, %v6120_v30  ;;  %v5471_v8 = vmul.f32 -1.442695, %v9907_v26  ;;  %v10841_v61 = vld [vmem:[#allocation65_spill] sm:$0xff] }
 0x6c8   :  { %v4169_v15 = vsel %vm4168_vm5, %v6116_v37, %v4165_v60  ;;  %v6122_v18 = vpop.eup %6121  ;;  %v4627_v37 = vsel %vm331_vm10, %v4574_v31, 0.0  ;;  %v9931_v22 = vadd.f32 %v4661_v27, %v4660_v55  ;;  %v4308_v39 = vor.u32 1.1754944e-38, %v4307_v52 }
 0x6c9   :  { %v4174_v21 = vsel %vm4171_vm2, %v4173_v7, %v4169_v15  ;;  %v6124_v40 = vpop.eup %6123  ;;  %v9928_v6 = vadd.f32 1.0, %v6122_v18  ;;  %6125 = vpow2.f32 %v5461_v34  ;;  %v4667_v13 = vadd.f32 %v4666_v42, %v9846_v9 }
 0x6ca   :  { %v4543_v62 = vmul.f32 %v4174_v21, %v9829_v5  ;;  %v4312_v50 = vmul.f32 %v6124_v40, %v9890_v2  ;;  %6127 = vrcp.f32 %v9926_v3  ;;  %vm4306_vm4 = vcmp.eq.f32.partialorder %v4305_v4, 8.507059e+37 }
 0x6cb   :  { %6129 = vrcp.f32 %v9928_v6  ;;  %v9937_v17 = vunpack.c.l.b16 %v4754_v29  ;;  %v9939_v58 = vadd.f32 %v4625_v36, %v4624_v10  ;;  %v4309_v59 = vsel %vm4306_vm4, %v4308_v39, %v4304_v48  ;;  %v3898_v57 = vpop.f32.mrf.mxu3 }
 0x6cc   :  { %v4575_v5 = vmul.f32 %v4543_v62, %v10838_v33  ;;  %v4313_v56 = vsub.f32 1.0, %v4312_v50  ;;  %v4759_v1 = vpack.c.bf16 %v9899_v54, %v9899_v54  ;;  %v4320_v11 = vand.u32 2147483647, %v9890_v2 }
 0x6cd   :  { %v4322_v20 = vand.u32 2147483648, %v9890_v2  ;;  %6131 = vpow2.f32 %v5471_v8  ;;  %vm4317_vm0 = vweird.f32 %v6124_v40  ;;  %v9946_v53 = vadd.f32 %v9606_v44, %v3898_v57 }
 0x6ce   :  { %v4628_v47 = vsel %vm331_vm10, %v4575_v5, 0.0  ;;  %v4314_v35 = vmul.f32 %v6124_v40, %v4313_v56  ;;  %v9948_v24 = vunpack.c.l.b16 %v4755_v43  ;;  %v4760_v51 = vpack.c.bf16 %v9931_v22, %v9931_v22 }
 0x6cf   :  { %v4629_v41 = vadd.f32 %v4628_v47, %v4627_v37  ;;  %v6126_v38 = vpop.eup %6125  ;;  %v4668_v28 = vrot.slane %v4667_v13, 2  ;;  %v4552_v45 = vmul.f32 %v4309_v59, %v9812_v12  ;;  %v4756_v23 = vpack.c.bf16 %v9939_v58, %v9939_v58 }
 0x6d0   :  { %v6128_v60 = vpop.eup %6127  ;;  %v4315_v7 = vadd.f32 %v6124_v40, %v4314_v35  ;;  %vm4316_vm14 = vweird.f32 %v9890_v2  ;;  %v9956_v55 = vadd.f32 1.0, %v6126_v38  ;;  %vm4321_vm13 = vcmp.eq.f32.partialorder %v4320_v11, 8.507059e+37 }
 0x6d1   :  { %v4630_v16 = vrot.slane %v4629_v41, 4  ;;  %v9958_v44 = vpop.eup %6129  ;;  %vm4318_vm6 = vmor %vm4316_vm14, %vm4317_vm0  ;;  %v4323_v15 = vor.u32 1.1754944e-38, %v4322_v20  ;;  %v4177_v29 = vmul.f32 %v6128_v60, %v9926_v3  ;;  %v5472_v10 = vmul.f32 -1.442695, %v9946_v53 }
 0x6d2   :  { %v4319_v12 = vsel %vm4318_vm6, %v6124_v40, %v4315_v7  ;;  %v4327_v32 = vmul.f32 %v9958_v44, %v9928_v6  ;;  %6133 = vrcp.f32 %v9956_v55  ;;  %v9965_v2 = vadd.f32 %v4668_v28, %v4667_v13 }
 0x6d3   :  { %v4631_v9 = vadd.f32 %v4630_v16, %v4629_v41  ;;  %v6132_v31 = vpop.eup %6131  ;;  %v4584_v62 = vmul.f32 %v4552_v45, %v10841_v61  ;;  %v4324_v49 = vsel %vm4321_vm13, %v4323_v15, %v4319_v12  ;;  %v4178_v19 = vsub.f32 1.0, %v4177_v29  ;;  %v3900_v5 = vpop.f32.mrf.mxu3 }
 0x6d4   :  { %v4553_v43 = vmul.f32 %v4324_v49, %v9860_v14  ;;  %v4185_v27 = vand.u32 2147483647, %v9926_v3  ;;  %v4187_v52 = vand.u32 2147483648, %v9926_v3  ;;  %v4328_v33 = vsub.f32 1.0, %v4327_v32 }
 0x6d5   :  { %v4632_v21 = vrot.slane %v4631_v9, 2  ;;  %v4179_v30 = vmul.f32 %v6128_v60, %v4178_v19  ;;  %vm4182_vm8 = vweird.f32 %v6128_v60  ;;  %v9971_v36 = vadd.f32 1.0, %v6132_v31 }
 0x6d6   :  { %6135 = vpow2.f32 %v5472_v10  ;;  %v4585_v4 = vmul.f32 %v4553_v43, %v10842_v46  ;;  %v4329_v34 = vmul.f32 %v9958_v44, %v4328_v33  ;;  %v4335_v18 = vand.u32 2147483647, %v9928_v6 }
 0x6d7   :  { %v4633_v42 = vadd.f32 %v4632_v21, %v4631_v9  ;;  %v4180_v37 = vadd.f32 %v6128_v60, %v4179_v30  ;;  %vm4181_vm9 = vweird.f32 %v9926_v3  ;;  %v4337_v14 = vand.u32 2147483648, %v9928_v6 }
 0x6d8   :  { %6137 = vrcp.f32 %v9971_v36  ;;  %v6134_v48 = vpop.eup %6133  ;;  %v4672_v47 = vsel %vm331_vm10, %v4584_v62, 0.0  ;;  %v4673_v40 = vsel %vm331_vm10, %v4585_v4, 0.0  ;;  %vm9981_vm15 = vmor %vm4181_vm9, %vm4182_vm8  ;;  %vm4331_vm11 = vweird.f32 %v9928_v6  ;;  %v10014_v6 = vld [vmem:[%s10396_s13 + $0x1] ss:$0 sm:$0xff] }
 0x6d9   :  { %vm4332_vm12 = vweird.f32 %v9958_v44  ;;  %v4674_v8 = vadd.f32 %v4673_v40, %v4672_v47  ;;  %v4184_v3 = vsel %vm9981_vm15, %v6128_v60, %v4180_v37  ;;  %v4330_v39 = vadd.f32 %v9958_v44, %v4329_v34 }
 0x6da   :  { %v4192_v50 = vmul.f32 %v6134_v48, %v9956_v55  ;;  %v4634_v13 = vrot.slane %v4633_v42, 1  ;;  %vm4186_vm5 = vcmp.eq.f32.partialorder %v4185_v27, 8.507059e+37  ;;  %v4188_v16 = vor.u32 1.1754944e-38, %v4187_v52  ;;  %vm10001_vm3 = vmor %vm4331_vm11, %vm4332_vm12 }
 0x6db   :  { %vm9991_vm2 = vcmp.eq.f32.partialorder %v4335_v18, 8.507059e+37  ;;  %v4675_v57 = vrot.slane %v4674_v8, 4  ;;  %v4338_v11 = vor.u32 1.1754944e-38, %v4337_v14  ;;  %vm4196_vm1 = vweird.f32 %v9956_v55  ;;  %v3903_v60 = vpop.f32.mrf.mxu3 }
 0x6dc   :  { %v6136_v56 = vpop.eup %6135  ;;  %v4200_v20 = vand.u32 2147483647, %v9956_v55  ;;  %v4189_v9 = vsel %vm4186_vm5, %v4188_v16, %v4184_v3  ;;  %v4193_v38 = vsub.f32 1.0, %v4192_v50  ;;  %v4202_v28 = vand.u32 2147483648, %v9956_v55  ;;  %v10851_v55 = vld [vmem:[#allocation64_spill] sm:$0xff] }
 0x6dd   :  { %v10006_v45 = vadd.f32 1.0, %v6136_v56  ;;  %v4676_v15 = vadd.f32 %v4675_v57, %v4674_v8  ;;  %v4334_v29 = vsel %vm10001_vm3, %v9958_v44, %v4330_v39  ;;  %v10017_v10 = vadd.f32 %v10014_v6, %v3900_v5 }
 0x6de   :  { %v6138_v7 = vpop.eup %6137  ;;  %v10020_v21 = vadd.f32 %v10014_v6, %v3903_v60  ;;  %v4635_v12 = vadd.f32 %v4634_v13, %v4633_v42  ;;  %v4194_v32 = vmul.f32 %v6134_v48, %v4193_v38  ;;  %vm4197_vm7 = vweird.f32 %v6134_v48  ;;  %v10853_v13 = vld [vmem:[#allocation61_spill] sm:$0xff] }
 0x6df   :  { %v4342_v31 = vmul.f32 %v6138_v7, %v9971_v36  ;;  %v4677_v61 = vrot.slane %v4676_v15, 2  ;;  %vm10023_vm4 = vcmp.eq.f32.partialorder %v4200_v20, 8.507059e+37  ;;  %v4350_v44 = vand.u32 2147483647, %v9971_v36  ;;  %vm4198_vm0 = vmor %vm4196_vm1, %vm4197_vm7 }
 0x6e0   :  { %6139 = vrcp.f32 %v10006_v45  ;;  %v4544_v49 = vmul.f32 %v4189_v9, %v9877_v0  ;;  %v4339_v19 = vsel %vm9991_vm2, %v4338_v11, %v4334_v29  ;;  %v4195_v43 = vadd.f32 %v6134_v48, %v4194_v32  ;;  %v10854_v29 = vld [vmem:[#allocation69_spill] sm:$0xff] }
 0x6e1   :  { %v4343_v27 = vsub.f32 1.0, %v4342_v31  ;;  %v4203_v52 = vor.u32 1.1754944e-38, %v4202_v28  ;;  %v4352_v33 = vand.u32 2147483648, %v9971_v36  ;;  %v5473_v5 = vmul.f32 -1.442695, %v10017_v10 }
 0x6e2   :  { %v5474_v30 = vmul.f32 -1.442695, %v10020_v21  ;;  %v4678_v42 = vadd.f32 %v4677_v61, %v4676_v15  ;;  %v4199_v46 = vsel %vm4198_vm0, %v6134_v48, %v4195_v43  ;;  %vm4347_vm14 = vweird.f32 %v6138_v7 }
 0x6e3   :  { %v4344_v4 = vmul.f32 %v6138_v7, %v4343_v27  ;;  %v4554_v0 = vmul.f32 %v4339_v19, %v9880_v63  ;;  %v4204_v34 = vsel %vm10023_vm4, %v4203_v52, %v4199_v46  ;;  %vm4346_vm6 = vweird.f32 %v9971_v36  ;;  %v3905_v47 = vpop.f32.mrf.mxu3  ;;  %v10852_v36 = vld [vmem:[#allocation76_spill] sm:$0xff] }
 0x6e4   :  { %6141 = vpow2.f32 %v5473_v5  ;;  %v4576_v18 = vmul.f32 %v4544_v49, %v10851_v55  ;;  %v4545_v37 = vmul.f32 %v4204_v34, %v9904_v25  ;;  %v4670_v48 = vrot.slane %v9965_v2, 1  ;;  %vm4348_vm13 = vmor %vm4346_vm6, %vm4347_vm14 }
 0x6e5   :  { %v4345_v14 = vadd.f32 %v6138_v7, %v4344_v4  ;;  %6143 = vpow2.f32 %v5474_v30  ;;  %vm4351_vm8 = vcmp.eq.f32.partialorder %v4350_v44, 8.507059e+37  ;;  %v4353_v63 = vor.u32 1.1754944e-38, %v4352_v33 }
 0x6e6   :  { %v10043_v40 = vpop.eup %6139  ;;  %v10047_v41 = vadd.f32 %v10014_v6, %v3905_v47  ;;  %v4679_v8 = vrot.slane %v4678_v42, 1  ;;  %v4577_v3 = vmul.f32 %v4545_v37, %v10852_v36  ;;  %v4757_v50 = vpack.c.bf16 %v4635_v12, %v4635_v12 }
 0x6e7   :  { %v4349_v39 = vsel %vm4348_vm13, %v6138_v7, %v4345_v14  ;;  %v4357_v25 = vmul.f32 %v10043_v40, %v10006_v45  ;;  %v4586_v16 = vmul.f32 %v4554_v0, %v10853_v13  ;;  %v4636_v57 = vsel %vm331_vm10, %v4576_v18, 0.0 }
 0x6e8   :  { %v4354_v59 = vsel %vm4351_vm8, %v4353_v63, %v4349_v39  ;;  %v5475_v56 = vmul.f32 -1.442695, %v10047_v41  ;;  %v4637_v11 = vsel %vm331_vm10, %v4577_v3, 0.0  ;;  %v4788_v38 = vunpack.c.l.b16 %v4756_v23 }
 0x6e9   :  { %v4555_v20 = vmul.f32 %v4354_v59, %v9907_v26  ;;  %v4358_v9 = vsub.f32 1.0, %v4357_v25  ;;  %v10061_v28 = vadd.f32 %v4670_v48, %v9965_v2  ;;  %v4638_v60 = vadd.f32 %v4637_v11, %v4636_v57 }
 0x6ea   :  { %v6142_v35 = vpop.eup %6141  ;;  %6145 = vpow2.f32 %v5475_v56  ;;  %v4680_v15 = vadd.f32 %v4679_v8, %v4678_v42  ;;  %v4789_v26 = vunpack.c.l.b16 %v4757_v50  ;;  %v4681_v61 = vsel %vm331_vm10, %v4586_v16, 0.0 }
 0x6eb   :  { %v6144_v7 = vpop.eup %6143  ;;  %v4587_v12 = vmul.f32 %v4555_v20, %v10854_v29  ;;  %v4359_v32 = vmul.f32 %v10043_v40, %v4358_v9  ;;  %v10065_v31 = vadd.f32 1.0, %v6142_v35  ;;  %v4639_v62 = vrot.slane %v4638_v60, 4  ;;  %v3908_v2 = vpop.f32.mrf.mxu3 }
 0x6ec   :  { %v10068_v44 = vadd.f32 1.0, %v6144_v7  ;;  %vm4362_vm9 = vweird.f32 %v10043_v40  ;;  %vm10855_vm15 = vcmask 1041409   ;;  %v4367_v27 = vand.u32 2147483648, %v10006_v45 }
 0x6ed   :  { %v4682_v58 = vsel %vm331_vm10, %v4587_v12, 0.0  ;;  %v4360_v23 = vadd.f32 %v10043_v40, %v4359_v32  ;;  %6147 = vrcp.f32 %v10065_v31  ;;  %v4802_v49 = vsel %vm10855_vm15, %v9948_v24, %v9937_v17  ;;  %v10862_v32 = vld [vmem:[#allocation72_spill] sm:$0xff] }
 0x6ee   :  { %v4640_v19 = vadd.f32 %v4639_v62, %v4638_v60  ;;  %v4683_v43 = vadd.f32 %v4682_v58, %v4681_v61  ;;  %v4762_v52 = vpack.c.bf16 %v4680_v15, %v4680_v15  ;;  %vm4361_vm11 = vweird.f32 %v10006_v45 }
 0x6ef   :  { %v4365_v33 = vand.u32 2147483647, %v10006_v45  ;;  %6149 = vrcp.f32 %v10068_v44  ;;  %v10084_v30 = vunpack.c.l.b16 %v4759_v1  ;;  %vm10856_vm12 = vcmask 1042434   ;;  %vm10089_vm5 = vmor %vm4361_vm11, %vm4362_vm9 }
 0x6f0   :  { %v6146_v5 = vpop.eup %6145  ;;  %v4803_v42 = vsel %vm10856_vm12, %v4788_v38, %v4802_v49  ;;  %v4641_v17 = vrot.slane %v4640_v19, 2  ;;  %v4684_v24 = vrot.slane %v4683_v43, 4  ;;  %v10096_v45 = vunpack.c.l.b16 %v4760_v51 }
 0x6f1   :  { %v4761_v54 = vpack.c.bf16 %v10061_v28, %v10061_v28  ;;  %vm10859_vm2 = vcmask 1043459   ;;  %v4364_v4 = vsel %vm10089_vm5, %v10043_v40, %v4360_v23  ;;  %v4368_v55 = vor.u32 1.1754944e-38, %v4367_v27 }
 0x6f2   :  { %v4804_v1 = vsel %vm10859_vm2, %v4789_v26, %v4803_v42  ;;  %v4642_v0 = vadd.f32 %v4641_v17, %v4640_v19  ;;  %v4685_v34 = vadd.f32 %v4684_v24, %v4683_v43  ;;  %v10104_v18 = vadd.f32 1.0, %v6146_v5 }
 0x6f3   :  { %v6148_v37 = vpop.eup %6147  ;;  %v4794_v14 = vunpack.c.l.b16 %v4762_v52  ;;  %vm4366_vm1 = vcmp.eq.f32.partialorder %v4365_v33, 8.507059e+37  ;;  %vm4376_vm3 = vweird.f32 %v10065_v31  ;;  %v10108_v22 = vadd.f32 %v10014_v6, %v3908_v2  ;;  %v3910_v3 = vpop.f32.mrf.mxu3 }
 0x6f4   :  { %v4643_v51 = vrot.slane %v4642_v0, 1  ;;  %v4686_v47 = vrot.slane %v4685_v34, 2  ;;  %v4369_v48 = vsel %vm4366_vm1, %v4368_v55, %v4364_v4  ;;  %v4372_v63 = vmul.f32 %v6148_v37, %v10065_v31  ;;  %v10868_v4 = vld [vmem:[#allocation79_spill] sm:$0xff] }
 0x6f5   :  { %v6150_v8 = vpop.eup %6149  ;;  %v4380_v40 = vand.u32 2147483647, %v10065_v31  ;;  %v4382_v36 = vand.u32 2147483648, %v10065_v31  ;;  %vm4391_vm7 = vweird.f32 %v10068_v44  ;;  %6151 = vrcp.f32 %v10104_v18 }
 0x6f6   :  { %v4644_v39 = vadd.f32 %v4643_v51, %v4642_v0  ;;  %v4687_v25 = vadd.f32 %v4686_v47, %v4685_v34  ;;  %v4373_v50 = vsub.f32 1.0, %v4372_v63  ;;  %v4387_v13 = vmul.f32 %v6150_v8, %v10068_v44 }
 0x6f7   :  { %v4556_v16 = vmul.f32 %v4369_v48, %v9946_v53  ;;  %vm4377_vm4 = vweird.f32 %v6148_v37  ;;  %v4395_v59 = vand.u32 2147483647, %v10068_v44  ;;  %v5476_v56 = vmul.f32 -1.442695, %v10108_v22 }
 0x6f8   :  { %v4758_v57 = vpack.c.bf16 %v4644_v39, %v4644_v39  ;;  %v4688_v11 = vrot.slane %v4687_v25, 1  ;;  %v4374_v20 = vmul.f32 %v6148_v37, %v4373_v50  ;;  %v4388_v9 = vsub.f32 1.0, %v4387_v13  ;;  %vm4378_vm6 = vmor %vm4376_vm3, %vm4377_vm4 }
 0x6f9   :  { %vm10119_vm0 = vcmp.eq.f32.partialorder %v4380_v40, 8.507059e+37  ;;  %vm4392_vm14 = vweird.f32 %v6150_v8  ;;  %v4397_v38 = vand.u32 2147483648, %v10068_v44  ;;  %v10125_v60 = vadd.f32 %v10014_v6, %v3910_v3 }
 0x6fa   :  { %v4790_v53 = vunpack.c.l.b16 %v4758_v57  ;;  %v4689_v7 = vadd.f32 %v4688_v11, %v4687_v25  ;;  %v4375_v15 = vadd.f32 %v6148_v37, %v4374_v20  ;;  %v4389_v29 = vmul.f32 %v6150_v8, %v4388_v9  ;;  %vm10138_vm8 = vmor %vm4391_vm7, %vm4392_vm14  ;;  %v10872_v11 = vld [vmem:[#allocation77_spill] sm:$0xff] }
 0x6fb   :  { %v6152_v12 = vpop.eup %6151  ;;  %v4588_v26 = vmul.f32 %v4556_v16, %v10862_v32  ;;  %v4383_v61 = vor.u32 1.1754944e-38, %v4382_v36  ;;  %6153 = vpow2.f32 %v5476_v56  ;;  %v5477_v62 = vmul.f32 -1.442695, %v10125_v60  ;;  %v3913_v52 = vpop.f32.mrf.mxu3 }
 0x6fc   :  { %vm10863_vm13 = vcmask 1044484   ;;  %v4763_v23 = vpack.c.bf16 %v4689_v7, %v4689_v7  ;;  %v4379_v2 = vsel %vm4378_vm6, %v6148_v37, %v4375_v15  ;;  %v4390_v49 = vadd.f32 %v6150_v8, %v4389_v29 }
 0x6fd   :  { %v4805_v58 = vsel %vm10863_vm13, %v4790_v53, %v4804_v1  ;;  %v4384_v19 = vsel %vm10119_vm0, %v4383_v61, %v4379_v2  ;;  %v4398_v31 = vor.u32 1.1754944e-38, %v4397_v38  ;;  %v4402_v27 = vmul.f32 %v6152_v12, %v10104_v18 }
 0x6fe   :  { %6155 = vpow2.f32 %v5477_v62  ;;  %v4795_v33 = vunpack.c.l.b16 %v4763_v23  ;;  %v4557_v5 = vmul.f32 %v4384_v19, %v10017_v10  ;;  %v4394_v42 = vsel %vm10138_vm8, %v6150_v8, %v4390_v49 }
 0x6ff   :  { %v10147_v17 = vadd.f32 %v10014_v6, %v3913_v52  ;;  %vm4396_vm9 = vcmp.eq.f32.partialorder %v4395_v59, 8.507059e+37  ;;  %v4403_v44 = vsub.f32 1.0, %v4402_v27  ;;  %v4410_v24 = vand.u32 2147483647, %v10104_v18 }
 0x700   :  { %vm10866_vm15 = vcmask 1045509   ;;  %vm10867_vm11 = vcmask 1041409   ;;  %v4589_v0 = vmul.f32 %v4557_v5, %v10868_v4  ;;  %v4399_v34 = vsel %vm4396_vm9, %v4398_v31, %v4394_v42 }
 0x701   :  { %v4806_v46 = vsel %vm10866_vm15, %v10084_v30, %v4805_v58  ;;  %v10153_v1 = vsel %vm10867_vm11, %v4795_v33, %v4794_v14  ;;  %v4412_v10 = vand.u32 2147483648, %v10104_v18  ;;  %v6154_v55 = vpop.eup %6153  ;;  %v4404_v37 = vmul.f32 %v6152_v12, %v4403_v44 }
 0x702   :  { %vm4407_vm12 = vweird.f32 %v6152_v12  ;;  %v5478_v51 = vmul.f32 -1.442695, %v10147_v17  ;;  %vm10869_vm5 = vcmask 1046534   ;;  %v4793_v30 = vunpack.c.l.b16 %v4761_v54 }
 0x703   :  { %v4807_v47 = vsel %vm10869_vm5, %v10096_v45, %v4806_v46  ;;  %v4690_v14 = vsel %vm331_vm10, %v4588_v26, 0.0  ;;  %v4691_v48 = vsel %vm331_vm10, %v4589_v0, 0.0  ;;  %v4558_v40 = vmul.f32 %v4399_v34, %v10020_v21  ;;  %v3915_v25 = vpop.f32.mrf.mxu3  ;;  %v10871_v21 = vld [vmem:[#allocation75_spill] sm:$0xff] }
 0x704   :  { %v6156_v63 = vpop.eup %6155  ;;  %v4692_v8 = vadd.f32 %v4691_v48, %v4690_v14  ;;  %v4405_v36 = vadd.f32 %v6152_v12, %v4404_v37  ;;  %vm4406_vm2 = vweird.f32 %v10104_v18  ;;  %v4413_v3 = vor.u32 1.1754944e-38, %v4412_v10 }
 0x705   :  { %vm4408_vm1 = vmor %vm4406_vm2, %vm4407_vm12  ;;  %6157 = vpow2.f32 %v5478_v51  ;;  %vm10870_vm3 = vcmask 1047559   ;;  %vm4411_vm7 = vcmp.eq.f32.partialorder %v4410_v24, 8.507059e+37  ;;  %v10170_v54 = vadd.f32 1.0, %v6156_v63 }
 0x706   :  { %v10168_v45 = vsel %vm10870_vm3, %v4793_v30, %v4807_v47  ;;  %v4693_v39 = vrot.slane %v4692_v8, 4  ;;  %v4409_v28 = vsel %vm4408_vm1, %v6152_v12, %v4405_v36  ;;  %v10172_v13 = vadd.f32 1.0, %v6154_v55 }
 0x707   :  { %v4414_v50 = vsel %vm4411_vm7, %v4413_v3, %v4409_v28  ;;  %v4590_v59 = vmul.f32 %v4558_v40, %v10871_v21  ;;  %v10177_v56 = vadd.f32 %v10014_v6, %v3915_v25  ;;  %6159 = vrcp.f32 %v10170_v54 }
 0x708   :  { %v4694_v16 = vadd.f32 %v4693_v39, %v4692_v8  ;;  %v4559_v18 = vmul.f32 %v4414_v50, %v10047_v41  ;;  %6161 = vrcp.f32 %v10172_v13  ;;  %vm10873_vm4 = vcmask 1042434  }
 0x709   :  { %v5479_v35 = vmul.f32 -1.442695, %v10177_v56  ;;  %v4699_v53 = vsel %vm331_vm10, %v4590_v59, 0.0  ;;  %v4425_v30 = vand.u32 2147483647, %v10172_v13  ;;  %v4427_v14 = vand.u32 2147483648, %v10172_v13 }
 0x70a   :  { %v4695_v57 = vrot.slane %v4694_v16, 2  ;;  %v4591_v20 = vmul.f32 %v4559_v18, %v10872_v11  ;;  %v4442_v36 = vand.u32 2147483648, %v10170_v54  ;;  %vm10874_vm0 = vcmask 1043459  }
 0x70b   :  { %v6158_v9 = vpop.eup %6157  ;;  %6163 = vpow2.f32 %v5479_v35  ;;  %v3918_v12 = vpop.f32.mrf.mxu3  ;;  %vm4421_vm14 = vweird.f32 %v10172_v13  ;;  %vm10231_vm13 = vcmp.eq.f32.partialorder %v4425_v30, 8.507059e+37  ;;  %v4428_v21 = vor.u32 1.1754944e-38, %v4427_v14 }
 0x70c   :  { %v4696_v38 = vadd.f32 %v4695_v57, %v4694_v16  ;;  %v4700_v7 = vsel %vm331_vm10, %v4591_v20, 0.0  ;;  %v10185_v15 = vadd.f32 1.0, %v6158_v9  ;;  %v10193_v23 = vadd.f32 %v10014_v6, %v3918_v12 }
 0x70d   :  { %v4701_v41 = vadd.f32 %v4700_v7, %v4699_v53  ;;  %v10188_v26 = vpop.eup %6159  ;;  %vm4436_vm8 = vweird.f32 %v10170_v54  ;;  %v4440_v57 = vand.u32 2147483647, %v10170_v54  ;;  %v4443_v11 = vor.u32 1.1754944e-38, %v4442_v36  ;;  %v10887_v36 = vld [vmem:[#allocation82_spill] sm:$0xff] }
 0x70e   :  { %v4697_v29 = vrot.slane %v4696_v38, 1  ;;  %6165 = vrcp.f32 %v10185_v15  ;;  %v10190_v62 = vpop.eup %6161  ;;  %v4432_v43 = vmul.f32 %v10188_v26, %v10170_v54  ;;  %v5480_v31 = vmul.f32 -1.442695, %v10193_v23 }
 0x70f   :  { %v4702_v32 = vrot.slane %v4701_v41, 4  ;;  %v4417_v44 = vmul.f32 %v10190_v62, %v10172_v13  ;;  %vm4437_vm6 = vweird.f32 %v10188_v26  ;;  %vm4422_vm9 = vweird.f32 %v10190_v62 }
 0x710   :  { %v4698_v61 = vadd.f32 %v4697_v29, %v4696_v38  ;;  %6167 = vpow2.f32 %v5480_v31  ;;  %v4433_v4 = vsub.f32 1.0, %v4432_v43  ;;  %vm10243_vm15 = vmor %vm4436_vm8, %vm4437_vm6  ;;  %v4455_v38 = vand.u32 2147483647, %v10185_v15 }
 0x711   :  { %v4703_v58 = vadd.f32 %v4702_v32, %v4701_v41  ;;  %v6164_v49 = vpop.eup %6163  ;;  %v4418_v55 = vsub.f32 1.0, %v4417_v44  ;;  %v4457_v53 = vand.u32 2147483648, %v10185_v15  ;;  %vm10265_vm5 = vmor %vm4421_vm14, %vm4422_vm9  ;;  %vm4441_vm1 = vcmp.eq.f32.partialorder %v4440_v57, 8.507059e+37 }
 0x712   :  { %v4764_v2 = vpack.c.bf16 %v4698_v61, %v4698_v61  ;;  %v10198_v52 = vadd.f32 1.0, %v6164_v49  ;;  %vm4451_vm3 = vweird.f32 %v10185_v15 }
 0x713   :  { %v4704_v19 = vrot.slane %v4703_v58, 2  ;;  %v3920_v24 = vpop.f32.mrf.mxu3  ;;  %v4419_v3 = vmul.f32 %v10190_v62, %v4418_v55  ;;  %v4458_v44 = vor.u32 1.1754944e-38, %v4457_v53 }
 0x714   :  { %v4796_v27 = vunpack.c.l.b16 %v4764_v2  ;;  %v10200_v33 = vpop.eup %6165  ;;  %6169 = vrcp.f32 %v10198_v52  ;;  %v10210_v10 = vadd.f32 %v10014_v6, %v3920_v24  ;;  %vm4466_vm2 = vweird.f32 %v10198_v52 }
 0x715   :  { %v4705_v5 = vadd.f32 %v4704_v19, %v4703_v58  ;;  %v4447_v0 = vmul.f32 %v10200_v33, %v10185_v15  ;;  %v4420_v9 = vadd.f32 %v10190_v62, %v4419_v3  ;;  %vm4452_vm11 = vweird.f32 %v10200_v33 }
 0x716   :  { %v4810_v42 = vsel %vm10873_vm4, %v4796_v27, %v10153_v1  ;;  %v6168_v37 = vpop.eup %6167  ;;  %v4434_v1 = vmul.f32 %v10188_v26, %v4433_v4  ;;  %v5481_v47 = vmul.f32 -1.442695, %v10210_v10  ;;  %v4472_v58 = vand.u32 2147483648, %v10198_v52  ;;  %vm10285_vm4 = vmor %vm4451_vm3, %vm4452_vm11 }
 0x717   :  { %v4706_v46 = vrot.slane %v4705_v5, 1  ;;  %v4448_v48 = vsub.f32 1.0, %v4447_v0  ;;  %v10216_v63 = vadd.f32 1.0, %v6168_v37  ;;  %v4470_v49 = vand.u32 2147483647, %v10198_v52 }
 0x718   :  { %6171 = vpow2.f32 %v5481_v47  ;;  %v4435_v50 = vadd.f32 %v10188_v26, %v4434_v1  ;;  %v4424_v43 = vsel %vm10265_vm5, %v10190_v62, %v4420_v9  ;;  %v4473_v24 = vor.u32 1.1754944e-38, %v4472_v58 }
 0x719   :  { %v4707_v34 = vadd.f32 %v4706_v46, %v4705_v5  ;;  %6173 = vrcp.f32 %v10216_v63  ;;  %v4449_v59 = vmul.f32 %v10200_v33, %v4448_v48  ;;  %v4429_v4 = vsel %vm10231_vm13, %v4428_v21, %v4424_v43 }
 0x71a   :  { %v10218_v8 = vpop.eup %6169  ;;  %v4439_v54 = vsel %vm10243_vm15, %v10188_v26, %v4435_v50  ;;  %vm4471_vm14 = vcmp.eq.f32.partialorder %v4470_v49, 8.507059e+37  ;;  %v4487_v37 = vand.u32 2147483648, %v10216_v63  ;;  %vm4481_vm8 = vweird.f32 %v10216_v63  ;;  %v10888_v50 = vld [vmem:[#allocation78_spill] sm:$0xff] }
 0x71b   :  { %v4765_v51 = vpack.c.bf16 %v4707_v34, %v4707_v34  ;;  %v4462_v39 = vmul.f32 %v10218_v8, %v10198_v52  ;;  %v3923_v28 = vpop.f32.mrf.mxu3  ;;  %vm4467_vm12 = vweird.f32 %v10218_v8  ;;  %v4450_v32 = vadd.f32 %v10200_v33, %v4449_v59  ;;  %v10889_v59 = vld [vmem:[#allocation84_spill] sm:$0xff]  ;;  %v10891_v49 = vld [vmem:[#allocation66_spill] sm:$0xff] }
 0x71c   :  { %v10240_v20 = vadd.f32 %v10014_v6, %v3923_v28  ;;  %vm10278_vm7 = vmor %vm4466_vm2, %vm4467_vm12  ;;  %v4444_v27 = vsel %vm4441_vm1, %v4443_v11, %v4439_v54  ;;  %v4560_v14 = vmul.f32 %v4429_v4, %v10108_v22  ;;  %v4488_v28 = vor.u32 1.1754944e-38, %v4487_v37 }
 0x71d   :  { %v4797_v40 = vunpack.c.l.b16 %v4765_v51  ;;  %v4463_v18 = vsub.f32 1.0, %v4462_v39  ;;  %v4561_v34 = vmul.f32 %v4444_v27, %v10125_v60 }
 0x71e   :  { %v6172_v41 = vpop.eup %6171  ;;  %v5482_v29 = vmul.f32 -1.442695, %v10240_v20  ;;  %v4592_v22 = vmul.f32 %v4560_v14, %v10888_v50 }
 0x71f   :  { %v10226_v25 = vsel %vm10874_vm0, %v4797_v40, %v4810_v42  ;;  %v4464_v7 = vmul.f32 %v10218_v8, %v4463_v18  ;;  %v6174_v12 = vpop.eup %6173  ;;  %v10259_v2 = vadd.f32 1.0, %v6172_v41  ;;  %vm10289_vm0 = vcmp.eq.f32.partialorder %v4455_v38, 8.507059e+37 }
 0x720   :  { %v4477_v19 = vmul.f32 %v6174_v12, %v10216_v63  ;;  %6175 = vpow2.f32 %v5482_v29  ;;  %v4454_v42 = vsel %vm10285_vm4, %v10200_v33, %v4450_v32  ;;  %vm4482_vm6 = vweird.f32 %v6174_v12 }
 0x721   :  { %v4465_v61 = vadd.f32 %v10218_v8, %v4464_v7  ;;  %6177 = vrcp.f32 %v10259_v2  ;;  %v4459_v33 = vsel %vm10289_vm0, %v4458_v44, %v4454_v42  ;;  %vm4483_vm13 = vmor %vm4481_vm8, %vm4482_vm6  ;;  %v4593_v3 = vmul.f32 %v4561_v34, %v10887_v36  ;;  %v5578_v34 = vld [vmem:[#allocation7 + $0x18] sm:$0xff] }
 0x722   :  { %v4478_v5 = vsub.f32 1.0, %v4477_v19  ;;  %v4562_v39 = vmul.f32 %v4459_v33, %v10147_v17  ;;  %v4502_v21 = vand.u32 2147483648, %v10259_v2  ;;  %v4500_v57 = vand.u32 2147483647, %v10259_v2  ;;  %v10890_v17 = vld [vmem:[#allocation83_spill] sm:$0xff]  ;;  %4838 = vmatpush.bf16.msrb.mxu1 %v5578_v34 }
 0x723   :  { %v3925_v31 = vpop.f32.mrf.mxu3  ;;  %v4469_v15 = vsel %vm10278_vm7, %v10218_v8, %v4465_v61  ;;  %v4709_v9 = vsel %vm331_vm10, %v4593_v3, 0.0  ;;  %vm4496_vm11 = vweird.f32 %v10259_v2  ;;  %v4708_v54 = vsel %vm331_vm10, %v4592_v22, 0.0  ;;  %v5577_v33 = vld [vmem:[#allocation7 + $0x10] sm:$0xff] }
 0x724   :  { %v10300_v46 = vadd.f32 %v10014_v6, %v3925_v31  ;;  %v4479_v0 = vmul.f32 %v6174_v12, %v4478_v5  ;;  %v4474_v55 = vsel %vm4471_vm14, %v4473_v24, %v4469_v15  ;;  %v4485_v6 = vand.u32 2147483647, %v10216_v63  ;;  %v10892_v31 = vld [vmem:[#allocation87_spill] sm:$0xff] }
 0x725   :  { %v4563_v60 = vmul.f32 %v4474_v55, %v10177_v56  ;;  %v4594_v35 = vmul.f32 %v4562_v39, %v10890_v17  ;;  %v4503_v29 = vor.u32 1.1754944e-38, %v4502_v21  ;;  %vm4501_vm5 = vcmp.eq.f32.partialorder %v4500_v57, 8.507059e+37 }
 0x726   :  { %v5483_v51 = vmul.f32 -1.442695, %v10300_v46  ;;  %v6176_v1 = vpop.eup %6175  ;;  %v4480_v47 = vadd.f32 %v6174_v12, %v4479_v0  ;;  %vm4486_vm9 = vcmp.eq.f32.partialorder %v4485_v6, 8.507059e+37  ;;  %v4710_v58 = vadd.f32 %v4709_v9, %v4708_v54  ;;  %4839 = vmatpush.bf16.msrb.mxu1 %v5577_v33  ;;  %v10894_v9 = vld [vmem:[#allocation90_spill] sm:$0xff]  ;;  %v5580_v33 = vld [vmem:[#allocation8 + $0x18] sm:$0xff] }
 0x727   :  { %v6178_v30 = vpop.eup %6177  ;;  %v10312_v48 = vadd.f32 1.0, %v6176_v1  ;;  %v4595_v18 = vmul.f32 %v4563_v60, %v10889_v59  ;;  %v10893_v59 = vld [vmem:[#allocation91_spill] sm:$0xff]  ;;  %vm10895_vm8 = vcmask 1044484  }
 0x728   :  { %6179 = vpow2.f32 %v5483_v51  ;;  %v4484_v8 = vsel %vm4483_vm13, %v6174_v12, %v4480_v47  ;;  %v4492_v40 = vmul.f32 %v6178_v30, %v10259_v2  ;;  %vm4497_vm15 = vweird.f32 %v6178_v30 }
 0x729   :  { %6181 = vrcp.f32 %v10312_v48  ;;  %v4489_v16 = vsel %vm4486_vm9, %v4488_v28, %v4484_v8  ;;  %vm4498_vm12 = vmor %vm4496_vm11, %vm4497_vm15  ;;  %v4718_v12 = vsel %vm331_vm10, %v4595_v18, 0.0  ;;  %v4711_v62 = vrot.slane %v4710_v58, 4 }
 0x72a   :  { %v4493_v63 = vsub.f32 1.0, %v4492_v40  ;;  %v4564_v38 = vmul.f32 %v4489_v16, %v10193_v23  ;;  %v4717_v23 = vsel %vm331_vm10, %v4594_v35, 0.0  ;;  %vm4511_vm1 = vweird.f32 %v10312_v48  ;;  %4951 = vmatpush.bf16.msra.mxu1 %v5580_v33 }
 0x72b   :  { %v4719_v13 = vadd.f32 %v4718_v12, %v4717_v23  ;;  %v4517_v15 = vand.u32 2147483648, %v10312_v48  ;;  %v4515_v24 = vand.u32 2147483647, %v10312_v48  ;;  %v4712_v47 = vadd.f32 %v4711_v62, %v4710_v58 }
 0x72c   :  { %v4494_v56 = vmul.f32 %v6178_v30, %v4493_v63  ;;  %v4596_v19 = vmul.f32 %v4564_v38, %v10891_v49  ;;  %vm10896_vm13 = vcmask 1045509   ;;  %vm10897_vm9 = vcmask 1046534  }
 0x72d   :  { %v4518_v1 = vor.u32 1.1754944e-38, %v4517_v15  ;;  %vm4516_vm7 = vcmp.eq.f32.partialorder %v4515_v24, 8.507059e+37  ;;  %v4713_v36 = vrot.slane %v4712_v47, 2  ;;  %vm10898_vm15 = vcmask 1047559   ;;  %v4867_v24 = vpop.f32.mrf.mxu2 }
 0x72e   :  { %v6180_v11 = vpop.eup %6179  ;;  %v4495_v53 = vadd.f32 %v6178_v30, %v4494_v56  ;;  %v4726_v5 = vsel %vm331_vm10, %v4596_v19, 0.0 }
 0x72f   :  { %v4055_v7 = vadd.f32 1.0, %v6180_v11  ;;  %v6182_v41 = vpop.eup %6181  ;;  %v4714_v21 = vadd.f32 %v4713_v36, %v4712_v47 }
 0x730   :  { %v4499_v32 = vsel %vm4498_vm12, %v6178_v30, %v4495_v53  ;;  %v4507_v61 = vmul.f32 %v6182_v41, %v10312_v48  ;;  %vm4512_vm2 = vweird.f32 %v6182_v41 }
 0x731   :  { %v4504_v26 = vsel %vm4501_vm5, %v4503_v29, %v4499_v32  ;;  %6183 = vrcp.f32 %v4055_v7  ;;  %vm4513_vm3 = vmor %vm4511_vm1, %vm4512_vm2  ;;  %v4532_v60 = vand.u32 2147483648, %v4055_v7  ;;  %v4530_v48 = vand.u32 2147483647, %v4055_v7 }
 0x732   :  { %v4565_v2 = vmul.f32 %v4504_v26, %v10210_v10  ;;  %v4508_v43 = vsub.f32 1.0, %v4507_v61  ;;  %v4720_v10 = vrot.slane %v4719_v13, 4  ;;  %vm4526_vm0 = vweird.f32 %v4055_v7 }
 0x733   :  { %v4533_v63 = vor.u32 1.1754944e-38, %v4532_v60  ;;  %vm4531_vm6 = vcmp.eq.f32.partialorder %v4530_v48, 8.507059e+37  ;;  %v4715_v35 = vrot.slane %v4714_v21, 1 }
 0x734   :  { %v4597_v27 = vmul.f32 %v4565_v2, %v10892_v31  ;;  %v4509_v52 = vmul.f32 %v6182_v41, %v4508_v43  ;;  %v4721_v30 = vadd.f32 %v4720_v10, %v4719_v13 }
 0x735   :  { %v4716_v29 = vadd.f32 %v4715_v35, %v4714_v21 }
 0x736   :  { %v4727_v42 = vsel %vm331_vm10, %v4597_v27, 0.0  ;;  %v4510_v44 = vadd.f32 %v6182_v41, %v4509_v52  ;;  %v4722_v28 = vrot.slane %v4721_v30, 2 }
 0x737   :  { %v6184_v4 = vpop.eup %6183  ;;  %v4728_v0 = vadd.f32 %v4727_v42, %v4726_v5  ;;  %v4766_v26 = vpack.c.bf16 %v4716_v29, %v4716_v29  ;;  %v5652_v29 = vld [vmem:[%s10401_s18 + $0x1] ss:$0 sm:$0xff] }
 0x738   :  { %v4514_v55 = vsel %vm4513_vm3, %v6182_v41, %v4510_v44  ;;  %v4522_v37 = vmul.f32 %v6184_v4, %v4055_v7  ;;  %vm4527_vm4 = vweird.f32 %v6184_v4  ;;  %v4723_v57 = vadd.f32 %v4722_v28, %v4721_v30 }
 0x739   :  { %v4729_v51 = vrot.slane %v4728_v0, 4  ;;  %v4519_v14 = vsel %vm4516_vm7, %v4518_v1, %v4514_v55  ;;  %vm4528_vm14 = vmor %vm4526_vm0, %vm4527_vm4  ;;  %v4798_v2 = vunpack.c.l.b16 %v4766_v26  ;;  %v4869_v55 = vpop.f32.mrf.mxu2 }
 0x73a   :  { %v4523_v6 = vsub.f32 1.0, %v4522_v37  ;;  %v4566_v3 = vmul.f32 %v4519_v14, %v10240_v20  ;;  %v4724_v53 = vrot.slane %v4723_v57, 1 }
 0x73b   :  { %v4730_v8 = vadd.f32 %v4729_v51, %v4728_v0  ;;  %v4812_v52 = vsel %vm10895_vm8, %v4798_v2, %v10226_v25 }
 0x73c   :  { %v4524_v40 = vmul.f32 %v6184_v4, %v4523_v6  ;;  %v4598_v18 = vmul.f32 %v4566_v3, %v10893_v59  ;;  %v4725_v12 = vadd.f32 %v4724_v53, %v4723_v57 }
 0x73d   :  { %v4731_v50 = vrot.slane %v4730_v8, 2 }
 0x73e   :  { %v4525_v39 = vadd.f32 %v6184_v4, %v4524_v40  ;;  %v4735_v20 = vsel %vm331_vm10, %v4598_v18, 0.0 }
 0x73f   :  { %v4732_v11 = vadd.f32 %v4731_v50, %v4730_v8 }
 0x740   :  { %v4529_v22 = vsel %vm4528_vm14, %v6184_v4, %v4525_v39  ;;  %v5651_v4 = vld [vmem:[%s10399_s16 + $0x1] ss:$0 sm:$0xff] }
 0x741   :  { %v4534_v16 = vsel %vm4531_vm6, %v4533_v63, %v4529_v22  ;;  %v4733_v41 = vrot.slane %v4732_v11, 1 }
 0x742   :  { %v4567_v56 = vmul.f32 %v4534_v16, %v10300_v46  ;;  %v4767_v46 = vpack.c.bf16 %v4725_v12, %v4725_v12 }
 0x743   :  { %v4734_v61 = vadd.f32 %v4733_v41, %v4732_v11  ;;  %v5581_v41 = vld [vmem:[#allocation10] sm:$0xff] }
 0x744   :  { %v4599_v17 = vmul.f32 %v4567_v56, %v10894_v9  ;;  %v4799_v43 = vunpack.c.l.b16 %v4767_v46  ;;  %v10900_v46 = vld [vmem:[#allocation28_spill] sm:$0xff] }
 0x745   :  { %v4768_v49 = vpack.c.bf16 %v4734_v61, %v4734_v61 }
 0x746   :  { %v4736_v38 = vsel %vm331_vm10, %v4599_v17, 0.0  ;;  %v4813_v15 = vsel %vm10896_vm13, %v4799_v43, %v4812_v52  ;;  %v5584_v52 = vld [vmem:[#allocation13 + $0x8] sm:$0xff] }
 0x747   :  { %v4737_v7 = vadd.f32 %v4736_v38, %v4735_v20  ;;  %v4800_v31 = vunpack.c.l.b16 %v4768_v49 }
 0x749   :  { %v4738_v54 = vrot.slane %v4737_v7, 4  ;;  %v4814_v5 = vsel %vm10897_vm9, %v4800_v31, %v4813_v15 }
 0x74b   :  { %v4739_v32 = vadd.f32 %v4738_v54, %v4737_v7  ;;  %v5582_v7 = vld [vmem:[#allocation10 + $0x8] sm:$0xff] }
 0x74c   :  { %4991 = vmatpush.bf16.msra.mxu2 %v5582_v7 }
 0x74d   :  { %v4740_v58 = vrot.slane %v4739_v32, 2 }
 0x74f   :  { %v4741_v23 = vadd.f32 %v4740_v58, %v4739_v32  ;;  %v10899_v58 = vld [vmem:[#allocation27_spill] sm:$0xff] }
 0x750   :  { %4992 = vmatpush.bf16.msra.mxu2 %v5581_v41 }
 0x751   :  { %v4742_v19 = vrot.slane %v4741_v23, 1 }
 0x753   :  { %v4743_v13 = vadd.f32 %v4742_v19, %v4741_v23  ;;  %v5653_v19 = vld [vmem:[#allocation11] ss:$0 sm:$0xff] }
 0x755   :  { %v4769_v27 = vpack.c.bf16 %v4743_v13, %v4743_v13 }
 0x757   :  { %v4801_v62 = vunpack.c.l.b16 %v4769_v27 }
 0x759   :  { %v4815_v42 = vsel %vm10898_vm15, %v4801_v62, %v4814_v5  ;;  %v5583_v5 = vld [vmem:[#allocation13] sm:$0xff] }
 0x75a   :  { %v4816_v44 = vpack.c.b16 %v4815_v42, %v10168_v45  ;;  %v5579_v45 = vld [vmem:[#allocation8 + $0x10] sm:$0xff] }
 0x75b   :  { %4952 = vmatpush.bf16.msra.mxu1 %v5579_v45 }
 0x75c   :  { %5492 = vmatmul.msk.bf16.vlgmr.msrb.gmra.mxu1 %vm331_vm10, %v4816_v44 }
 0x75f   :  { %5069 = vmatpush.bf16.msrb.mxu1 %v5584_v52 }
 0x763   :  { %5070 = vmatpush.bf16.msrb.mxu1 %v5583_v5 }
 0x7d9   :  { %v4841_v10 = vpop.f32.mrf.mxu1 }
 0x7da   :  { %v4868_v0 = vadd.f32 %v4867_v24, %v4841_v10 }
 0x7dc   :  { %v4877_v34 = vadd.f32 %v5651_v4, %v4868_v0 }
 0x7de   :  { %v5503_v25 = vmul.f32 -1.442695, %v4877_v34 }
 0x7e0   :  { %6185 = vpow2.f32 %v5503_v25 }
 0x7e1   :  { %v4843_v37 = vpop.f32.mrf.mxu1 }
 0x7e2   :  { %v4870_v51 = vadd.f32 %v4869_v55, %v4843_v37 }
 0x7e4   :  { %v4878_v1 = vadd.f32 %v5651_v4, %v4870_v51 }
 0x7e6   :  { %v6186_v47 = vpop.eup %6185  ;;  %v5504_v6 = vmul.f32 -1.442695, %v4878_v1 }
 0x7e7   :  { %v4885_v30 = vadd.f32 1.0, %v6186_v47 }
 0x7e8   :  { %6187 = vpow2.f32 %v5504_v6 }
 0x7e9   :  { %6189 = vrcp.f32 %v4885_v30  ;;  %v4898_v63 = vand.u32 2147483648, %v4885_v30  ;;  %vm4892_vm12 = vweird.f32 %v4885_v30  ;;  %v4896_v50 = vand.u32 2147483647, %v4885_v30 }
 0x7eb   :  { %v4899_v56 = vor.u32 1.1754944e-38, %v4898_v63  ;;  %vm4897_vm1 = vcmp.eq.f32.partialorder %v4896_v50, 8.507059e+37  ;;  %v5654_v50 = vld [vmem:[#allocation14] ss:$0 sm:$0xff] }
 0x7ee   :  { %v6188_v14 = vpop.eup %6187 }
 0x7ef   :  { %v6190_v60 = vpop.eup %6189  ;;  %v4886_v8 = vadd.f32 1.0, %v6188_v14 }
 0x7f0   :  { %v4888_v40 = vmul.f32 %v6190_v60, %v4885_v30  ;;  %vm4893_vm11 = vweird.f32 %v6190_v60 }
 0x7f1   :  { %6191 = vrcp.f32 %v4886_v8  ;;  %vm4894_vm5 = vmor %vm4892_vm12, %vm4893_vm11  ;;  %v4913_v16 = vand.u32 2147483648, %v4886_v8  ;;  %v4911_v18 = vand.u32 2147483647, %v4886_v8  ;;  %vm4907_vm3 = vweird.f32 %v4886_v8 }
 0x7f2   :  { %v4889_v48 = vsub.f32 1.0, %v4888_v40  ;;  %vm5078_vm12 = vcmask 130048  }
 0x7f3   :  { %v4914_v9 = vor.u32 1.1754944e-38, %v4913_v16  ;;  %vm4912_vm4 = vcmp.eq.f32.partialorder %v4911_v18, 8.507059e+37  ;;  %v5586_v18 = vld [vmem:[%s10406_s23 + $0x8] sm:$0xff] }
 0x7f4   :  { %v4890_v36 = vmul.f32 %v6190_v60, %v4889_v48 }
 0x7f6   :  { %v4891_v39 = vadd.f32 %v6190_v60, %v4890_v36 }
 0x7f7   :  { %v6192_v3 = vpop.eup %6191 }
 0x7f8   :  { %v4903_v28 = vmul.f32 %v6192_v3, %v4886_v8  ;;  %v4895_v21 = vsel %vm4894_vm5, %v6190_v60, %v4891_v39  ;;  %vm4908_vm2 = vweird.f32 %v6192_v3 }
 0x7f9   :  { %v4900_v11 = vsel %vm4897_vm1, %v4899_v56, %v4895_v21  ;;  %vm4909_vm7 = vmor %vm4907_vm3, %vm4908_vm2  ;;  %v5585_v56 = vld [vmem:[%s10406_s23] sm:$0xff]  ;;  %s6503_s23 = smov [#allocation19]  }
 0x7fa   :  { %v4904_v22 = vsub.f32 1.0, %v4903_v28  ;;  %v4917_v20 = vmul.f32 %v4900_v11, %v4877_v34 }
 0x7fc   :  { %v4905_v59 = vmul.f32 %v6192_v3, %v4904_v22 }
 0x7fe   :  { %v4906_v57 = vadd.f32 %v6192_v3, %v4905_v59  ;;  %v5077_v59 = vld [vmem:[%s10901_s30] sm:$0x3] }
 0x800   :  { %v4910_v17 = vsel %vm4909_vm7, %v6192_v3, %v4906_v57  ;;  %vm5196_vm7 = vcmask 17408  }
 0x801   :  { %v4915_v35 = vsel %vm4912_vm4, %v4914_v9, %v4910_v17  ;;  %v5655_v9 = vld [vmem:[#allocation16] ss:$0 sm:$0xff] }
 0x802   :  { %v4918_v38 = vmul.f32 %v4915_v35, %v4878_v1 }
 0x804   :  { %v4926_v53 = vpack.c.bf16 %v4918_v38, %v4917_v20  ;;  %v5588_v20 = vld [vmem:[%s10408_s25 + $0x8] sm:$0xff] }
 0x806   :  { %5514 = vmatmul.msk.bf16.vlgmr.msra.gmra.mxu1 %vm331_vm10, %v4926_v53  ;;  %v5587_v53 = vld [vmem:[%s10408_s25] sm:$0xff]  ;;  %s5203_s25 = sshll.u32 %s6503_s23, 4  ;;  %s5204_s25 = int_to_ptr.vmem [resolvable:$true] %s5203_s25 }
 0x807   :  { %5189 = vmatpush.bf16.msra.mxu1 %v5588_v20 }
 0x80b   :  { %5190 = vmatpush.bf16.msra.mxu1 %v5587_v53 }
 0x883   :  { %v4954_v54 = vpop.f32.mrf.mxu1 }
 0x884   :  { %v4955_v12 = vadd.f32 %v5652_v29, %v4954_v54 }
 0x886   :  { %v4959_v26 = vadd.f32 %v4955_v12, %v10899_v58 }
 0x88b   :  { %v4956_v32 = vpop.f32.mrf.mxu1 }
 0x88c   :  { %v4957_v61 = vadd.f32 %v5652_v29, %v4956_v32 }
 0x88e   :  { %v4960_v23 = vadd.f32 %v4957_v61, %v10900_v46 }
 0x890   :  { %v4966_v49 = vpack.c.bf16 %v4960_v23, %v4959_v26 }
 0x892   :  { %5523 = vmatmul.msk.bf16.vlgmr.msra.gmra.mxu2 %vm331_vm10, %v4966_v49 }
 0x915   :  { %v4994_v2 = vpop.f32.mrf.mxu2 }
 0x916   :  { %v4995_v43 = vadd.f32 %v5653_v19, %v4994_v2 }
 0x918   :  { %v5524_v13 = vmul.f32 -1.442695, %v4995_v43 }
 0x91a   :  { %6193 = vpow2.f32 %v5524_v13  ;;  %v5656_v13 = vld [vmem:[#allocation17] ss:$0 sm:$0xff] }
 0x91d   :  { %v4996_v31 = vpop.f32.mrf.mxu2 }
 0x91e   :  { %v4997_v27 = vadd.f32 %v5653_v19, %v4996_v31 }
 0x920   :  { %v6194_v62 = vpop.eup %6193  ;;  %v5525_v15 = vmul.f32 -1.442695, %v4997_v27 }
 0x921   :  { %v5005_v42 = vadd.f32 1.0, %v6194_v62 }
 0x922   :  { %6195 = vpow2.f32 %v5525_v15 }
 0x923   :  { %6197 = vrcp.f32 %v5005_v42  ;;  %v5018_v51 = vand.u32 2147483648, %v5005_v42  ;;  %vm5012_vm14 = vweird.f32 %v5005_v42  ;;  %v5016_v1 = vand.u32 2147483647, %v5005_v42 }
 0x925   :  { %v5019_v14 = vor.u32 1.1754944e-38, %v5018_v51  ;;  %vm5017_vm13 = vcmp.eq.f32.partialorder %v5016_v1, 8.507059e+37 }
 0x928   :  { %v6196_v44 = vpop.eup %6195 }
 0x929   :  { %v6198_v24 = vpop.eup %6197  ;;  %v5006_v4 = vadd.f32 1.0, %v6196_v44 }
 0x92a   :  { %v5008_v10 = vmul.f32 %v6198_v24, %v5005_v42  ;;  %vm5013_vm0 = vweird.f32 %v6198_v24 }
 0x92b   :  { %6199 = vrcp.f32 %v5006_v4  ;;  %vm5014_vm6 = vmor %vm5012_vm14, %vm5013_vm0  ;;  %v5033_v47 = vand.u32 2147483648, %v5006_v4  ;;  %v5031_v30 = vand.u32 2147483647, %v5006_v4  ;;  %vm5027_vm9 = vweird.f32 %v5006_v4 }
 0x92c   :  { %v5009_v0 = vsub.f32 1.0, %v5008_v10 }
 0x92d   :  { %v5034_v40 = vor.u32 1.1754944e-38, %v5033_v47  ;;  %vm5032_vm11 = vcmp.eq.f32.partialorder %v5031_v30, 8.507059e+37 }
 0x92e   :  { %v5010_v34 = vmul.f32 %v6198_v24, %v5009_v0 }
 0x930   :  { %v5011_v55 = vadd.f32 %v6198_v24, %v5010_v34 }
 0x931   :  { %v6200_v25 = vpop.eup %6199 }
 0x932   :  { %v5023_v37 = vmul.f32 %v6200_v25, %v5006_v4  ;;  %v5015_v6 = vsel %vm5014_vm6, %v6198_v24, %v5011_v55  ;;  %vm5028_vm8 = vweird.f32 %v6200_v25 }
 0x933   :  { %v5020_v8 = vsel %vm5017_vm13, %v5019_v14, %v5015_v6  ;;  %vm5029_vm15 = vmor %vm5027_vm9, %vm5028_vm8 }
 0x934   :  { %v5024_v33 = vsub.f32 1.0, %v5023_v37  ;;  %v5037_v3 = vmul.f32 %v5020_v8, %v4995_v43 }
 0x936   :  { %v5025_v45 = vmul.f32 %v6200_v25, %v5024_v33 }
 0x938   :  { %v5026_v60 = vadd.f32 %v6200_v25, %v5025_v45 }
 0x93a   :  { %v5030_v48 = vsel %vm5029_vm15, %v6200_v25, %v5026_v60 }
 0x93b   :  { %v5035_v36 = vsel %vm5032_vm11, %v5034_v40, %v5030_v48 }
 0x93c   :  { %v5038_v39 = vmul.f32 %v5035_v36, %v4997_v27 }
 0x93e   :  { %v5044_v28 = vpack.c.bf16 %v5038_v39, %v5037_v3 }
 0x940   :  { %5534 = vmatmul.msk.bf16.vlgmr.msrb.gmra.mxu1 %vm331_vm10, %v5044_v28 }
 0x9bd   :  { %v5072_v63 = vpop.f32.mrf.mxu1 }
 0x9be   :  { %v5073_v21 = vadd.f32 %v5654_v50, %v5072_v63 }
 0x9c5   :  { %v5074_v22 = vpop.f32.mrf.mxu1 }
 0x9c6   :  { %v5075_v16 = vadd.f32 %v5654_v50, %v5074_v22 }
 0x9c8   :  { %5096 = vmatpush.msrb.mxu2 %v5075_v16 }
 0x9ca   :  { %5097 = vmatpush.msrb.mxu2 %v5073_v21 }
 0x9cb   :  { %5535 = vmatmul.msk.f32.vlgmr.msrb.gmra.mxu2 %vm5078_vm12, %v5077_v59 }
 0x9cc   :  { %5132 = vmatpush.bf16.msra.mxu2 %v5586_v18 }
 0x9d0   :  { %5133 = vmatpush.bf16.msra.mxu2 %v5585_v56 }
 0xa4e   :  { %v5099_v57 = vpop.f32.mrf.mxu2 }
 0xa4f   :  { %v5107_v11 = vpack.c.bf16 %v5099_v57, %v5099_v57 }
 0xa51   :  { %5544 = vmatmul.msk.bf16.vlgmr.msra.gmra.mxu2 %vm331_vm10, %v5107_v11 }
 0xad4   :  { %v5135_v17 = vpop.f32.mrf.mxu2 }
 0xad5   :  { %v5136_v35 = vadd.f32 %v5655_v9, %v5135_v17 }
 0xad7   :  { %v5545_v38 = vmul.f32 -1.442695, %v5136_v35 }
 0xad9   :  { %6201 = vpow2.f32 %v5545_v38 }
 0xadc   :  { %v5137_v7 = vpop.f32.mrf.mxu2 }
 0xadf   :  { %v6202_v41 = vpop.eup %6201 }
 0xae0   :  { %v5142_v54 = vadd.f32 1.0, %v6202_v41 }
 0xae2   :  { %6203 = vrcp.f32 %v5142_v54  ;;  %v5154_v61 = vand.u32 2147483648, %v5142_v54  ;;  %v5152_v26 = vand.u32 2147483647, %v5142_v54  ;;  %vm5148_vm2 = vweird.f32 %v5142_v54 }
 0xae4   :  { %v5155_v23 = vor.u32 1.1754944e-38, %v5154_v61  ;;  %vm5153_vm3 = vcmp.eq.f32.partialorder %v5152_v26, 8.507059e+37 }
 0xae8   :  { %v6204_v29 = vpop.eup %6203 }
 0xae9   :  { %v5144_v12 = vmul.f32 %v6204_v29, %v5142_v54  ;;  %vm5149_vm5 = vweird.f32 %v6204_v29 }
 0xaea   :  { %vm5150_vm1 = vmor %vm5148_vm2, %vm5149_vm5 }
 0xaeb   :  { %v5145_v32 = vsub.f32 1.0, %v5144_v12 }
 0xaed   :  { %v5146_v58 = vmul.f32 %v6204_v29, %v5145_v32 }
 0xaef   :  { %v5147_v46 = vadd.f32 %v6204_v29, %v5146_v58 }
 0xaf1   :  { %v5151_v49 = vsel %vm5150_vm1, %v6204_v29, %v5147_v46 }
 0xaf2   :  { %v5156_v19 = vsel %vm5153_vm3, %v5155_v23, %v5151_v49 }
 0xaf3   :  { %v5158_v2 = vmul.f32 %v5156_v19, %v5136_v35 }
 0xaf5   :  { %v5164_v43 = vpack.c.bf16 %v5158_v2, %v5158_v2 }
 0xaf7   :  { %5554 = vmatmul.msk.bf16.vlgmr.msra.gmra.mxu1 %vm331_vm10, %v5164_v43 }
 0xb74   :  { %v5192_v31 = vpop.f32.mrf.mxu1 }
 0xb75   :  { %v5193_v27 = vadd.f32 %v5656_v13, %v5192_v31 }
 0xb77   :  { %5197 = vst.msk [vmem:[#allocation19] sm:$0x3] %vm5196_vm7, %v5193_v27 }
 0xb78   :  { %5208 = dma.vmem_to_hbm [thread:$0]  %s5204_s25, 32, %s5206_s26, [#allocation4]  }
 0xb7c   :  { %v5194_v52 = vpop.f32.mrf.mxu1 }
 0xb7d   :  { %6489 = dma.done.wait [#allocation4], 32  }
 0xb7e   :  { %6490 = vsyncadd [#allocation4], 4294967264 }
 0xb7f   :  { %5213 = vsyncpa [#allocation3], 1 }
 0xb80   :  { %5214 = vsyncpa [#allocation6], 1 }
 0xb81   :  { %5215 = vsyncpa [#allocation9], 1 }
 0xb82   :  { %5216 = vsyncpa [#allocation12], 1 }
 0xb83   :  { %5217 = vsyncpa [#allocation15], 1 }
 0xb84   :  { %5218 = vsyncpa [#allocation18], 1 }
 0xb85   :  { %5219 = vsyncpa [#allocation4], 1 }

</bundles_post_ra>
